<compile_context>
chip_gen: v5e
topology: v5e:2x2
jax: 0.10.0
libtpu: 0.0.40
codegen_flags: <defaults>
</compile_context>

<pallas_src>
import functools
import math

import jax
import jax.numpy as jnp
from jax import lax
from jax.experimental import pallas as pl
from jax.experimental.pallas import tpu as pltpu


# ------------------------------ fused kernel --------------------------------

def _fused_attention_kernel(x_ref, wqkv_ref, wout_ref, b_ref, o_ref, *,
                            heads, dim_head, scale):
    # x_ref:    (1, N, C)        input, channels-last per batch
    # wqkv_ref: (C, 3*hidden)    pre-transposed Conv2d(dim, 3*hidden, 1) weight
    # wout_ref: (C_out, hidden)  Conv2d(hidden, dim, 1) weight (native layout)
    # b_ref:    (C_out, 1)       output-proj bias (column for lane broadcast)
    # o_ref:    (1, C_out, N)    output, channels-first (N lane-dense)
    hidden = heads * dim_head

    x = x_ref[0]                      # (N, C) f32
    w_qkv_t = wqkv_ref[...]           # (C, 3*hidden) f32
    w_out = wout_ref[...]             # (C_out, hidden) f32

    # --- 1x1-conv QKV projection: (N, C) @ (C, 3*hidden) -> (N, 3*hidden) ---
    qkv = jnp.dot(x, w_qkv_t, preferred_element_type=jnp.float32)

    out_cn = None
    for h in range(heads):            # heads=4, static unrolled loop
        lo = h * dim_head
        q = qkv[:, lo:lo + dim_head] * scale                       # (N, D) f32
        k = qkv[:, hidden + lo:hidden + lo + dim_head]             # (N, D) f32
        v = qkv[:, 2 * hidden + lo:2 * hidden + lo + dim_head]     # (N, D) f32

        q_bf = q.astype(jnp.bfloat16)
        k_bf = k.astype(jnp.bfloat16)
        v_bf = v.astype(jnp.bfloat16)

        # sim[i, j] = sum_d q[i, d] * k[j, d]   (contract last dims; no relayout)
        sim = lax.dot_general(q_bf, k_bf, (((1,), (1,)), ((), ())),
                              preferred_element_type=jnp.float32)  # (N, N) f32

        # softmax stats in f32 (amax subtraction as in the reference module)
        m = jnp.max(sim, axis=-1, keepdims=True)
        p = jnp.exp(sim - m)                                       # (N, N) f32
        l = jnp.sum(p, axis=-1, keepdims=True)                     # (N, 1) f32

        # PV matmul (standard form), normalize AFTER with EUP reciprocal
        o_h = jnp.dot(p.astype(jnp.bfloat16), v_bf,
                      preferred_element_type=jnp.float32)          # (N, D) f32
        o_h = o_h * pl.reciprocal(l, approx=True)

        # fused per-head slice of the 1x1-conv output projection:
        #   contrib[c, n] = sum_d w_out[c, h*D + d] * o_h[n, d]
        w_h = w_out[:, lo:lo + dim_head]                           # (C_out, D)
        contrib = lax.dot_general(w_h, o_h, (((1,), (1,)), ((), ())),
                                  preferred_element_type=jnp.float32)  # (C_out, N)
        out_cn = contrib if out_cn is None else out_cn + contrib

    o_ref[0] = out_cn + b_ref[...]    # (C_out, N) + (C_out, 1) broadcast


# ------------------------------ wrapper ------------------------------------

def attention_forward(x_nchw, params, heads=4, dim_head=32):
    w_qkv = params["w_qkv"]       # (3*hidden, dim)  -- Conv2d(dim, 3*hidden, 1, bias=False)
    w_out = params["w_out"]       # (dim, hidden)    -- Conv2d(hidden, dim, 1)
    b_out = params["b_out"]       # (dim,)
    b, c, h, w = x_nchw.shape
    n = h * w
    hidden = heads * dim_head
    scale = dim_head ** (-0.5)

    # NCHW -> (B, N, C) channels-last (one tiny layout transpose outside the kernel)
    x_nc = x_nchw.reshape(b, c, n).transpose(0, 2, 1)
    w_qkv_t = jnp.transpose(w_qkv)          # (C, 3*hidden): no in-kernel weight transpose
    b_col = b_out.reshape(c, 1)

    out_cn = pl.pallas_call(
        functools.partial(_fused_attention_kernel,
                          heads=heads, dim_head=dim_head, scale=scale),
        out_shape=jax.ShapeDtypeStruct((b, c, n), jnp.float32),
        grid=(b,),
        in_specs=[
            pl.BlockSpec((1, n, c), lambda i: (i, 0, 0)),            # x per batch
            pl.BlockSpec((c, 3 * hidden), lambda i: (0, 0)),          # w_qkv^T (resident)
            pl.BlockSpec((c, hidden), lambda i: (0, 0)),              # w_out   (resident)
            pl.BlockSpec((c, 1), lambda i: (0, 0)),                   # bias    (resident)
        ],
        out_specs=pl.BlockSpec((1, c, n), lambda i: (i, 0, 0)),       # lane-dense (N last)
        compiler_params=pltpu.CompilerParams(
            dimension_semantics=("parallel",)),                       # megacore on v7x
    )(x_nc, w_qkv_t, w_out, b_col)

    # (B, C, N) -> NCHW is a pure reshape (no transpose)
    return out_cn.reshape(b, c, h, w)


# ------------------------------ pure-JAX reference --------------------------

def attention_reference(x, params, heads=4, dim_head=32):
    b, c, h, w = x.shape
    hidden = heads * dim_head
    scale = dim_head ** (-0.5)
    qkv = jnp.einsum("bchw,oc->bohw", x, params["w_qkv"])
    q, k, v = jnp.split(qkv, 3, axis=1)
    rearr = lambda t: t.reshape(b, heads, dim_head, h * w)
    q, k, v = map(rearr, (q, k, v))
    q = q * scale
    sim = jnp.einsum("bhdi,bhdj->bhij", q, k)
    sim = sim - jnp.max(sim, axis=-1, keepdims=True)
    attn = jax.nn.softmax(sim, axis=-1)
    out = jnp.einsum("bhij,bhdj->bhid", attn, v)
    out = out.transpose(0, 1, 3, 2).reshape(b, hidden, h, w)
    return (jnp.einsum("bchw,oc->bohw", out, params["w_out"])
            + params["b_out"][None, :, None, None])


# ------------------------------ main ----------------------------------------

if __name__ == "__main__":
    B, DIM, H, W = 2, 4, 16, 16
    HEADS, DIM_HEAD = 4, 32
    HIDDEN = HEADS * DIM_HEAD

    key = jax.random.PRNGKey(0)
    kx, kq, ko, kb = jax.random.split(key, 4)

    x = jax.random.normal(kx, (B, DIM, H, W), dtype=jnp.float32)
    params = {
        # Conv2d(dim, 3*hidden, 1, bias=False).weight squeezed to (3*hidden, dim)
        "w_qkv": jax.random.normal(kq, (3 * HIDDEN, DIM), jnp.float32) / math.sqrt(DIM),
        # Conv2d(hidden, dim, 1).weight squeezed to (dim, hidden) + bias (dim,)
        "w_out": jax.random.normal(ko, (DIM, HIDDEN), jnp.float32) / math.sqrt(HIDDEN),
        "b_out": jax.random.normal(kb, (DIM,), jnp.float32) * 0.01,
    }

    out = attention_forward(x, params, heads=HEADS, dim_head=DIM_HEAD)
    out = jax.block_until_ready(out)

    ref = attention_reference(x, params, heads=HEADS, dim_head=DIM_HEAD)
    assert out.shape == (B, DIM, H, W), out.shape
    # tolerance accounts for bf16 MXU inputs (f32 accumulation / f32 softmax stats)
    # and the approximate EUP reciprocal; observed error is well below this bound.
    assert jnp.allclose(out, ref, atol=2e-2, rtol=2e-2), float(jnp.abs(out - ref).max())

    print("KERNEL_OK")
</pallas_src>

<mosaic_0001>
module attributes {stable_mosaic.version = 11 : i64} {
  func.func @_fused_attention_kernel(%arg0: i32, %arg1: memref<1x256x4xf32, #tpu.memory_space<vmem>>, %arg2: memref<4x384xf32, #tpu.memory_space<vmem>>, %arg3: memref<4x128xf32, #tpu.memory_space<vmem>>, %arg4: memref<4x1xf32, #tpu.memory_space<vmem>>, %arg5: memref<1x4x256xf32, #tpu.memory_space<vmem>>) attributes {dimension_semantics = [#tpu.dimension_semantics<parallel>], iteration_bounds = array<i64: 2>, scalar_prefetch = 0 : i64, scratch_operands = 0 : i64, tpu.core_type = #tpu.core_type<tc>, window_params = [{transform_indices = @transform_0, window_bounds = array<i64: 1, 256, 4>}, {pipeline_mode = #tpu.pipeline_mode<synchronous>, transform_indices = @transform_1, window_bounds = array<i64: 4, 384>}, {pipeline_mode = #tpu.pipeline_mode<synchronous>, transform_indices = @transform_2, window_bounds = array<i64: 4, 128>}, {pipeline_mode = #tpu.pipeline_mode<synchronous>, transform_indices = @transform_3, window_bounds = array<i64: 4, 1>}, {transform_indices = @transform_4, window_bounds = array<i64: 1, 4, 256>}]} {
    %c0 = arith.constant 0 : index
    %c0_0 = arith.constant 0 : index
    %c0_1 = arith.constant 0 : index
    %0 = vector.load %arg1[%c0, %c0_0, %c0_1] : memref<1x256x4xf32, #tpu.memory_space<vmem>>, vector<1x256x4xf32>
    %1 = vector.shape_cast %0 : vector<1x256x4xf32> to vector<256x4xf32>
    %c0_2 = arith.constant 0 : index
    %c0_3 = arith.constant 0 : index
    %2 = vector.load %arg2[%c0_2, %c0_3] : memref<4x384xf32, #tpu.memory_space<vmem>>, vector<4x384xf32>
    %c0_4 = arith.constant 0 : index
    %c0_5 = arith.constant 0 : index
    %3 = vector.load %arg3[%c0_4, %c0_5] : memref<4x128xf32, #tpu.memory_space<vmem>>, vector<4x128xf32>
    %cst = arith.constant dense<0.000000e+00> : vector<256x384xf32>
    %4 = tpu.matmul %1, %2, %cst {dimension_numbers = #tpu.dot_dimension_numbers<[1], [0], [0], [1], [0, 0, 1, 1], [], []>} : vector<256x4xf32>, vector<4x384xf32>, vector<256x384xf32> -> vector<256x384xf32>
    %5 = vector.extract_strided_slice %4 {offsets = [0, 0], sizes = [256, 32], strides = [1, 1]} : vector<256x384xf32> to vector<256x32xf32>
    %cst_6 = arith.constant 0.176776692 : f32
    %6 = vector.broadcast %cst_6 : f32 to vector<256x32xf32>
    %7 = arith.mulf %5, %6 : vector<256x32xf32>
    %8 = vector.extract_strided_slice %4 {offsets = [0, 128], sizes = [256, 32], strides = [1, 1]} : vector<256x384xf32> to vector<256x32xf32>
    %9 = vector.extract_strided_slice %4 {offsets = [0, 256], sizes = [256, 32], strides = [1, 1]} : vector<256x384xf32> to vector<256x32xf32>
    %10 = arith.truncf %7 : vector<256x32xf32> to vector<256x32xbf16>
    %11 = arith.truncf %8 : vector<256x32xf32> to vector<256x32xbf16>
    %12 = arith.truncf %9 : vector<256x32xf32> to vector<256x32xbf16>
    %cst_7 = arith.constant dense<0.000000e+00> : vector<256x256xf32>
    %13 = tpu.matmul %10, %11, %cst_7 {dimension_numbers = #tpu.dot_dimension_numbers<[1], [1], [0], [0], [0, 0, 1, 0], [], []>} : vector<256x32xbf16>, vector<256x32xbf16>, vector<256x256xf32> -> vector<256x256xf32>
    %cst_8 = arith.constant dense<0xFF800000> : vector<256xf32>
    %14 = vector.multi_reduction <maximumf>, %13, %cst_8 [1] : vector<256x256xf32> to vector<256xf32>
    %15 = vector.shape_cast %14 : vector<256xf32> to vector<256x1xf32>
    %16 = vector.broadcast %15 : vector<256x1xf32> to vector<256x256xf32>
    %17 = arith.subf %13, %16 : vector<256x256xf32>
    %18 = math.exp %17 : vector<256x256xf32>
    %cst_9 = arith.constant dense<0.000000e+00> : vector<256xf32>
    %19 = vector.multi_reduction <add>, %18, %cst_9 [1] : vector<256x256xf32> to vector<256xf32>
    %20 = vector.shape_cast %19 : vector<256xf32> to vector<256x1xf32>
    %21 = arith.truncf %18 : vector<256x256xf32> to vector<256x256xbf16>
    %cst_10 = arith.constant dense<0.000000e+00> : vector<256x32xf32>
    %22 = tpu.matmul %21, %12, %cst_10 {dimension_numbers = #tpu.dot_dimension_numbers<[1], [0], [0], [1], [0, 0, 1, 1], [], []>} : vector<256x256xbf16>, vector<256x32xbf16>, vector<256x32xf32> -> vector<256x32xf32>
    %23 = tpu.reciprocal %20 {approx = true} : vector<256x1xf32> -> vector<256x1xf32>
    %24 = vector.broadcast %23 : vector<256x1xf32> to vector<256x32xf32>
    %25 = arith.mulf %22, %24 : vector<256x32xf32>
    %26 = vector.extract_strided_slice %3 {offsets = [0, 0], sizes = [4, 32], strides = [1, 1]} : vector<4x128xf32> to vector<4x32xf32>
    %cst_11 = arith.constant dense<0.000000e+00> : vector<4x256xf32>
    %27 = tpu.matmul %26, %25, %cst_11 {dimension_numbers = #tpu.dot_dimension_numbers<[1], [1], [0], [0], [0, 0, 1, 0], [], []>} : vector<4x32xf32>, vector<256x32xf32>, vector<4x256xf32> -> vector<4x256xf32>
    %28 = vector.extract_strided_slice %4 {offsets = [0, 32], sizes = [256, 32], strides = [1, 1]} : vector<256x384xf32> to vector<256x32xf32>
    %cst_12 = arith.constant 0.176776692 : f32
    %29 = vector.broadcast %cst_12 : f32 to vector<256x32xf32>
    %30 = arith.mulf %28, %29 : vector<256x32xf32>
    %31 = vector.extract_strided_slice %4 {offsets = [0, 160], sizes = [256, 32], strides = [1, 1]} : vector<256x384xf32> to vector<256x32xf32>
    %32 = vector.extract_strided_slice %4 {offsets = [0, 288], sizes = [256, 32], strides = [1, 1]} : vector<256x384xf32> to vector<256x32xf32>
    %33 = arith.truncf %30 : vector<256x32xf32> to vector<256x32xbf16>
    %34 = arith.truncf %31 : vector<256x32xf32> to vector<256x32xbf16>
    %35 = arith.truncf %32 : vector<256x32xf32> to vector<256x32xbf16>
    %cst_13 = arith.constant dense<0.000000e+00> : vector<256x256xf32>
    %36 = tpu.matmul %33, %34, %cst_13 {dimension_numbers = #tpu.dot_dimension_numbers<[1], [1], [0], [0], [0, 0, 1, 0], [], []>} : vector<256x32xbf16>, vector<256x32xbf16>, vector<256x256xf32> -> vector<256x256xf32>
    %cst_14 = arith.constant dense<0xFF800000> : vector<256xf32>
    %37 = vector.multi_reduction <maximumf>, %36, %cst_14 [1] : vector<256x256xf32> to vector<256xf32>
    %38 = vector.shape_cast %37 : vector<256xf32> to vector<256x1xf32>
    %39 = vector.broadcast %38 : vector<256x1xf32> to vector<256x256xf32>
    %40 = arith.subf %36, %39 : vector<256x256xf32>
    %41 = math.exp %40 : vector<256x256xf32>
    %cst_15 = arith.constant dense<0.000000e+00> : vector<256xf32>
    %42 = vector.multi_reduction <add>, %41, %cst_15 [1] : vector<256x256xf32> to vector<256xf32>
    %43 = vector.shape_cast %42 : vector<256xf32> to vector<256x1xf32>
    %44 = arith.truncf %41 : vector<256x256xf32> to vector<256x256xbf16>
    %cst_16 = arith.constant dense<0.000000e+00> : vector<256x32xf32>
    %45 = tpu.matmul %44, %35, %cst_16 {dimension_numbers = #tpu.dot_dimension_numbers<[1], [0], [0], [1], [0, 0, 1, 1], [], []>} : vector<256x256xbf16>, vector<256x32xbf16>, vector<256x32xf32> -> vector<256x32xf32>
    %46 = tpu.reciprocal %43 {approx = true} : vector<256x1xf32> -> vector<256x1xf32>
    %47 = vector.broadcast %46 : vector<256x1xf32> to vector<256x32xf32>
    %48 = arith.mulf %45, %47 : vector<256x32xf32>
    %49 = vector.extract_strided_slice %3 {offsets = [0, 32], sizes = [4, 32], strides = [1, 1]} : vector<4x128xf32> to vector<4x32xf32>
    %cst_17 = arith.constant dense<0.000000e+00> : vector<4x256xf32>
    %50 = tpu.matmul %49, %48, %cst_17 {dimension_numbers = #tpu.dot_dimension_numbers<[1], [1], [0], [0], [0, 0, 1, 0], [], []>} : vector<4x32xf32>, vector<256x32xf32>, vector<4x256xf32> -> vector<4x256xf32>
    %51 = arith.addf %27, %50 : vector<4x256xf32>
    %52 = vector.extract_strided_slice %4 {offsets = [0, 64], sizes = [256, 32], strides = [1, 1]} : vector<256x384xf32> to vector<256x32xf32>
    %cst_18 = arith.constant 0.176776692 : f32
    %53 = vector.broadcast %cst_18 : f32 to vector<256x32xf32>
    %54 = arith.mulf %52, %53 : vector<256x32xf32>
    %55 = vector.extract_strided_slice %4 {offsets = [0, 192], sizes = [256, 32], strides = [1, 1]} : vector<256x384xf32> to vector<256x32xf32>
    %56 = vector.extract_strided_slice %4 {offsets = [0, 320], sizes = [256, 32], strides = [1, 1]} : vector<256x384xf32> to vector<256x32xf32>
    %57 = arith.truncf %54 : vector<256x32xf32> to vector<256x32xbf16>
    %58 = arith.truncf %55 : vector<256x32xf32> to vector<256x32xbf16>
    %59 = arith.truncf %56 : vector<256x32xf32> to vector<256x32xbf16>
    %cst_19 = arith.constant dense<0.000000e+00> : vector<256x256xf32>
    %60 = tpu.matmul %57, %58, %cst_19 {dimension_numbers = #tpu.dot_dimension_numbers<[1], [1], [0], [0], [0, 0, 1, 0], [], []>} : vector<256x32xbf16>, vector<256x32xbf16>, vector<256x256xf32> -> vector<256x256xf32>
    %cst_20 = arith.constant dense<0xFF800000> : vector<256xf32>
    %61 = vector.multi_reduction <maximumf>, %60, %cst_20 [1] : vector<256x256xf32> to vector<256xf32>
    %62 = vector.shape_cast %61 : vector<256xf32> to vector<256x1xf32>
    %63 = vector.broadcast %62 : vector<256x1xf32> to vector<256x256xf32>
    %64 = arith.subf %60, %63 : vector<256x256xf32>
    %65 = math.exp %64 : vector<256x256xf32>
    %cst_21 = arith.constant dense<0.000000e+00> : vector<256xf32>
    %66 = vector.multi_reduction <add>, %65, %cst_21 [1] : vector<256x256xf32> to vector<256xf32>
    %67 = vector.shape_cast %66 : vector<256xf32> to vector<256x1xf32>
    %68 = arith.truncf %65 : vector<256x256xf32> to vector<256x256xbf16>
    %cst_22 = arith.constant dense<0.000000e+00> : vector<256x32xf32>
    %69 = tpu.matmul %68, %59, %cst_22 {dimension_numbers = #tpu.dot_dimension_numbers<[1], [0], [0], [1], [0, 0, 1, 1], [], []>} : vector<256x256xbf16>, vector<256x32xbf16>, vector<256x32xf32> -> vector<256x32xf32>
    %70 = tpu.reciprocal %67 {approx = true} : vector<256x1xf32> -> vector<256x1xf32>
    %71 = vector.broadcast %70 : vector<256x1xf32> to vector<256x32xf32>
    %72 = arith.mulf %69, %71 : vector<256x32xf32>
    %73 = vector.extract_strided_slice %3 {offsets = [0, 64], sizes = [4, 32], strides = [1, 1]} : vector<4x128xf32> to vector<4x32xf32>
    %cst_23 = arith.constant dense<0.000000e+00> : vector<4x256xf32>
    %74 = tpu.matmul %73, %72, %cst_23 {dimension_numbers = #tpu.dot_dimension_numbers<[1], [1], [0], [0], [0, 0, 1, 0], [], []>} : vector<4x32xf32>, vector<256x32xf32>, vector<4x256xf32> -> vector<4x256xf32>
    %75 = arith.addf %51, %74 : vector<4x256xf32>
    %76 = vector.extract_strided_slice %4 {offsets = [0, 96], sizes = [256, 32], strides = [1, 1]} : vector<256x384xf32> to vector<256x32xf32>
    %cst_24 = arith.constant 0.176776692 : f32
    %77 = vector.broadcast %cst_24 : f32 to vector<256x32xf32>
    %78 = arith.mulf %76, %77 : vector<256x32xf32>
    %79 = vector.extract_strided_slice %4 {offsets = [0, 224], sizes = [256, 32], strides = [1, 1]} : vector<256x384xf32> to vector<256x32xf32>
    %80 = vector.extract_strided_slice %4 {offsets = [0, 352], sizes = [256, 32], strides = [1, 1]} : vector<256x384xf32> to vector<256x32xf32>
    %81 = arith.truncf %78 : vector<256x32xf32> to vector<256x32xbf16>
    %82 = arith.truncf %79 : vector<256x32xf32> to vector<256x32xbf16>
    %83 = arith.truncf %80 : vector<256x32xf32> to vector<256x32xbf16>
    %cst_25 = arith.constant dense<0.000000e+00> : vector<256x256xf32>
    %84 = tpu.matmul %81, %82, %cst_25 {dimension_numbers = #tpu.dot_dimension_numbers<[1], [1], [0], [0], [0, 0, 1, 0], [], []>} : vector<256x32xbf16>, vector<256x32xbf16>, vector<256x256xf32> -> vector<256x256xf32>
    %cst_26 = arith.constant dense<0xFF800000> : vector<256xf32>
    %85 = vector.multi_reduction <maximumf>, %84, %cst_26 [1] : vector<256x256xf32> to vector<256xf32>
    %86 = vector.shape_cast %85 : vector<256xf32> to vector<256x1xf32>
    %87 = vector.broadcast %86 : vector<256x1xf32> to vector<256x256xf32>
    %88 = arith.subf %84, %87 : vector<256x256xf32>
    %89 = math.exp %88 : vector<256x256xf32>
    %cst_27 = arith.constant dense<0.000000e+00> : vector<256xf32>
    %90 = vector.multi_reduction <add>, %89, %cst_27 [1] : vector<256x256xf32> to vector<256xf32>
    %91 = vector.shape_cast %90 : vector<256xf32> to vector<256x1xf32>
    %92 = arith.truncf %89 : vector<256x256xf32> to vector<256x256xbf16>
    %cst_28 = arith.constant dense<0.000000e+00> : vector<256x32xf32>
    %93 = tpu.matmul %92, %83, %cst_28 {dimension_numbers = #tpu.dot_dimension_numbers<[1], [0], [0], [1], [0, 0, 1, 1], [], []>} : vector<256x256xbf16>, vector<256x32xbf16>, vector<256x32xf32> -> vector<256x32xf32>
    %94 = tpu.reciprocal %91 {approx = true} : vector<256x1xf32> -> vector<256x1xf32>
    %95 = vector.broadcast %94 : vector<256x1xf32> to vector<256x32xf32>
    %96 = arith.mulf %93, %95 : vector<256x32xf32>
    %97 = vector.extract_strided_slice %3 {offsets = [0, 96], sizes = [4, 32], strides = [1, 1]} : vector<4x128xf32> to vector<4x32xf32>
    %cst_29 = arith.constant dense<0.000000e+00> : vector<4x256xf32>
    %98 = tpu.matmul %97, %96, %cst_29 {dimension_numbers = #tpu.dot_dimension_numbers<[1], [1], [0], [0], [0, 0, 1, 0], [], []>} : vector<4x32xf32>, vector<256x32xf32>, vector<4x256xf32> -> vector<4x256xf32>
    %99 = arith.addf %75, %98 : vector<4x256xf32>
    %c0_30 = arith.constant 0 : index
    %c0_31 = arith.constant 0 : index
    %100 = vector.load %arg4[%c0_30, %c0_31] : memref<4x1xf32, #tpu.memory_space<vmem>>, vector<4x1xf32>
    %101 = vector.broadcast %100 : vector<4x1xf32> to vector<4x256xf32>
    %102 = arith.addf %99, %101 : vector<4x256xf32>
    %c0_32 = arith.constant 0 : index
    %c0_33 = arith.constant 0 : index
    %c0_34 = arith.constant 0 : index
    %103 = vector.load %arg5[%c0_32, %c0_33, %c0_34] : memref<1x4x256xf32, #tpu.memory_space<vmem>>, vector<1x4x256xf32>
    %104 = vector.shape_cast %103 : vector<1x4x256xf32> to vector<4x256xf32>
    %105 = vector.shape_cast %102 : vector<4x256xf32> to vector<1x4x256xf32>
    tpu.vector_store %arg5[%c0_32, %c0_33, %c0_34], %105 {strides = array<i32>} : memref<1x4x256xf32, #tpu.memory_space<vmem>>, vector<1x4x256xf32>,
    return
  }
  func.func @transform_0(%arg0: i32) -> (i32, i32, i32) {
    %c0_i32 = arith.constant 0 : i32
    %c0_i32_0 = arith.constant 0 : i32
    %c0_i32_1 = arith.constant 0 : i32
    return %arg0, %c0_i32, %c0_i32_0 : i32, i32, i32
  }
  func.func @transform_1(%arg0: i32) -> (i32, i32) {
    %c0_i32 = arith.constant 0 : i32
    %c0_i32_0 = arith.constant 0 : i32
    %c0_i32_1 = arith.constant 0 : i32
    return %c0_i32, %c0_i32_0 : i32, i32
  }
  func.func @transform_2(%arg0: i32) -> (i32, i32) {
    %c0_i32 = arith.constant 0 : i32
    %c0_i32_0 = arith.constant 0 : i32
    %c0_i32_1 = arith.constant 0 : i32
    return %c0_i32, %c0_i32_0 : i32, i32
  }
  func.func @transform_3(%arg0: i32) -> (i32, i32) {
    %c0_i32 = arith.constant 0 : i32
    %c0_i32_0 = arith.constant 0 : i32
    %c0_i32_1 = arith.constant 0 : i32
    return %c0_i32, %c0_i32_0 : i32, i32
  }
  func.func @transform_4(%arg0: i32) -> (i32, i32, i32) {
    %c0_i32 = arith.constant 0 : i32
    %c0_i32_0 = arith.constant 0 : i32
    %c0_i32_1 = arith.constant 0 : i32
    return %arg0, %c0_i32, %c0_i32_0 : i32, i32, i32
  }
}

</mosaic_0001>

<bundles_post_ra>
// kernel: tpu_custom_call.1
= control target key start
LH: loop header
LB: loop body
LE: loop exit
PB: predicated region body
PF: predicated region fallthrough
CT: control target
= control target key end

     0   :  { %9 = vsyncpa [#allocation3], 0  ;;  %s10503_s0 = inlined_call_operand.vmem [shape: f32[2,256,4], index: 0, kind: input, shape index: {}]   ;;  %s10504_s1 = inlined_call_operand.vmem [shape: f32[4,384], index: 1, kind: input, shape index: {}]   ;;  %s10505_s2 = inlined_call_operand.vmem [shape: f32[4,128], index: 2, kind: input, shape index: {}]   ;;  %s10506_s3 = inlined_call_operand.vmem [shape: f32[4,1], index: 3, kind: input, shape index: {}]   ;;  %s10507_s4 = inlined_call_operand.hbm [shape: f32[2,4,256], index: 4, kind: output, shape index: {}]  }
   0x1   :  { %11 = vsyncpa [#allocation3 + $0x1], 0  ;;  %s6814_s15 = smov 0   ;;  %s6816_s16 = smov 0  }
   0x2   :  { %s6818_s17 = smov 0   ;;  %s6820_s18 = smov 0  }
   0x3 LB: > { %s6835_s19 = sadd.s32 4294967295, %s6783_s18   ;;  %s5528_s20 = sadd.s32 4294967294, %s6783_s18   ;;  %s6783_s18 = sphi %s6820_s18, %s11129_s18   ;;  %s6779_s17 = sphi %s6818_s17, %s11128_s17   ;;  %s6775_s16 = sphi %s6816_s16, %s11127_s16   ;;  %s6771_s15 = sphi %s6814_s15, %s11126_s15  }
   0x4   : > { %s6839_s21 = sadd.s32 1, %s6783_s18   ;;  %s113_s22 = sadd.s32 1, %s6779_s17 }
   0x5   : > { %s110_s23 = ssub.s32 %s6783_s18, %s6839_s21  ;;  %p123_p0 = scmp.ne.s32.totalorder %s6779_s17, %s6775_s16 }
   0x6   : > { %p111_p1 = scmp.eq.s32.totalorder %s110_s23, 0  ;;  %p124_p2 = scmp.eq.s32.totalorder %s6835_s19, 1 }
   0x7   : > { %p129_p3 = scmp.ne.s32.totalorder %s6775_s16, %s6771_s15  ;;  %p130_p4 = scmp.eq.s32.totalorder %s5528_s20, 1 }
   0x8   : > { %s6850_s24 = scalar_select %p111_p1, %s6779_s17, %s113_s22  }
   0x9   : > { %p6852_p5 = por %p124_p2, %p123_p0  ;;  %p6856_p6 = por %p130_p4, %p129_p3 }
   0xa   : > { %p5531_p7 = scmp.ge.s32.totalorder %s6783_s18, 1  ;;  %p165_p8 = scmp.lt.s32.totalorder %s6783_s18, 3 }
   0xc   : > { %p166_p9 = pnand %p5531_p7, %p165_p8 }
   0xe   : > { %169 = sbr.rel (%p166_p9) target bundleno = 2947 (0xb83), region = 36 }
  0x13   : > { %v228_v0 = vld [vmem:[%s10504_s1] sm:$0xff]  ;;  %p191_p10 = scmp.lt.s32.totalorder %s6835_s19, 1  ;;  %v229_v1 = vld [vmem:[%s10504_s1 + $0x8] sm:$0xf]  ;;  %vm336_vm0 = vcmask 1043456   ;;  %vm239_vm1 = vcmask 31744  }
  0x14   : > { %233 = vst [vmem:[#allocation1] ss:$2 sm:$0xff] %v228_v0  ;;  %s6785_s10 = smov 64   ;;  %s6786_s11 = smov 96   ;;  %vm762_vm2 = vcmask 261120  }
  0x15   : > { %s192_s5 = scalar_select %p191_p10, %s6835_s19, 1  ;;  %235 = vst [vmem:[#allocation1 + $0x10] ss:$2 sm:$0xff] %v229_v1 }
  0x16   : > { %s6787_s14 = smov 32   ;;  %s5904_s8 = sshll.u32 %s6835_s19, 3 }
  0x17   : > { %s5903_s6 = sshll.u32 %s192_s5, 8  ;;  %s6741_s28 = scalar_lea.hbm %s10507_s4, 16 }
  0x18   : > { %s6873_s9 = scalar_lea.vmem %s10503_s0, %s5903_s6  ;;  %s188_s6 = sand.u32 1, %s6775_s16  }
  0x19   : > { %v196_v2 = vld [vmem:[%s6873_s9] sm:$0xff]  ;;  %v197_v6 = vld [vmem:[%s6873_s9 + $0x8] sm:$0xff]  ;;  %v198_v7 = vld [vmem:[%s6873_s9 + $0x10] sm:$0xff]  ;;  %s5532_s7 = sshll.u32 %s188_s6, 3  ;;  %s5453_s19 = scalar_lea.sflag [#allocation3], %s188_s6 }
  0x1a   : > { %v199_v8 = vld [vmem:[%s6873_s9 + $0x18] sm:$0xff]  ;;  %v200_v9 = vld [vmem:[%s6873_s9 + $0x20] sm:$0xff]  ;;  %v201_v10 = vld [vmem:[%s6873_s9 + $0x28] sm:$0xff]  ;;  %s190_s12 = scalar_lea.vmem [#allocation2], %s5532_s7 }
  0x1b   : > { %v236_v3 = vld.sshfl [vmem:[#allocation1] sm:$0xff pattern:$0x75316420]  ;;  %v237_v4 = vld.sshfl [vmem:[#allocation1 + $0x8] sm:$0xff pattern:$0x75316420] }
  0x1c   : > { %5535 = vmatpush.msk.msra.mxu0 %vm336_vm0, %v236_v3  ;;  %5568 = vmatpush.msk.msra.mxu1 %vm336_vm0, %v237_v4  ;;  %v238_v5 = vld.sshfl [vmem:[#allocation1 + $0x10] sm:$0xff pattern:$0x75316420]  ;;  %v203_v12 = vld [vmem:[%s6873_s9 + $0x38] sm:$0xff]  ;;  %v204_v13 = vld [vmem:[%s6873_s9 + $0x40] sm:$0xff]  ;;  %s5466_s13 = sshll.u32 %s190_s12, 4  ;;  %s5467_s13 = int_to_ptr.vmem [resolvable:$true] %s5466_s13 }
  0x1d   : > { %5536 = vmatmul.msk.f32.vlgmr.msra.gmra.mxu0 %vm239_vm1, %v196_v2  ;;  %5569 = vmatmul.msk.f32.vlgmr.msra.gmra.mxu1 %vm239_vm1, %v196_v2  ;;  %v202_v11 = vld [vmem:[%s6873_s9 + $0x30] sm:$0xff]  ;;  %v205_v14 = vld [vmem:[%s6873_s9 + $0x48] sm:$0xff]  ;;  %v207_v16 = vld [vmem:[%s6873_s9 + $0x58] sm:$0xff] }
  0x1e   : > { %5601 = vmatpush.msk.msra.mxu2 %vm336_vm0, %v238_v5  ;;  %v206_v15 = vld [vmem:[%s6873_s9 + $0x50] sm:$0xff]  ;;  %v208_v17 = vld [vmem:[%s6873_s9 + $0x60] sm:$0xff]  ;;  %v209_v18 = vld [vmem:[%s6873_s9 + $0x68] sm:$0xff] }
  0x1f   : > { %5602 = vmatmul.msk.f32.vlgmr.msra.gmra.mxu2 %vm239_vm1, %v196_v2  ;;  %v210_v19 = vld [vmem:[%s6873_s9 + $0x70] sm:$0xff]  ;;  %v211_v20 = vld [vmem:[%s6873_s9 + $0x78] sm:$0xff]  ;;  %v212_v23 = vld [vmem:[%s6873_s9 + $0x80] sm:$0xff] }
  0x20   : > { %v213_v26 = vld [vmem:[%s6873_s9 + $0x88] sm:$0xff]  ;;  %v214_v34 = vld [vmem:[%s6873_s9 + $0x90] sm:$0xff]  ;;  %v215_v40 = vld [vmem:[%s6873_s9 + $0x98] sm:$0xff] }
  0x21   : > { %v216_v46 = vld [vmem:[%s6873_s9 + $0xa0] sm:$0xff]  ;;  %v217_v52 = vld [vmem:[%s6873_s9 + $0xa8] sm:$0xff]  ;;  %v218_v59 = vld [vmem:[%s6873_s9 + $0xb0] sm:$0xff] }
  0x22   : > { %v219_v63 = vld [vmem:[%s6873_s9 + $0xb8] sm:$0xff] }
  0x25   : > { %5537 = vmatmul.msk.f32.gmra.mxu0 %vm239_vm1, %v197_v6  ;;  %5570 = vmatmul.msk.f32.gmra.mxu1 %vm239_vm1, %v197_v6 }
  0x27   : > { %5603 = vmatmul.msk.f32.gmra.mxu2 %vm239_vm1, %v197_v6 }
  0x2d   : > { %5538 = vmatmul.msk.f32.gmra.mxu0 %vm239_vm1, %v198_v7  ;;  %5571 = vmatmul.msk.f32.gmra.mxu1 %vm239_vm1, %v198_v7 }
  0x2f   : > { %5604 = vmatmul.msk.f32.gmra.mxu2 %vm239_vm1, %v198_v7  ;;  %v220_v7 = vld [vmem:[%s6873_s9 + $0xc0] sm:$0xff] }
  0x35   : > { %5539 = vmatmul.msk.f32.gmra.mxu0 %vm239_vm1, %v199_v8  ;;  %5572 = vmatmul.msk.f32.gmra.mxu1 %vm239_vm1, %v199_v8 }
  0x37   : > { %5605 = vmatmul.msk.f32.gmra.mxu2 %vm239_vm1, %v199_v8 }
  0x3d   : > { %5573 = vmatmul.msk.f32.gmra.mxu1 %vm239_vm1, %v200_v9  ;;  %5540 = vmatmul.msk.f32.gmra.mxu0 %vm239_vm1, %v200_v9 }
  0x3f   : > { %5606 = vmatmul.msk.f32.gmra.mxu2 %vm239_vm1, %v200_v9 }
  0x45   : > { %5574 = vmatmul.msk.f32.gmra.mxu1 %vm239_vm1, %v201_v10  ;;  %5541 = vmatmul.msk.f32.gmra.mxu0 %vm239_vm1, %v201_v10 }
  0x47   : > { %5607 = vmatmul.msk.f32.gmra.mxu2 %vm239_vm1, %v201_v10 }
  0x4d   : > { %5575 = vmatmul.msk.f32.gmra.mxu1 %vm239_vm1, %v202_v11  ;;  %5542 = vmatmul.msk.f32.gmra.mxu0 %vm239_vm1, %v202_v11 }
  0x4f   : > { %5608 = vmatmul.msk.f32.gmra.mxu2 %vm239_vm1, %v202_v11 }
  0x55   : > { %5576 = vmatmul.msk.f32.gmra.mxu1 %vm239_vm1, %v203_v12  ;;  %5543 = vmatmul.msk.f32.gmra.mxu0 %vm239_vm1, %v203_v12 }
  0x57   : > { %5609 = vmatmul.msk.f32.gmra.mxu2 %vm239_vm1, %v203_v12 }
  0x5d   : > { %5577 = vmatmul.msk.f32.gmra.mxu1 %vm239_vm1, %v204_v13  ;;  %5544 = vmatmul.msk.f32.gmra.mxu0 %vm239_vm1, %v204_v13 }
  0x5f   : > { %5610 = vmatmul.msk.f32.gmra.mxu2 %vm239_vm1, %v204_v13  ;;  %v221_v13 = vld [vmem:[%s6873_s9 + $0xc8] sm:$0xff] }
  0x65   : > { %5578 = vmatmul.msk.f32.gmra.mxu1 %vm239_vm1, %v205_v14  ;;  %5545 = vmatmul.msk.f32.gmra.mxu0 %vm239_vm1, %v205_v14 }
  0x67   : > { %5611 = vmatmul.msk.f32.gmra.mxu2 %vm239_vm1, %v205_v14 }
  0x6d   : > { %5579 = vmatmul.msk.f32.gmra.mxu1 %vm239_vm1, %v206_v15  ;;  %5546 = vmatmul.msk.f32.gmra.mxu0 %vm239_vm1, %v206_v15 }
  0x6f   : > { %5612 = vmatmul.msk.f32.gmra.mxu2 %vm239_vm1, %v206_v15 }
  0x75   : > { %5580 = vmatmul.msk.f32.gmra.mxu1 %vm239_vm1, %v207_v16  ;;  %5547 = vmatmul.msk.f32.gmra.mxu0 %vm239_vm1, %v207_v16 }
  0x77   : > { %5613 = vmatmul.msk.f32.gmra.mxu2 %vm239_vm1, %v207_v16 }
  0x7d   : > { %5581 = vmatmul.msk.f32.gmra.mxu1 %vm239_vm1, %v208_v17  ;;  %5548 = vmatmul.msk.f32.gmra.mxu0 %vm239_vm1, %v208_v17 }
  0x7f   : > { %5614 = vmatmul.msk.f32.gmra.mxu2 %vm239_vm1, %v208_v17 }
  0x85   : > { %5582 = vmatmul.msk.f32.gmra.mxu1 %vm239_vm1, %v209_v18  ;;  %5549 = vmatmul.msk.f32.gmra.mxu0 %vm239_vm1, %v209_v18 }
  0x87   : > { %5615 = vmatmul.msk.f32.gmra.mxu2 %vm239_vm1, %v209_v18 }
  0x8d   : > { %5583 = vmatmul.msk.f32.gmra.mxu1 %vm239_vm1, %v210_v19  ;;  %5550 = vmatmul.msk.f32.gmra.mxu0 %vm239_vm1, %v210_v19 }
  0x8f   : > { %5616 = vmatmul.msk.f32.gmra.mxu2 %vm239_vm1, %v210_v19 }
  0x95   : > { %5584 = vmatmul.msk.f32.gmra.mxu1 %vm239_vm1, %v211_v20  ;;  %5551 = vmatmul.msk.f32.gmra.mxu0 %vm239_vm1, %v211_v20 }
  0x97   : > { %5617 = vmatmul.msk.f32.gmra.mxu2 %vm239_vm1, %v211_v20 }
  0x9a   : > { %v360_v21 = vpop.f32.mrf.mxu0  ;;  %v473_v22 = vpop.f32.mrf.mxu1 }
  0x9b   : > { %v682_v29 = vmul.f32 0.17677669, %v360_v21  ;;  %v222_v21 = vld [vmem:[%s6873_s9 + $0xd0] sm:$0xff] }
  0x9d   : > { %5585 = vmatmul.msk.f32.gmra.mxu1 %vm239_vm1, %v212_v23  ;;  %5552 = vmatmul.msk.f32.gmra.mxu0 %vm239_vm1, %v212_v23 }
  0x9f   : > { %5618 = vmatmul.msk.f32.gmra.mxu2 %vm239_vm1, %v212_v23 }
  0xa2   : > { %v363_v24 = vpop.f32.mrf.mxu0  ;;  %v476_v25 = vpop.f32.mrf.mxu1 }
  0xa3   : > { %v6947_v27 = vpack.c.bf16 %v476_v25, %v473_v22  ;;  %v586_v28 = vpop.f32.mrf.mxu2  ;;  %v683_v30 = vmul.f32 0.17677669, %v363_v24 }
  0xa5   : > { %10648 = vst [vmem:[#allocation5_spill] sm:$0xff] %v6947_v27  ;;  %5586 = vmatmul.msk.f32.gmra.mxu1 %vm239_vm1, %v213_v26  ;;  %3098 = vrot.lane.b32.xlu0 %v6947_v27, %s6785_s10  ;;  %v6956_v31 = vpack.c.bf16 %v683_v30, %v682_v29 }
  0xa6   : > { %1759 = vrot.lane.b32.xlu1 %v6947_v27, %s6786_s11  ;;  %5553 = vmatmul.msk.f32.gmra.mxu0 %vm239_vm1, %v213_v26 }
  0xa7   : > { %5619 = vmatmul.msk.f32.gmra.mxu2 %vm239_vm1, %v213_v26  ;;  %10649 = vst [vmem:[#allocation6_spill] sm:$0xff] %v6956_v31 }
  0xaa   : > { %v366_v32 = vpop.f32.mrf.mxu0  ;;  %v479_v33 = vpop.f32.mrf.mxu1 }
  0xab   : > { %v589_v35 = vpop.f32.mrf.mxu2  ;;  %v684_v36 = vmul.f32 0.17677669, %v366_v32 }
  0xac   : > { %v6964_v37 = vpack.c.bf16 %v589_v35, %v586_v28  ;;  %v223_v28 = vld [vmem:[%s6873_s9 + $0xd8] sm:$0xff] }
  0xad   : > { %5587 = vmatmul.msk.f32.gmra.mxu1 %vm239_vm1, %v214_v34  ;;  %1711 = vrot.lane.b32.xlu0 %v6956_v31, %s6786_s11 }
  0xae   : > { %5554 = vmatmul.msk.f32.gmra.mxu0 %vm239_vm1, %v214_v34  ;;  %10650 = vst [vmem:[#allocation7_spill] sm:$0xff] %v6964_v37 }
  0xaf   : > { %5620 = vmatmul.msk.f32.gmra.mxu2 %vm239_vm1, %v214_v34 }
  0xb2   : > { %v369_v38 = vpop.f32.mrf.mxu0  ;;  %v482_v39 = vpop.f32.mrf.mxu1 }
  0xb3   : > { %v685_v41 = vmul.f32 0.17677669, %v369_v38  ;;  %v6967_v42 = vpack.c.bf16 %v482_v39, %v479_v33  ;;  %v592_v43 = vpop.f32.mrf.mxu2 }
  0xb5   : > { %10651 = vst [vmem:[#allocation8_spill] sm:$0xff] %v6967_v42  ;;  %v6969_v44 = vpack.c.bf16 %v685_v41, %v684_v36  ;;  %5588 = vmatmul.msk.f32.gmra.mxu1 %vm239_vm1, %v215_v40  ;;  %3100 = vrot.lane.b32.xlu1 %v6967_v42, %s6785_s10  ;;  %v224_v36 = vld [vmem:[%s6873_s9 + $0xe0] sm:$0xff] }
  0xb6   : > { %2497 = vrot.lane.b32.xlu0 %v6964_v37, %s6786_s11  ;;  %5555 = vmatmul.msk.f32.gmra.mxu0 %vm239_vm1, %v215_v40 }
  0xb7   : > { %10652 = vst [vmem:[#allocation9_spill] sm:$0xff] %v6969_v44  ;;  %5621 = vmatmul.msk.f32.gmra.mxu2 %vm239_vm1, %v215_v40  ;;  %1713 = vrot.lane.b32.xlu2 %v6969_v44, %s6786_s11 }
  0xba   : > { %v485_v45 = vpop.f32.mrf.mxu1  ;;  %v372_v47 = vpop.f32.mrf.mxu0 }
  0xbb   : > { %v595_v48 = vpop.f32.mrf.mxu2  ;;  %v686_v50 = vmul.f32 0.17677669, %v372_v47 }
  0xbc   : > { %v6981_v49 = vpack.c.bf16 %v595_v48, %v592_v43 }
  0xbd   : > { %5589 = vmatmul.msk.f32.gmra.mxu1 %vm239_vm1, %v216_v46 }
  0xbe   : > { %10653 = vst [vmem:[#allocation10_spill] sm:$0xff] %v6981_v49  ;;  %1761 = vrot.lane.b32.xlu0 %v6967_v42, %s6786_s11  ;;  %5556 = vmatmul.msk.f32.gmra.mxu0 %vm239_vm1, %v216_v46 }
  0xbf   : > { %5622 = vmatmul.msk.f32.gmra.mxu2 %vm239_vm1, %v216_v46  ;;  %2499 = vrot.lane.b32.xlu2 %v6981_v49, %s6786_s11 }
  0xc2   : > { %v488_v51 = vpop.f32.mrf.mxu1  ;;  %v375_v53 = vpop.f32.mrf.mxu0 }
  0xc3   : > { %v598_v54 = vpop.f32.mrf.mxu2  ;;  %v687_v55 = vmul.f32 0.17677669, %v375_v53  ;;  %v6991_v56 = vpack.c.bf16 %v488_v51, %v485_v45  ;;  %v225_v45 = vld [vmem:[%s6873_s9 + $0xe8] sm:$0xff]  ;;  %v226_v53 = vld [vmem:[%s6873_s9 + $0xf0] sm:$0xff] }
  0xc5   : > { %10654 = vst [vmem:[#allocation11_spill] sm:$0xff] %v6991_v56  ;;  %5590 = vmatmul.msk.f32.gmra.mxu1 %vm239_vm1, %v217_v52  ;;  %v6994_v57 = vpack.c.bf16 %v687_v55, %v686_v50 }
  0xc6   : > { %5557 = vmatmul.msk.f32.gmra.mxu0 %vm239_vm1, %v217_v52 }
  0xc7   : > { %10655 = vst [vmem:[#allocation12_spill] sm:$0xff] %v6994_v57  ;;  %5623 = vmatmul.msk.f32.gmra.mxu2 %vm239_vm1, %v217_v52  ;;  %1763 = vrot.lane.b32.xlu2 %v6991_v56, %s6786_s11 }
  0xc8   : > { %1715 = vrot.lane.b32.xlu1 %v6994_v57, %s6786_s11 }
  0xca   : > { %v491_v58 = vpop.f32.mrf.mxu1  ;;  %v378_v60 = vpop.f32.mrf.mxu0 }
  0xcb   : > { %v601_v61 = vpop.f32.mrf.mxu2  ;;  %v688_v4 = vmul.f32 0.17677669, %v378_v60  ;;  %v227_v60 = vld [vmem:[%s6873_s9 + $0xf8] sm:$0xff] }
  0xcc   : > { %v7009_v1 = vpack.c.bf16 %v601_v61, %v598_v54 }
  0xcd   : > { %5591 = vmatmul.msk.f32.gmra.mxu1 %vm239_vm1, %v218_v59 }
  0xce   : > { %5558 = vmatmul.msk.f32.gmra.mxu0 %vm239_vm1, %v218_v59  ;;  %10656 = vst [vmem:[#allocation13_spill] sm:$0xff] %v7009_v1 }
  0xcf   : > { %5624 = vmatmul.msk.f32.gmra.mxu2 %vm239_vm1, %v218_v59  ;;  %3102 = vrot.lane.b32.xlu2 %v6991_v56, %s6785_s10 }
  0xd2   : > { %v494_v62 = vpop.f32.mrf.mxu1  ;;  %v381_v0 = vpop.f32.mrf.mxu0 }
  0xd3   : > { %v7011_v2 = vpack.c.bf16 %v494_v62, %v491_v58  ;;  %v604_v3 = vpop.f32.mrf.mxu2  ;;  %v689_v5 = vmul.f32 0.17677669, %v381_v0 }
  0xd5   : > { %10657 = vst [vmem:[#allocation14_spill] sm:$0xff] %v7011_v2  ;;  %5592 = vmatmul.msk.f32.gmra.mxu1 %vm239_vm1, %v219_v63  ;;  %3104 = vrot.lane.b32.xlu0 %v7011_v2, %s6785_s10  ;;  %v7023_v9 = vpack.c.bf16 %v689_v5, %v688_v4 }
  0xd6   : > { %1765 = vrot.lane.b32.xlu1 %v7011_v2, %s6786_s11  ;;  %5559 = vmatmul.msk.f32.gmra.mxu0 %vm239_vm1, %v219_v63 }
  0xd7   : > { %5625 = vmatmul.msk.f32.gmra.mxu2 %vm239_vm1, %v219_v63  ;;  %2501 = vrot.lane.b32.xlu2 %v7009_v1, %s6786_s11  ;;  %10658 = vst [vmem:[#allocation15_spill] sm:$0xff] %v7023_v9 }
  0xda   : > { %v497_v6 = vpop.f32.mrf.mxu1  ;;  %v384_v8 = vpop.f32.mrf.mxu0 }
  0xdb   : > { %v607_v10 = vpop.f32.mrf.mxu2  ;;  %v690_v11 = vmul.f32 0.17677669, %v384_v8 }
  0xdc   : > { %v7031_v15 = vpack.c.bf16 %v607_v10, %v604_v3 }
  0xdd   : > { %5593 = vmatmul.msk.f32.gmra.mxu1 %vm239_vm1, %v220_v7 }
  0xde   : > { %5560 = vmatmul.msk.f32.gmra.mxu0 %vm239_vm1, %v220_v7  ;;  %10659 = vst [vmem:[#allocation16_spill] sm:$0xff] %v7031_v15 }
  0xdf   : > { %5626 = vmatmul.msk.f32.gmra.mxu2 %vm239_vm1, %v220_v7  ;;  %1717 = vrot.lane.b32.xlu2 %v7023_v9, %s6786_s11 }
  0xe2   : > { %v500_v12 = vpop.f32.mrf.mxu1  ;;  %v387_v14 = vpop.f32.mrf.mxu0 }
  0xe3   : > { %v7033_v16 = vpack.c.bf16 %v500_v12, %v497_v6  ;;  %v610_v17 = vpop.f32.mrf.mxu2  ;;  %v691_v18 = vmul.f32 0.17677669, %v387_v14 }
  0xe5   : > { %10660 = vst [vmem:[#allocation17_spill] sm:$0xff] %v7033_v16  ;;  %5594 = vmatmul.msk.f32.gmra.mxu1 %vm239_vm1, %v221_v13  ;;  %1767 = vrot.lane.b32.xlu1 %v7033_v16, %s6786_s11  ;;  %v7038_v19 = vpack.c.bf16 %v691_v18, %v690_v11 }
  0xe6   : > { %5561 = vmatmul.msk.f32.gmra.mxu0 %vm239_vm1, %v221_v13 }
  0xe7   : > { %10661 = vst [vmem:[#allocation18_spill] sm:$0xff] %v7038_v19  ;;  %5627 = vmatmul.msk.f32.gmra.mxu2 %vm239_vm1, %v221_v13  ;;  %2503 = vrot.lane.b32.xlu2 %v7031_v15, %s6786_s11 }
  0xe8   : > { %1719 = vrot.lane.b32.xlu0 %v7038_v19, %s6786_s11 }
  0xea   : > { %v503_v20 = vpop.f32.mrf.mxu1  ;;  %v390_v22 = vpop.f32.mrf.mxu0 }
  0xeb   : > { %v613_v23 = vpop.f32.mrf.mxu2  ;;  %v692_v25 = vmul.f32 0.17677669, %v390_v22 }
  0xec   : > { %v7047_v24 = vpack.c.bf16 %v613_v23, %v610_v17 }
  0xed   : > { %5595 = vmatmul.msk.f32.gmra.mxu1 %vm239_vm1, %v222_v21  ;;  %3106 = vrot.lane.b32.xlu1 %v7033_v16, %s6785_s10 }
  0xee   : > { %10662 = vst [vmem:[#allocation19_spill] sm:$0xff] %v7047_v24  ;;  %5562 = vmatmul.msk.f32.gmra.mxu0 %vm239_vm1, %v222_v21 }
  0xef   : > { %2505 = vrot.lane.b32.xlu2 %v7047_v24, %s6786_s11  ;;  %5628 = vmatmul.msk.f32.gmra.mxu2 %vm239_vm1, %v222_v21 }
  0xf2   : > { %v506_v26 = vpop.f32.mrf.mxu1  ;;  %v393_v29 = vpop.f32.mrf.mxu0 }
  0xf3   : > { %v7057_v30 = vpack.c.bf16 %v506_v26, %v503_v20  ;;  %v616_v32 = vpop.f32.mrf.mxu2  ;;  %v693_v33 = vmul.f32 0.17677669, %v393_v29 }
  0xf5   : > { %10663 = vst [vmem:[#allocation20_spill] sm:$0xff] %v7057_v30  ;;  %5596 = vmatmul.msk.f32.gmra.mxu1 %vm239_vm1, %v223_v28  ;;  %1769 = vrot.lane.b32.xlu0 %v7057_v30, %s6786_s11  ;;  %v7062_v34 = vpack.c.bf16 %v693_v33, %v692_v25  ;;  %v827_v22 = vsel %vm762_vm2, %v7057_v30, 0  ;;  %v824_v33 = vsel %vm762_vm2, %v7033_v16, 0 }
  0xf6   : > { %5563 = vmatmul.msk.f32.gmra.mxu0 %vm239_vm1, %v223_v28 }
  0xf7   : > { %10664 = vst [vmem:[#allocation21_spill] sm:$0xff] %v7062_v34  ;;  %3108 = vrot.lane.b32.xlu2 %v7057_v30, %s6785_s10  ;;  %1721 = vrot.lane.b32.xlu1 %v7062_v34, %s6786_s11 }
  0xf8   : > { %5629 = vmatmul.msk.f32.gmra.mxu2 %vm239_vm1, %v223_v28 }
  0xfa   : > { %v509_v35 = vpop.f32.mrf.mxu1  ;;  %v396_v38 = vpop.f32.mrf.mxu0 }
  0xfb   : > { %v619_v39 = vpop.f32.mrf.mxu2  ;;  %v694_v41 = vmul.f32 0.17677669, %v396_v38 }
  0xfc   : > { %v7071_v40 = vpack.c.bf16 %v619_v39, %v616_v32 }
  0xfd   : > { %5597 = vmatmul.msk.f32.gmra.mxu1 %vm239_vm1, %v224_v36 }
  0xfe   : > { %10665 = vst [vmem:[#allocation22_spill] sm:$0xff] %v7071_v40  ;;  %5564 = vmatmul.msk.f32.gmra.mxu0 %vm239_vm1, %v224_v36 }
  0xff   : > { %2507 = vrot.lane.b32.xlu2 %v7071_v40, %s6786_s11 }
 0x100   : > { %5630 = vmatmul.msk.f32.gmra.mxu2 %vm239_vm1, %v224_v36 }
 0x102   : > { %v512_v43 = vpop.f32.mrf.mxu1  ;;  %v399_v46 = vpop.f32.mrf.mxu0 }
 0x103   : > { %v7079_v47 = vpack.c.bf16 %v512_v43, %v509_v35  ;;  %v622_v48 = vpop.f32.mrf.mxu2  ;;  %v695_v50 = vmul.f32 0.17677669, %v399_v46  ;;  %v821_v43 = vsel %vm762_vm2, %v7011_v2, 0 }
 0x105   : > { %10666 = vst [vmem:[#allocation23_spill] sm:$0xff] %v7079_v47  ;;  %5598 = vmatmul.msk.f32.gmra.mxu1 %vm239_vm1, %v225_v45  ;;  %1771 = vrot.lane.b32.xlu0 %v7079_v47, %s6786_s11  ;;  %v7084_v51 = vpack.c.bf16 %v695_v50, %v694_v41  ;;  %v830_v12 = vsel %vm762_vm2, %v7079_v47, 0 }
 0x106   : > { %3110 = vrot.lane.b32.xlu1 %v7079_v47, %s6785_s10  ;;  %5565 = vmatmul.msk.f32.gmra.mxu0 %vm239_vm1, %v225_v45 }
 0x107   : > { %10667 = vst [vmem:[#allocation24_spill] sm:$0xff] %v7084_v51  ;;  %1723 = vrot.lane.b32.xlu2 %v7084_v51, %s6786_s11 }
 0x108   : > { %5631 = vmatmul.msk.f32.gmra.mxu2 %vm239_vm1, %v225_v45 }
 0x10a   : > { %v515_v52 = vpop.f32.mrf.mxu1  ;;  %v402_v54 = vpop.f32.mrf.mxu0 }
 0x10b   : > { %v625_v55 = vpop.f32.mrf.mxu2  ;;  %v696_v3 = vmul.f32 0.17677669, %v402_v54 }
 0x10c   : > { %v7093_v58 = vpack.c.bf16 %v625_v55, %v622_v48 }
 0x10d   : > { %5599 = vmatmul.msk.f32.gmra.mxu1 %vm239_vm1, %v226_v53 }
 0x10e   : > { %10668 = vst [vmem:[#allocation25_spill] sm:$0xff] %v7093_v58  ;;  %2509 = vrot.lane.b32.xlu0 %v7093_v58, %s6786_s11  ;;  %5566 = vmatmul.msk.f32.gmra.mxu0 %vm239_vm1, %v226_v53 }
 0x110   : > { %5632 = vmatmul.msk.f32.gmra.mxu2 %vm239_vm1, %v226_v53 }
 0x111   : > { %v7112_v5 = vpop.permute.xlu2 %1713 }
 0x112   : > { %v518_v59 = vpop.f32.mrf.mxu1  ;;  %v405_v61 = vpop.f32.mrf.mxu0  ;;  %10670 = vst [vmem:[#allocation27_spill] sm:$0xff] %v7112_v5 }
 0x113   : > { %v7101_v62 = vpack.c.bf16 %v518_v59, %v515_v52  ;;  %v628_v63 = vpop.f32.mrf.mxu2  ;;  %v697_v4 = vmul.f32 0.17677669, %v405_v61 }
 0x115   : > { %10669 = vst [vmem:[#allocation26_spill] sm:$0xff] %v7101_v62  ;;  %5600 = vmatmul.msk.f32.gmra.mxu1 %vm239_vm1, %v227_v60  ;;  %1773 = vrot.lane.b32.xlu1 %v7101_v62, %s6786_s11  ;;  %v833_v0 = vsel %vm762_vm2, %v7101_v62, 0  ;;  %v7114_v6 = vpack.c.bf16 %v697_v4, %v696_v3 }
 0x116   : > { %3112 = vrot.lane.b32.xlu0 %v7101_v62, %s6785_s10  ;;  %859 = vmatpush.bf16.xpose.msra.mxu3 %v833_v0 }
 0x117   : > { %5567 = vmatmul.msk.f32.gmra.mxu0 %vm239_vm1, %v227_v60  ;;  %10671 = vst [vmem:[#allocation28_spill] sm:$0xff] %v7114_v6  ;;  %v7158_v45 = vpop.permute.xlu0 %3098 }
 0x118   : > { %5633 = vmatmul.msk.f32.gmra.mxu2 %vm239_vm1, %v227_v60  ;;  %10677 = vst [vmem:[#allocation34_spill] sm:$0xff] %v7158_v45  ;;  %v818_v60 = vsel %vm762_vm2, %v6991_v56, 0  ;;  %v7176_v61 = vpop.permute.xlu1 %1759 }
 0x119   : > { %v7126_v20 = vpop.permute.xlu2 %2499 }
 0x11a   : > { %v521_v7 = vpop.f32.mrf.mxu1  ;;  %v408_v8 = vpop.f32.mrf.mxu0 }
 0x11b   : > { %v631_v10 = vpop.f32.mrf.mxu2  ;;  %v698_v21 = vmul.f32 0.17677669, %v408_v8 }
 0x11c   : > { %v7116_v11 = vpack.c.bf16 %v631_v10, %v628_v63  ;;  %v815_v10 = vsel %vm762_vm2, %v6967_v42, 0 }
 0x11e   : > { %10672 = vst [vmem:[#allocation29_spill] sm:$0xff] %v7116_v11  ;;  %860 = vmatpush.bf16.xpose.msra.mxu3 %v830_v12  ;;  %1725 = vrot.lane.b32.xlu0 %v7114_v6, %s6786_s11 }
 0x11f   : > { %1453 = vmatpush.bf16.msrb.mxu1 %v7116_v11  ;;  %v7178_v63 = vpop.permute.xlu0 %1711 }
 0x121   : > { %v7146_v35 = vpop.permute.xlu2 %1763 }
 0x122   : > { %v524_v13 = vpop.f32.mrf.mxu1 }
 0x123   : > { %v7123_v14 = vpack.c.bf16 %v524_v13, %v521_v7  ;;  %v634_v17 = vpop.f32.mrf.mxu2  ;;  %v411_v18 = vpop.f32.mrf.mxu0  ;;  %1454 = vmatpush.bf16.msrb.mxu1 %v7093_v58 }
 0x124   : > { %v699_v23 = vmul.f32 0.17677669, %v411_v18 }
 0x125   : > { %10673 = vst [vmem:[#allocation30_spill] sm:$0xff] %v7123_v14  ;;  %3114 = vrot.lane.b32.xlu1 %v7123_v14, %s6785_s10  ;;  %1775 = vrot.lane.b32.xlu2 %v7123_v14, %s6786_s11 }
 0x126   : > { %861 = vmatpush.bf16.xpose.msra.mxu3 %v827_v22  ;;  %2511 = vrot.lane.b32.xlu0 %v7116_v11, %s6786_s11  ;;  %v7137_v25 = vpack.c.bf16 %v699_v23, %v698_v21 }
 0x127   : > { %1455 = vmatpush.bf16.msrb.mxu1 %v7071_v40 }
 0x128   : > { %10674 = vst [vmem:[#allocation31_spill] sm:$0xff] %v7137_v25  ;;  %v7192_v18 = vpop.permute.xlu0 %2497 }
 0x129   : > { %v7163_v50 = vpop.permute.xlu2 %3102 }
 0x12a   : > { %v527_v26 = vpop.f32.mrf.mxu1 }
 0x12b   : > { %v637_v28 = vpop.f32.mrf.mxu2  ;;  %v414_v29 = vpop.f32.mrf.mxu0  ;;  %1456 = vmatpush.bf16.msrb.mxu1 %v7047_v24 }
 0x12c   : > { %v7140_v32 = vpack.c.bf16 %v637_v28, %v634_v17  ;;  %v700_v46 = vmul.f32 0.17677669, %v414_v29  ;;  %v7190_v17 = vpop.permute.xlu1 %3100  ;;  %v812_v29 = vsel %vm762_vm2, %v6947_v27, 0 }
 0x12d   : > { %1727 = vrot.lane.b32.xlu1 %v7137_v25, %s6786_s11 }
 0x12e   : > { %10675 = vst [vmem:[#allocation32_spill] sm:$0xff] %v7140_v32  ;;  %2513 = vrot.lane.b32.xlu2 %v7140_v32, %s6786_s11  ;;  %862 = vmatpush.bf16.xpose.msra.mxu3 %v824_v33 }
 0x12f   : > { %1457 = vmatpush.bf16.msrb.mxu1 %v7031_v15 }
 0x131   : > { %v7180_v0 = vpop.permute.xlu2 %2501 }
 0x132   : > { %v530_v36 = vpop.f32.mrf.mxu1 }
 0x133   : > { %v7151_v38 = vpack.c.bf16 %v530_v36, %v527_v26  ;;  %v640_v39 = vpop.f32.mrf.mxu2  ;;  %v417_v41 = vpop.f32.mrf.mxu0  ;;  %1458 = vmatpush.bf16.msrb.mxu1 %v7009_v1 }
 0x134   : > { %v701_v48 = vmul.f32 0.17677669, %v417_v41 }
 0x135   : > { %10676 = vst [vmem:[#allocation33_spill] sm:$0xff] %v7151_v38  ;;  %1777 = vrot.lane.b32.xlu1 %v7151_v38, %s6786_s11 }
 0x136   : > { %3116 = vrot.lane.b32.xlu2 %v7151_v38, %s6785_s10  ;;  %863 = vmatpush.bf16.xpose.msra.mxu3 %v821_v43  ;;  %v7165_v52 = vpack.c.bf16 %v701_v48, %v700_v46  ;;  %v7208_v48 = vpop.permute.xlu0 %1761 }
 0x137   : > { %1459 = vmatpush.bf16.msrb.mxu1 %v6981_v49 }
 0x138   : > { %10678 = vst [vmem:[#allocation35_spill] sm:$0xff] %v7165_v52 }
 0x139   : > { %v7196_v28 = vpop.permute.xlu2 %1717 }
 0x13a   : > { %v533_v53 = vpop.f32.mrf.mxu1  ;;  %10682 = vst [vmem:[#allocation39_spill] sm:$0xff] %v7196_v28  ;;  %v7202_v33 = vpop.permute.xlu1 %1715 }
 0x13b   : > { %v643_v54 = vpop.f32.mrf.mxu2  ;;  %v420_v55 = vpop.f32.mrf.mxu0  ;;  %1460 = vmatpush.bf16.msrb.mxu1 %v6964_v37  ;;  %10683 = vst [vmem:[#allocation40_spill] sm:$0xff] %v7202_v33 }
 0x13c   : > { %v7168_v59 = vpack.c.bf16 %v643_v54, %v640_v39  ;;  %v702_v12 = vmul.f32 0.17677669, %v420_v55 }
 0x13e   : > { %10679 = vst [vmem:[#allocation36_spill] sm:$0xff] %v7168_v59  ;;  %1729 = vrot.lane.b32.xlu2 %v7165_v52, %s6786_s11  ;;  %864 = vmatpush.bf16.xpose.msra.mxu3 %v818_v60 }
 0x13f   : > { %2515 = vrot.lane.b32.xlu1 %v7168_v59, %s6786_s11 }
 0x141   : > { %v7218_v55 = vpop.permute.xlu2 %2503 }
 0x142   : > { %v536_v3 = vpop.f32.mrf.mxu1 }
 0x143   : > { %v7182_v4 = vpack.c.bf16 %v536_v3, %v533_v53  ;;  %v646_v7 = vpop.f32.mrf.mxu2  ;;  %v423_v8 = vpop.f32.mrf.mxu0 }
 0x144   : > { %v703_v13 = vmul.f32 0.17677669, %v423_v8 }
 0x145   : > { %10680 = vst [vmem:[#allocation37_spill] sm:$0xff] %v7182_v4  ;;  %3118 = vrot.lane.b32.xlu0 %v7182_v4, %s6785_s10 }
 0x146   : > { %1779 = vrot.lane.b32.xlu2 %v7182_v4, %s6786_s11  ;;  %865 = vmatpush.bf16.xpose.msra.mxu3 %v815_v10  ;;  %v7194_v21 = vpack.c.bf16 %v703_v13, %v702_v12 }
 0x147   : > { %v7224_v12 = vpop.permute.xlu0 %3104 }
 0x148   : > { %10681 = vst [vmem:[#allocation38_spill] sm:$0xff] %v7194_v21  ;;  %v7222_v3 = vpop.permute.xlu1 %1765 }
 0x149   : > { %v7228_v13 = vpop.permute.xlu2 %2505 }
 0x14a   : > { %v539_v22 = vpop.f32.mrf.mxu1 }
 0x14b   : > { %v649_v23 = vpop.f32.mrf.mxu2  ;;  %v426_v26 = vpop.f32.mrf.mxu0 }
 0x14c   : > { %v7204_v36 = vpack.c.bf16 %v649_v23, %v646_v7  ;;  %v704_v53 = vmul.f32 0.17677669, %v426_v26 }
 0x14e   : > { %866 = vmatpush.bf16.xpose.msra.mxu3 %v812_v29  ;;  %1731 = vrot.lane.b32.xlu2 %v7194_v21, %s6786_s11  ;;  %10684 = vst [vmem:[#allocation41_spill] sm:$0xff] %v7204_v36 }
 0x151   : > { %v7246_v27 = vpop.permute.xlu2 %3108 }
 0x152   : > { %v542_v39 = vpop.f32.mrf.mxu1 }
 0x153   : > { %v7206_v41 = vpack.c.bf16 %v542_v39, %v539_v22  ;;  %v652_v43 = vpop.f32.mrf.mxu2  ;;  %v429_v46 = vpop.f32.mrf.mxu0 }
 0x154   : > { %v705_v54 = vmul.f32 0.17677669, %v429_v46 }
 0x155   : > { %10685 = vst [vmem:[#allocation42_spill] sm:$0xff] %v7206_v41  ;;  %5634 = vmatmul.msk.bf16.vlgmr.msra.gmra.mxu3 %vm762_vm2, %v6956_v31  ;;  %1781 = vrot.lane.b32.xlu0 %v7206_v41, %s6786_s11 }
 0x156   : > { %3120 = vrot.lane.b32.xlu1 %v7206_v41, %s6785_s10  ;;  %2517 = vrot.lane.b32.xlu2 %v7204_v36, %s6786_s11  ;;  %v7220_v60 = vpack.c.bf16 %v705_v54, %v704_v53 }
 0x157   : > { %v7230_v22 = vpop.permute.xlu1 %1767 }
 0x158   : > { %10686 = vst [vmem:[#allocation43_spill] sm:$0xff] %v7220_v60 }
 0x159   : > { %v7260_v30 = vpop.permute.xlu2 %2507 }
 0x15a   : > { %v545_v7 = vpop.f32.mrf.mxu1  ;;  %v7236_v53 = vpop.permute.xlu0 %1719 }
 0x15b   : > { %v655_v8 = vpop.f32.mrf.mxu2  ;;  %v432_v10 = vpop.f32.mrf.mxu0  ;;  %10689 = vst [vmem:[#allocation46_spill] sm:$0xff] %v7236_v53 }
 0x15c   : > { %v7232_v23 = vpack.c.bf16 %v655_v8, %v652_v43  ;;  %v706_v54 = vmul.f32 0.17677669, %v432_v10 }
 0x15d   : > { %1733 = vrot.lane.b32.xlu0 %v7220_v60, %s6786_s11 }
 0x15e   : > { %10687 = vst [vmem:[#allocation44_spill] sm:$0xff] %v7232_v23 }
 0x15f   : > { %v7250_v1 = vpop.permute.xlu1 %3106 }
 0x161   : > { %v7272_v37 = vpop.permute.xlu2 %1723 }
 0x162   : > { %v548_v26 = vpop.f32.mrf.mxu1  ;;  %10695 = vst [vmem:[#allocation52_spill] sm:$0xff] %v7272_v37 }
 0x163   : > { %v7234_v29 = vpack.c.bf16 %v548_v26, %v545_v7  ;;  %v658_v39 = vpop.f32.mrf.mxu2  ;;  %v435_v46 = vpop.f32.mrf.mxu0 }
 0x164   : > { %v707_v62 = vmul.f32 0.17677669, %v435_v46 }
 0x165   : > { %10688 = vst [vmem:[#allocation45_spill] sm:$0xff] %v7234_v29  ;;  %5635 = vmatmul.msk.bf16.gmra.mxu3 %vm762_vm2, %v6969_v44  ;;  %1783 = vrot.lane.b32.xlu2 %v7234_v29, %s6786_s11 }
 0x166   : > { %2519 = vrot.lane.b32.xlu0 %v7232_v23, %s6786_s11  ;;  %v7244_v43 = vpack.c.bf16 %v707_v62, %v706_v54 }
 0x167   : > { %v1770_v62 = vpop.permute.xlu0 %1769 }
 0x168   : > { %10690 = vst [vmem:[#allocation47_spill] sm:$0xff] %v7244_v43 }
 0x16a   : > { %v551_v8 = vpop.f32.mrf.mxu1 }
 0x16b   : > { %v661_v7 = vpop.f32.mrf.mxu2  ;;  %v438_v26 = vpop.f32.mrf.mxu0 }
 0x16c   : > { %v7248_v16 = vpack.c.bf16 %v661_v7, %v658_v39  ;;  %v7262_v39 = vpop.permute.xlu1 %1721  ;;  %v708_v42 = vmul.f32 0.17677669, %v438_v26 }
 0x16d   : > { %3122 = vrot.lane.b32.xlu2 %v7234_v29, %s6785_s10  ;;  %10693 = vst [vmem:[#allocation50_spill] sm:$0xff] %v7262_v39 }
 0x16e   : > { %10691 = vst [vmem:[#allocation48_spill] sm:$0xff] %v7248_v16  ;;  %2521 = vrot.lane.b32.xlu1 %v7248_v16, %s6786_s11  ;;  %1735 = vrot.lane.b32.xlu0 %v7244_v43, %s6786_s11 }
 0x172   : > { %v554_v10 = vpop.f32.mrf.mxu1 }
 0x173   : > { %v7258_v46 = vpack.c.bf16 %v554_v10, %v551_v8  ;;  %v441_v54 = vpop.f32.mrf.mxu0  ;;  %v664_v7 = vpop.f32.mrf.mxu2 }
 0x174   : > { %v709_v47 = vmul.f32 0.17677669, %v441_v54 }
 0x175   : > { %10692 = vst [vmem:[#allocation49_spill] sm:$0xff] %v7258_v46  ;;  %5636 = vmatmul.msk.bf16.gmra.mxu3 %vm762_vm2, %v6994_v57 }
 0x176   : > { %1785 = vrot.lane.b32.xlu1 %v7258_v46, %s6786_s11  ;;  %3124 = vrot.lane.b32.xlu0 %v7258_v46, %s6785_s10  ;;  %v7270_v8 = vpack.c.bf16 %v709_v47, %v708_v42 }
 0x177   : > { %v1772_v56 = vpop.permute.xlu0 %1771 }
 0x178   : > { %10694 = vst [vmem:[#allocation51_spill] sm:$0xff] %v7270_v8  ;;  %v7276_v49 = vpop.permute.xlu1 %3110 }
 0x17a   : > { %v557_v10 = vpop.f32.mrf.mxu1 }
 0x17b   : > { %v444_v2 = vpop.f32.mrf.mxu0  ;;  %v667_v26 = vpop.f32.mrf.mxu2 }
 0x17c   : > { %v7278_v24 = vpack.c.bf16 %v667_v26, %v664_v7  ;;  %v710_v11 = vmul.f32 0.17677669, %v444_v2 }
 0x17e   : > { %1737 = vrot.lane.b32.xlu0 %v7270_v8, %s6786_s11  ;;  %10696 = vst [vmem:[#allocation53_spill] sm:$0xff] %v7278_v24 }
 0x17f   : > { %v7291_v26 = vpop.permute.xlu2 %1775 }
 0x180   : > { %v2510_v15 = vpop.permute.xlu0 %2509 }
 0x182   : > { %v560_v40 = vpop.f32.mrf.mxu1 }
 0x183   : > { %v7280_v58 = vpack.c.bf16 %v560_v40, %v557_v10  ;;  %v447_v54 = vpop.f32.mrf.mxu0  ;;  %v670_v2 = vpop.f32.mrf.mxu2 }
 0x184   : > { %v711_v42 = vmul.f32 0.17677669, %v447_v54  ;;  %v1858_v54 = vsel %vm762_vm2, %v1772_v56, 0 }
 0x185   : > { %10697 = vst [vmem:[#allocation54_spill] sm:$0xff] %v7280_v58  ;;  %5637 = vmatmul.msk.bf16.gmra.mxu3 %vm762_vm2, %v7023_v9  ;;  %1787 = vrot.lane.b32.xlu2 %v7280_v58, %s6786_s11  ;;  %v854_v45 = vsel %vm762_vm2, %v7280_v58, 0 }
 0x186   : > { %2523 = vrot.lane.b32.xlu0 %v7278_v24, %s6786_s11  ;;  %v7293_v40 = vpack.c.bf16 %v711_v42, %v710_v11 }
 0x187   : > { %v1774_v47 = vpop.permute.xlu1 %1773 }
 0x188   : > { %v7288_v37 = vpop.permute.xlu0 %3112  ;;  %v1861_v7 = vsel %vm762_vm2, %v1774_v47, 0  ;;  %10698 = vst [vmem:[#allocation55_spill] sm:$0xff] %v7293_v40  ;;  %v7304_v11 = vpop.permute.xlu2 %2513 }
 0x189   : > { %1887 = vmatpush.bf16.xpose.msrb.mxu3 %v1861_v7  ;;  %v1855_v7 = vsel %vm762_vm2, %v1770_v62, 0 }
 0x18a   : > { %v563_v10 = vpop.f32.mrf.mxu1 }
 0x18b   : > { %v450_v53 = vpop.f32.mrf.mxu0  ;;  %v673_v47 = vpop.f32.mrf.mxu2 }
 0x18c   : > { %v7302_v33 = vpack.c.bf16 %v673_v47, %v670_v2 }
 0x18d   : > { %1739 = vrot.lane.b32.xlu2 %v7293_v40, %s6786_s11 }
 0x18e   : > { %3126 = vrot.lane.b32.xlu0 %v7280_v58, %s6785_s10  ;;  %10700 = vst [vmem:[#allocation57_spill] sm:$0xff] %v7302_v33  ;;  %2525 = vrot.lane.b32.xlu1 %v7302_v33, %s6786_s11 }
 0x190   : > { %v7300_v39 = vpop.permute.xlu0 %1725  ;;  %v7319_v5 = vpop.permute.xlu2 %3116 }
 0x191   : > { %10699 = vst [vmem:[#allocation56_spill] sm:$0xff] %v7300_v39  ;;  %1888 = vmatpush.bf16.xpose.msrb.mxu3 %v1858_v54  ;;  %v712_v54 = vmul.f32 0.17677669, %v450_v53  ;;  %v1852_v53 = vsel %vm762_vm2, %v7230_v22, 0  ;;  %v848_v22 = vsel %vm762_vm2, %v7234_v29, 0 }
 0x192   : > { %v566_v28 = vpop.f32.mrf.mxu1 }
 0x193   : > { %v7306_v42 = vpack.c.bf16 %v566_v28, %v563_v10  ;;  %v676_v10 = vpop.f32.mrf.mxu2 }
 0x194   : > { %v453_v28 = vpop.f32.mrf.mxu0 }
 0x195   : > { %10701 = vst [vmem:[#allocation58_spill] sm:$0xff] %v7306_v42  ;;  %5638 = vmatmul.msk.bf16.gmra.mxu3 %vm762_vm2, %v7038_v19  ;;  %1789 = vrot.lane.b32.xlu2 %v7306_v42, %s6786_s11  ;;  %v857_v56 = vsel %vm762_vm2, %v7306_v42, 0  ;;  %v713_v47 = vmul.f32 0.17677669, %v453_v28 }
 0x196   : > { %948 = vmatpush.bf16.xpose.msrb.mxu0 %v857_v56 }
 0x197   : > { %v7317_v39 = vpack.c.bf16 %v713_v47, %v712_v54  ;;  %v839_v54 = vsel %vm762_vm2, %v7151_v38, 0  ;;  %v836_v47 = vsel %vm762_vm2, %v7123_v14, 0 }
 0x198   : > { %v2512_v2 = vpop.permute.xlu0 %2511 }
 0x199   : > { %1889 = vmatpush.bf16.xpose.msrb.mxu3 %v1855_v7  ;;  %2545 = vmatpush.bf16.msra.mxu1 %v2512_v2  ;;  %10702 = vst [vmem:[#allocation59_spill] sm:$0xff] %v7317_v39  ;;  %v7377_v2 = vpop.permute.xlu1 %3114 }
 0x19a   : > { %1741 = vrot.lane.b32.xlu0 %v7317_v39, %s6786_s11 }
 0x19b   : > { %v679_v62 = vpop.f32.mrf.mxu2 }
 0x19c   : > { %v7330_v56 = vpack.c.bf16 %v679_v62, %v676_v10 }
 0x19d   : > { %3128 = vrot.lane.b32.xlu2 %v7306_v42, %s6785_s10  ;;  %2546 = vmatpush.bf16.msra.mxu1 %v2510_v15  ;;  %v851_v15 = vsel %vm762_vm2, %v7258_v46, 0 }
 0x19e   : > { %949 = vmatpush.bf16.xpose.msrb.mxu0 %v854_v45  ;;  %10703 = vst [vmem:[#allocation60_spill] sm:$0xff] %v7330_v56  ;;  %1542 = vmatpush.bf16.msrb.mxu2 %v7330_v56  ;;  %v7340_v45 = vpop.permute.xlu2 %1729 }
 0x1a1   : > { %1890 = vmatpush.bf16.xpose.msrb.mxu3 %v1852_v53  ;;  %2547 = vmatpush.bf16.msra.mxu1 %v7260_v30  ;;  %v1849_v30 = vsel %vm762_vm2, %v7222_v3, 0 }
 0x1a2   : > { %2527 = vrot.lane.b32.xlu0 %v7330_v56, %s6786_s11  ;;  %1543 = vmatpush.bf16.msrb.mxu2 %v7302_v33 }
 0x1a5   : > { %5639 = vmatmul.msk.bf16.gmra.mxu3 %vm762_vm2, %v7062_v34  ;;  %2548 = vmatpush.bf16.msra.mxu1 %v7228_v13  ;;  %v1846_v13 = vsel %vm762_vm2, %v7146_v35, 0  ;;  %v1843_v35 = vsel %vm762_vm2, %v7208_v48, 0 }
 0x1a6   : > { %950 = vmatpush.bf16.xpose.msrb.mxu0 %v851_v15  ;;  %1544 = vmatpush.bf16.msrb.mxu2 %v7278_v24  ;;  %v7353_v7 = vpop.permute.xlu2 %1779 }
 0x1a9   : > { %1891 = vmatpush.bf16.xpose.msrb.mxu3 %v1849_v30  ;;  %2549 = vmatpush.bf16.msra.mxu1 %v7218_v55  ;;  %v845_v55 = vsel %vm762_vm2, %v7206_v41, 0 }
 0x1aa   : > { %1545 = vmatpush.bf16.msrb.mxu2 %v7248_v16 }
 0x1ad   : > { %2550 = vmatpush.bf16.msra.mxu1 %v7180_v0 }
 0x1ae   : > { %951 = vmatpush.bf16.xpose.msrb.mxu0 %v848_v22  ;;  %1546 = vmatpush.bf16.msrb.mxu2 %v7232_v23  ;;  %v7365_v0 = vpop.permute.xlu2 %1731 }
 0x1b1   : > { %1892 = vmatpush.bf16.xpose.msrb.mxu3 %v1846_v13  ;;  %2551 = vmatpush.bf16.msra.mxu1 %v7126_v20  ;;  %v842_v20 = vsel %vm762_vm2, %v7182_v4, 0 }
 0x1b2   : > { %1547 = vmatpush.bf16.msrb.mxu2 %v7204_v36 }
 0x1b5   : > { %5640 = vmatmul.msk.bf16.gmra.mxu3 %vm762_vm2, %v7084_v51  ;;  %2552 = vmatpush.bf16.msra.mxu1 %v7192_v18  ;;  %v1840_v18 = vsel %vm762_vm2, %v7176_v61, 0  ;;  %v7385_v61 = vpop.permute.xlu1 %1727 }
 0x1b6   : > { %952 = vmatpush.bf16.xpose.msrb.mxu0 %v845_v55  ;;  %1548 = vmatpush.bf16.msrb.mxu2 %v7168_v59  ;;  %v7375_v48 = vpop.permute.xlu2 %2517  ;;  %10704 = vst [vmem:[#allocation61_spill] sm:$0xff] %v7385_v61 }
 0x1b7   : > { %v7370_v3 = vpop.permute.xlu0 %3118 }
 0x1b9   : > { %1893 = vmatpush.bf16.xpose.msrb.mxu3 %v1843_v35 }
 0x1ba   : > { %1549 = vmatpush.bf16.msrb.mxu2 %v7140_v32 }
 0x1bd   : > { %v1778_v22 = vpop.permute.xlu1 %1777 }
 0x1be   : > { %953 = vmatpush.bf16.xpose.msrb.mxu0 %v842_v20 }
 0x1bf   : > { %v1784_v10 = vpop.permute.xlu2 %1783 }
 0x1c1   : > { %1894 = vmatpush.bf16.xpose.msrb.mxu3 %v1840_v18 }
 0x1c5   : > { %5641 = vmatmul.msk.bf16.gmra.mxu3 %vm762_vm2, %v7114_v6  ;;  %v2516_v55 = vpop.permute.xlu1 %2515 }
 0x1c6   : > { %954 = vmatpush.bf16.xpose.msrb.mxu0 %v839_v54 }
 0x1c7   : > { %v1782_v28 = vpop.permute.xlu0 %1781  ;;  %v7393_v62 = vpop.permute.xlu2 %3122 }
 0x1ce   : > { %955 = vmatpush.bf16.xpose.msrb.mxu0 %v836_v47  ;;  %v7409_v47 = vpop.permute.xlu1 %3120 }
 0x1cf   : > { %v7387_v53 = vpop.permute.xlu0 %1733 }
 0x1d5   : > { %5642 = vmatmul.msk.bf16.gmra.mxu3 %vm762_vm2, %v7137_v25  ;;  %5650 = vmatmul.msk.bf16.vlgmr.msrb.gmra.mxu0 %vm762_vm2, %v6956_v31 }
 0x1d8   : > { %v2520_v15 = vpop.permute.xlu0 %2519  ;;  %v7395_v30 = vpop.f32.mrf.mxu3 }
 0x1df   : > { %v1788_v13 = vpop.permute.xlu2 %1787 }
 0x1e0   : > { %v7397_v35 = vpop.f32.mrf.mxu3  ;;  %v7399_v20 = vpop.permute.xlu0 %1735  ;;  %v1882_v59 = vsel %vm762_vm2, %v1788_v13, 0 }
 0x1e1   : > { %v2522_v29 = vpop.permute.xlu1 %2521 }
 0x1e5   : > { %5643 = vmatmul.msk.bf16.gmra.mxu3 %vm762_vm2, %v7165_v52  ;;  %5651 = vmatmul.msk.bf16.gmra.mxu0 %vm762_vm2, %v6969_v44 }
 0x1e7   : > { %v7405_v18 = vpop.permute.xlu2 %1739 }
 0x1e8   : > { %10705 = vst [vmem:[#allocation62_spill] sm:$0xff] %v7405_v18  ;;  %v7407_v54 = vpop.f32.mrf.mxu3  ;;  %v7411_v38 = vpop.permute.xlu0 %3124 }
 0x1e9   : > { %v1786_v14 = vpop.permute.xlu1 %1785 }
 0x1ef   : > { %v1790_v4 = vpop.permute.xlu2 %1789 }
 0x1f0   : > { %v1885_v41 = vsel %vm762_vm2, %v1790_v4, 0  ;;  %v7414_v58 = vpop.f32.mrf.mxu3  ;;  %v7420_v32 = vpop.permute.xlu0 %1737  ;;  %v1879_v4 = vsel %vm762_vm2, %v1786_v14, 0 }
 0x1f1   : > { %1976 = vmatpush.bf16.xpose.msra.mxu0 %v1885_v41  ;;  %10706 = vst [vmem:[#allocation63_spill] sm:$0xff] %v7420_v32  ;;  %v1876_v41 = vsel %vm762_vm2, %v1784_v10, 0  ;;  %v1870_v10 = vsel %vm762_vm2, %v7353_v7, 0  ;;  %v1864_v7 = vsel %vm762_vm2, %v7291_v26, 0  ;;  %v3191_v26 = vsel %vm762_vm2, %v7250_v1, 0 }
 0x1f5   : > { %5644 = vmatmul.msk.bf16.gmra.mxu3 %vm762_vm2, %v7194_v21  ;;  %5652 = vmatmul.msk.bf16.gmra.mxu0 %vm762_vm2, %v6994_v57 }
 0x1f8   : > { %v7423_v46 = vpop.f32.mrf.mxu3  ;;  %v2524_v42 = vpop.permute.xlu0 %2523 }
 0x1f9   : > { %1977 = vmatpush.bf16.xpose.msra.mxu0 %v1882_v59  ;;  %v1873_v59 = vsel %vm762_vm2, %v1782_v28, 0 }
 0x200   : > { %v7426_v36 = vpop.f32.mrf.mxu3  ;;  %v7435_v13 = vpop.permute.xlu0 %3126 }
 0x201   : > { %1978 = vmatpush.bf16.xpose.msra.mxu0 %v1879_v4  ;;  %v2526_v28 = vpop.permute.xlu1 %2525 }
 0x205   : > { %5645 = vmatmul.msk.bf16.gmra.mxu3 %vm762_vm2, %v7220_v60  ;;  %5653 = vmatmul.msk.bf16.gmra.mxu0 %vm762_vm2, %v7023_v9 }
 0x208   : > { %v7433_v23 = vpop.f32.mrf.mxu3 }
 0x209   : > { %1979 = vmatpush.bf16.xpose.msra.mxu0 %v1876_v41 }
 0x20c   : > { %v7440_v14 = vpop.permute.xlu0 %1741 }
 0x20d   : > { %10707 = vst [vmem:[#allocation64_spill] sm:$0xff] %v7440_v14 }
 0x210   : > { %v7438_v16 = vpop.f32.mrf.mxu3 }
 0x211   : > { %1980 = vmatpush.bf16.xpose.msra.mxu0 %v1873_v59  ;;  %v1867_v59 = vsel %vm762_vm2, %v1778_v22, 0  ;;  %v3197_v22 = vsel %vm762_vm2, %v7276_v49, 0 }
 0x214   : > { %v2528_v41 = vpop.permute.xlu0 %2527 }
 0x215   : > { %5646 = vmatmul.msk.bf16.gmra.mxu3 %vm762_vm2, %v7244_v43  ;;  %5654 = vmatmul.msk.bf16.gmra.mxu0 %vm762_vm2, %v7038_v19 }
 0x216   : > { %2634 = vmatpush.bf16.msra.mxu2 %v2528_v41 }
 0x218   : > { %v7448_v4 = vpop.f32.mrf.mxu3 }
 0x219   : > { %10708 = vst [vmem:[#allocation65_spill] sm:$0xff] %v7448_v4  ;;  %1981 = vmatpush.bf16.xpose.msra.mxu0 %v1870_v10  ;;  %v3200_v10 = vsel %vm762_vm2, %v7288_v37, 0 }
 0x21a   : > { %2635 = vmatpush.bf16.msra.mxu2 %v2526_v28 }
 0x21e   : > { %2636 = vmatpush.bf16.msra.mxu2 %v2524_v42 }
 0x220   : > { %v7451_v24 = vpop.f32.mrf.mxu3 }
 0x221   : > { %10709 = vst [vmem:[#allocation66_spill] sm:$0xff] %v7451_v24  ;;  %1982 = vmatpush.bf16.xpose.msra.mxu0 %v1867_v59 }
 0x222   : > { %2637 = vmatpush.bf16.msra.mxu2 %v2522_v29  ;;  %v3194_v29 = vsel %vm762_vm2, %v7246_v27, 0  ;;  %v3185_v27 = vsel %vm762_vm2, %v7163_v50, 0 }
 0x225   : > { %5647 = vmatmul.msk.bf16.gmra.mxu3 %vm762_vm2, %v7270_v8  ;;  %5655 = vmatmul.msk.bf16.gmra.mxu0 %vm762_vm2, %v7062_v34 }
 0x226   : > { %2638 = vmatpush.bf16.msra.mxu2 %v2520_v15 }
 0x228   : > { %v7461_v41 = vpop.f32.mrf.mxu3 }
 0x229   : > { %1983 = vmatpush.bf16.xpose.msra.mxu0 %v1864_v7  ;;  %v10711_v7 = vld [vmem:[#allocation34_spill] sm:$0xff] }
 0x22a   : > { %2639 = vmatpush.bf16.msra.mxu2 %v7375_v48 }
 0x22e   : > { %2640 = vmatpush.bf16.msra.mxu2 %v2516_v55 }
 0x230   : > { %v7464_v42 = vpop.f32.mrf.mxu3 }
 0x231   : > { %3226 = vmatpush.bf16.xpose.msrb.mxu0 %v3200_v10  ;;  %v3179_v10 = vsel %vm762_vm2, %v10711_v7, 0  ;;  %v10713_v7 = vld [vmem:[#allocation40_spill] sm:$0xff] }
 0x232   : > { %2641 = vmatpush.bf16.msra.mxu2 %v7304_v11  ;;  %v3188_v11 = vsel %vm762_vm2, %v7224_v12, 0  ;;  %v3182_v12 = vsel %vm762_vm2, %v7190_v17, 0  ;;  %v10712_v17 = vld [vmem:[#allocation27_spill] sm:$0xff] }
 0x235   : > { %5648 = vmatmul.msk.bf16.gmra.mxu3 %vm762_vm2, %v7293_v40  ;;  %5656 = vmatmul.msk.bf16.gmra.mxu0 %vm762_vm2, %v7084_v51 }
 0x238   : > { %v7473_v37 = vpop.f32.mrf.mxu3 }
 0x239   : > { %3227 = vmatpush.bf16.xpose.msrb.mxu0 %v3197_v22 }
 0x240   : > { %v7479_v49 = vpop.f32.mrf.mxu3 }
 0x241   : > { %3228 = vmatpush.bf16.xpose.msrb.mxu0 %v3194_v29 }
 0x245   : > { %5649 = vmatmul.msk.bf16.gmra.mxu3 %vm762_vm2, %v7317_v39  ;;  %5657 = vmatmul.msk.bf16.gmra.mxu0 %vm762_vm2, %v7114_v6 }
 0x248   : > { %v7487_v48 = vpop.f32.mrf.mxu3 }
 0x249   : > { %3229 = vmatpush.bf16.xpose.msrb.mxu0 %v3191_v26  ;;  %10710 = vst [vmem:[#allocation67_spill] sm:$0xff] %v7487_v48 }
 0x250   : > { %v7497_v55 = vpop.f32.mrf.mxu3 }
 0x251   : > { %3230 = vmatpush.bf16.xpose.msrb.mxu0 %v3188_v11 }
 0x252   : > { %v7491_v15 = vpop.f32.mrf.mxu0 }
 0x253   : > { %v1037_v1 = vmax.f32 %v7395_v30, %v7491_v15 }
 0x255   : > { %5658 = vmatmul.msk.bf16.gmra.mxu0 %vm762_vm2, %v7137_v25  ;;  %1038 = vmax.xlane.f32.xlu0 %v1037_v1 }
 0x256   : > { %5666 = vmatmul.msk.bf16.vlgmr.msrb.gmra.mxu3 %vm762_vm2, %v7178_v63 }
 0x258   : > { %v7507_v59 = vpop.f32.mrf.mxu3 }
 0x259   : > { %3231 = vmatpush.bf16.xpose.msrb.mxu0 %v3185_v27 }
 0x25a   : > { %v7503_v28 = vpop.f32.mrf.mxu0 }
 0x25b   : > { %v1040_v50 = vmax.f32 %v7397_v35, %v7503_v28 }
 0x25d   : > { %1041 = vmax.xlane.f32.xlu0 %v1040_v50 }
 0x260   : > { %v7519_v26 = vpop.f32.mrf.mxu3 }
 0x261   : > { %3232 = vmatpush.bf16.xpose.msrb.mxu0 %v3182_v12 }
 0x262   : > { %v7511_v22 = vpop.f32.mrf.mxu0 }
 0x263   : > { %v1043_v29 = vmax.f32 %v7407_v54, %v7511_v22 }
 0x265   : > { %5659 = vmatmul.msk.bf16.gmra.mxu0 %vm762_vm2, %v7165_v52  ;;  %1044 = vmax.xlane.f32.xlu1 %v1043_v29 }
 0x266   : > { %5667 = vmatmul.msk.bf16.gmra.mxu3 %vm762_vm2, %v10712_v17 }
 0x268   : > { %v7529_v50 = vpop.f32.mrf.mxu3 }
 0x269   : > { %3233 = vmatpush.bf16.xpose.msrb.mxu0 %v3179_v10 }
 0x26a   : > { %v7521_v11 = vpop.f32.mrf.mxu0 }
 0x26b   : > { %v1046_v27 = vmax.f32 %v7414_v58, %v7521_v11 }
 0x26d   : > { %1047 = vmax.xlane.f32.xlu2 %v1046_v27 }
 0x270   : > { %v7539_v27 = vpop.f32.mrf.mxu3 }
 0x272   : > { %v7525_v1 = vpop.f32.mrf.mxu0 }
 0x273   : > { %v1049_v12 = vmax.f32 %v7423_v46, %v7525_v1 }
 0x275   : > { %5660 = vmatmul.msk.bf16.gmra.mxu0 %vm762_vm2, %v7194_v21  ;;  %1050 = vmax.xlane.f32.xlu2 %v1049_v12  ;;  %v10714_v12 = vld [vmem:[#allocation39_spill] sm:$0xff] }
 0x276   : > { %5668 = vmatmul.msk.bf16.gmra.mxu3 %vm762_vm2, %v10713_v7 }
 0x278   : > { %v7549_v21 = vpop.f32.mrf.mxu3 }
 0x27a   : > { %v7535_v10 = vpop.f32.mrf.mxu0 }
 0x27b   : > { %v1052_v29 = vmax.f32 %v7426_v36, %v7535_v10 }
 0x27d   : > { %1053 = vmax.xlane.f32.xlu0 %v1052_v29 }
 0x280   : > { %v7555_v25 = vpop.f32.mrf.mxu3 }
 0x282   : > { %v7541_v33 = vpop.f32.mrf.mxu0 }
 0x283   : > { %v1055_v56 = vmax.f32 %v7433_v23, %v7541_v33 }
 0x285   : > { %5661 = vmatmul.msk.bf16.gmra.mxu0 %vm762_vm2, %v7220_v60  ;;  %1056 = vmax.xlane.f32.xlu0 %v1055_v56  ;;  %v10716_v56 = vld [vmem:[#allocation46_spill] sm:$0xff] }
 0x286   : > { %5669 = vmatmul.msk.bf16.gmra.mxu3 %vm762_vm2, %v10714_v12 }
 0x28a   : > { %v7551_v52 = vpop.f32.mrf.mxu0 }
 0x28b   : > { %v1058_v29 = vmax.f32 %v7438_v16, %v7551_v52 }
 0x28d   : > { %1059 = vmax.xlane.f32.xlu1 %v1058_v29  ;;  %v7569_v29 = vpop.f32.mrf.mxu3 }
 0x28e   : > { %10718 = vst [vmem:[#allocation40_spill] sm:$0xff] %v7569_v29 }
 0x292   : > { %v7557_v51 = vpop.f32.mrf.mxu0 }
 0x293   : > { %10715 = vst [vmem:[#allocation34_spill] sm:$0xff] %v7557_v51  ;;  %v1061_v6 = vmax.f32 %v7448_v4, %v7557_v51  ;;  %v10720_v51 = vld [vmem:[#allocation50_spill] sm:$0xff] }
 0x295   : > { %5662 = vmatmul.msk.bf16.gmra.mxu0 %vm762_vm2, %v7244_v43  ;;  %1062 = vmax.xlane.f32.xlu2 %v1061_v6  ;;  %v7575_v18 = vpop.f32.mrf.mxu3 }
 0x296   : > { %5670 = vmatmul.msk.bf16.gmra.mxu3 %vm762_vm2, %v10716_v56  ;;  %10719 = vst [vmem:[#allocation39_spill] sm:$0xff] %v7575_v18 }
 0x299   : > { %3068 = vrot.lane.b32.xlu0 %v6969_v44, %s6785_s10 }
 0x29a   : > { %v7567_v60 = vpop.f32.mrf.mxu0 }
 0x29b   : > { %10717 = vst [vmem:[#allocation27_spill] sm:$0xff] %v7567_v60 }
 0x29d   : > { %v7585_v43 = vpop.f32.mrf.mxu3 }
 0x29e   : > { %10722 = vst [vmem:[#allocation50_spill] sm:$0xff] %v7585_v43  ;;  %v10728_v43 = vld [vmem:[#allocation56_spill] sm:$0xff] }
 0x2a2   : > { %v7571_v14 = vpop.f32.mrf.mxu0 }
 0x2a5   : > { %5663 = vmatmul.msk.bf16.gmra.mxu0 %vm762_vm2, %v7270_v8  ;;  %v10723_v8 = vld [vmem:[#allocation52_spill] sm:$0xff]  ;;  %v7593_v4 = vpop.f32.mrf.mxu3 }
 0x2a6   : > { %5671 = vmatmul.msk.bf16.gmra.mxu3 %vm762_vm2, %v10720_v51  ;;  %3070 = vrot.lane.b32.xlu1 %v6994_v57, %s6785_s10  ;;  %10724 = vst [vmem:[#allocation68_spill] sm:$0xff] %v7593_v4  ;;  %v1064_v57 = vmax.f32 %v7451_v24, %v7567_v60 }
 0x2aa   : > { %v7581_v6 = vpop.f32.mrf.mxu0 }
 0x2ab   : > { %10721 = vst [vmem:[#allocation46_spill] sm:$0xff] %v7581_v6  ;;  %v1070_v32 = vmax.f32 %v7464_v42, %v7581_v6 }
 0x2ad   : > { %3066 = vrot.lane.b32.xlu2 %v6956_v31, %s6785_s10  ;;  %v7601_v31 = vpop.f32.mrf.mxu3 }
 0x2ae   : > { %10727 = vst [vmem:[#allocation71_spill] sm:$0xff] %v7601_v31 }
 0x2b2   : > { %v7587_v44 = vpop.f32.mrf.mxu0 }
 0x2b5   : > { %5664 = vmatmul.msk.bf16.gmra.mxu0 %vm762_vm2, %v7293_v40  ;;  %v7613_v31 = vpop.f32.mrf.mxu3 }
 0x2b6   : > { %5672 = vmatmul.msk.bf16.gmra.mxu3 %vm762_vm2, %v10723_v8  ;;  %10729 = vst [vmem:[#allocation72_spill] sm:$0xff] %v7613_v31 }
 0x2ba   : > { %v7595_v18 = vpop.f32.mrf.mxu0 }
 0x2bb   : > { %10725 = vst [vmem:[#allocation69_spill] sm:$0xff] %v7595_v18 }
 0x2c2   : > { %v7599_v29 = vpop.f32.mrf.mxu0 }
 0x2c3   : > { %10726 = vst [vmem:[#allocation70_spill] sm:$0xff] %v7599_v29  ;;  %1065 = vmax.xlane.f32.xlu0 %v1064_v57 }
 0x2c5   : > { %5665 = vmatmul.msk.bf16.gmra.mxu0 %vm762_vm2, %v7317_v39  ;;  %v1067_v39 = vmax.f32 %v7461_v41, %v7571_v14 }
 0x2c6   : > { %5673 = vmatmul.msk.bf16.gmra.mxu3 %vm762_vm2, %v10728_v43 }
 0x2c8   : > { %v1039_v40 = vpop.xlane.xlu0 %1038 }
 0x2c9   : > { %v1133_v8 = vsub.f32 %v7395_v30, %v1039_v40  ;;  %v1134_v4 = vsub.f32 %v7491_v15, %v1039_v40  ;;  %v1079_v15 = vmax.f32 %v7487_v48, %v7599_v29 }
 0x2ca   : > { %v7611_v60 = vpop.f32.mrf.mxu0 }
 0x2cb   : > { %v1197_v24 = vmul.f32 1.442695, %v1133_v8  ;;  %v1199_v57 = vmul.f32 1.442695, %v1134_v4  ;;  %1071 = vmax.xlane.f32.xlu0 %v1070_v32 }
 0x2cd   : > { %5950 = vpow2.f32 %v1197_v24 }
 0x2ce   : > { %5952 = vpow2.f32 %v1199_v57  ;;  %v1073_v57 = vmax.f32 %v7473_v37, %v7587_v44 }
 0x2d0   : > { %1068 = vmax.xlane.f32.xlu1 %v1067_v39  ;;  %v1042_v43 = vpop.xlane.xlu0 %1041 }
 0x2d1   : > { %v1135_v30 = vsub.f32 %v7397_v35, %v1042_v43  ;;  %v1136_v40 = vsub.f32 %v7503_v28, %v1042_v43  ;;  %v1076_v43 = vmax.f32 %v7479_v49, %v7595_v18  ;;  %v3129_v35 = vpop.permute.xlu2 %3128  ;;  %v7633_v28 = vpop.f32.mrf.mxu3 }
 0x2d2   : > { %v7621_v6 = vpop.f32.mrf.mxu0  ;;  %10731 = vst [vmem:[#allocation74_spill] sm:$0xff] %v7633_v28 }
 0x2d3   : > { %v5951_v8 = vpop.eup %5950  ;;  %v1201_v32 = vmul.f32 1.442695, %v1135_v30  ;;  %v1203_v24 = vmul.f32 1.442695, %v1136_v40  ;;  %1080 = vmax.xlane.f32.xlu0 %v1079_v15 }
 0x2d4   : > { %v5953_v4 = vpop.eup %5952 }
 0x2d5   : > { %5954 = vpow2.f32 %v1201_v32  ;;  %5682 = vmatmul.msk.bf16.vlgmr.msra.gmra.mxu0 %vm762_vm2, %v7178_v63  ;;  %v7627_v39 = vadd.f32 %v5953_v4, %v5951_v8  ;;  %v1082_v63 = vmax.f32 %v7497_v55, %v7611_v60 }
 0x2d6   : > { %5956 = vpow2.f32 %v1203_v24  ;;  %5674 = vmatmul.msk.bf16.gmra.mxu3 %vm762_vm2, %v7385_v61  ;;  %1074 = vmax.xlane.f32.xlu2 %v1073_v57 }
 0x2d7   : > { %10730 = vst [vmem:[#allocation73_spill] sm:$0xff] %v7627_v39 }
 0x2d8   : > { %v1045_v30 = vpop.xlane.xlu1 %1044  ;;  %1077 = vmax.xlane.f32.xlu1 %v1076_v43  ;;  %v3224_v43 = vsel %vm762_vm2, %v3129_v35, 0 }
 0x2d9   : > { %v1137_v40 = vsub.f32 %v7407_v54, %v1045_v30  ;;  %v1138_v15 = vsub.f32 %v7511_v22, %v1045_v30 }
 0x2da   : > { %v7639_v32 = vpop.f32.mrf.mxu0 }
 0x2db   : > { %v5955_v24 = vpop.eup %5954  ;;  %v1205_v39 = vmul.f32 1.442695, %v1137_v40  ;;  %v1207_v57 = vmul.f32 1.442695, %v1138_v15  ;;  %1083 = vmax.xlane.f32.xlu0 %v1082_v63  ;;  %v1088_v40 = vmax.f32 %v7519_v26, %v7639_v32  ;;  %v7648_v15 = vpop.f32.mrf.mxu3 }
 0x2dc   : > { %v5957_v29 = vpop.eup %5956  ;;  %v1421_v48 = vpack.c.bf16 %v5955_v24, %v5951_v8  ;;  %10733 = vst [vmem:[#allocation76_spill] sm:$0xff] %v7648_v15 }
 0x2dd   : > { %5958 = vpow2.f32 %v1205_v39  ;;  %v1422_v61 = vpack.c.bf16 %v5957_v29, %v5953_v4  ;;  %v7641_v18 = vadd.f32 %v5957_v29, %v5955_v24 }
 0x2de   : > { %5960 = vpow2.f32 %v1207_v57  ;;  %1461 = vmatmul.bf16.vlgmr.msrb.gmra.mxu1 %v1421_v48 }
 0x2df   : > { %10732 = vst [vmem:[#allocation75_spill] sm:$0xff] %v7641_v18  ;;  %1550 = vmatmul.bf16.vlgmr.msrb.gmra.mxu2 %v1422_v61  ;;  %3315 = vmatpush.bf16.xpose.msrb.mxu1 %v3224_v43  ;;  %v10749_v18 = vld [vmem:[#allocation62_spill] sm:$0xff] }
 0x2e0   : > { %v1048_v54 = vpop.xlane.xlu2 %1047 }
 0x2e1   : > { %v1139_v22 = vsub.f32 %v7414_v58, %v1048_v54  ;;  %v1140_v30 = vsub.f32 %v7521_v11, %v1048_v54  ;;  %v3221_v11 = vsel %vm762_vm2, %v7435_v13, 0 }
 0x2e2   : > { %v7650_v8 = vpop.f32.mrf.mxu0 }
 0x2e3   : > { %v5959_v29 = vpop.eup %5958  ;;  %v1209_v4 = vmul.f32 1.442695, %v1139_v22  ;;  %v1211_v39 = vmul.f32 1.442695, %v1140_v30  ;;  %1089 = vmax.xlane.f32.xlu0 %v1088_v40  ;;  %v1091_v61 = vmax.f32 %v7529_v50, %v7650_v8  ;;  %v7666_v30 = vpop.f32.mrf.mxu3 }
 0x2e4   : > { %v5961_v48 = vpop.eup %5960 }
 0x2e5   : > { %5962 = vpow2.f32 %v1209_v4  ;;  %1092 = vmax.xlane.f32.xlu2 %v1091_v61  ;;  %5683 = vmatmul.msk.bf16.gmra.mxu0 %vm762_vm2, %v10712_v17  ;;  %v7656_v58 = vadd.f32 %v5961_v48, %v5959_v29 }
 0x2e6   : > { %5964 = vpow2.f32 %v1211_v39  ;;  %5675 = vmatmul.msk.bf16.gmra.mxu3 %vm762_vm2, %v7340_v45 }
 0x2e7   : > { %10734 = vst [vmem:[#allocation77_spill] sm:$0xff] %v7656_v58  ;;  %3316 = vmatpush.bf16.xpose.msrb.mxu1 %v3221_v11  ;;  %v10748_v58 = vld [vmem:[#allocation52_spill] sm:$0xff] }
 0x2e8   : > { %v1051_v35 = vpop.xlane.xlu2 %1050 }
 0x2e9   : > { %v1141_v63 = vsub.f32 %v7423_v46, %v1051_v35  ;;  %v1142_v24 = vsub.f32 %v7525_v1, %v1051_v35  ;;  %v3218_v46 = vsel %vm762_vm2, %v7411_v38, 0 }
 0x2ea   : > { %v7664_v57 = vpop.f32.mrf.mxu0 }
 0x2eb   : > { %v5963_v43 = vpop.eup %5962  ;;  %v1213_v54 = vmul.f32 1.442695, %v1141_v63  ;;  %v1215_v17 = vmul.f32 1.442695, %v1142_v24  ;;  %v7682_v24 = vpop.f32.mrf.mxu3 }
 0x2ec   : > { %v5965_v22 = vpop.eup %5964  ;;  %v1423_v40 = vpack.c.bf16 %v5963_v43, %v5959_v29 }
 0x2ed   : > { %5966 = vpow2.f32 %v1213_v54  ;;  %v1424_v4 = vpack.c.bf16 %v5965_v22, %v5961_v48  ;;  %v7668_v39 = vadd.f32 %v5965_v22, %v5963_v43 }
 0x2ee   : > { %5968 = vpow2.f32 %v1215_v17  ;;  %1466 = vmatmul.bf16.gmra.mxu1 %v1423_v40 }
 0x2ef   : > { %10735 = vst [vmem:[#allocation78_spill] sm:$0xff] %v7668_v39  ;;  %1555 = vmatmul.bf16.gmra.mxu2 %v1424_v4  ;;  %3317 = vmatpush.bf16.xpose.msrb.mxu1 %v3218_v46  ;;  %v10751_v39 = vld [vmem:[#allocation27_spill] sm:$0xff] }
 0x2f0   : > { %v1054_v13 = vpop.xlane.xlu0 %1053 }
 0x2f1   : > { %v1143_v1 = vsub.f32 %v7426_v36, %v1054_v13  ;;  %v1144_v61 = vsub.f32 %v7535_v10, %v1054_v13  ;;  %3072 = vrot.lane.b32.xlu1 %v7023_v9, %s6785_s10  ;;  %v3215_v36 = vsel %vm762_vm2, %v7393_v62, 0 }
 0x2f2   : > { %v7676_v29 = vpop.f32.mrf.mxu0 }
 0x2f3   : > { %v5967_v48 = vpop.eup %5966  ;;  %v1217_v11 = vmul.f32 1.442695, %v1143_v1  ;;  %v1219_v35 = vmul.f32 1.442695, %v1144_v61 }
 0x2f4   : > { %v5969_v63 = vpop.eup %5968 }
 0x2f5   : > { %5970 = vpow2.f32 %v1217_v11  ;;  %5684 = vmatmul.msk.bf16.gmra.mxu0 %vm762_vm2, %v10713_v7  ;;  %v7680_v38 = vadd.f32 %v5969_v63, %v5967_v48 }
 0x2f6   : > { %5972 = vpow2.f32 %v1219_v35  ;;  %5676 = vmatmul.msk.bf16.gmra.mxu3 %vm762_vm2, %v7365_v0 }
 0x2f7   : > { %3318 = vmatpush.bf16.xpose.msrb.mxu1 %v3215_v36  ;;  %3076 = vrot.lane.b32.xlu0 %v7062_v34, %s6785_s10 }
 0x2f8   : > { %v1057_v10 = vpop.xlane.xlu0 %1056 }
 0x2f9   : > { %v1145_v43 = vsub.f32 %v7433_v23, %v1057_v10  ;;  %v1146_v7 = vsub.f32 %v7541_v33, %v1057_v10  ;;  %v3212_v23 = vsel %vm762_vm2, %v7409_v47, 0  ;;  %v7700_v33 = vpop.f32.mrf.mxu3 }
 0x2fa   : > { %v7692_v54 = vpop.f32.mrf.mxu0 }
 0x2fb   : > { %v5971_v17 = vpop.eup %5970  ;;  %v1221_v22 = vmul.f32 1.442695, %v1145_v43  ;;  %v1223_v40 = vmul.f32 1.442695, %v1146_v7 }
 0x2fc   : > { %v5973_v4 = vpop.eup %5972  ;;  %v1425_v46 = vpack.c.bf16 %v5971_v17, %v5967_v48 }
 0x2fd   : > { %5974 = vpow2.f32 %v1221_v22  ;;  %3074 = vrot.lane.b32.xlu2 %v7038_v19, %s6785_s10  ;;  %v1426_v62 = vpack.c.bf16 %v5973_v4, %v5969_v63  ;;  %v7696_v13 = vadd.f32 %v5973_v4, %v5971_v17  ;;  %v10747_v19 = vld [vmem:[#allocation71_spill] sm:$0xff] }
 0x2fe   : > { %5976 = vpow2.f32 %v1223_v40  ;;  %1471 = vmatmul.bf16.gmra.mxu1 %v1425_v46 }
 0x2ff   : > { %1560 = vmatmul.bf16.gmra.mxu2 %v1426_v62  ;;  %3319 = vmatpush.bf16.xpose.msrb.mxu1 %v3212_v23  ;;  %v3203_v62 = vsel %vm762_vm2, %v7377_v2, 0  ;;  %v1085_v23 = vmax.f32 %v7507_v59, %v7621_v6  ;;  %v1097_v2 = vmax.f32 %v7549_v21, %v7676_v29 }
 0x300   : > { %v1060_v1 = vpop.xlane.xlu1 %1059 }
 0x301   : > { %v1147_v61 = vsub.f32 %v7438_v16, %v1060_v1  ;;  %v1148_v48 = vsub.f32 %v7551_v52, %v1060_v1  ;;  %v3209_v16 = vsel %vm762_vm2, %v7370_v3, 0  ;;  %v7714_v52 = vpop.f32.mrf.mxu3 }
 0x302   : > { %v7704_v11 = vpop.f32.mrf.mxu0 }
 0x303   : > { %v5975_v35 = vpop.eup %5974  ;;  %v1225_v63 = vmul.f32 1.442695, %v1147_v61  ;;  %v1227_v36 = vmul.f32 1.442695, %v1148_v48  ;;  %v1094_v61 = vmax.f32 %v7539_v27, %v7664_v57 }
 0x304   : > { %v5977_v10 = vpop.eup %5976 }
 0x305   : > { %5978 = vpow2.f32 %v1225_v63  ;;  %5685 = vmatmul.msk.bf16.gmra.mxu0 %vm762_vm2, %v10714_v12  ;;  %v7708_v47 = vadd.f32 %v5977_v10, %v5975_v35  ;;  %v3206_v12 = vsel %vm762_vm2, %v7319_v5, 0  ;;  %v10739_v63 = vld [vmem:[#allocation40_spill] sm:$0xff] }
 0x306   : > { %5980 = vpow2.f32 %v1227_v36  ;;  %5677 = vmatmul.msk.bf16.gmra.mxu3 %vm762_vm2, %v7387_v53  ;;  %v1103_v36 = vmax.f32 %v10739_v63, %v7704_v11 }
 0x307   : > { %3320 = vmatpush.bf16.xpose.msrb.mxu1 %v3209_v16 }
 0x309   : > { %v7724_v3 = vpop.f32.mrf.mxu3 }
 0x30a   : > { %v7716_v43 = vpop.f32.mrf.mxu0 }
 0x30b   : > { %v5979_v7 = vpop.eup %5978 }
 0x30c   : > { %v5981_v17 = vpop.eup %5980  ;;  %v1427_v22 = vpack.c.bf16 %v5979_v7, %v5975_v35  ;;  %v10738_v35 = vld [vmem:[#allocation63_spill] sm:$0xff] }
 0x30d   : > { %v1428_v40 = vpack.c.bf16 %v5981_v17, %v5977_v10  ;;  %v7718_v4 = vadd.f32 %v5981_v17, %v5979_v7  ;;  %v10741_v17 = vld [vmem:[#allocation50_spill] sm:$0xff] }
 0x30e   : > { %1476 = vmatmul.bf16.gmra.mxu1 %v1427_v22 }
 0x30f   : > { %1565 = vmatmul.bf16.gmra.mxu2 %v1428_v40  ;;  %3321 = vmatpush.bf16.xpose.msrb.mxu1 %v3206_v12  ;;  %v7760_v40 = vpop.permute.xlu0 %3068  ;;  %v10743_v12 = vld [vmem:[#allocation39_spill] sm:$0xff] }
 0x310   : > { %10742 = vst [vmem:[#allocation40_spill] sm:$0xff] %v7760_v40 }
 0x311   : > { %v7736_v1 = vpop.f32.mrf.mxu3 }
 0x312   : > { %v7722_v46 = vpop.f32.mrf.mxu0 }
 0x313   : > { %v1109_v22 = vmax.f32 %v10741_v17, %v7722_v46 }
 0x315   : > { %5686 = vmatmul.msk.bf16.gmra.mxu0 %vm762_vm2, %v10716_v56  ;;  %v1100_v56 = vmax.f32 %v7555_v25, %v7692_v54 }
 0x316   : > { %5678 = vmatmul.msk.bf16.gmra.mxu3 %vm762_vm2, %v7399_v20 }
 0x317   : > { %3322 = vmatpush.bf16.xpose.msrb.mxu1 %v3203_v62  ;;  %v1106_v62 = vmax.f32 %v10743_v12, %v7716_v43 }
 0x319   : > { %v7752_v10 = vpop.f32.mrf.mxu3 }
 0x31a   : > { %v7734_v5 = vpop.f32.mrf.mxu0 }
 0x31b   : > { %10736 = vst [vmem:[#allocation79_spill] sm:$0xff] %v7734_v5  ;;  %1086 = vmax.xlane.f32.xlu1 %v1085_v23  ;;  %v10744_v23 = vld [vmem:[#allocation65_spill] sm:$0xff] }
 0x321   : > { %1095 = vmax.xlane.f32.xlu0 %v1094_v61 }
 0x322   : > { %v7742_v48 = vpop.f32.mrf.mxu0 }
 0x323   : > { %10737 = vst [vmem:[#allocation80_spill] sm:$0xff] %v7742_v48  ;;  %1101 = vmax.xlane.f32.xlu1 %v1100_v56  ;;  %v7765_v56 = vpop.f32.mrf.mxu3  ;;  %v1115_v9 = vmax.f32 %v10747_v19, %v7742_v48 }
 0x325   : > { %5687 = vmatmul.msk.bf16.gmra.mxu0 %vm762_vm2, %v10720_v51  ;;  %v1063_v51 = vpop.xlane.xlu2 %1062 }
 0x326   : > { %5679 = vmatmul.msk.bf16.gmra.mxu3 %vm762_vm2, %v10738_v35  ;;  %1098 = vmax.xlane.f32.xlu2 %v1097_v2  ;;  %v1149_v61 = vsub.f32 %v10744_v23, %v1063_v51  ;;  %v10745_v2 = vld [vmem:[#allocation34_spill] sm:$0xff] }
 0x329   : > { %1104 = vmax.xlane.f32.xlu0 %v1103_v36  ;;  %v1150_v36 = vsub.f32 %v10745_v2, %v1063_v51  ;;  %v10752_v51 = vld [vmem:[#allocation68_spill] sm:$0xff] }
 0x32a   : > { %v7754_v16 = vpop.f32.mrf.mxu0  ;;  %v1112_v2 = vmax.f32 %v10752_v51, %v7734_v5 }
 0x32b   : > { %10740 = vst [vmem:[#allocation63_spill] sm:$0xff] %v7754_v16  ;;  %v1118_v7 = vmax.f32 %v7613_v31, %v7754_v16 }
 0x32d   : > { %1119 = vmax.xlane.f32.xlu1 %v1118_v7  ;;  %v1229_v7 = vmul.f32 1.442695, %v1149_v61 }
 0x32e   : > { %1110 = vmax.xlane.f32.xlu2 %v1109_v22  ;;  %v1231_v22 = vmul.f32 1.442695, %v1150_v36  ;;  %v7784_v36 = vpop.f32.mrf.mxu3 }
 0x32f   : > { %5982 = vpow2.f32 %v1229_v7  ;;  %10755 = vst [vmem:[#allocation34_spill] sm:$0xff] %v7784_v36 }
 0x330   : > { %5984 = vpow2.f32 %v1231_v22  ;;  %v7794_v22 = vpop.permute.xlu2 %3066 }
 0x331   : > { %1107 = vmax.xlane.f32.xlu0 %v1106_v62  ;;  %v10750_v62 = vld [vmem:[#allocation66_spill] sm:$0xff]  ;;  %10757 = vst [vmem:[#allocation52_spill] sm:$0xff] %v7794_v22 }
 0x332   : > { %v7768_v34 = vpop.f32.mrf.mxu0 }
 0x333   : > { %10746 = vst [vmem:[#allocation50_spill] sm:$0xff] %v7768_v34 }
 0x335   : > { %5688 = vmatmul.msk.bf16.gmra.mxu0 %vm762_vm2, %v10748_v58  ;;  %v7782_v58 = vpop.permute.xlu1 %3070 }
 0x336   : > { %5680 = vmatmul.msk.bf16.gmra.mxu3 %vm762_vm2, %v10749_v18  ;;  %1116 = vmax.xlane.f32.xlu2 %v1115_v9  ;;  %v1066_v23 = vpop.xlane.xlu0 %1065  ;;  %10754 = vst [vmem:[#allocation65_spill] sm:$0xff] %v7782_v58 }
 0x337   : > { %v1151_v40 = vsub.f32 %v10750_v62, %v1066_v23  ;;  %v1152_v16 = vsub.f32 %v10751_v39, %v1066_v23  ;;  %v7786_v62 = vpop.eup %5982  ;;  %v10756_v23 = vld [vmem:[#allocation46_spill] sm:$0xff] }
 0x339   : > { %v1233_v31 = vmul.f32 1.442695, %v1151_v40  ;;  %v1235_v48 = vmul.f32 1.442695, %v1152_v16  ;;  %1113 = vmax.xlane.f32.xlu0 %v1112_v2  ;;  %v1121_v16 = vmax.f32 %v7633_v28, %v7768_v34  ;;  %v7792_v40 = vpop.eup %5984 }
 0x33a   : > { %v7780_v61 = vpop.f32.mrf.mxu0 }
 0x33b   : > { %10753 = vst [vmem:[#allocation39_spill] sm:$0xff] %v7780_v61  ;;  %5986 = vpow2.f32 %v1233_v31 }
 0x33c   : > { %5988 = vpow2.f32 %v1235_v48 }
 0x33e   : > { %v1072_v9 = vpop.xlane.xlu0 %1071 }
 0x33f   : > { %v1155_v39 = vsub.f32 %v7464_v42, %v1072_v9  ;;  %v1156_v19 = vsub.f32 %v10756_v23, %v1072_v9 }
 0x341   : > { %v5987_v7 = vpop.eup %5986  ;;  %v1241_v2 = vmul.f32 1.442695, %v1155_v39  ;;  %v1243_v31 = vmul.f32 1.442695, %v1156_v19  ;;  %1122 = vmax.xlane.f32.xlu0 %v1121_v16  ;;  %v10758_v19 = vld [vmem:[#allocation56_spill] sm:$0xff]  ;;  %v7806_v39 = vpop.f32.mrf.mxu3 }
 0x342   : > { %v5989_v58 = vpop.eup %5988  ;;  %v7796_v48 = vpop.f32.mrf.mxu0  ;;  %v1429_v5 = vpack.c.bf16 %v5987_v7, %v7786_v62  ;;  %10759 = vst [vmem:[#allocation62_spill] sm:$0xff] %v7806_v39 }
 0x343   : > { %5990 = vpow2.f32 %v1241_v2  ;;  %v1069_v42 = vpop.xlane.xlu1 %1068  ;;  %v1430_v9 = vpack.c.bf16 %v5989_v58, %v7792_v40  ;;  %v7800_v23 = vadd.f32 %v5989_v58, %v5987_v7  ;;  %v10760_v2 = vld [vmem:[#allocation64_spill] sm:$0xff]  ;;  %v1124_v58 = vmax.f32 %v7648_v15, %v7780_v61  ;;  %v10761_v61 = vld [vmem:[#allocation69_spill] sm:$0xff] }
 0x344   : > { %5992 = vpow2.f32 %v1243_v31  ;;  %v1153_v34 = vsub.f32 %v7461_v41, %v1069_v42  ;;  %v1154_v28 = vsub.f32 %v7571_v14, %v1069_v42  ;;  %1481 = vmatmul.bf16.gmra.mxu1 %v1429_v5 }
 0x345   : > { %1570 = vmatmul.bf16.gmra.mxu2 %v1430_v9  ;;  %5689 = vmatmul.msk.bf16.gmra.mxu0 %vm762_vm2, %v10758_v19 }
 0x346   : > { %v1237_v16 = vmul.f32 1.442695, %v1153_v34  ;;  %v1239_v22 = vmul.f32 1.442695, %v1154_v28  ;;  %5681 = vmatmul.msk.bf16.gmra.mxu3 %vm762_vm2, %v10760_v2  ;;  %v7810_v36 = vpop.xlane.xlu0 %1080 }
 0x348   : > { %5994 = vpow2.f32 %v1237_v16 }
 0x349   : > { %v5991_v41 = vpop.eup %5990  ;;  %5996 = vpow2.f32 %v1239_v22  ;;  %v1075_v14 = vpop.xlane.xlu2 %1074  ;;  %1125 = vmax.xlane.f32.xlu0 %v1124_v58 }
 0x34a   : > { %v5993_v5 = vpop.eup %5992  ;;  %v1157_v7 = vsub.f32 %v7473_v37, %v1075_v14  ;;  %v1158_v31 = vsub.f32 %v7587_v44, %v1075_v14  ;;  %v7816_v34 = vpop.f32.mrf.mxu0 }
 0x34b   : > { %v1078_v28 = vpop.xlane.xlu1 %1077  ;;  %v7818_v42 = vadd.f32 %v5993_v5, %v5991_v41 }
 0x34c   : > { %v1245_v9 = vmul.f32 1.442695, %v1157_v7  ;;  %v1247_v19 = vmul.f32 1.442695, %v1158_v31  ;;  %v1159_v39 = vsub.f32 %v7479_v49, %v1078_v28  ;;  %v1160_v16 = vsub.f32 %v10761_v61, %v1078_v28  ;;  %v10762_v61 = vld [vmem:[#allocation61_spill] sm:$0xff] }
 0x34e   : > { %v5995_v15 = vpop.eup %5994  ;;  %5998 = vpow2.f32 %v1245_v9  ;;  %v1249_v22 = vmul.f32 1.442695, %v1159_v39  ;;  %v1084_v58 = vpop.xlane.xlu0 %1083  ;;  %v1251_v37 = vmul.f32 1.442695, %v1160_v16 }
 0x34f   : > { %v5997_v51 = vpop.eup %5996  ;;  %6000 = vpow2.f32 %v1247_v19  ;;  %v1431_v2 = vpack.c.bf16 %v5991_v41, %v5995_v15 }
 0x350   : > { %6002 = vpow2.f32 %v1249_v22  ;;  %v1355_v44 = vadd.f32 %v5997_v51, %v5995_v15  ;;  %v1432_v7 = vpack.c.bf16 %v5993_v5, %v5997_v51  ;;  %v1349_v15 = vadd.f32 %v7792_v40, %v7786_v62 }
 0x351   : > { %6004 = vpow2.f32 %v1251_v37  ;;  %v1127_v62 = vmax.f32 %v7666_v30, %v7796_v48 }
 0x352   : > { %1356 = vadd.xlane.f32.xlu0 %v1355_v44  ;;  %v7822_v14 = vpop.f32.mrf.mxu0 }
 0x354   : > { %v5999_v31 = vpop.eup %5998  ;;  %1486 = vmatmul.bf16.gmra.mxu1 %v1431_v2 }
 0x355   : > { %v6001_v49 = vpop.eup %6000  ;;  %1575 = vmatmul.bf16.gmra.mxu2 %v1432_v7  ;;  %5690 = vmatmul.msk.bf16.gmra.mxu0 %vm762_vm2, %v10762_v61 }
 0x356   : > { %v6003_v39 = vpop.eup %6002  ;;  %v1090_v28 = vpop.xlane.xlu0 %1089  ;;  %v1361_v9 = vadd.f32 %v6001_v49, %v5999_v31 }
 0x357   : > { %v6005_v19 = vpop.eup %6004  ;;  %v1167_v16 = vsub.f32 %v7519_v26, %v1090_v28  ;;  %v1168_v22 = vsub.f32 %v7639_v32, %v1090_v28 }
 0x358   : > { %1362 = vadd.xlane.f32.xlu1 %v1361_v9  ;;  %v1093_v37 = vpop.xlane.xlu2 %1092  ;;  %v1364_v44 = vadd.f32 %v6005_v19, %v6003_v39 }
 0x359   : > { %v1265_v51 = vmul.f32 1.442695, %v1167_v16  ;;  %v1267_v2 = vmul.f32 1.442695, %v1168_v22  ;;  %v1169_v41 = vsub.f32 %v7529_v50, %v1093_v37  ;;  %v1170_v5 = vsub.f32 %v7650_v8, %v1093_v37 }
 0x35a   : > { %1365 = vadd.xlane.f32.xlu2 %v1364_v44  ;;  %1350 = vadd.xlane.f32.xlu0 %v1349_v15  ;;  %v7832_v7 = vpop.f32.mrf.mxu0  ;;  %v1163_v50 = vsub.f32 %v7497_v55, %v1084_v58  ;;  %v1164_v8 = vsub.f32 %v7611_v60, %v1084_v58  ;;  %v1433_v22 = vpack.c.bf16 %v6003_v39, %v5999_v31  ;;  %v10763_v44 = vld [vmem:[#allocation67_spill] sm:$0xff]  ;;  %v10767_v58 = vld [vmem:[#allocation70_spill] sm:$0xff] }
 0x35b   : > { %6006 = vpow2.f32 %v1265_v51  ;;  %v1269_v26 = vmul.f32 1.442695, %v1169_v41  ;;  %v1271_v61 = vmul.f32 1.442695, %v1170_v5  ;;  %v1462_v32 = vpop.f32.mrf.mxu1  ;;  %v1161_v15 = vsub.f32 %v10763_v44, %v7810_v36 }
 0x35c   : > { %6008 = vpow2.f32 %v1267_v2  ;;  %v1434_v41 = vpack.c.bf16 %v6005_v19, %v6001_v49  ;;  %v1162_v5 = vsub.f32 %v10767_v58, %v7810_v36  ;;  %v1257_v31 = vmul.f32 1.442695, %v1163_v50 }
 0x35d   : > { %6010 = vpow2.f32 %v1269_v26  ;;  %v1259_v49 = vmul.f32 1.442695, %v1164_v8  ;;  %v1253_v19 = vmul.f32 1.442695, %v1161_v15  ;;  %v10771_v8 = vld [vmem:[#allocation24_spill] sm:$0xff] }
 0x35e   : > { %6012 = vpow2.f32 %v1271_v61  ;;  %v1255_v26 = vmul.f32 1.442695, %v1162_v5 }
 0x35f   : > { %6014 = vpow2.f32 %v1257_v31 }
 0x360   : > { %6016 = vpow2.f32 %v1259_v49  ;;  %v230_v49 = vld [vmem:[%s10505_s2] sm:$0xf] }
 0x361   : > { %v7836_v40 = vpop.eup %6006  ;;  %6018 = vpow2.f32 %v1253_v19 }
 0x362   : > { %v7839_v28 = vpop.eup %6008  ;;  %v1551_v9 = vpop.f32.mrf.mxu2  ;;  %1128 = vmax.xlane.f32.xlu2 %v1127_v62  ;;  %6020 = vpow2.f32 %v1255_v26  ;;  %v10770_v62 = vld [vmem:[#allocation28_spill] sm:$0xff] }
 0x363   : > { %v7842_v16 = vpop.f32.mrf.mxu0  ;;  %v7844_v37 = vpop.eup %6010  ;;  %v7848_v51 = vadd.f32 %v1551_v9, %v1462_v32  ;;  %v7854_v55 = vadd.f32 %v7839_v28, %v7836_v40 }
 0x364   : > { %v7850_v2 = vpop.f32.mrf.mxu1  ;;  %v7856_v60 = vpop.eup %6012  ;;  %1491 = vmatmul.bf16.gmra.mxu1 %v1433_v22 }
 0x365   : > { %10764 = vst [vmem:[#allocation66_spill] sm:$0xff] %v7848_v51  ;;  %1580 = vmatmul.bf16.gmra.mxu2 %v1434_v41  ;;  %5691 = vmatmul.msk.bf16.gmra.mxu0 %vm762_vm2, %v7340_v45  ;;  %v7864_v39 = vadd.f32 %v7856_v60, %v7844_v37  ;;  %v7872_v45 = vpop.eup %6014 }
 0x366   : > { %10765 = vst [vmem:[#allocation27_spill] sm:$0xff] %v7850_v2  ;;  %v7874_v50 = vpop.eup %6016 }
 0x367   : > { %10766 = vst [vmem:[#allocation46_spill] sm:$0xff] %v7854_v55  ;;  %v7876_v9 = vpop.eup %6018 }
 0x368   : > { %10768 = vst [vmem:[#allocation56_spill] sm:$0xff] %v7864_v39  ;;  %v7880_v22 = vpop.eup %6020  ;;  %v1435_v41 = vpack.c.bf16 %v7872_v45, %v7876_v9 }
 0x369   : > { %v1436_v5 = vpack.c.bf16 %v7874_v50, %v7880_v22 }
 0x36a   : > { %v7866_v61 = vpop.f32.mrf.mxu2 }
 0x36b   : > { %10769 = vst [vmem:[#allocation69_spill] sm:$0xff] %v7866_v61  ;;  %v7868_v32 = vpop.f32.mrf.mxu0 }
 0x36c   : > { %v1467_v36 = vpop.f32.mrf.mxu1 }
 0x36e   : > { %3080 = vrot.lane.b32.xlu0 %v10770_v62, %s6785_s10 }
 0x371   : > { %3078 = vrot.lane.b32.xlu1 %v10771_v8, %s6785_s10 }
 0x372   : > { %v1556_v44 = vpop.f32.mrf.mxu2 }
 0x373   : > { %v7882_v15 = vpop.f32.mrf.mxu0  ;;  %v7886_v58 = vadd.f32 %v1556_v44, %v1467_v36 }
 0x374   : > { %v7890_v31 = vpop.f32.mrf.mxu1  ;;  %1496 = vmatmul.bf16.gmra.mxu1 %v1435_v41 }
 0x375   : > { %10772 = vst [vmem:[#allocation61_spill] sm:$0xff] %v7886_v58  ;;  %1585 = vmatmul.bf16.gmra.mxu2 %v1436_v5  ;;  %5692 = vmatmul.msk.bf16.gmra.mxu0 %vm762_vm2, %v7365_v0  ;;  %v7908_v0 = vpop.permute.xlu1 %3072 }
 0x376   : > { %10773 = vst [vmem:[#allocation67_spill] sm:$0xff] %v7890_v31 }
 0x377   : > { %10776 = vst [vmem:[#allocation82_spill] sm:$0xff] %v7908_v0 }
 0x37a   : > { %v7897_v19 = vpop.f32.mrf.mxu2  ;;  %2788 = vrot.lane.b32.xlu2 %v230_v49, %s6786_s11  ;;  %v7916_v49 = vpop.permute.xlu0 %3076  ;;  %s5464_s11 = scalar_lea.hbm %s10507_s4, %s5904_s8 }
 0x37b   : > { %10774 = vst [vmem:[#allocation70_spill] sm:$0xff] %v7897_v19  ;;  %v7900_v26 = vpop.f32.mrf.mxu0 }
 0x37c   : > { %v1472_v36 = vpop.f32.mrf.mxu1  ;;  %10779 = vst [vmem:[#allocation85_spill] sm:$0xff] %v7916_v49 }
 0x382   : > { %v1561_v44 = vpop.f32.mrf.mxu2 }
 0x383   : > { %v7902_v62 = vpop.f32.mrf.mxu0  ;;  %v7904_v51 = vadd.f32 %v1561_v44, %v1472_v36  ;;  %v7920_v36 = vpop.permute.xlu2 %3074 }
 0x384   : > { %v7910_v41 = vpop.f32.mrf.mxu1  ;;  %10780 = vst [vmem:[#allocation86_spill] sm:$0xff] %v7920_v36 }
 0x385   : > { %10775 = vst [vmem:[#allocation81_spill] sm:$0xff] %v7904_v51  ;;  %5693 = vmatmul.msk.bf16.gmra.mxu0 %vm762_vm2, %v7387_v53 }
 0x386   : > { %10777 = vst [vmem:[#allocation83_spill] sm:$0xff] %v7910_v41 }
 0x38a   : > { %v7912_v5 = vpop.f32.mrf.mxu2 }
 0x38b   : > { %10778 = vst [vmem:[#allocation84_spill] sm:$0xff] %v7912_v5  ;;  %v7914_v61 = vpop.f32.mrf.mxu0 }
 0x38c   : > { %v1477_v53 = vpop.f32.mrf.mxu1 }
 0x38e   : > { %v1087_v2 = vpop.xlane.xlu1 %1086 }
 0x38f   : > { %v1165_v58 = vsub.f32 %v7507_v59, %v1087_v2  ;;  %v1166_v19 = vsub.f32 %v7621_v6, %v1087_v2  ;;  %v7930_v6 = vpop.f32.mrf.mxu3 }
 0x391   : > { %v1261_v44 = vmul.f32 1.442695, %v1165_v58  ;;  %v1263_v31 = vmul.f32 1.442695, %v1166_v19 }
 0x392   : > { %v1566_v51 = vpop.f32.mrf.mxu2 }
 0x393   : > { %6022 = vpow2.f32 %v1261_v44  ;;  %v7922_v8 = vadd.f32 %v1566_v51, %v1477_v53  ;;  %v7924_v41 = vpop.f32.mrf.mxu0 }
 0x394   : > { %6024 = vpow2.f32 %v1263_v31  ;;  %v1096_v5 = vpop.xlane.xlu0 %1095 }
 0x395   : > { %10781 = vst [vmem:[#allocation87_spill] sm:$0xff] %v7922_v8  ;;  %v1171_v55 = vsub.f32 %v7539_v27, %v1096_v5  ;;  %v1172_v39 = vsub.f32 %v7664_v57, %v1096_v5  ;;  %5694 = vmatmul.msk.bf16.gmra.mxu0 %vm762_vm2, %v7399_v20 }
 0x396   : > { %v1102_v59 = vpop.xlane.xlu1 %1101 }
 0x397   : > { %v1273_v2 = vmul.f32 1.442695, %v1171_v55  ;;  %v1275_v58 = vmul.f32 1.442695, %v1172_v39  ;;  %v1175_v19 = vsub.f32 %v7555_v25, %v1102_v59  ;;  %v1176_v51 = vsub.f32 %v7692_v54, %v1102_v59 }
 0x398   : > { %1344 = vadd.xlane.f32.xlu0 %v7708_v47 }
 0x399   : > { %v6023_v31 = vpop.eup %6022  ;;  %6026 = vpow2.f32 %v1273_v2  ;;  %v1281_v44 = vmul.f32 1.442695, %v1175_v19  ;;  %v1283_v27 = vmul.f32 1.442695, %v1176_v51  ;;  %v1099_v53 = vpop.xlane.xlu2 %1098 }
 0x39a   : > { %v6025_v57 = vpop.eup %6024  ;;  %6028 = vpow2.f32 %v1275_v58  ;;  %v1173_v20 = vsub.f32 %v7549_v21, %v1099_v53  ;;  %v1174_v5 = vsub.f32 %v7676_v29, %v1099_v53  ;;  %v1437_v55 = vpack.c.bf16 %v7836_v40, %v6023_v31 }
 0x39b   : > { %6030 = vpow2.f32 %v1281_v44  ;;  %1353 = vadd.xlane.f32.xlu1 %v7800_v23  ;;  %v1438_v25 = vpack.c.bf16 %v7839_v28, %v6025_v57  ;;  %v7940_v59 = vadd.f32 %v6025_v57, %v6023_v31  ;;  %v1367_v29 = vadd.f32 %v7880_v22, %v7876_v9  ;;  %v7946_v23 = vpop.f32.mrf.mxu0  ;;  %v7950_v31 = vpop.f32.mrf.mxu3 }
 0x39c   : > { %6032 = vpow2.f32 %v1283_v27  ;;  %v1277_v54 = vmul.f32 1.442695, %v1173_v20  ;;  %v1279_v47 = vmul.f32 1.442695, %v1174_v5  ;;  %1501 = vmatmul.bf16.gmra.mxu1 %v1437_v55  ;;  %v1105_v39 = vpop.xlane.xlu0 %1104  ;;  %v2068_v5 = vmax.f32 %v7714_v52, %v7832_v7 }
 0x39d   : > { %10782 = vst [vmem:[#allocation88_spill] sm:$0xff] %v7940_v59  ;;  %1590 = vmatmul.bf16.gmra.mxu2 %v1438_v25  ;;  %v1177_v2 = vsub.f32 %v10739_v63, %v1105_v39  ;;  %v1178_v21 = vsub.f32 %v7704_v11, %v1105_v39  ;;  %v1130_v11 = vmax.f32 %v7682_v24, %v7816_v34 }
 0x39e   : > { %6034 = vpow2.f32 %v1277_v54 }
 0x39f   : > { %v6027_v40 = vpop.eup %6026  ;;  %6036 = vpow2.f32 %v1279_v47  ;;  %v1285_v28 = vmul.f32 1.442695, %v1177_v2  ;;  %v1287_v58 = vmul.f32 1.442695, %v1178_v21 }
 0x3a0   : > { %v6029_v19 = vpop.eup %6028  ;;  %1368 = vadd.xlane.f32.xlu0 %v1367_v29 }
 0x3a1   : > { %v7948_v51 = vpop.eup %6030  ;;  %6038 = vpow2.f32 %v1285_v28  ;;  %v7954_v44 = vadd.f32 %v6029_v19, %v6027_v40  ;;  %v1111_v39 = vpop.xlane.xlu2 %1110  ;;  %v1440_v29 = vpack.c.bf16 %v6029_v19, %v7856_v60  ;;  %v2065_v60 = vmax.f32 %v7700_v33, %v7822_v14 }
 0x3a2   : > { %v6033_v63 = vpop.eup %6032  ;;  %6040 = vpow2.f32 %v1287_v58  ;;  %v1181_v28 = vsub.f32 %v10741_v17, %v1111_v39  ;;  %v1182_v58 = vsub.f32 %v7722_v46, %v1111_v39 }
 0x3a3   : > { %10783 = vst [vmem:[#allocation89_spill] sm:$0xff] %v7954_v44  ;;  %1359 = vadd.xlane.f32.xlu2 %v7818_v42  ;;  %1131 = vmax.xlane.f32.xlu1 %v1130_v11  ;;  %v7958_v9 = vadd.f32 %v6033_v63, %v7948_v51  ;;  %v7972_v2 = vpop.f32.mrf.mxu0  ;;  %v7981_v21 = vpop.f32.mrf.mxu3 }
 0x3a4   : > { %v6035_v22 = vpop.eup %6034  ;;  %v1108_v27 = vpop.xlane.xlu0 %1107 }
 0x3a5   : > { %v6037_v53 = vpop.eup %6036  ;;  %v1179_v57 = vsub.f32 %v10743_v12, %v1108_v27  ;;  %v1180_v20 = vsub.f32 %v7716_v43, %v1108_v27  ;;  %5695 = vmatmul.msk.bf16.gmra.mxu0 %vm762_vm2, %v10738_v35  ;;  %v1370_v43 = vadd.f32 %v7874_v50, %v7872_v45  ;;  %v1439_v12 = vpack.c.bf16 %v6027_v40, %v7844_v37 }
 0x3a6   : > { %v7966_v55 = vadd.f32 %v6037_v53, %v6035_v22  ;;  %v2077_v45 = vmax.f32 %v7752_v10, %v7882_v15  ;;  %v1293_v27 = vmul.f32 1.442695, %v1181_v28  ;;  %v1295_v37 = vmul.f32 1.442695, %v1182_v58  ;;  %v10788_v28 = vld [vmem:[#allocation64_spill] sm:$0xff] }
 0x3a7   : > { %v7968_v42 = vpop.eup %6038  ;;  %v1289_v25 = vmul.f32 1.442695, %v1179_v57  ;;  %v1291_v54 = vmul.f32 1.442695, %v1180_v20  ;;  %v8003_v57 = vpop.f32.mrf.mxu1  ;;  %v2071_v20 = vmax.f32 %v7724_v3, %v7842_v16  ;;  %v1442_v39 = vpack.c.bf16 %v6033_v63, %v6037_v53 }
 0x3a8   : > { %10784 = vst [vmem:[#allocation90_spill] sm:$0xff] %v7966_v55  ;;  %v7970_v47 = vpop.eup %6040  ;;  %2069 = vmax.xlane.f32.xlu0 %v2068_v5 }
 0x3a9   : > { %6042 = vpow2.f32 %v1289_v25  ;;  %v7978_v35 = vadd.f32 %v7970_v47, %v7968_v42  ;;  %10786 = vst [vmem:[#allocation92_spill] sm:$0xff] %v8003_v57  ;;  %v1441_v25 = vpack.c.bf16 %v7948_v51, %v6035_v22  ;;  %v10789_v22 = vld [vmem:[#allocation68_spill] sm:$0xff] }
 0x3aa   : > { %6044 = vpow2.f32 %v1291_v54 }
 0x3ab   : > { %1347 = vadd.xlane.f32.xlu2 %v7718_v4  ;;  %1371 = vadd.xlane.f32.xlu1 %v1370_v43  ;;  %v2074_v4 = vmax.f32 %v7736_v1, %v7868_v32  ;;  %v7995_v17 = vpop.f32.mrf.mxu0  ;;  %6046 = vpow2.f32 %v1293_v27  ;;  %v7997_v46 = vpop.f32.mrf.mxu3  ;;  %v10792_v27 = vld [vmem:[#allocation34_spill] sm:$0xff] }
 0x3ac   : > { %1506 = vmatmul.bf16.gmra.mxu1 %v1439_v12  ;;  %10785 = vst [vmem:[#allocation91_spill] sm:$0xff] %v7995_v17  ;;  %6048 = vpow2.f32 %v1295_v37  ;;  %v2098_v19 = vmax.f32 %v7997_v46, %v7995_v17  ;;  %v8009_v43 = vpop.f32.mrf.mxu2  ;;  %v1114_v51 = vpop.xlane.xlu0 %1113  ;;  %v2083_v37 = vmax.f32 %v10792_v27, %v7902_v62 }
 0x3ad   : > { %1595 = vmatmul.bf16.gmra.mxu2 %v1440_v29  ;;  %10787 = vst [vmem:[#allocation93_spill] sm:$0xff] %v8009_v43  ;;  %v2080_v29 = vmax.f32 %v7765_v56, %v7900_v26  ;;  %v1183_v63 = vsub.f32 %v10789_v22, %v1114_v51 }
 0x3af   : > { %v6043_v50 = vpop.eup %6042 }
 0x3b0   : > { %v6045_v11 = vpop.eup %6044  ;;  %2078 = vmax.xlane.f32.xlu0 %v2077_v45  ;;  %v2092_v45 = vmax.f32 %v7950_v31, %v7946_v23 }
 0x3b1   : > { %v7993_v40 = vadd.f32 %v6045_v11, %v6043_v50  ;;  %v6047_v5 = vpop.eup %6046 }
 0x3b2   : > { %v6049_v54 = vpop.eup %6048 }
 0x3b3   : > { %2075 = vmax.xlane.f32.xlu2 %v2074_v4  ;;  %2066 = vmax.xlane.f32.xlu1 %v2065_v60  ;;  %v10793_v4 = vld [vmem:[#allocation79_spill] sm:$0xff]  ;;  %v1443_v60 = vpack.c.bf16 %v6043_v50, %v7968_v42  ;;  %v10796_v42 = vld [vmem:[#allocation52_spill] sm:$0xff] }
 0x3b5   : > { %5696 = vmatmul.msk.bf16.gmra.mxu0 %vm762_vm2, %v10749_v18  ;;  %v1397_v18 = vadd.f32 %v6049_v54, %v6047_v5 }
 0x3b8   : > { %2099 = vmax.xlane.f32.xlu0 %v2098_v19  ;;  %v1444_v19 = vpack.c.bf16 %v6045_v11, %v7970_v47  ;;  %v1117_v47 = vpop.xlane.xlu2 %1116 }
 0x3bb   : > { %1341 = vadd.xlane.f32.xlu2 %v7696_v13  ;;  %2072 = vmax.xlane.f32.xlu1 %v2071_v20  ;;  %v1297_v20 = vmul.f32 1.442695, %v1183_v63  ;;  %v10797_v63 = vld [vmem:[#allocation71_spill] sm:$0xff] }
 0x3bc   : > { %1511 = vmatmul.bf16.gmra.mxu1 %v1441_v25 }
 0x3bd   : > { %1600 = vmatmul.bf16.gmra.mxu2 %v1442_v39  ;;  %v8028_v39 = vpop.f32.mrf.mxu0  ;;  %6050 = vpow2.f32 %v1297_v20 }
 0x3c0   : > { %1398 = vadd.xlane.f32.xlu0 %v1397_v18 }
 0x3c1   : > { %v1482_v12 = vpop.f32.mrf.mxu1 }
 0x3c3   : > { %1338 = vadd.xlane.f32.xlu2 %v7680_v38  ;;  %2081 = vmax.xlane.f32.xlu1 %v2080_v29  ;;  %v1184_v38 = vsub.f32 %v10793_v4, %v1114_v51  ;;  %v10795_v29 = vld [vmem:[#allocation62_spill] sm:$0xff]  ;;  %v8034_v51 = vpop.f32.mrf.mxu3  ;;  %v6051_v50 = vpop.eup %6050 }
 0x3c5   : > { %5697 = vmatmul.msk.bf16.gmra.mxu0 %vm762_vm2, %v10788_v28  ;;  %v1299_v25 = vmul.f32 1.442695, %v1184_v38  ;;  %v2086_v28 = vmax.f32 %v10795_v29, %v7914_v61  ;;  %v2089_v38 = vmax.f32 %v7930_v6, %v7924_v41 }
 0x3c7   : > { %6052 = vpow2.f32 %v1299_v25  ;;  %v1445_v25 = vpack.c.bf16 %v6051_v50, %v6047_v5 }
 0x3c8   : > { %v1571_v13 = vpop.f32.mrf.mxu2 }
 0x3c9   : > { %v8017_v53 = vadd.f32 %v1571_v13, %v1482_v12  ;;  %v8019_v58 = vpop.f32.mrf.mxu1  ;;  %v1120_v13 = vpop.xlane.xlu1 %1119 }
 0x3ca   : > { %10791 = vst [vmem:[#allocation68_spill] sm:$0xff] %v8019_v58 }
 0x3cb   : > { %10790 = vst [vmem:[#allocation64_spill] sm:$0xff] %v8017_v53  ;;  %2093 = vmax.xlane.f32.xlu2 %v2092_v45  ;;  %2084 = vmax.xlane.f32.xlu1 %v2083_v37  ;;  %v1185_v45 = vsub.f32 %v10797_v63, %v1117_v47  ;;  %v8039_v37 = vpop.f32.mrf.mxu0  ;;  %v8049_v57 = vpop.f32.mrf.mxu3  ;;  %v10802_v53 = vld [vmem:[#allocation63_spill] sm:$0xff] }
 0x3cc   : > { %1516 = vmatmul.bf16.gmra.mxu1 %v1443_v60  ;;  %v10799_v60 = vld [vmem:[#allocation80_spill] sm:$0xff]  ;;  %v1188_v63 = vsub.f32 %v10802_v53, %v1120_v13 }
 0x3cd   : > { %1605 = vmatmul.bf16.gmra.mxu2 %v1444_v19  ;;  %v6053_v11 = vpop.eup %6052  ;;  %v1186_v19 = vsub.f32 %v10799_v60, %v1117_v47  ;;  %v10805_v47 = vld [vmem:[#allocation78_spill] sm:$0xff] }
 0x3ce   : > { %v1446_v43 = vpack.c.bf16 %v6053_v11, %v6049_v54  ;;  %v10804_v54 = vld [vmem:[#allocation31_spill] sm:$0xff] }
 0x3d0   : > { %v8030_v18 = vpop.f32.mrf.mxu2 }
 0x3d1   : > { %10794 = vst [vmem:[#allocation34_spill] sm:$0xff] %v8030_v18  ;;  %v1487_v12 = vpop.f32.mrf.mxu1  ;;  %v1123_v18 = vpop.xlane.xlu0 %1122 }
 0x3d3   : > { %2087 = vmax.xlane.f32.xlu1 %v2086_v28  ;;  %v10801_v28 = vld [vmem:[#allocation72_spill] sm:$0xff]  ;;  %v8054_v5 = vpop.f32.mrf.mxu0 }
 0x3d4   : > { %v1187_v8 = vsub.f32 %v10801_v28, %v1120_v13  ;;  %v10806_v13 = vld [vmem:[#allocation40_spill] sm:$0xff] }
 0x3d5   : > { %5766 = vmatmul.msk.bf16.vlgmr.msrb.gmra.mxu0 %vm762_vm2, %v10796_v42 }
 0x3d6   : > { %v1305_v58 = vmul.f32 1.442695, %v1187_v8 }
 0x3d8   : > { %v1576_v22 = vpop.f32.mrf.mxu2 }
 0x3d9   : > { %v8041_v4 = vadd.f32 %v1576_v22, %v1487_v12  ;;  %v8046_v20 = vpop.f32.mrf.mxu1  ;;  %v1301_v12 = vmul.f32 1.442695, %v1185_v45  ;;  %v1303_v22 = vmul.f32 1.442695, %v1186_v19  ;;  %v1126_v8 = vpop.xlane.xlu0 %1125 }
 0x3da   : > { %10800 = vst [vmem:[#allocation62_spill] sm:$0xff] %v8046_v20 }
 0x3db   : > { %10798 = vst [vmem:[#allocation79_spill] sm:$0xff] %v8041_v4  ;;  %2090 = vmax.xlane.f32.xlu1 %v2089_v38  ;;  %v1307_v4 = vmul.f32 1.442695, %v1188_v63  ;;  %6054 = vpow2.f32 %v1301_v12  ;;  %v1400_v63 = vadd.f32 %v6053_v11, %v6051_v50  ;;  %v8069_v55 = vpop.f32.mrf.mxu0 }
 0x3dc   : > { %1521 = vmatmul.bf16.gmra.mxu1 %v1445_v25  ;;  %6056 = vpow2.f32 %v1303_v22  ;;  %v10809_v22 = vld [vmem:[#allocation39_spill] sm:$0xff] }
 0x3dd   : > { %1610 = vmatmul.bf16.gmra.mxu2 %v1446_v43  ;;  %6058 = vpow2.f32 %v1305_v58  ;;  %v8061_v43 = vpop.f32.mrf.mxu3  ;;  %v10807_v58 = vld [vmem:[#allocation76_spill] sm:$0xff] }
 0x3de   : > { %6060 = vpow2.f32 %v1307_v4  ;;  %v1191_v25 = vsub.f32 %v10807_v58, %v1126_v8 }
 0x3e0   : > { %v8052_v42 = vpop.f32.mrf.mxu2  ;;  %v1313_v44 = vmul.f32 1.442695, %v1191_v25 }
 0x3e1   : > { %10803 = vst [vmem:[#allocation71_spill] sm:$0xff] %v8052_v42  ;;  %v1492_v53 = vpop.f32.mrf.mxu1  ;;  %v6055_v45 = vpop.eup %6054 }
 0x3e2   : > { %v6057_v38 = vpop.eup %6056  ;;  %6062 = vpow2.f32 %v1313_v44 }
 0x3e3   : > { %3082 = vrot.lane.b32.xlu2 %v10804_v54, %s6785_s10  ;;  %1335 = vadd.xlane.f32.xlu1 %v10805_v47  ;;  %v6059_v19 = vpop.eup %6058  ;;  %v1192_v47 = vsub.f32 %v10809_v22, %v1126_v8  ;;  %v10810_v54 = vld [vmem:[#allocation74_spill] sm:$0xff] }
 0x3e4   : > { %v6061_v12 = vpop.eup %6060  ;;  %v1447_v4 = vpack.c.bf16 %v6059_v19, %v6055_v45  ;;  %v1189_v42 = vsub.f32 %v10810_v54, %v1123_v18  ;;  %v8077_v54 = vpop.xlane.xlu0 %1356 }
 0x3e5   : > { %5767 = vmatmul.msk.bf16.gmra.mxu0 %vm762_vm2, %v10806_v13  ;;  %v1448_v20 = vpack.c.bf16 %v6061_v12, %v6057_v38  ;;  %v10811_v13 = vld [vmem:[#allocation50_spill] sm:$0xff]  ;;  %v1315_v17 = vmul.f32 1.442695, %v1192_v47  ;;  %v8073_v50 = vpop.f32.mrf.mxu3  ;;  %10814 = vst [vmem:[#allocation78_spill] sm:$0xff] %v8077_v54  ;;  %v1403_v47 = vadd.f32 %v6057_v38, %v6055_v45 }
 0x3e6   : > { %v1190_v59 = vsub.f32 %v10811_v13, %v1123_v18  ;;  %v2095_v18 = vmax.f32 %v7981_v21, %v7972_v2  ;;  %v8081_v13 = vpop.xlane.xlu2 %1365 }
 0x3e7   : > { %6064 = vpow2.f32 %v1315_v17  ;;  %10815 = vst [vmem:[#allocation76_spill] sm:$0xff] %v8081_v13 }
 0x3e8   : > { %v1581_v60 = vpop.f32.mrf.mxu2  ;;  %v1311_v11 = vmul.f32 1.442695, %v1190_v59 }
 0x3e9   : > { %v8064_v28 = vadd.f32 %v1581_v60, %v1492_v53  ;;  %v8071_v58 = vpop.f32.mrf.mxu1  ;;  %v1309_v53 = vmul.f32 1.442695, %v1189_v42  ;;  %v6063_v42 = vpop.eup %6062 }
 0x3ea   : > { %10812 = vst [vmem:[#allocation72_spill] sm:$0xff] %v8071_v58  ;;  %v8085_v60 = vpop.f32.mrf.mxu0 }
 0x3eb   : > { %10808 = vst [vmem:[#allocation80_spill] sm:$0xff] %v8064_v28  ;;  %1401 = vadd.xlane.f32.xlu1 %v1400_v63  ;;  %6066 = vpow2.f32 %v1309_v53  ;;  %v8093_v28 = vpop.xlane.xlu1 %1362 }
 0x3ec   : > { %1526 = vmatmul.bf16.gmra.mxu1 %v1447_v4  ;;  %6068 = vpow2.f32 %v1311_v11  ;;  %v8091_v54 = vpop.xlane.xlu0 %1350  ;;  %10819 = vst [vmem:[#allocation50_spill] sm:$0xff] %v8093_v28 }
 0x3ed   : > { %1615 = vmatmul.bf16.gmra.mxu2 %v1448_v20  ;;  %v10816_v20 = vld [vmem:[#allocation65_spill] sm:$0xff]  ;;  %v6065_v59 = vpop.eup %6064  ;;  %v8089_v17 = vpop.f32.mrf.mxu3  ;;  %10818 = vst [vmem:[#allocation74_spill] sm:$0xff] %v8091_v54 }
 0x3f0   : > { %v8075_v8 = vpop.f32.mrf.mxu2 }
 0x3f1   : > { %10813 = vst [vmem:[#allocation63_spill] sm:$0xff] %v8075_v8  ;;  %v1497_v25 = vpop.f32.mrf.mxu1  ;;  %v6067_v63 = vpop.eup %6066 }
 0x3f2   : > { %v6069_v4 = vpop.eup %6068  ;;  %v1449_v53 = vpack.c.bf16 %v6063_v42, %v6067_v63 }
 0x3f3   : > { %2096 = vmax.xlane.f32.xlu1 %v2095_v18  ;;  %v1450_v11 = vpack.c.bf16 %v6065_v59, %v6069_v4  ;;  %v1129_v18 = vpop.xlane.xlu2 %1128 }
 0x3f4   : > { %v1193_v8 = vsub.f32 %v7666_v30, %v1129_v18  ;;  %v1194_v58 = vsub.f32 %v7796_v48, %v1129_v18  ;;  %v8099_v45 = vpop.permute.xlu0 %3080  ;;  %v2101_v30 = vmax.f32 %v8034_v51, %v8028_v39  ;;  %v1412_v48 = vadd.f32 %v6065_v59, %v6063_v42 }
 0x3f5   : > { %5768 = vmatmul.msk.bf16.gmra.mxu0 %vm762_vm2, %v10816_v20  ;;  %10820 = vst [vmem:[#allocation94_spill] sm:$0xff] %v8099_v45  ;;  %v8101_v38 = vpop.f32.mrf.mxu3 }
 0x3f6   : > { %v1317_v54 = vmul.f32 1.442695, %v1193_v8 }
 0x3f8   : > { %v1586_v44 = vpop.f32.mrf.mxu2  ;;  %6070 = vpow2.f32 %v1317_v54 }
 0x3f9   : > { %v8087_v22 = vadd.f32 %v1586_v44, %v1497_v25  ;;  %v1406_v25 = vadd.f32 %v6061_v12, %v6059_v19  ;;  %v8097_v44 = vpop.f32.mrf.mxu0  ;;  %v8119_v54 = vpop.f32.mrf.mxu1 }
 0x3fa   : > { %10825 = vst [vmem:[#allocation99_spill] sm:$0xff] %v8119_v54 }
 0x3fb   : > { %10817 = vst [vmem:[#allocation39_spill] sm:$0xff] %v8087_v22  ;;  %1404 = vadd.xlane.f32.xlu1 %v1403_v47  ;;  %v1319_v47 = vmul.f32 1.442695, %v1194_v58 }
 0x3fc   : > { %1531 = vmatmul.bf16.gmra.mxu1 %v1449_v53  ;;  %v8105_v53 = vpop.permute.xlu1 %3078 }
 0x3fd   : > { %1620 = vmatmul.bf16.gmra.mxu2 %v1450_v11  ;;  %10821 = vst [vmem:[#allocation95_spill] sm:$0xff] %v8105_v53  ;;  %6072 = vpow2.f32 %v1319_v47  ;;  %v8113_v8 = vpop.f32.mrf.mxu3  ;;  %v1409_v47 = vadd.f32 %v6069_v4, %v6067_v63 }
 0x3fe   : > { %v6071_v11 = vpop.eup %6070 }
 0x401   : > { %v8111_v12 = vpop.f32.mrf.mxu0 }
 0x403   : > { %1407 = vadd.xlane.f32.xlu1 %v1406_v25  ;;  %v6073_v18 = vpop.eup %6072  ;;  %v8117_v25 = vpop.permute.xlu2 %2788 }
 0x404   : > { %10824 = vst [vmem:[#allocation98_spill] sm:$0xff] %v8117_v25  ;;  %v1415_v28 = vadd.f32 %v6073_v18, %v6071_v11 }
 0x405   : > { %5769 = vmatmul.msk.bf16.gmra.mxu0 %vm762_vm2, %v7908_v0 }
 0x409   : > { %v8125_v42 = vpop.f32.mrf.mxu0 }
 0x40b   : > { %v8109_v19 = vpop.xlane.xlu0 %1344  ;;  %2102 = vmax.xlane.f32.xlu1 %v2101_v30 }
 0x40c   : > { %10822 = vst [vmem:[#allocation96_spill] sm:$0xff] %v8109_v19  ;;  %1413 = vadd.xlane.f32.xlu2 %v1412_v48  ;;  %v8129_v19 = vpop.f32.mrf.mxu3 }
 0x40e   : > { %v8115_v58 = vpop.xlane.xlu1 %1353 }
 0x40f   : > { %10823 = vst [vmem:[#allocation97_spill] sm:$0xff] %v8115_v58  ;;  %v8131_v58 = vpop.f32.mrf.mxu2 }
 0x410   : > { %10827 = vst [vmem:[#allocation101_spill] sm:$0xff] %v8131_v58 }
 0x413   : > { %v8121_v22 = vpop.xlane.xlu0 %1368  ;;  %1410 = vadd.xlane.f32.xlu1 %v1409_v47 }
 0x414   : > { %10826 = vst [vmem:[#allocation100_spill] sm:$0xff] %v8121_v22  ;;  %1416 = vadd.xlane.f32.xlu2 %v1415_v28  ;;  %v2104_v28 = vmax.f32 %v8049_v57, %v8039_v37 }
 0x415   : > { %5770 = vmatmul.msk.bf16.gmra.mxu0 %vm762_vm2, %v7920_v36 }
 0x416   : > { %v1132_v59 = vpop.xlane.xlu1 %1131  ;;  %v8133_v63 = vpop.xlane.xlu2 %1359 }
 0x417   : > { %v1195_v30 = vsub.f32 %v7682_v24, %v1132_v59  ;;  %v1196_v48 = vsub.f32 %v7816_v34, %v1132_v59  ;;  %10828 = vst [vmem:[#allocation102_spill] sm:$0xff] %v8133_v63  ;;  %v10829_v59 = vld [vmem:[#allocation75_spill] sm:$0xff] }
 0x419   : > { %v1321_v4 = vmul.f32 1.442695, %v1195_v30  ;;  %v1323_v13 = vmul.f32 1.442695, %v1196_v48  ;;  %v1502_v47 = vpop.f32.mrf.mxu1  ;;  %v8142_v30 = vpop.f32.mrf.mxu0 }
 0x41b   : > { %6074 = vpow2.f32 %v1321_v4  ;;  %v2070_v54 = vpop.xlane.xlu0 %2069  ;;  %2105 = vmax.xlane.f32.xlu1 %v2104_v28 }
 0x41c   : > { %6076 = vpow2.f32 %v1323_v13  ;;  %v2163_v24 = vsub.f32 %v7714_v52, %v2070_v54  ;;  %v2164_v34 = vsub.f32 %v7832_v7, %v2070_v54  ;;  %1329 = vadd.xlane.f32.xlu2 %v10829_v59  ;;  %v2107_v52 = vmax.f32 %v8061_v43, %v8054_v5  ;;  %v8150_v13 = vpop.f32.mrf.mxu3 }
 0x41d   : > { %v2113_v54 = vmax.f32 %v8089_v17, %v8085_v60 }
 0x41e   : > { %v2229_v22 = vmul.f32 1.442695, %v2163_v24  ;;  %v2231_v58 = vmul.f32 1.442695, %v2164_v34  ;;  %v8140_v36 = vpop.xlane.xlu1 %1371  ;;  %v8154_v34 = vpop.xlane.xlu2 %1347 }
 0x41f   : > { %10830 = vst [vmem:[#allocation75_spill] sm:$0xff] %v8140_v36 }
 0x420   : > { %6078 = vpow2.f32 %v2229_v22  ;;  %v1591_v48 = vpop.f32.mrf.mxu2  ;;  %10833 = vst [vmem:[#allocation105_spill] sm:$0xff] %v8154_v34 }
 0x421   : > { %v6075_v63 = vpop.eup %6074  ;;  %6080 = vpow2.f32 %v2231_v58  ;;  %v8144_v4 = vadd.f32 %v1591_v48, %v1502_v47  ;;  %v8146_v28 = vpop.f32.mrf.mxu1 }
 0x422   : > { %10832 = vst [vmem:[#allocation104_spill] sm:$0xff] %v8146_v28  ;;  %v6077_v7 = vpop.eup %6076  ;;  %v1451_v24 = vpack.c.bf16 %v6075_v63, %v6071_v11 }
 0x423   : > { %10831 = vst [vmem:[#allocation103_spill] sm:$0xff] %v8144_v4  ;;  %2108 = vmax.xlane.f32.xlu1 %v2107_v52  ;;  %v1452_v22 = vpack.c.bf16 %v6077_v7, %v6073_v18  ;;  %v1418_v59 = vadd.f32 %v6077_v7, %v6075_v63  ;;  %v2079_v58 = vpop.xlane.xlu0 %2078  ;;  %v2110_v7 = vmax.f32 %v8073_v50, %v8069_v55 }
 0x424   : > { %2114 = vmax.xlane.f32.xlu2 %v2113_v54  ;;  %1536 = vmatmul.bf16.gmra.mxu1 %v1451_v24  ;;  %v2169_v34 = vsub.f32 %v7752_v10, %v2079_v58  ;;  %v2170_v18 = vsub.f32 %v7882_v15, %v2079_v58  ;;  %v8166_v54 = vpop.f32.mrf.mxu0  ;;  %v8168_v36 = vpop.f32.mrf.mxu3 }
 0x425   : > { %1625 = vmatmul.bf16.gmra.mxu2 %v1452_v22  ;;  %1419 = vadd.xlane.f32.xlu0 %v1418_v59 }
 0x426   : > { %v6079_v47 = vpop.eup %6078  ;;  %5771 = vmatmul.msk.bf16.gmra.mxu0 %vm762_vm2, %v7916_v49  ;;  %v2067_v48 = vpop.xlane.xlu1 %2066 }
 0x427   : > { %v6081_v4 = vpop.eup %6080  ;;  %v2161_v28 = vsub.f32 %v7700_v33, %v2067_v48  ;;  %v2162_v11 = vsub.f32 %v7822_v14, %v2067_v48  ;;  %v2241_v33 = vmul.f32 1.442695, %v2169_v34  ;;  %v2243_v14 = vmul.f32 1.442695, %v2170_v18  ;;  %v2076_v10 = vpop.xlane.xlu2 %2075 }
 0x428   : > { %v8161_v52 = vpop.f32.mrf.mxu2  ;;  %v2356_v59 = vadd.f32 %v6081_v4, %v6079_v47  ;;  %v2119_v34 = vmax.f32 %v8113_v8, %v8111_v12 }
 0x429   : > { %10834 = vst [vmem:[#allocation106_spill] sm:$0xff] %v8161_v52  ;;  %v1507_v63 = vpop.f32.mrf.mxu1  ;;  %v2225_v24 = vmul.f32 1.442695, %v2161_v28  ;;  %v2227_v22 = vmul.f32 1.442695, %v2162_v11 }
 0x42b   : > { %2111 = vmax.xlane.f32.xlu1 %v2110_v7  ;;  %6082 = vpow2.f32 %v2225_v24 }
 0x42c   : > { %2357 = vadd.xlane.f32.xlu2 %v2356_v59  ;;  %6084 = vpow2.f32 %v2227_v22  ;;  %v10837_v59 = vld [vmem:[#allocation77_spill] sm:$0xff]  ;;  %v8179_v22 = vpop.f32.mrf.mxu0 }
 0x42d   : > { %6086 = vpow2.f32 %v2241_v33 }
 0x42e   : > { %v2073_v48 = vpop.xlane.xlu1 %2072  ;;  %6088 = vpow2.f32 %v2243_v14 }
 0x42f   : > { %v2165_v15 = vsub.f32 %v7724_v3, %v2073_v48  ;;  %v2166_v58 = vsub.f32 %v7842_v16, %v2073_v48  ;;  %v2167_v16 = vsub.f32 %v7736_v1, %v2076_v10  ;;  %v8184_v48 = vpop.f32.mrf.mxu3 }
 0x430   : > { %v1596_v52 = vpop.f32.mrf.mxu2 }
 0x431   : > { %v8172_v28 = vadd.f32 %v1596_v52, %v1507_v63  ;;  %v8174_v11 = vpop.f32.mrf.mxu1  ;;  %v6083_v7 = vpop.eup %6082  ;;  %v2233_v18 = vmul.f32 1.442695, %v2165_v15  ;;  %v2235_v33 = vmul.f32 1.442695, %v2166_v58  ;;  %v2237_v58 = vmul.f32 1.442695, %v2167_v16 }
 0x432   : > { %10836 = vst [vmem:[#allocation108_spill] sm:$0xff] %v8174_v11  ;;  %v6085_v24 = vpop.eup %6084  ;;  %v2449_v3 = vpack.c.bf16 %v6079_v47, %v6083_v7  ;;  %v8191_v47 = vpop.xlane.xlu2 %1341 }
 0x433   : > { %10835 = vst [vmem:[#allocation107_spill] sm:$0xff] %v8172_v28  ;;  %1332 = vadd.xlane.f32.xlu1 %v10837_v59  ;;  %v2450_v14 = vpack.c.bf16 %v6081_v4, %v6085_v24  ;;  %v2353_v52 = vadd.f32 %v6085_v24, %v6083_v7  ;;  %v8182_v63 = vpop.eup %6086  ;;  %v2168_v28 = vsub.f32 %v7868_v32, %v2076_v10  ;;  %6090 = vpow2.f32 %v2233_v18 }
 0x434   : > { %2120 = vmax.xlane.f32.xlu2 %v2119_v34  ;;  %2553 = vmatmul.bf16.vlgmr.msra.gmra.mxu1 %v2449_v3  ;;  %v8189_v59 = vpop.eup %6088  ;;  %10838 = vst [vmem:[#allocation77_spill] sm:$0xff] %v8191_v47  ;;  %6092 = vpow2.f32 %v2235_v33  ;;  %v2116_v34 = vmax.f32 %v8101_v38, %v8097_v44 }
 0x435   : > { %2642 = vmatmul.bf16.vlgmr.msra.gmra.mxu2 %v2450_v14  ;;  %2354 = vadd.xlane.f32.xlu0 %v2353_v52  ;;  %v2239_v7 = vmul.f32 1.442695, %v2168_v28  ;;  %v2365_v24 = vadd.f32 %v8189_v59, %v8182_v63  ;;  %6094 = vpow2.f32 %v2237_v58  ;;  %v8201_v14 = vpop.f32.mrf.mxu0 }
 0x436   : > { %5772 = vmatmul.msk.bf16.gmra.mxu0 %vm762_vm2, %v8105_v53  ;;  %v2082_v15 = vpop.xlane.xlu1 %2081  ;;  %v10847_v53 = vld [vmem:[#allocation35_spill] sm:$0xff] }
 0x437   : > { %v2171_v1 = vsub.f32 %v7765_v56, %v2082_v15  ;;  %v2172_v32 = vsub.f32 %v7900_v26, %v2082_v15  ;;  %6096 = vpow2.f32 %v2239_v7  ;;  %v10840_v26 = vld [vmem:[#allocation73_spill] sm:$0xff]  ;;  %v8204_v52 = vpop.f32.mrf.mxu3 }
 0x438   : > { %v8194_v4 = vpop.f32.mrf.mxu2 }
 0x439   : > { %10839 = vst [vmem:[#allocation109_spill] sm:$0xff] %v8194_v4  ;;  %v1512_v10 = vpop.f32.mrf.mxu1  ;;  %v2245_v18 = vmul.f32 1.442695, %v2171_v1  ;;  %v6091_v3 = vpop.eup %6090  ;;  %v2247_v33 = vmul.f32 1.442695, %v2172_v32  ;;  %v2128_v32 = vmax.f32 %v8168_v36, %v8166_v54 }
 0x43a   : > { %v6093_v56 = vpop.eup %6092  ;;  %v8206_v15 = vpop.xlane.xlu2 %1338 }
 0x43b   : > { %2117 = vmax.xlane.f32.xlu1 %v2116_v34  ;;  %6098 = vpow2.f32 %v2245_v18  ;;  %10841 = vst [vmem:[#allocation73_spill] sm:$0xff] %v8206_v15  ;;  %v2359_v58 = vadd.f32 %v6093_v56, %v6091_v3 }
 0x43c   : > { %2366 = vadd.xlane.f32.xlu2 %v2365_v24  ;;  %6100 = vpow2.f32 %v2247_v33  ;;  %v8214_v24 = vpop.eup %6094 }
 0x43d   : > { %1326 = vadd.xlane.f32.xlu0 %v10840_v26  ;;  %v8216_v7 = vpop.eup %6096  ;;  %v2451_v18 = vpack.c.bf16 %v8214_v24, %v6091_v3 }
 0x43e   : > { %v2085_v16 = vpop.xlane.xlu1 %2084  ;;  %v2452_v26 = vpack.c.bf16 %v8216_v7, %v6093_v56 }
 0x440   : > { %v1601_v28 = vpop.f32.mrf.mxu2 }
 0x441   : > { %v8208_v34 = vadd.f32 %v1601_v28, %v1512_v10  ;;  %v8210_v1 = vpop.f32.mrf.mxu1  ;;  %v6099_v4 = vpop.eup %6098 }
 0x442   : > { %10843 = vst [vmem:[#allocation111_spill] sm:$0xff] %v8210_v1  ;;  %v6101_v33 = vpop.eup %6100  ;;  %v8222_v28 = vpop.f32.mrf.mxu0 }
 0x443   : > { %10842 = vst [vmem:[#allocation110_spill] sm:$0xff] %v8208_v34  ;;  %2360 = vadd.xlane.f32.xlu1 %v2359_v58  ;;  %v2122_v58 = vmax.f32 %v8129_v19, %v8125_v42  ;;  %v8228_v34 = vpop.f32.mrf.mxu3  ;;  %v2368_v3 = vadd.f32 %v6101_v33, %v6099_v4  ;;  %v8230_v56 = vpop.xlane.xlu2 %2093 }
 0x444   : > { %2129 = vmax.xlane.f32.xlu2 %v2128_v32  ;;  %2558 = vmatmul.bf16.gmra.mxu1 %v2451_v18 }
 0x445   : > { %2647 = vmatmul.bf16.gmra.mxu2 %v2452_v26 }
 0x446   : > { %5773 = vmatmul.msk.bf16.gmra.mxu0 %vm762_vm2, %v8099_v45  ;;  %v2088_v10 = vpop.xlane.xlu1 %2087 }
 0x447   : > { %v2175_v45 = vsub.f32 %v10795_v29, %v2088_v10  ;;  %v2174_v29 = vsub.f32 %v7902_v62, %v2085_v16 }
 0x448   : > { %v8224_v11 = vpop.f32.mrf.mxu2 }
 0x449   : > { %10844 = vst [vmem:[#allocation112_spill] sm:$0xff] %v8224_v11  ;;  %v1517_v32 = vpop.f32.mrf.mxu1  ;;  %v2137_v11 = vmax.f32 %v8228_v34, %v8222_v28 }
 0x44a   : > { %v8238_v47 = vpop.f32.mrf.mxu0 }
 0x44b   : > { %2123 = vmax.xlane.f32.xlu1 %v2122_v58  ;;  %v8244_v58 = vpop.f32.mrf.mxu3 }
 0x44c   : > { %2369 = vadd.xlane.f32.xlu2 %v2368_v3  ;;  %v2176_v3 = vsub.f32 %v7914_v61, %v2088_v10 }
 0x44e   : > { %v2091_v18 = vpop.xlane.xlu1 %2090  ;;  %v2255_v61 = vmul.f32 1.442695, %v2176_v3 }
 0x450   : > { %v1606_v1 = vpop.f32.mrf.mxu2 }
 0x451   : > { %v8232_v15 = vadd.f32 %v1606_v1, %v1517_v32  ;;  %v8234_v26 = vpop.f32.mrf.mxu1  ;;  %3084 = vrot.lane.b32.xlu0 %v10847_v53, %s6785_s10  ;;  %v2453_v1 = vpack.c.bf16 %v6099_v4, %v8182_v63  ;;  %v2173_v32 = vsub.f32 %v10792_v27, %v2085_v16  ;;  %v2253_v53 = vmul.f32 1.442695, %v2175_v45 }
 0x452   : > { %10846 = vst [vmem:[#allocation114_spill] sm:$0xff] %v8234_v26  ;;  %v2454_v26 = vpack.c.bf16 %v6101_v33, %v8189_v59  ;;  %v2251_v27 = vmul.f32 1.442695, %v2174_v29  ;;  %v8260_v59 = vpop.f32.mrf.mxu0  ;;  %v2177_v33 = vsub.f32 %v7930_v6, %v2091_v18 }
 0x453   : > { %10845 = vst [vmem:[#allocation113_spill] sm:$0xff] %v8232_v15  ;;  %1395 = vadd.xlane.f32.xlu1 %v7993_v40  ;;  %v8249_v15 = vpop.permute.xlu2 %3082  ;;  %6102 = vpow2.f32 %v2253_v53  ;;  %v8262_v62 = vpop.f32.mrf.mxu3 }
 0x454   : > { %2138 = vmax.xlane.f32.xlu2 %v2137_v11  ;;  %10848 = vst [vmem:[#allocation115_spill] sm:$0xff] %v8249_v15  ;;  %2563 = vmatmul.bf16.gmra.mxu1 %v2453_v1  ;;  %v2249_v11 = vmul.f32 1.442695, %v2173_v32  ;;  %6104 = vpow2.f32 %v2255_v61  ;;  %v2179_v61 = vsub.f32 %v7950_v31, %v8230_v56  ;;  %v2131_v31 = vmax.f32 %v8184_v48, %v8179_v22 }
 0x455   : > { %2652 = vmatmul.bf16.gmra.mxu2 %v2454_v26 }
 0x456   : > { %5774 = vmatmul.msk.bf16.gmra.mxu0 %vm762_vm2, %v8249_v15  ;;  %v8255_v40 = vpop.xlane.xlu1 %1335  ;;  %6106 = vpow2.f32 %v2249_v11  ;;  %v2257_v11 = vmul.f32 1.442695, %v2177_v33 }
 0x457   : > { %10849 = vst [vmem:[#allocation116_spill] sm:$0xff] %v8255_v40  ;;  %6108 = vpow2.f32 %v2251_v27  ;;  %v2180_v27 = vsub.f32 %v7946_v23, %v8230_v56 }
 0x458   : > { %v8257_v10 = vpop.f32.mrf.mxu2  ;;  %6110 = vpow2.f32 %v2257_v11 }
 0x459   : > { %10850 = vst [vmem:[#allocation117_spill] sm:$0xff] %v8257_v10  ;;  %v1522_v63 = vpop.f32.mrf.mxu1  ;;  %v8266_v16 = vpop.eup %6102  ;;  %v2263_v23 = vmul.f32 1.442695, %v2180_v27 }
 0x45a   : > { %v8271_v3 = vpop.eup %6104 }
 0x45b   : > { %1392 = vadd.xlane.f32.xlu1 %v7978_v35  ;;  %v2178_v35 = vsub.f32 %v7924_v41, %v2091_v18  ;;  %v8287_v10 = vpop.f32.mrf.mxu3 }
 0x45c   : > { %v6107_v1 = vpop.eup %6106 }
 0x45d   : > { %v6109_v32 = vpop.eup %6108  ;;  %v2455_v29 = vpack.c.bf16 %v8266_v16, %v6107_v1  ;;  %v2259_v41 = vmul.f32 1.442695, %v2178_v35 }
 0x45e   : > { %v8264_v4 = vpop.xlane.xlu1 %1401  ;;  %v2456_v6 = vpack.c.bf16 %v8271_v3, %v6109_v32  ;;  %v2371_v27 = vadd.f32 %v6109_v32, %v6107_v1  ;;  %v10857_v1 = vld [vmem:[#allocation91_spill] sm:$0xff] }
 0x45f   : > { %10851 = vst [vmem:[#allocation118_spill] sm:$0xff] %v8264_v4  ;;  %6112 = vpow2.f32 %v2259_v41 }
 0x460   : > { %v1611_v45 = vpop.f32.mrf.mxu2 }
 0x461   : > { %v8269_v26 = vadd.f32 %v1611_v45, %v1522_v63  ;;  %v8274_v53 = vpop.f32.mrf.mxu1  ;;  %v8281_v63 = vpop.f32.mrf.mxu0 }
 0x462   : > { %10853 = vst [vmem:[#allocation120_spill] sm:$0xff] %v8274_v53 }
 0x463   : > { %10852 = vst [vmem:[#allocation119_spill] sm:$0xff] %v8269_v26  ;;  %1389 = vadd.xlane.f32.xlu1 %v7958_v9  ;;  %v2261_v26 = vmul.f32 1.442695, %v2179_v61 }
 0x464   : > { %2568 = vmatmul.bf16.gmra.mxu1 %v2455_v29 }
 0x465   : > { %2657 = vmatmul.bf16.gmra.mxu2 %v2456_v6 }
 0x466   : > { %v2097_v18 = vpop.xlane.xlu1 %2096 }
 0x467   : > { %v2181_v9 = vsub.f32 %v7981_v21, %v2097_v18  ;;  %v2182_v45 = vsub.f32 %v7972_v2, %v2097_v18  ;;  %v8295_v21 = vpop.eup %6110 }
 0x468   : > { %v8291_v33 = vpop.f32.mrf.mxu2  ;;  %v8297_v35 = vpop.eup %6112 }
 0x469   : > { %10854 = vst [vmem:[#allocation121_spill] sm:$0xff] %v8291_v33  ;;  %v2265_v53 = vmul.f32 1.442695, %v2181_v9  ;;  %v2267_v4 = vmul.f32 1.442695, %v2182_v45  ;;  %v1527_v56 = vpop.f32.mrf.mxu1  ;;  %v8299_v29 = vpop.f32.mrf.mxu0 }
 0x46b   : > { %6114 = vpow2.f32 %v2265_v53  ;;  %2132 = vmax.xlane.f32.xlu1 %v2131_v31  ;;  %v8303_v53 = vpop.f32.mrf.mxu3 }
 0x46c   : > { %6116 = vpow2.f32 %v2267_v4  ;;  %v2100_v4 = vpop.xlane.xlu0 %2099 }
 0x46d   : > { %6118 = vpow2.f32 %v2261_v26  ;;  %v2183_v31 = vsub.f32 %v7997_v46, %v2100_v4  ;;  %v2184_v32 = vsub.f32 %v10857_v1, %v2100_v4  ;;  %v2362_v4 = vadd.f32 %v8216_v7, %v8214_v24 }
 0x46e   : > { %6120 = vpow2.f32 %v2263_v23  ;;  %v8293_v2 = vpop.xlane.xlu1 %1404  ;;  %v2125_v7 = vmax.f32 %v8150_v13, %v8142_v30 }
 0x46f   : > { %10855 = vst [vmem:[#allocation122_spill] sm:$0xff] %v8293_v2  ;;  %v2269_v33 = vmul.f32 1.442695, %v2183_v31  ;;  %v2271_v2 = vmul.f32 1.442695, %v2184_v32 }
 0x470   : > { %v1616_v61 = vpop.f32.mrf.mxu2 }
 0x471   : > { %v6115_v11 = vpop.eup %6114  ;;  %v8301_v6 = vadd.f32 %v1616_v61, %v1527_v56  ;;  %v8315_v56 = vpop.f32.mrf.mxu1  ;;  %6122 = vpow2.f32 %v2269_v33  ;;  %v10863_v33 = vld [vmem:[#allocation90_spill] sm:$0xff] }
 0x472   : > { %v6117_v41 = vpop.eup %6116  ;;  %10858 = vst [vmem:[#allocation91_spill] sm:$0xff] %v8315_v56  ;;  %v8323_v46 = vpop.f32.mrf.mxu0  ;;  %6124 = vpow2.f32 %v2271_v2 }
 0x473   : > { %10856 = vst [vmem:[#allocation123_spill] sm:$0xff] %v8301_v6  ;;  %v8305_v18 = vpop.eup %6118  ;;  %2372 = vadd.xlane.f32.xlu1 %v2371_v27  ;;  %v2383_v26 = vadd.f32 %v6117_v41, %v6115_v11  ;;  %v2140_v6 = vmax.f32 %v8244_v58, %v8238_v47 }
 0x474   : > { %v8307_v9 = vpop.eup %6120  ;;  %v2457_v45 = vpack.c.bf16 %v8305_v18, %v8295_v21 }
 0x475   : > { %v2458_v23 = vpack.c.bf16 %v8307_v9, %v8297_v35  ;;  %2384 = vadd.xlane.f32.xlu2 %v2383_v26  ;;  %v2146_v26 = vmax.f32 %v8287_v10, %v8281_v63 }
 0x476   : > { %2573 = vmatmul.bf16.gmra.mxu1 %v2457_v45  ;;  %v8317_v61 = vpop.xlane.xlu1 %1407  ;;  %v8329_v45 = vpop.f32.mrf.mxu3 }
 0x477   : > { %10859 = vst [vmem:[#allocation124_spill] sm:$0xff] %v8317_v61  ;;  %2662 = vmatmul.bf16.gmra.mxu2 %v2458_v23  ;;  %v8337_v24 = vpop.eup %6122 }
 0x478   : > { %v8319_v27 = vpop.f32.mrf.mxu2  ;;  %v8342_v2 = vpop.eup %6124 }
 0x479   : > { %10860 = vst [vmem:[#allocation125_spill] sm:$0xff] %v8319_v27  ;;  %v1532_v27 = vpop.f32.mrf.mxu1 }
 0x47b   : > { %2141 = vmax.xlane.f32.xlu1 %v2140_v6  ;;  %2363 = vadd.xlane.f32.xlu0 %v2362_v4  ;;  %v2460_v6 = vpack.c.bf16 %v8342_v2, %v6117_v41  ;;  %v2149_v4 = vmax.f32 %v8303_v53, %v8299_v29 }
 0x47d   : > { %2147 = vmax.xlane.f32.xlu2 %v2146_v26 }
 0x47e   : > { %v2103_v23 = vpop.xlane.xlu1 %2102 }
 0x47f   : > { %v2185_v1 = vsub.f32 %v8034_v51, %v2103_v23  ;;  %v2186_v31 = vsub.f32 %v8028_v39, %v2103_v23  ;;  %v8333_v32 = vpop.xlane.xlu2 %1413  ;;  %v8344_v51 = vpop.f32.mrf.mxu0  ;;  %v2459_v39 = vpack.c.bf16 %v8337_v24, %v6115_v11 }
 0x480   : > { %10861 = vst [vmem:[#allocation126_spill] sm:$0xff] %v8333_v32  ;;  %v1621_v56 = vpop.f32.mrf.mxu2 }
 0x481   : > { %v2273_v61 = vmul.f32 1.442695, %v2185_v1  ;;  %v2275_v40 = vmul.f32 1.442695, %v2186_v31  ;;  %v8335_v15 = vadd.f32 %v1621_v56, %v1532_v27  ;;  %v8348_v56 = vpop.f32.mrf.mxu3 }
 0x483   : > { %10862 = vst [vmem:[#allocation127_spill] sm:$0xff] %v8335_v15  ;;  %6126 = vpow2.f32 %v2273_v61  ;;  %1386 = vadd.xlane.f32.xlu1 %v10863_v33  ;;  %2126 = vmax.xlane.f32.xlu0 %v2125_v7 }
 0x484   : > { %6128 = vpow2.f32 %v2275_v40  ;;  %v2134_v40 = vmax.f32 %v8204_v52, %v8201_v14 }
 0x486   : > { %2578 = vmatmul.bf16.gmra.mxu1 %v2459_v39  ;;  %v8350_v27 = vpop.xlane.xlu1 %1410 }
 0x487   : > { %10864 = vst [vmem:[#allocation90_spill] sm:$0xff] %v8350_v27  ;;  %2667 = vmatmul.bf16.gmra.mxu2 %v2460_v6  ;;  %v8352_v26 = vpop.xlane.xlu2 %1416  ;;  %v8358_v41 = vpop.f32.mrf.mxu0 }
 0x488   : > { %10865 = vst [vmem:[#allocation128_spill] sm:$0xff] %v8352_v26 }
 0x489   : > { %v6127_v61 = vpop.eup %6126  ;;  %v8364_v39 = vpop.f32.mrf.mxu3 }
 0x48a   : > { %v6129_v23 = vpop.eup %6128  ;;  %v2158_v6 = vmax.f32 %v8364_v39, %v8358_v41 }
 0x48b   : > { %2150 = vmax.xlane.f32.xlu1 %v2149_v4  ;;  %v2389_v11 = vadd.f32 %v6129_v23, %v6127_v61  ;;  %2135 = vmax.xlane.f32.xlu0 %v2134_v40  ;;  %v2155_v4 = vmax.f32 %v8348_v56, %v8344_v51  ;;  %v2374_v40 = vadd.f32 %v8271_v3, %v8266_v16 }
 0x48d   : > { %2390 = vadd.xlane.f32.xlu2 %v2389_v11 }
 0x48e   : > { %v2106_v1 = vpop.xlane.xlu1 %2105 }
 0x48f   : > { %v2187_v31 = vsub.f32 %v8049_v57, %v2106_v1  ;;  %v2188_v7 = vsub.f32 %v8039_v37, %v2106_v1  ;;  %v8362_v33 = vpop.xlane.xlu2 %1329 }
 0x490   : > { %10866 = vst [vmem:[#allocation129_spill] sm:$0xff] %v8362_v33 }
 0x491   : > { %v2277_v15 = vmul.f32 1.442695, %v2187_v31  ;;  %v2279_v27 = vmul.f32 1.442695, %v2188_v7 }
 0x493   : > { %6130 = vpow2.f32 %v2277_v15  ;;  %2159 = vmax.xlane.f32.xlu1 %v2158_v6  ;;  %2375 = vadd.xlane.f32.xlu0 %v2374_v40  ;;  %v8378_v15 = vpop.f32.mrf.mxu1 }
 0x494   : > { %6132 = vpow2.f32 %v2279_v27  ;;  %10867 = vst [vmem:[#allocation130_spill] sm:$0xff] %v8378_v15 }
 0x495   : > { %2156 = vmax.xlane.f32.xlu2 %v2155_v4 }
 0x496   : > { %v2109_v57 = vpop.xlane.xlu1 %2108 }
 0x497   : > { %v2189_v37 = vsub.f32 %v8061_v43, %v2109_v57  ;;  %v2190_v11 = vsub.f32 %v8054_v5, %v2109_v57  ;;  %v2115_v1 = vpop.xlane.xlu2 %2114  ;;  %v2377_v5 = vadd.f32 %v8297_v35, %v8295_v21  ;;  %v8388_v57 = vpop.f32.mrf.mxu2 }
 0x498   : > { %v2193_v31 = vsub.f32 %v8089_v17, %v2115_v1  ;;  %v2194_v7 = vsub.f32 %v8085_v60, %v2115_v1  ;;  %10868 = vst [vmem:[#allocation131_spill] sm:$0xff] %v8388_v57 }
 0x499   : > { %v8376_v32 = vpop.eup %6130  ;;  %v2281_v26 = vmul.f32 1.442695, %v2189_v37  ;;  %v2283_v16 = vmul.f32 1.442695, %v2190_v11 }
 0x49a   : > { %v8380_v3 = vpop.eup %6132  ;;  %v2289_v27 = vmul.f32 1.442695, %v2193_v31  ;;  %v2291_v6 = vmul.f32 1.442695, %v2194_v7  ;;  %v2461_v4 = vpack.c.bf16 %v8376_v32, %v6127_v61  ;;  %v10870_v7 = vld [vmem:[#allocation89_spill] sm:$0xff] }
 0x49b   : > { %6134 = vpow2.f32 %v2281_v26  ;;  %v2462_v43 = vpack.c.bf16 %v8380_v3, %v6129_v23  ;;  %2378 = vadd.xlane.f32.xlu0 %v2377_v5  ;;  %v8390_v23 = vpop.xlane.xlu0 %1398 }
 0x49c   : > { %6136 = vpow2.f32 %v2283_v16  ;;  %2583 = vmatmul.bf16.gmra.mxu1 %v2461_v4  ;;  %10869 = vst [vmem:[#allocation132_spill] sm:$0xff] %v8390_v23 }
 0x49d   : > { %6138 = vpow2.f32 %v2289_v27  ;;  %2672 = vmatmul.bf16.gmra.mxu2 %v2462_v43 }
 0x49e   : > { %6140 = vpow2.f32 %v2291_v6  ;;  %v2112_v60 = vpop.xlane.xlu1 %2111 }
 0x49f   : > { %v2191_v17 = vsub.f32 %v8073_v50, %v2112_v60  ;;  %v2192_v40 = vsub.f32 %v8069_v55, %v2112_v60 }
 0x4a1   : > { %v6135_v61 = vpop.eup %6134  ;;  %v2285_v26 = vmul.f32 1.442695, %v2191_v17  ;;  %v2287_v37 = vmul.f32 1.442695, %v2192_v40  ;;  %v1537_v11 = vpop.f32.mrf.mxu1  ;;  %v2380_v17 = vadd.f32 %v8307_v9, %v8305_v18  ;;  %v2143_v18 = vmax.f32 %v8262_v62, %v8260_v59 }
 0x4a2   : > { %v6137_v21 = vpop.eup %6136 }
 0x4a3   : > { %v6139_v35 = vpop.eup %6138  ;;  %6142 = vpow2.f32 %v2285_v26  ;;  %v2395_v1 = vadd.f32 %v6137_v21, %v6135_v61  ;;  %1383 = vadd.xlane.f32.xlu0 %v10870_v7  ;;  %v8406_v60 = vpop.xlane.xlu0 %1419 }
 0x4a4   : > { %v6141_v31 = vpop.eup %6140  ;;  %6144 = vpow2.f32 %v2287_v37  ;;  %10874 = vst [vmem:[#allocation135_spill] sm:$0xff] %v8406_v60  ;;  %v8411_v26 = vpop.xlane.xlu2 %2357  ;;  %v10875_v37 = vld [vmem:[#allocation29_spill] sm:$0xff] }
 0x4a5   : > { %2396 = vadd.xlane.f32.xlu2 %v2395_v1  ;;  %v8393_v50 = vadd.f32 %v6141_v31, %v6139_v35 }
 0x4a6   : > { %v8395_v55 = vpop.xlane.xlu1 %1332 }
 0x4a7   : > { %10871 = vst [vmem:[#allocation89_spill] sm:$0xff] %v8395_v55 }
 0x4a8   : > { %v1626_v16 = vpop.f32.mrf.mxu2 }
 0x4a9   : > { %v8397_v27 = vpop.eup %6142  ;;  %v8399_v6 = vadd.f32 %v1626_v16, %v1537_v11  ;;  %v8401_v4 = vpop.f32.mrf.mxu1 }
 0x4aa   : > { %10873 = vst [vmem:[#allocation134_spill] sm:$0xff] %v8401_v4  ;;  %v8403_v5 = vpop.eup %6144  ;;  %v2463_v43 = vpack.c.bf16 %v8397_v27, %v6135_v61 }
 0x4ab   : > { %10872 = vst [vmem:[#allocation133_spill] sm:$0xff] %v8399_v6  ;;  %v2464_v40 = vpack.c.bf16 %v8403_v5, %v6137_v21  ;;  %2381 = vadd.xlane.f32.xlu0 %v2380_v17  ;;  %v8421_v9 = vpop.xlane.xlu0 %2354 }
 0x4ac   : > { %3834 = vrot.lane.b32.xlu1 %v10875_v37, %s6785_s10  ;;  %2588 = vmatmul.bf16.gmra.mxu1 %v2463_v43  ;;  %10877 = vst [vmem:[#allocation137_spill] sm:$0xff] %v8421_v9  ;;  %v2121_v43 = vpop.xlane.xlu2 %2120 }
 0x4ad   : > { %2677 = vmatmul.bf16.gmra.mxu2 %v2464_v40 }
 0x4ae   : > { %v2118_v11 = vpop.xlane.xlu1 %2117 }
 0x4af   : > { %v2195_v1 = vsub.f32 %v8101_v38, %v2118_v11  ;;  %v2196_v61 = vsub.f32 %v8097_v44, %v2118_v11  ;;  %v2197_v38 = vsub.f32 %v8113_v8, %v2121_v43  ;;  %v2198_v11 = vsub.f32 %v8111_v12, %v2121_v43  ;;  %v10881_v8 = vld [vmem:[#allocation60_spill] sm:$0xff] }
 0x4b0   : > { %v8417_v7 = vpop.f32.mrf.mxu2 }
 0x4b1   : > { %10876 = vst [vmem:[#allocation136_spill] sm:$0xff] %v8417_v7  ;;  %v2293_v16 = vmul.f32 1.442695, %v2195_v1  ;;  %v2295_v23 = vmul.f32 1.442695, %v2196_v61  ;;  %v2554_v21 = vpop.f32.mrf.mxu1  ;;  %v10891_v7 = vld [vmem:[#allocation57_spill] sm:$0xff] }
 0x4b2   : > { %v2297_v57 = vmul.f32 1.442695, %v2197_v38  ;;  %v2299_v12 = vmul.f32 1.442695, %v2198_v11  ;;  %v2152_v38 = vmax.f32 %v8329_v45, %v8323_v46 }
 0x4b3   : > { %6146 = vpow2.f32 %v2293_v16  ;;  %2144 = vmax.xlane.f32.xlu0 %v2143_v18  ;;  %v2386_v16 = vadd.f32 %v8342_v2, %v8337_v24  ;;  %v8435_v15 = vpop.xlane.xlu0 %1326 }
 0x4b4   : > { %6148 = vpow2.f32 %v2295_v23  ;;  %10880 = vst [vmem:[#allocation140_spill] sm:$0xff] %v8435_v15 }
 0x4b5   : > { %6150 = vpow2.f32 %v2297_v57 }
 0x4b6   : > { %v8423_v17 = vpop.xlane.xlu1 %2360  ;;  %6152 = vpow2.f32 %v2299_v12 }
 0x4b8   : > { %v2643_v1 = vpop.f32.mrf.mxu2 }
 0x4b9   : > { %v6147_v40 = vpop.eup %6146  ;;  %v8427_v37 = vadd.f32 %v2643_v1, %v2554_v21  ;;  %v8429_v6 = vpop.f32.mrf.mxu1 }
 0x4ba   : > { %v6149_v44 = vpop.eup %6148  ;;  %v2465_v61 = vpack.c.bf16 %v6147_v40, %v6139_v35  ;;  %10879 = vst [vmem:[#allocation139_spill] sm:$0xff] %v8429_v6 }
 0x4bb   : > { %10878 = vst [vmem:[#allocation138_spill] sm:$0xff] %v8427_v37  ;;  %v2466_v23 = vpack.c.bf16 %v6149_v44, %v6141_v31  ;;  %v8433_v18 = vadd.f32 %v6149_v44, %v6147_v40  ;;  %2387 = vadd.xlane.f32.xlu0 %v2386_v16  ;;  %v8441_v31 = vpop.xlane.xlu2 %2366  ;;  %v6151_v57 = vpop.eup %6150 }
 0x4bc   : > { %2593 = vmatmul.bf16.gmra.mxu1 %v2465_v61  ;;  %v6153_v1 = vpop.eup %6152 }
 0x4bd   : > { %3850 = vrot.lane.b32.xlu2 %v10881_v8, %s6785_s10  ;;  %2682 = vmatmul.bf16.gmra.mxu2 %v2466_v23 }
 0x4be   : > { %v2124_v35 = vpop.xlane.xlu1 %2123 }
 0x4bf   : > { %v2199_v21 = vsub.f32 %v8129_v19, %v2124_v35  ;;  %v2200_v43 = vsub.f32 %v8125_v42, %v2124_v35  ;;  %v10884_v19 = vld [vmem:[#allocation38_spill] sm:$0xff] }
 0x4c0   : > { %v8443_v40 = vpop.f32.mrf.mxu2 }
 0x4c1   : > { %v2301_v24 = vmul.f32 1.442695, %v2199_v21  ;;  %v2303_v2 = vmul.f32 1.442695, %v2200_v43  ;;  %10882 = vst [vmem:[#allocation141_spill] sm:$0xff] %v8443_v40  ;;  %v2559_v44 = vpop.f32.mrf.mxu1  ;;  %v2392_v43 = vadd.f32 %v8380_v3, %v8376_v32 }
 0x4c3   : > { %6154 = vpow2.f32 %v2301_v24  ;;  %v8447_v11 = vpop.permute.xlu0 %3084  ;;  %2153 = vmax.xlane.f32.xlu0 %v2152_v38  ;;  %v10887_v38 = vld [vmem:[#allocation25_spill] sm:$0xff] }
 0x4c4   : > { %6156 = vpow2.f32 %v2303_v2  ;;  %10883 = vst [vmem:[#allocation142_spill] sm:$0xff] %v8447_v11  ;;  %5775 = vmatmul.msk.bf16.gmra.mxu0 %vm762_vm2, %v8447_v11  ;;  %v2130_v2 = vpop.xlane.xlu2 %2129 }
 0x4c5   : > { %3086 = vrot.lane.b32.xlu2 %v10884_v19, %s6785_s10 }
 0x4c6   : > { %v8453_v42 = vpop.xlane.xlu1 %1395 }
 0x4c7   : > { %10885 = vst [vmem:[#allocation143_spill] sm:$0xff] %v8453_v42 }
 0x4c8   : > { %v2648_v23 = vpop.f32.mrf.mxu2 }
 0x4c9   : > { %v6155_v61 = vpop.eup %6154  ;;  %v8455_v35 = vadd.f32 %v2648_v23, %v2559_v44  ;;  %v8457_v21 = vpop.f32.mrf.mxu1  ;;  %v2398_v44 = vadd.f32 %v8403_v5, %v8397_v27 }
 0x4ca   : > { %v6157_v16 = vpop.eup %6156  ;;  %v2467_v12 = vpack.c.bf16 %v6155_v61, %v6151_v57 }
 0x4cb   : > { %10886 = vst [vmem:[#allocation144_spill] sm:$0xff] %v8455_v35  ;;  %v2468_v24 = vpack.c.bf16 %v6157_v16, %v6153_v1  ;;  %2393 = vadd.xlane.f32.xlu0 %v2392_v43  ;;  %v2410_v60 = vadd.f32 %v6157_v16, %v6155_v61 }
 0x4cc   : > { %2598 = vmatmul.bf16.gmra.mxu1 %v2467_v12  ;;  %v8469_v23 = vpop.xlane.xlu2 %2369 }
 0x4cd   : > { %3832 = vrot.lane.b32.xlu2 %v10887_v38, %s6785_s10  ;;  %2687 = vmatmul.bf16.gmra.mxu2 %v2468_v24  ;;  %v10890_v38 = vld [vmem:[#allocation56_spill] sm:$0xff] }
 0x4ce   : > { %v8463_v19 = vpop.xlane.xlu1 %1392 }
 0x4cf   : > { %10888 = vst [vmem:[#allocation145_spill] sm:$0xff] %v8463_v19 }
 0x4d0   : > { %v8465_v8 = vpop.f32.mrf.mxu2 }
 0x4d1   : > { %v2564_v42 = vpop.f32.mrf.mxu1 }
 0x4d4   : > { %v8480_v19 = vpop.xlane.xlu2 %2138 }
 0x4d6   : > { %2399 = vadd.xlane.f32.xlu1 %v2398_v44  ;;  %v8471_v32 = vpop.xlane.xlu1 %1389  ;;  %v2407_v44 = vadd.f32 %v6153_v1, %v6151_v57 }
 0x4d7   : > { %10889 = vst [vmem:[#allocation146_spill] sm:$0xff] %v8471_v32 }
 0x4d8   : > { %v2653_v3 = vpop.f32.mrf.mxu2 }
 0x4d9   : > { %v8473_v12 = vadd.f32 %v2653_v3, %v2564_v42  ;;  %v8475_v43 = vpop.f32.mrf.mxu1 }
 0x4de   : > { %1380 = vadd.xlane.f32.xlu1 %v10890_v38  ;;  %v8478_v24 = vpop.xlane.xlu1 %2132 }
 0x4df   : > { %3848 = vrot.lane.b32.xlu0 %v10891_v7, %s6785_s10 }
 0x4e0   : > { %v8484_v27 = vpop.f32.mrf.mxu2 }
 0x4e1   : > { %v2569_v5 = vpop.f32.mrf.mxu1 }
 0x4e6   : > { %2408 = vadd.xlane.f32.xlu1 %v2407_v44  ;;  %v8486_v32 = vpop.xlane.xlu1 %2372 }
 0x4e8   : > { %v8488_v42 = vpop.xlane.xlu2 %2384  ;;  %v2658_v3 = vpop.f32.mrf.mxu2 }
 0x4e9   : > { %v8490_v4 = vadd.f32 %v2658_v3, %v2569_v5  ;;  %v8492_v38 = vpop.f32.mrf.mxu1  ;;  %v2203_v3 = vsub.f32 %v8168_v36, %v2130_v2 }
 0x4ee   : > { %2411 = vadd.xlane.f32.xlu1 %v2410_v60  ;;  %v2142_v15 = vpop.xlane.xlu1 %2141  ;;  %v8496_v55 = vpop.xlane.xlu0 %2363 }
 0x4ef   : > { %v2211_v33 = vsub.f32 %v8244_v58, %v2142_v15  ;;  %v2212_v7 = vsub.f32 %v8238_v47, %v2142_v15  ;;  %v2204_v58 = vsub.f32 %v8166_v54, %v2130_v2  ;;  %v10892_v15 = vld [vmem:[#allocation46_spill] sm:$0xff] }
 0x4f0   : > { %v2148_v57 = vpop.xlane.xlu2 %2147  ;;  %v8499_v49 = vpop.f32.mrf.mxu2 }
 0x4f1   : > { %v2325_v1 = vmul.f32 1.442695, %v2211_v33  ;;  %v2327_v44 = vmul.f32 1.442695, %v2212_v7  ;;  %v2215_v11 = vsub.f32 %v8287_v10, %v2148_v57  ;;  %v2216_v5 = vsub.f32 %v8281_v63, %v2148_v57 }
 0x4f2   : > { %v2309_v33 = vmul.f32 1.442695, %v2203_v3  ;;  %v2311_v7 = vmul.f32 1.442695, %v2204_v58 }
 0x4f3   : > { %6158 = vpow2.f32 %v2325_v1  ;;  %v2333_v60 = vmul.f32 1.442695, %v2215_v11  ;;  %v2574_v61 = vpop.f32.mrf.mxu1  ;;  %v2335_v47 = vmul.f32 1.442695, %v2216_v5 }
 0x4f4   : > { %6160 = vpow2.f32 %v2327_v44 }
 0x4f5   : > { %6162 = vpow2.f32 %v2333_v60 }
 0x4f6   : > { %6164 = vpow2.f32 %v2335_v47  ;;  %1377 = vadd.xlane.f32.xlu2 %v10892_v15  ;;  %v2127_v10 = vpop.xlane.xlu0 %2126  ;;  %v2206_v15 = vsub.f32 %v8179_v22, %v8478_v24 }
 0x4f7   : > { %v2201_v63 = vsub.f32 %v8150_v13, %v2127_v10  ;;  %v2202_v36 = vsub.f32 %v8142_v30, %v2127_v10  ;;  %6166 = vpow2.f32 %v2309_v33  ;;  %v8531_v33 = vpop.xlane.xlu1 %1386 }
 0x4f8   : > { %6168 = vpow2.f32 %v2311_v7  ;;  %10893 = vst [vmem:[#allocation56_spill] sm:$0xff] %v8531_v33  ;;  %v2315_v37 = vmul.f32 1.442695, %v2206_v15  ;;  %v10894_v15 = vld [vmem:[#allocation19_spill] sm:$0xff] }
 0x4f9   : > { %v8505_v16 = vpop.eup %6158  ;;  %v2305_v54 = vmul.f32 1.442695, %v2201_v63  ;;  %v2307_v2 = vmul.f32 1.442695, %v2202_v36 }
 0x4fa   : > { %v8509_v57 = vpop.eup %6160  ;;  %v2663_v11 = vpop.f32.mrf.mxu2 }
 0x4fb   : > { %v8511_v1 = vpop.eup %6162  ;;  %v8513_v44 = vadd.f32 %v2663_v11, %v2574_v61  ;;  %v8519_v3 = vadd.f32 %v8509_v57, %v8505_v16  ;;  %6170 = vpow2.f32 %v2305_v54  ;;  %v8521_v13 = vpop.f32.mrf.mxu1  ;;  %v2205_v61 = vsub.f32 %v8184_v48, %v8478_v24 }
 0x4fc   : > { %v8515_v5 = vpop.eup %6164  ;;  %6172 = vpow2.f32 %v2307_v2 }
 0x4fd   : > { %v8525_v30 = vadd.f32 %v8515_v5, %v8511_v1  ;;  %v6167_v58 = vpop.eup %6166  ;;  %v2313_v2 = vmul.f32 1.442695, %v2205_v61 }
 0x4fe   : > { %v2136_v60 = vpop.xlane.xlu0 %2135  ;;  %v6169_v47 = vpop.eup %6168 }
 0x4ff   : > { %v2207_v10 = vsub.f32 %v8204_v52, %v2136_v60  ;;  %v2208_v11 = vsub.f32 %v8201_v14, %v2136_v60  ;;  %6174 = vpow2.f32 %v2313_v2  ;;  %v8544_v14 = vpop.xlane.xlu1 %2150  ;;  %v2416_v61 = vadd.f32 %v6169_v47, %v6167_v58 }
 0x500   : > { %v8537_v48 = vpop.xlane.xlu2 %2390  ;;  %6176 = vpow2.f32 %v2315_v37 }
 0x501   : > { %v6171_v7 = vpop.eup %6170  ;;  %v2317_v9 = vmul.f32 1.442695, %v2207_v10  ;;  %v2319_v24 = vmul.f32 1.442695, %v2208_v11 }
 0x502   : > { %v8534_v63 = vpop.f32.mrf.mxu2  ;;  %v6173_v36 = vpop.eup %6172  ;;  %v2469_v54 = vpack.c.bf16 %v6167_v58, %v6171_v7  ;;  %v2209_v58 = vsub.f32 %v8228_v34, %v8480_v19 }
 0x503   : > { %v2470_v0 = vpack.c.bf16 %v6169_v47, %v6173_v36  ;;  %v2413_v25 = vadd.f32 %v6173_v36, %v6171_v7  ;;  %v8539_v22 = vpop.f32.mrf.mxu1  ;;  %6178 = vpow2.f32 %v2317_v9 }
 0x504   : > { %2603 = vmatmul.bf16.gmra.mxu1 %v2469_v54  ;;  %6180 = vpow2.f32 %v2319_v24  ;;  %v2210_v54 = vsub.f32 %v8222_v28, %v8480_v19  ;;  %v10895_v24 = vld [vmem:[#allocation51_spill] sm:$0xff]  ;;  %v2321_v34 = vmul.f32 1.442695, %v2209_v58 }
 0x505   : > { %2692 = vmatmul.bf16.gmra.mxu2 %v2470_v0  ;;  %2414 = vadd.xlane.f32.xlu1 %v2413_v25  ;;  %v6175_v7 = vpop.eup %6174 }
 0x506   : > { %v8541_v52 = vpop.xlane.xlu0 %2375  ;;  %v6177_v0 = vpop.eup %6176  ;;  %6182 = vpow2.f32 %v2321_v34 }
 0x507   : > { %v2419_v11 = vadd.f32 %v6177_v0, %v6175_v7  ;;  %v8561_v2 = vpop.xlane.xlu1 %2159 }
 0x508   : > { %v8550_v25 = vpop.xlane.xlu2 %2156 }
 0x509   : > { %2402 = vadd.xlane.f32.xlu0 %v8393_v50  ;;  %v6179_v37 = vpop.eup %6178 }
 0x50a   : > { %v8546_v60 = vpop.f32.mrf.mxu2  ;;  %v6181_v50 = vpop.eup %6180  ;;  %v2471_v36 = vpack.c.bf16 %v6179_v37, %v6175_v7  ;;  %v2323_v7 = vmul.f32 1.442695, %v2210_v54 }
 0x50b   : > { %v8554_v9 = vpop.f32.mrf.mxu1  ;;  %v2472_v47 = vpack.c.bf16 %v6181_v50, %v6177_v0  ;;  %v2422_v28 = vadd.f32 %v6181_v50, %v6179_v37  ;;  %v10898_v50 = vld [vmem:[#allocation22_spill] sm:$0xff] }
 0x50c   : > { %6184 = vpow2.f32 %v2323_v7 }
 0x50d   : > { %2417 = vadd.xlane.f32.xlu1 %v2416_v61 }
 0x50e   : > { %3828 = vrot.lane.b32.xlu2 %v10894_v15, %s6785_s10  ;;  %v8552_v10 = vpop.xlane.xlu0 %2378 }
 0x511   : > { %2405 = vadd.xlane.f32.xlu0 %v8433_v18 }
 0x512   : > { %v8565_v61 = vpop.f32.mrf.mxu2 }
 0x514   : > { %2608 = vmatmul.bf16.gmra.mxu1 %v2471_v36 }
 0x515   : > { %2697 = vmatmul.bf16.gmra.mxu2 %v2472_v47  ;;  %2420 = vadd.xlane.f32.xlu1 %v2419_v11 }
 0x516   : > { %3092 = vrot.lane.b32.xlu2 %v10895_v24, %s6785_s10  ;;  %v8567_v18 = vpop.xlane.xlu0 %1383  ;;  %v8581_v24 = vpop.eup %6182 }
 0x517   : > { %10896 = vst [vmem:[#allocation46_spill] sm:$0xff] %v8567_v18  ;;  %v8583_v58 = vpop.eup %6184  ;;  %v2473_v54 = vpack.c.bf16 %v8505_v16, %v8581_v24 }
 0x518   : > { %v8569_v15 = vpop.xlane.xlu2 %2396  ;;  %v2474_v37 = vpack.c.bf16 %v8509_v57, %v8583_v58 }
 0x519   : > { %v8571_v33 = vpop.f32.mrf.mxu1 }
 0x51d   : > { %2423 = vadd.xlane.f32.xlu1 %v2422_v28 }
 0x51e   : > { %v3835_v19 = vpop.permute.xlu1 %3834  ;;  %v8573_v0 = vpop.xlane.xlu0 %2381 }
 0x51f   : > { %3868 = vmatpush.bf16.msrb.mxu2 %v3835_v19 }
 0x520   : > { %v8575_v36 = vpop.f32.mrf.mxu2  ;;  %v8577_v47 = vpop.permute.xlu2 %3850 }
 0x521   : > { %10897 = vst [vmem:[#allocation147_spill] sm:$0xff] %v8577_v47  ;;  %v8579_v11 = vpop.f32.mrf.mxu1 }
 0x524   : > { %2613 = vmatmul.bf16.gmra.mxu1 %v2473_v54 }
 0x525   : > { %2702 = vmatmul.bf16.gmra.mxu2 %v2474_v37  ;;  %3830 = vrot.lane.b32.xlu0 %v10898_v50, %s6785_s10 }
 0x526   : > { %v2145_v34 = vpop.xlane.xlu0 %2144 }
 0x527   : > { %v2213_v28 = vsub.f32 %v8262_v62, %v2145_v34  ;;  %v2214_v19 = vsub.f32 %v8260_v59, %v2145_v34  ;;  %v2217_v59 = vsub.f32 %v8303_v53, %v8544_v14 }
 0x528   : > { %v8591_v7 = vpop.f32.mrf.mxu2  ;;  %v8595_v47 = vpop.permute.xlu2 %3086 }
 0x529   : > { %10899 = vst [vmem:[#allocation148_spill] sm:$0xff] %v8595_v47  ;;  %v8597_v18 = vpop.f32.mrf.mxu1  ;;  %5776 = vmatmul.msk.bf16.gmra.mxu0 %vm762_vm2, %v8595_v47  ;;  %v2329_v16 = vmul.f32 1.442695, %v2213_v28  ;;  %v2331_v57 = vmul.f32 1.442695, %v2214_v19  ;;  %v2218_v28 = vsub.f32 %v8299_v29, %v8544_v14  ;;  %v10900_v47 = vld [vmem:[#allocation53_spill] sm:$0xff]  ;;  %v2221_v29 = vsub.f32 %v8348_v56, %v8550_v25 }
 0x52a   : > { %v2223_v56 = vsub.f32 %v8364_v39, %v8561_v2 }
 0x52b   : > { %6186 = vpow2.f32 %v2329_v16 }
 0x52c   : > { %6188 = vpow2.f32 %v2331_v57  ;;  %v2337_v57 = vmul.f32 1.442695, %v2217_v59 }
 0x52e   : > { %v8601_v54 = vpop.xlane.xlu0 %2387  ;;  %6190 = vpow2.f32 %v2337_v57 }
 0x530   : > { %v8603_v37 = vpop.f32.mrf.mxu2  ;;  %v3833_v50 = vpop.permute.xlu2 %3832 }
 0x531   : > { %3869 = vmatpush.bf16.msrb.mxu2 %v3833_v50  ;;  %v8605_v62 = vpop.eup %6186  ;;  %v2591_v34 = vpop.f32.mrf.mxu1  ;;  %v2339_v50 = vmul.f32 1.442695, %v2218_v28  ;;  %v2345_v28 = vmul.f32 1.442695, %v2221_v29 }
 0x532   : > { %v8609_v20 = vpop.eup %6188  ;;  %v2475_v19 = vpack.c.bf16 %v8511_v1, %v8605_v62 }
 0x533   : > { %v2476_v16 = vpack.c.bf16 %v8515_v5, %v8609_v20  ;;  %6192 = vpow2.f32 %v2339_v50  ;;  %v2222_v5 = vsub.f32 %v8344_v51, %v8550_v25  ;;  %v2224_v25 = vsub.f32 %v8358_v41, %v8561_v2 }
 0x534   : > { %2618 = vmatmul.bf16.gmra.mxu1 %v2475_v19 }
 0x535   : > { %2707 = vmatmul.bf16.gmra.mxu2 %v2476_v16  ;;  %v2347_v19 = vmul.f32 1.442695, %v2222_v5  ;;  %v10901_v16 = vld [vmem:[#allocation48_spill] sm:$0xff]  ;;  %v2351_v39 = vmul.f32 1.442695, %v2224_v25 }
 0x536   : > { %3846 = vrot.lane.b32.xlu1 %v10900_v47, %s6785_s10  ;;  %v2154_v53 = vpop.xlane.xlu0 %2153  ;;  %v10902_v5 = vld [vmem:[#allocation16_spill] sm:$0xff] }
 0x537   : > { %v2219_v40 = vsub.f32 %v8329_v45, %v2154_v53  ;;  %v2220_v6 = vsub.f32 %v8323_v46, %v2154_v53  ;;  %v8627_v45 = vpop.eup %6190 }
 0x538   : > { %v2680_v35 = vpop.f32.mrf.mxu2 }
 0x539   : > { %v2341_v1 = vmul.f32 1.442695, %v2219_v40  ;;  %v2343_v14 = vmul.f32 1.442695, %v2220_v6  ;;  %v2594_v59 = vpop.f32.mrf.mxu1  ;;  %v8629_v57 = vpop.eup %6192 }
 0x53b   : > { %6194 = vpow2.f32 %v2341_v1  ;;  %v2349_v1 = vmul.f32 1.442695, %v2223_v56 }
 0x53c   : > { %6196 = vpow2.f32 %v2343_v14 }
 0x53d   : > { %6198 = vpow2.f32 %v2345_v28 }
 0x53e   : > { %3844 = vrot.lane.b32.xlu1 %v10901_v16, %s6785_s10  ;;  %6200 = vpow2.f32 %v2347_v19 }
 0x53f   : > { %6202 = vpow2.f32 %v2349_v1 }
 0x540   : > { %v2683_v46 = vpop.f32.mrf.mxu2 }
 0x541   : > { %v8633_v6 = vadd.f32 %v2683_v46, %v2594_v59  ;;  %v6195_v40 = vpop.eup %6194  ;;  %v8639_v14 = vpop.f32.mrf.mxu1 }
 0x542   : > { %v6197_v51 = vpop.eup %6196  ;;  %v2477_v50 = vpack.c.bf16 %v6195_v40, %v8627_v45  ;;  %v2394_v46 = vpop.xlane.xlu0 %2393 }
 0x543   : > { %v2440_v53 = vadd.f32 %v6197_v51, %v6195_v40  ;;  %v2478_v29 = vpack.c.bf16 %v6197_v51, %v8629_v57  ;;  %v6199_v59 = vpop.eup %6198  ;;  %v2681_v40 = vadd.f32 %v2680_v35, %v2591_v34  ;;  %v10903_v51 = vld [vmem:[#allocation44_spill] sm:$0xff] }
 0x544   : > { %2623 = vmatmul.bf16.gmra.mxu1 %v2477_v50  ;;  %v6201_v41 = vpop.eup %6200 }
 0x545   : > { %2441 = vadd.xlane.f32.xlu2 %v2440_v53  ;;  %2712 = vmatmul.bf16.gmra.mxu2 %v2478_v29  ;;  %v2443_v19 = vadd.f32 %v6201_v41, %v6199_v59  ;;  %v6203_v56 = vpop.eup %6202  ;;  %v10904_v53 = vld [vmem:[#allocation88_spill] sm:$0xff] }
 0x546   : > { %3826 = vrot.lane.b32.xlu1 %v10902_v5, %s6785_s10 }
 0x548   : > { %v8643_v28 = vpop.f32.mrf.mxu2 }
 0x549   : > { %v2400_v2 = vpop.xlane.xlu1 %2399  ;;  %v2599_v50 = vpop.f32.mrf.mxu1 }
 0x54a   : > { %6204 = vrcp.f32 %v2400_v2 }
 0x54b   : > { %6206 = vpow2.f32 %v2351_v39  ;;  %v2679_v39 = vadd.f32 %v8603_v37, %v8597_v18  ;;  %v2676_v18 = vadd.f32 %v8591_v7, %v8579_v11  ;;  %v10905_v37 = vld [vmem:[#allocation43_spill] sm:$0xff]  ;;  %v2671_v11 = vadd.f32 %v8565_v61, %v8554_v9  ;;  %v10907_v9 = vld [vmem:[#allocation52_spill] sm:$0xff] }
 0x54c   : > { %6208 = vrcp.f32 %v8569_v15  ;;  %v2479_v15 = vpack.c.bf16 %v6203_v56, %v6199_v59  ;;  %v2674_v59 = vadd.f32 %v8575_v36, %v8571_v33  ;;  %v2669_v33 = vadd.f32 %v8546_v60, %v8539_v22  ;;  %v10908_v22 = vld [vmem:[#allocation10_spill] sm:$0xff] }
 0x54d   : > { %2444 = vadd.xlane.f32.xlu2 %v2443_v19  ;;  %6210 = vrcp.f32 %v2394_v46 }
 0x54e   : > { %3842 = vrot.lane.b32.xlu1 %v10903_v51, %s6785_s10  ;;  %6212 = vrcp.f32 %v8537_v48 }
 0x54f   : > { %1374 = vadd.xlane.f32.xlu0 %v10904_v53  ;;  %v2425_v53 = vadd.f32 %v8583_v58, %v8581_v24  ;;  %6214 = vrcp.f32 %v8601_v54  ;;  %v10906_v58 = vld [vmem:[#allocation41_spill] sm:$0xff]  ;;  %v2431_v54 = vadd.f32 %v8609_v20, %v8605_v62 }
 0x550   : > { %v6205_v25 = vpop.eup %6204  ;;  %v2688_v29 = vpop.f32.mrf.mxu2  ;;  %6216 = vrcp.f32 %v8488_v42 }
 0x551   : > { %v6207_v1 = vpop.eup %6206  ;;  %v2770_v2 = vmul.f32 %v6205_v25, %v2681_v40  ;;  %v8651_v5 = vadd.f32 %v2688_v29, %v2599_v50  ;;  %6218 = vrcp.f32 %v8573_v0  ;;  %v8684_v0 = vpop.xlane.xlu1 %1380  ;;  %v10910_v40 = vld [vmem:[#allocation7_spill] sm:$0xff]  ;;  %v2437_v25 = vadd.f32 %v8629_v57, %v8627_v45 }
 0x552   : > { %v6209_v35 = vpop.eup %6208  ;;  %v2480_v34 = vpack.c.bf16 %v6207_v1, %v6201_v41  ;;  %v2446_v19 = vadd.f32 %v6207_v1, %v6203_v56  ;;  %6220 = vrcp.f32 %v8552_v10  ;;  %v8726_v57 = vpop.permute.xlu0 %3848  ;;  %v10914_v1 = vld [vmem:[#allocation11_spill] sm:$0xff] }
 0x553   : > { %5698 = vmatpush.xpose.msk.msra.mxu3 %vm762_vm2, %v2770_v2  ;;  %v2769_v51 = vmul.f32 %v6209_v35, %v2679_v39  ;;  %v6211_v46 = vpop.eup %6210  ;;  %6222 = vrcp.f32 %v8541_v52  ;;  %v10915_v39 = vld [vmem:[#allocation23_spill] sm:$0xff] }
 0x554   : > { %2628 = vmatmul.bf16.gmra.mxu1 %v2479_v15  ;;  %v2768_v48 = vmul.f32 %v6211_v46, %v2676_v18  ;;  %v6213_v41 = vpop.eup %6212  ;;  %6224 = vrcp.f32 %v8486_v32  ;;  %v10920_v18 = vld [vmem:[#allocation137_spill] sm:$0xff] }
 0x555   : > { %2717 = vmatmul.bf16.gmra.mxu2 %v2480_v34  ;;  %2447 = vadd.xlane.f32.xlu2 %v2446_v19  ;;  %v2767_v56 = vmul.f32 %v6213_v41, %v2674_v59  ;;  %v6215_v24 = vpop.eup %6214  ;;  %6226 = vrcp.f32 %v8469_v23  ;;  %v10913_v23 = vld [vmem:[#allocation55_spill] sm:$0xff]  ;;  %v10917_v19 = vld [vmem:[#allocation141_spill] sm:$0xff] }
 0x556   : > { %3088 = vrot.lane.b32.xlu1 %v10905_v37, %s6785_s10  ;;  %v2766_v36 = vmul.f32 %v6215_v24, %v2671_v11  ;;  %v6217_v7 = vpop.eup %6216  ;;  %6228 = vrcp.f32 %v8441_v31  ;;  %v10916_v34 = vld [vmem:[#allocation139_spill] sm:$0xff] }
 0x557   : > { %5699 = vmatpush.xpose.msk.msra.mxu3 %vm762_vm2, %v2769_v51  ;;  %2426 = vadd.xlane.f32.xlu0 %v2425_v53  ;;  %v2765_v42 = vmul.f32 %v6217_v7, %v2669_v33  ;;  %v6219_v61 = vpop.eup %6218  ;;  %6230 = vrcp.f32 %v8496_v55  ;;  %v2651_v55 = vadd.f32 %v8465_v8, %v8457_v21  ;;  %v2646_v46 = vadd.f32 %v10917_v19, %v10916_v34  ;;  %v10918_v8 = vld [vmem:[#allocation144_spill] sm:$0xff]  ;;  %v10919_v53 = vld [vmem:[#allocation65_spill] sm:$0xff] }
 0x558   : > { %v6221_v10 = vpop.eup %6220  ;;  %6232 = vrcp.f32 %v8423_v17  ;;  %v8735_v2 = vpop.f32.mrf.mxu2  ;;  %v10923_v7 = vld [vmem:[#allocation13_spill] sm:$0xff] }
 0x559   : > { %v2763_v20 = vmul.f32 %v6221_v10, %v8513_v44  ;;  %v6223_v62 = vpop.eup %6222  ;;  %v8701_v52 = vpop.xlane.xlu1 %2408  ;;  %v2656_v44 = vadd.f32 %v8484_v27, %v8475_v43  ;;  %6234 = vrcp.f32 %v8411_v26  ;;  %v10921_v26 = vld [vmem:[#allocation8_spill] sm:$0xff] }
 0x55a   : > { %v6225_v51 = vpop.eup %6224  ;;  %v8719_v43 = vpop.f32.mrf.mxu1  ;;  %6236 = vrcp.f32 %v10920_v18 }
 0x55b   : > { %5700 = vmatpush.xpose.msk.msra.mxu3 %vm762_vm2, %v2768_v48  ;;  %v6227_v50 = vpop.eup %6226  ;;  %v10922_v48 = vld [vmem:[#allocation20_spill] sm:$0xff] }
 0x55c   : > { %v6229_v31 = vpop.eup %6228 }
 0x55d   : > { %v2759_v29 = vmul.f32 %v6229_v31, %v8473_v12  ;;  %v6231_v45 = vpop.eup %6230  ;;  %v10932_v31 = vld [vmem:[#allocation32_spill] sm:$0xff] }
 0x55e   : > { %3840 = vrot.lane.b32.xlu1 %v10906_v58, %s6785_s10  ;;  %v2758_v15 = vmul.f32 %v6231_v45, %v2651_v55  ;;  %v6233_v35 = vpop.eup %6232  ;;  %v10934_v45 = vld [vmem:[#allocation45_spill] sm:$0xff] }
 0x55f   : > { %5701 = vmatpush.xpose.msk.msra.mxu3 %vm762_vm2, %v2767_v56  ;;  %2429 = vadd.xlane.f32.xlu0 %v8519_v3  ;;  %v2666_v3 = vadd.f32 %v8534_v63, %v8521_v13  ;;  %v10909_v13 = vld [vmem:[#allocation58_spill] sm:$0xff]  ;;  %v2661_v63 = vadd.f32 %v8499_v49, %v8492_v38  ;;  %v2761_v49 = vmul.f32 %v6225_v51, %v8490_v4  ;;  %v10911_v38 = vld [vmem:[#allocation40_spill] sm:$0xff]  ;;  %v6235_v41 = vpop.eup %6234  ;;  %v10930_v51 = vld [vmem:[#allocation9_spill] sm:$0xff] }
 0x560   : > { %v2760_v4 = vmul.f32 %v6227_v50, %v2656_v44  ;;  %v2757_v21 = vmul.f32 %v6233_v35, %v10918_v8  ;;  %v2756_v56 = vmul.f32 %v6235_v41, %v2646_v46  ;;  %v10937_v35 = vld [vmem:[#allocation5_spill] sm:$0xff]  ;;  %v10940_v41 = vld [vmem:[#allocation26_spill] sm:$0xff] }
 0x561   : > { %v2764_v60 = vmul.f32 %v6219_v61, %v2666_v3  ;;  %v2762_v32 = vmul.f32 %v6223_v62, %v2661_v63  ;;  %v8721_v27 = vpop.xlane.xlu1 %2411  ;;  %v10926_v3 = vld [vmem:[#allocation49_spill] sm:$0xff]  ;;  %v10928_v63 = vld [vmem:[#allocation36_spill] sm:$0xff] }
 0x563   : > { %5702 = vmatpush.xpose.msk.msra.mxu3 %vm762_vm2, %v2766_v36  ;;  %v6237_v36 = vpop.eup %6236 }
 0x564   : > { %5782 = vmatmul.msk.bf16.vlgmr.msrb.gmra.mxu1 %vm762_vm2, %v10907_v9 }
 0x566   : > { %3822 = vrot.lane.b32.xlu1 %v10908_v22, %s6785_s10 }
 0x567   : > { %5703 = vmatpush.xpose.msk.msra.mxu3 %vm762_vm2, %v2765_v42  ;;  %2432 = vadd.xlane.f32.xlu0 %v2431_v54  ;;  %v10924_v42 = vld [vmem:[#allocation138_spill] sm:$0xff] }
 0x568   : > { %v2755_v9 = vmul.f32 %v6237_v36, %v10924_v42  ;;  %v10925_v54 = vld [vmem:[#allocation30_spill] sm:$0xff] }
 0x56b   : > { %5704 = vmatpush.xpose.msk.msra.mxu3 %vm762_vm2, %v2764_v60 }
 0x56d   : > { %4314 = vrot.lane.b32.xlu2 %v10909_v13, %s6787_s14  ;;  %v10927_v13 = vld [vmem:[#allocation98_spill] sm:$0xff] }
 0x56e   : > { %3820 = vrot.lane.b32.xlu1 %v10910_v40, %s6785_s10 }
 0x56f   : > { %5705 = vmatpush.xpose.msk.msra.mxu3 %vm762_vm2, %v2763_v20  ;;  %2435 = vadd.xlane.f32.xlu0 %v8525_v30  ;;  %v10912_v30 = vld [vmem:[#allocation14_spill] sm:$0xff]  ;;  %v8773_v20 = vpop.xlane.xlu2 %1377 }
 0x573   : > { %5706 = vmatpush.xpose.msk.msra.mxu3 %vm762_vm2, %v2762_v32  ;;  %v10929_v32 = vld [vmem:[#allocation82_spill] sm:$0xff] }
 0x574   : > { %5783 = vmatmul.msk.bf16.gmra.mxu1 %vm762_vm2, %v10911_v38 }
 0x575   : > { %4290 = vrot.lane.b32.xlu2 %v10912_v30, %s6787_s14 }
 0x576   : > { %3094 = vrot.lane.b32.xlu1 %v10913_v23, %s6785_s10 }
 0x577   : > { %5707 = vmatpush.xpose.msk.msra.mxu3 %vm762_vm2, %v2761_v49  ;;  %2438 = vadd.xlane.f32.xlu0 %v2437_v25  ;;  %v10931_v49 = vld [vmem:[#allocation17_spill] sm:$0xff] }
 0x578   : > { %v8738_v17 = vpop.xlane.xlu1 %2414 }
 0x57b   : > { %5708 = vmatpush.xpose.msk.msra.mxu3 %vm762_vm2, %v2760_v4  ;;  %v3829_v4 = vpop.permute.xlu2 %3828 }
 0x57c   : > { %v8747_v59 = vpop.xlane.xlu0 %2402 }
 0x57d   : > { %4288 = vrot.lane.b32.xlu2 %v10914_v1, %s6787_s14 }
 0x57e   : > { %4296 = vrot.lane.b32.xlu1 %v10915_v39, %s6787_s14 }
 0x57f   : > { %5709 = vmatpush.xpose.msk.msra.mxu3 %vm762_vm2, %v2759_v29  ;;  %v10933_v29 = vld [vmem:[#allocation15_spill] sm:$0xff] }
 0x580   : > { %v8762_v61 = vpop.xlane.xlu1 %2417 }
 0x581   : > { %v2604_v12 = vpop.f32.mrf.mxu1 }
 0x583   : > { %5710 = vmatpush.xpose.msk.msra.mxu3 %vm762_vm2, %v2758_v15  ;;  %v10935_v15 = vld [vmem:[#allocation47_spill] sm:$0xff] }
 0x584   : > { %5784 = vmatmul.msk.bf16.gmra.mxu1 %vm762_vm2, %v10919_v53  ;;  %v8769_v60 = vpop.xlane.xlu0 %2405  ;;  %v8815_v53 = vpop.f32.mrf.mxu0 }
 0x585   : > { %4286 = vrot.lane.b32.xlu2 %v10921_v26, %s6787_s14 }
 0x586   : > { %4294 = vrot.lane.b32.xlu1 %v10922_v48, %s6787_s14 }
 0x587   : > { %5711 = vmatpush.xpose.msk.msra.mxu3 %vm762_vm2, %v2757_v21  ;;  %v10938_v21 = vld [vmem:[#allocation59_spill] sm:$0xff] }
 0x588   : > { %v2693_v24 = vpop.f32.mrf.mxu2  ;;  %v8783_v44 = vpop.xlane.xlu1 %2420 }
 0x589   : > { %v8754_v11 = vadd.f32 %v2693_v24, %v2604_v12  ;;  %v8756_v33 = vpop.f32.mrf.mxu1  ;;  %v10936_v12 = vld [vmem:[#allocation86_spill] sm:$0xff] }
 0x58b   : > { %5712 = vmatpush.xpose.msk.msra.mxu3 %vm762_vm2, %v2756_v56  ;;  %3824 = vrot.lane.b32.xlu0 %v10923_v7, %s6785_s10  ;;  %v10941_v56 = vld [vmem:[#allocation85_spill] sm:$0xff] }
 0x58c   : > { %v8825_v24 = vpop.f32.mrf.mxu0 }
 0x58d   : > { %4300 = vrot.lane.b32.xlu2 %v10925_v54, %s6787_s14 }
 0x58e   : > { %4310 = vrot.lane.b32.xlu1 %v10926_v3, %s6787_s14  ;;  %v10942_v3 = vld [vmem:[#allocation54_spill] sm:$0xff] }
 0x58f   : > { %5713 = vmatpush.xpose.msk.msra.mxu3 %vm762_vm2, %v2755_v9 }
 0x590   : > { %v8771_v10 = vpop.f32.mrf.mxu2  ;;  %v8797_v1 = vpop.xlane.xlu1 %2423 }
 0x591   : > { %v2609_v62 = vpop.f32.mrf.mxu1 }
 0x592   : > { %5714 = vmatmul.msk.f32.vlgmr.msra.gmra.mxu3 %vm762_vm2, %v10927_v13 }
 0x593   : > { %3838 = vrot.lane.b32.xlu0 %v10928_v63, %s6785_s10 }
 0x594   : > { %5785 = vmatmul.msk.bf16.gmra.mxu1 %vm762_vm2, %v10929_v32 }
 0x595   : > { %4254 = vrot.lane.b32.xlu2 %v10930_v51, %s6787_s14 }
 0x596   : > { %4292 = vrot.lane.b32.xlu1 %v10931_v49, %s6787_s14 }
 0x597   : > { %v3831_v38 = vpop.permute.xlu0 %3830 }
 0x598   : > { %v2698_v30 = vpop.f32.mrf.mxu2  ;;  %3870 = vmatpush.bf16.msrb.mxu2 %v3831_v38  ;;  %v8839_v38 = vpop.f32.mrf.mxu0 }
 0x599   : > { %v8787_v25 = vadd.f32 %v2698_v30, %v2609_v62  ;;  %v8789_v50 = vpop.f32.mrf.mxu1  ;;  %v8833_v62 = vpop.permute.xlu2 %3092 }
 0x59b   : > { %3836 = vrot.lane.b32.xlu0 %v10932_v31, %s6785_s10 }
 0x59c   : > { %3871 = vmatpush.bf16.msrb.mxu2 %v3829_v4  ;;  %v10944_v4 = vld [vmem:[#allocation42_spill] sm:$0xff] }
 0x59d   : > { %4258 = vrot.lane.b32.xlu2 %v10933_v29, %s6787_s14  ;;  %v10945_v29 = vld [vmem:[#allocation95_spill] sm:$0xff] }
 0x59e   : > { %4308 = vrot.lane.b32.xlu1 %v10934_v45, %s6787_s14 }
 0x5a0   : > { %v8799_v55 = vpop.f32.mrf.mxu2 }
 0x5a1   : > { %v2614_v39 = vpop.f32.mrf.mxu1 }
 0x5a3   : > { %3090 = vrot.lane.b32.xlu0 %v10935_v15, %s6785_s10 }
 0x5a4   : > { %5786 = vmatmul.msk.bf16.gmra.mxu1 %vm762_vm2, %v10936_v12 }
 0x5a6   : > { %4284 = vrot.lane.b32.xlu1 %v10937_v35, %s6787_s14 }
 0x5a8   : > { %v2703_v34 = vpop.f32.mrf.mxu2  ;;  %v8807_v19 = vpop.permute.xlu1 %3846 }
 0x5a9   : > { %v8809_v46 = vadd.f32 %v2703_v34, %v2614_v39  ;;  %v8811_v8 = vpop.f32.mrf.mxu1 }
 0x5ab   : > { %3096 = vrot.lane.b32.xlu0 %v10938_v21, %s6785_s10 }
 0x5b0   : > { %v8817_v18 = vpop.f32.mrf.mxu2  ;;  %v8819_v26 = vpop.permute.xlu1 %3844 }
 0x5b1   : > { %10939 = vst [vmem:[#allocation88_spill] sm:$0xff] %v8819_v26  ;;  %v2619_v48 = vpop.f32.mrf.mxu1 }
 0x5b3   : > { %4298 = vrot.lane.b32.xlu0 %v10940_v41, %s6787_s14  ;;  %v8853_v41 = vpop.f32.mrf.mxu0 }
 0x5b4   : > { %5787 = vmatmul.msk.bf16.gmra.mxu1 %vm762_vm2, %v10941_v56 }
 0x5b8   : > { %v2708_v36 = vpop.f32.mrf.mxu2  ;;  %v3827_v9 = vpop.permute.xlu1 %3826 }
 0x5b9   : > { %v8827_v42 = vadd.f32 %v2708_v36, %v2619_v48  ;;  %v8829_v54 = vpop.f32.mrf.mxu1  ;;  %3872 = vmatpush.bf16.msrb.mxu2 %v3827_v9  ;;  %v2442_v45 = vpop.xlane.xlu2 %2441  ;;  %v10946_v48 = vld [vmem:[#allocation37_spill] sm:$0xff] }
 0x5bb   : > { %4312 = vrot.lane.b32.xlu0 %v10942_v3, %s6787_s14  ;;  %v8859_v21 = vpop.f32.mrf.mxu0 }
 0x5c0   : > { %v8835_v32 = vpop.f32.mrf.mxu2  ;;  %v8837_v51 = vpop.permute.xlu1 %3842 }
 0x5c1   : > { %10943 = vst [vmem:[#allocation52_spill] sm:$0xff] %v8837_v51  ;;  %v2624_v49 = vpop.f32.mrf.mxu1  ;;  %v2445_v56 = vpop.xlane.xlu2 %2444  ;;  %v10950_v51 = vld [vmem:[#allocation12_spill] sm:$0xff] }
 0x5c2   : > { %v8841_v30 = vpop.xlane.xlu0 %1374 }
 0x5c3   : > { %4306 = vrot.lane.b32.xlu0 %v10944_v4, %s6787_s14  ;;  %v10947_v4 = vld [vmem:[#allocation33_spill] sm:$0xff]  ;;  %v8863_v58 = vpop.f32.mrf.mxu0 }
 0x5c4   : > { %5788 = vmatmul.msk.bf16.gmra.mxu1 %vm762_vm2, %v10945_v29  ;;  %v10948_v29 = vld [vmem:[#allocation94_spill] sm:$0xff] }
 0x5c8   : > { %v2713_v39 = vpop.f32.mrf.mxu2  ;;  %v8847_v12 = vpop.permute.xlu1 %3088 }
 0x5c9   : > { %v2626_v35 = vpop.f32.mrf.mxu1  ;;  %5777 = vmatmul.msk.bf16.gmra.mxu0 %vm762_vm2, %v8847_v12  ;;  %v2448_v40 = vpop.xlane.xlu2 %2447 }
 0x5ca   : > { %v2427_v34 = vpop.xlane.xlu0 %2426  ;;  %6238 = vrcp.f32 %v2448_v40 }
 0x5cb   : > { %4304 = vrot.lane.b32.xlu0 %v10946_v48, %s6787_s14  ;;  %v10949_v48 = vld [vmem:[#allocation6_spill] sm:$0xff]  ;;  %6240 = vrcp.f32 %v2445_v56 }
 0x5cc   : > { %6242 = vrcp.f32 %v2442_v45 }
 0x5d0   : > { %v2715_v36 = vpop.f32.mrf.mxu2 }
 0x5d1   : > { %v2629_v9 = vpop.f32.mrf.mxu1 }
 0x5d2   : > { %v2430_v3 = vpop.xlane.xlu0 %2429 }
 0x5d3   : > { %4302 = vrot.lane.b32.xlu0 %v10947_v4, %s6787_s14  ;;  %v6239_v4 = vpop.eup %6238 }
 0x5d4   : > { %5789 = vmatmul.msk.bf16.gmra.mxu1 %vm762_vm2, %v10948_v29  ;;  %v6241_v40 = vpop.eup %6240 }
 0x5d5   : > { %v6243_v26 = vpop.eup %6242 }
 0x5d8   : > { %v2718_v23 = vpop.f32.mrf.mxu2 }
 0x5d9   : > { %v2631_v15 = vpop.f32.mrf.mxu1  ;;  %v2719_v37 = vadd.f32 %v2718_v23, %v2629_v9  ;;  %v8877_v23 = vpop.f32.mrf.mxu0 }
 0x5da   : > { %v2433_v22 = vpop.xlane.xlu0 %2432 }
 0x5db   : > { %4252 = vrot.lane.b32.xlu0 %v10949_v48, %s6787_s14  ;;  %v10951_v48 = vld [vmem:[#allocation115_spill] sm:$0xff] }
 0x5e0   : > { %v2720_v7 = vpop.f32.mrf.mxu2 }
 0x5e1   : > { %v2721_v31 = vadd.f32 %v2720_v7, %v2631_v15  ;;  %v8865_v63 = vpop.f32.mrf.mxu1  ;;  %v2716_v7 = vadd.f32 %v2715_v36, %v2626_v35  ;;  %v2785_v15 = vmul.f32 %v6241_v40, %v2719_v37 }
 0x5e2   : > { %v3404_v29 = vmax.f32 %v8815_v53, %v8865_v63  ;;  %v2436_v16 = vpop.xlane.xlu0 %2435 }
 0x5e3   : > { %v2786_v47 = vmul.f32 %v6239_v4, %v2721_v31  ;;  %4256 = vrot.lane.b32.xlu0 %v10950_v51, %s6787_s14  ;;  %v2784_v9 = vmul.f32 %v6243_v26, %v2716_v7  ;;  %v2714_v51 = vadd.f32 %v2713_v39, %v2624_v49  ;;  %v8880_v4 = vpop.permute.xlu1 %3840 }
 0x5e4   : > { %5790 = vmatmul.msk.bf16.gmra.mxu1 %vm762_vm2, %v10951_v48  ;;  %3405 = vmax.xlane.f32.xlu2 %v3404_v29  ;;  %v8886_v29 = vpop.f32.mrf.mxu0  ;;  %v10952_v48 = vld [vmem:[#allocation142_spill] sm:$0xff] }
 0x5e5   : > { %5715 = vmatpush.xpose.msk.msrb.mxu3 %vm762_vm2, %v2786_v47 }
 0x5e9   : > { %5716 = vmatpush.xpose.msk.msrb.mxu3 %vm762_vm2, %v2785_v15  ;;  %v8875_v56 = vpop.f32.mrf.mxu1 }
 0x5ea   : > { %v2439_v31 = vpop.xlane.xlu0 %2438 }
 0x5eb   : > { %6244 = vrcp.f32 %v2439_v31  ;;  %v3823_v40 = vpop.permute.xlu1 %3822 }
 0x5ec   : > { %6246 = vrcp.f32 %v2436_v16  ;;  %v2711_v16 = vadd.f32 %v8835_v32, %v8829_v54  ;;  %v2706_v54 = vadd.f32 %v8817_v18, %v8811_v8  ;;  %v2701_v8 = vadd.f32 %v8799_v55, %v8789_v50 }
 0x5ed   : > { %5717 = vmatpush.xpose.msk.msrb.mxu3 %vm762_vm2, %v2784_v9  ;;  %6248 = vrcp.f32 %v2433_v22  ;;  %v2696_v55 = vadd.f32 %v8771_v10, %v8756_v33 }
 0x5ee   : > { %6250 = vrcp.f32 %v2430_v3  ;;  %v8902_v3 = vpop.f32.mrf.mxu0 }
 0x5ef   : > { %6252 = vrcp.f32 %v2427_v34 }
 0x5f0   : > { %6254 = vrcp.f32 %v8797_v1 }
 0x5f1   : > { %v6245_v45 = vpop.eup %6244  ;;  %v8882_v47 = vpop.f32.mrf.mxu1  ;;  %6256 = vrcp.f32 %v8783_v44 }
 0x5f2   : > { %v3410_v37 = vmax.f32 %v8839_v38, %v8882_v47  ;;  %v2783_v35 = vmul.f32 %v6245_v45, %v2714_v51  ;;  %v6247_v36 = vpop.eup %6246  ;;  %v10953_v51 = vld [vmem:[#allocation148_spill] sm:$0xff]  ;;  %6258 = vrcp.f32 %v8762_v61 }
 0x5f3   : > { %v2782_v26 = vmul.f32 %v6247_v36, %v2711_v16  ;;  %v6249_v49 = vpop.eup %6248  ;;  %v3821_v1 = vpop.permute.xlu1 %3820  ;;  %6260 = vrcp.f32 %v8738_v17 }
 0x5f4   : > { %5791 = vmatmul.msk.bf16.gmra.mxu1 %vm762_vm2, %v10952_v48  ;;  %3411 = vmax.xlane.f32.xlu1 %v3410_v37  ;;  %v2781_v7 = vmul.f32 %v6249_v49, %v8827_v42  ;;  %v6251_v15 = vpop.eup %6250  ;;  %v3407_v48 = vmax.f32 %v8825_v24, %v8875_v56  ;;  %6262 = vrcp.f32 %v8721_v27 }
 0x5f5   : > { %5718 = vmatpush.xpose.msk.msrb.mxu3 %vm762_vm2, %v2783_v35  ;;  %v2780_v31 = vmul.f32 %v6251_v15, %v2706_v54  ;;  %v6253_v9 = vpop.eup %6252  ;;  %6264 = vrcp.f32 %v8701_v52 }
 0x5f6   : > { %v2779_v18 = vmul.f32 %v6253_v9, %v8809_v46  ;;  %v6255_v37 = vpop.eup %6254  ;;  %v8919_v36 = vpop.f32.mrf.mxu0  ;;  %6266 = vrcp.f32 %v8769_v60  ;;  %v2686_v9 = vadd.f32 %v8643_v28, %v8639_v14 }
 0x5f7   : > { %v2778_v35 = vmul.f32 %v6255_v37, %v2701_v8  ;;  %v6257_v44 = vpop.eup %6256  ;;  %6268 = vrcp.f32 %v8747_v59  ;;  %v10955_v8 = vld [vmem:[#allocation100_spill] sm:$0xff] }
 0x5f8   : > { %v2777_v46 = vmul.f32 %v6257_v44, %v8787_v25  ;;  %v6259_v61 = vpop.eup %6258  ;;  %v8941_v25 = vpop.permute.xlu2 %4314  ;;  %v10959_v44 = vld [vmem:[#allocation101_spill] sm:$0xff] }
 0x5f9   : > { %5719 = vmatpush.xpose.msk.msrb.mxu3 %vm762_vm2, %v2782_v26  ;;  %v8894_v22 = vpop.f32.mrf.mxu1  ;;  %v2776_v26 = vmul.f32 %v6259_v61, %v2696_v55  ;;  %v6261_v33 = vpop.eup %6260 }
 0x5fa   : > { %v3413_v39 = vmax.f32 %v8853_v41, %v8894_v22  ;;  %v6263_v27 = vpop.eup %6262 }
 0x5fb   : > { %v6265_v54 = vpop.eup %6264 }
 0x5fc   : > { %3414 = vmax.xlane.f32.xlu2 %v3413_v39  ;;  %v2775_v39 = vmul.f32 %v6261_v33, %v8754_v11 }
 0x5fd   : > { %5720 = vmatpush.xpose.msk.msrb.mxu3 %vm762_vm2, %v2781_v7  ;;  %v3825_v32 = vpop.permute.xlu0 %3824  ;;  %v2691_v7 = vadd.f32 %v8735_v2, %v8719_v43  ;;  %v2773_v43 = vmul.f32 %v6265_v54, %v8651_v5  ;;  %v6267_v2 = vpop.eup %6266  ;;  %v10956_v5 = vld [vmem:[#allocation18_spill] sm:$0xff] }
 0x5fe   : > { %3873 = vmatpush.bf16.msrb.mxu2 %v3825_v32  ;;  %v8938_v10 = vpop.f32.mrf.mxu0  ;;  %v10954_v32 = vld [vmem:[#allocation75_spill] sm:$0xff]  ;;  %v10965_v54 = vld [vmem:[#allocation50_spill] sm:$0xff] }
 0x5ff   : > { %v2774_v15 = vmul.f32 %v6263_v27, %v2691_v7  ;;  %6270 = vrcp.f32 %v10954_v32  ;;  %v10963_v27 = vld [vmem:[#allocation63_spill] sm:$0xff] }
 0x600   : > { %v8965_v60 = vpop.permute.xlu2 %4290  ;;  %6272 = vrcp.f32 %v10955_v8 }
 0x601   : > { %5721 = vmatpush.xpose.msk.msrb.mxu3 %vm762_vm2, %v2780_v31  ;;  %v8906_v34 = vpop.f32.mrf.mxu1 }
 0x602   : > { %v3416_v42 = vmax.f32 %v8859_v21, %v8906_v34  ;;  %3874 = vmatpush.bf16.msrb.mxu2 %v3823_v40  ;;  %v8946_v40 = vpop.permute.xlu1 %3094 }
 0x604   : > { %5792 = vmatmul.msk.bf16.gmra.mxu1 %vm762_vm2, %v10953_v51  ;;  %3417 = vmax.xlane.f32.xlu2 %v3416_v42  ;;  %v6269_v51 = vpop.eup %6268 }
 0x605   : > { %5722 = vmatpush.xpose.msk.msrb.mxu3 %vm762_vm2, %v2779_v18  ;;  %v8917_v45 = vpop.permute.xlu0 %3838  ;;  %v2772_v18 = vmul.f32 %v6267_v2, %v2686_v9  ;;  %v2771_v28 = vmul.f32 %v6269_v51, %v8633_v6  ;;  %v10967_v9 = vld [vmem:[#allocation21_spill] sm:$0xff] }
 0x606   : > { %3875 = vmatpush.bf16.msrb.mxu2 %v3821_v1  ;;  %v8963_v31 = vpop.f32.mrf.mxu0  ;;  %v6271_v1 = vpop.eup %6270 }
 0x608   : > { %v8986_v33 = vpop.permute.xlu2 %4288 }
 0x609   : > { %5723 = vmatpush.xpose.msk.msrb.mxu3 %vm762_vm2, %v2778_v35  ;;  %v8923_v50 = vpop.f32.mrf.mxu1  ;;  %v10958_v35 = vld [vmem:[#allocation99_spill] sm:$0xff] }
 0x60a   : > { %v4297_v42 = vpop.permute.xlu1 %4296  ;;  %v1589_v14 = vadd.f32 %v10959_v44, %v10958_v35  ;;  %v10969_v44 = vld [vmem:[#allocation78_spill] sm:$0xff] }
 0x60b   : > { %v4383_v8 = vsel %vm762_vm2, %v4297_v42, 0  ;;  %v10972_v42 = vld [vmem:[#allocation97_spill] sm:$0xff] }
 0x60c   : > { %v1678_v55 = vmul.f32 %v6271_v1, %v1589_v14 }
 0x60d   : > { %5724 = vmatpush.xpose.msk.msrb.mxu3 %vm762_vm2, %v2777_v46  ;;  %v8932_v16 = vpop.permute.xlu0 %3836  ;;  %3408 = vmax.xlane.f32.xlu0 %v3407_v48  ;;  %v6273_v46 = vpop.eup %6272  ;;  %v10960_v48 = vld [vmem:[#allocation76_spill] sm:$0xff] }
 0x60e   : > { %6274 = vrcp.f32 %v10960_v48 }
 0x60f   : > { %6276 = vrcp.f32 %v10965_v54 }
 0x611   : > { %5725 = vmatpush.xpose.msk.msrb.mxu3 %vm762_vm2, %v2776_v26  ;;  %v8936_v49 = vpop.f32.mrf.mxu1  ;;  %v8984_v26 = vpop.f32.mrf.mxu0 }
 0x612   : > { %v3422_v17 = vmax.f32 %v8877_v23, %v8936_v49  ;;  %10961 = vst [vmem:[#allocation40_spill] sm:$0xff] %v8984_v26  ;;  %v4295_v6 = vpop.permute.xlu1 %4294 }
 0x614   : > { %3423 = vmax.xlane.f32.xlu1 %v3422_v17  ;;  %5793 = vmatmul.msk.bf16.gmra.mxu1 %vm762_vm2, %v8847_v12  ;;  %v6275_v32 = vpop.eup %6274 }
 0x615   : > { %5726 = vmatpush.xpose.msk.msrb.mxu3 %vm762_vm2, %v2775_v39  ;;  %v3091_v52 = vpop.permute.xlu0 %3090  ;;  %v10962_v39 = vld [vmem:[#allocation72_spill] sm:$0xff] }
 0x616   : > { %5778 = vmatmul.msk.bf16.gmra.mxu0 %vm762_vm2, %v3091_v52  ;;  %v1584_v7 = vadd.f32 %v10963_v27, %v10962_v39  ;;  %v4380_v39 = vsel %vm762_vm2, %v4295_v6, 0 }
 0x618   : > { %v1676_v2 = vmul.f32 %v6275_v32, %v1584_v7  ;;  %v10974_v7 = vld [vmem:[#allocation74_spill] sm:$0xff] }
 0x619   : > { %5727 = vmatpush.xpose.msk.msrb.mxu3 %vm762_vm2, %v2774_v15  ;;  %v8956_v11 = vpop.f32.mrf.mxu1  ;;  %v9007_v1 = vpop.f32.mrf.mxu0 }
 0x61a   : > { %v3425_v12 = vmax.f32 %v8886_v29, %v8956_v11  ;;  %v9012_v14 = vpop.permute.xlu1 %4310 }
 0x61c   : > { %3426 = vmax.xlane.f32.xlu2 %v3425_v12 }
 0x61d   : > { %5728 = vmatpush.xpose.msk.msrb.mxu3 %vm762_vm2, %v2773_v43  ;;  %v8970_v59 = vpop.permute.xlu0 %3096  ;;  %v10966_v43 = vld [vmem:[#allocation102_spill] sm:$0xff] }
 0x61e   : > { %6278 = vrcp.f32 %v10966_v43  ;;  %v10976_v43 = vld [vmem:[#allocation68_spill] sm:$0xff] }
 0x61f   : > { %6280 = vrcp.f32 %v10969_v44  ;;  %v10980_v44 = vld [vmem:[#allocation96_spill] sm:$0xff] }
 0x620   : > { %6282 = vrcp.f32 %v10972_v42 }
 0x621   : > { %5729 = vmatpush.xpose.msk.msrb.mxu3 %vm762_vm2, %v2772_v18  ;;  %4260 = vrot.lane.b32.xlu0 %v10956_v5, %s6787_s14  ;;  %v8976_v37 = vpop.f32.mrf.mxu1  ;;  %v10968_v18 = vld [vmem:[#allocation80_spill] sm:$0xff]  ;;  %v9009_v5 = vpop.permute.xlu2 %4286  ;;  %6284 = vrcp.f32 %v10974_v7 }
 0x622   : > { %10957 = vst [vmem:[#allocation58_spill] sm:$0xff] %v8976_v37  ;;  %v4293_v6 = vpop.permute.xlu1 %4292 }
 0x624   : > { %5794 = vmatmul.msk.bf16.gmra.mxu1 %vm762_vm2, %v3091_v52  ;;  %v10964_v52 = vld [vmem:[#allocation39_spill] sm:$0xff] }
 0x625   : > { %5730 = vmatpush.xpose.msk.msrb.mxu3 %vm762_vm2, %v2771_v28  ;;  %v4299_v61 = vpop.permute.xlu0 %4298  ;;  %v1677_v15 = vmul.f32 %v6273_v46, %v10964_v52  ;;  %v10971_v46 = vld [vmem:[#allocation71_spill] sm:$0xff] }
 0x626   : > { %v4386_v17 = vsel %vm762_vm2, %v4299_v61, 0  ;;  %5779 = vmatmul.msk.bf16.gmra.mxu0 %vm762_vm2, %v8833_v62  ;;  %v10973_v61 = vld [vmem:[#allocation24_spill] sm:$0xff]  ;;  %v10975_v52 = vld [vmem:[#allocation79_spill] sm:$0xff] }
 0x627   : > { %4412 = vmatpush.bf16.xpose.msra.mxu2 %v4386_v17 }
 0x628   : > { %5731 = vmatmul.msk.f32.vlgmr.msrb.gmra.mxu3 %vm762_vm2, %v10927_v13  ;;  %v6277_v13 = vpop.eup %6276 }
 0x629   : > { %5732 = vmatpush.xpose.msk.msra.mxu3 %vm762_vm2, %v1678_v55  ;;  %v8998_v12 = vpop.f32.mrf.mxu1  ;;  %v1675_v51 = vmul.f32 %v6277_v13, %v10968_v18  ;;  %v6279_v35 = vpop.eup %6278  ;;  %v10970_v55 = vld [vmem:[#allocation62_spill] sm:$0xff] }
 0x62a   : > { %v1579_v48 = vadd.f32 %v10971_v46, %v10970_v55  ;;  %v6281_v27 = vpop.eup %6280  ;;  %v9038_v13 = vpop.permute.xlu2 %4300  ;;  %v10981_v55 = vld [vmem:[#allocation64_spill] sm:$0xff] }
 0x62b   : > { %v6283_v54 = vpop.eup %6282  ;;  %10979 = vst [vmem:[#allocation14_spill] sm:$0xff] %v9038_v13 }
 0x62c   : > { %v1674_v17 = vmul.f32 %v6279_v35, %v1579_v48  ;;  %v4377_v35 = vsel %vm762_vm2, %v4293_v6, 0 }
 0x62d   : > { %5733 = vmatpush.xpose.msk.msra.mxu3 %vm762_vm2, %v1677_v15  ;;  %4262 = vrot.lane.b32.xlu1 %v10967_v9, %s6787_s14  ;;  %v1673_v15 = vmul.f32 %v6281_v27, %v10975_v52  ;;  %v9034_v9 = vpop.f32.mrf.mxu0  ;;  %v10985_v27 = vld [vmem:[#allocation77_spill] sm:$0xff] }
 0x62f   : > { %4413 = vmatpush.bf16.xpose.msra.mxu2 %v4383_v8  ;;  %v10978_v8 = vld [vmem:[#allocation105_spill] sm:$0xff] }
 0x630   : > { %6286 = vrcp.f32 %v10978_v8 }
 0x631   : > { %5734 = vmatpush.xpose.msk.msra.mxu3 %vm762_vm2, %v1676_v2  ;;  %v9014_v28 = vpop.f32.mrf.mxu1  ;;  %v10977_v2 = vld [vmem:[#allocation34_spill] sm:$0xff]  ;;  %6288 = vrcp.f32 %v10980_v44  ;;  %v10991_v44 = vld [vmem:[#allocation84_spill] sm:$0xff] }
 0x632   : > { %6290 = vrcp.f32 %v10985_v27 }
 0x634   : > { %4264 = vrot.lane.b32.xlu2 %v10973_v61, %s6787_s14  ;;  %5795 = vmatmul.msk.bf16.gmra.mxu1 %vm762_vm2, %v8833_v62  ;;  %v1574_v62 = vadd.f32 %v10977_v2, %v10976_v43  ;;  %v10983_v61 = vld [vmem:[#allocation92_spill] sm:$0xff]  ;;  %v9056_v43 = vpop.permute.xlu0 %4312  ;;  %v4374_v2 = vsel %vm762_vm2, %v8965_v60, 0 }
 0x635   : > { %5735 = vmatpush.xpose.msk.msra.mxu3 %vm762_vm2, %v1675_v51  ;;  %v6285_v51 = vpop.eup %6284 }
 0x636   : > { %5780 = vmatmul.msk.bf16.gmra.mxu0 %vm762_vm2, %v8946_v40  ;;  %v1672_v18 = vmul.f32 %v6283_v54, %v1574_v62  ;;  %v1671_v46 = vmul.f32 %v6285_v51, %v10981_v55  ;;  %v6287_v48 = vpop.eup %6286  ;;  %v9054_v54 = vpop.permute.xlu2 %4254  ;;  %v10988_v62 = vld [vmem:[#allocation73_spill] sm:$0xff] }
 0x637   : > { %4414 = vmatpush.bf16.xpose.msra.mxu2 %v4380_v39  ;;  %v6289_v52 = vpop.eup %6288  ;;  %10987 = vst [vmem:[#allocation139_spill] sm:$0xff] %v9054_v54  ;;  %6292 = vrcp.f32 %v10988_v62  ;;  %v11006_v54 = vld [vmem:[#allocation136_spill] sm:$0xff] }
 0x638   : > { %v6291_v6 = vpop.eup %6290 }
 0x639   : > { %5736 = vmatpush.xpose.msk.msra.mxu3 %vm762_vm2, %v1674_v17  ;;  %v9030_v32 = vpop.f32.mrf.mxu1  ;;  %v10984_v17 = vld [vmem:[#allocation93_spill] sm:$0xff] }
 0x63a   : > { %v1569_v39 = vadd.f32 %v10984_v17, %v10983_v61  ;;  %v4371_v61 = vsel %vm762_vm2, %v8986_v33, 0  ;;  %v10993_v17 = vld [vmem:[#allocation89_spill] sm:$0xff]  ;;  %v10996_v33 = vld [vmem:[#allocation67_spill] sm:$0xff] }
 0x63c   : > { %v1670_v7 = vmul.f32 %v6287_v48, %v1569_v39 }
 0x63d   : > { %5737 = vmatpush.xpose.msk.msra.mxu3 %vm762_vm2, %v1673_v15  ;;  %v9052_v15 = vpop.f32.mrf.mxu0  ;;  %v6293_v48 = vpop.eup %6292 }
 0x63e   : > { %10986 = vst [vmem:[#allocation23_spill] sm:$0xff] %v9052_v15  ;;  %v9079_v27 = vpop.permute.xlu2 %4258 }
 0x63f   : > { %4415 = vmatpush.bf16.xpose.msra.mxu2 %v4377_v35  ;;  %v10990_v35 = vld [vmem:[#allocation83_spill] sm:$0xff]  ;;  %10994 = vst [vmem:[#allocation141_spill] sm:$0xff] %v9079_v27  ;;  %v11005_v27 = vld [vmem:[#allocation134_spill] sm:$0xff] }
 0x640   : > { %v1564_v55 = vadd.f32 %v10991_v44, %v10990_v35  ;;  %v10998_v44 = vld [vmem:[#allocation129_spill] sm:$0xff]  ;;  %v1629_v13 = vadd.f32 %v11006_v54, %v11005_v27  ;;  %v11011_v54 = vld [vmem:[#allocation126_spill] sm:$0xff] }
 0x641   : > { %5738 = vmatpush.xpose.msk.msra.mxu3 %vm762_vm2, %v1672_v18  ;;  %v9044_v42 = vpop.f32.mrf.mxu1  ;;  %v3419_v18 = vmax.f32 %v8863_v58, %v8923_v50 }
 0x642   : > { %10982 = vst [vmem:[#allocation11_spill] sm:$0xff] %v9044_v42  ;;  %v1668_v60 = vmul.f32 %v6291_v6, %v1564_v55 }
 0x644   : > { %5796 = vmatmul.msk.bf16.gmra.mxu1 %vm762_vm2, %v8946_v40  ;;  %v10989_v40 = vld [vmem:[#allocation87_spill] sm:$0xff] }
 0x645   : > { %5739 = vmatpush.xpose.msk.msra.mxu3 %vm762_vm2, %v1671_v46  ;;  %v1669_v8 = vmul.f32 %v6289_v52, %v10989_v40  ;;  %v10992_v46 = vld [vmem:[#allocation116_spill] sm:$0xff]  ;;  %v9077_v39 = vpop.f32.mrf.mxu0  ;;  %v10995_v52 = vld [vmem:[#allocation81_spill] sm:$0xff]  ;;  %v9084_v40 = vpop.permute.xlu1 %4308 }
 0x646   : > { %5781 = vmatmul.msk.bf16.gmra.mxu0 %vm762_vm2, %v8970_v59  ;;  %6294 = vrcp.f32 %v10992_v46 }
 0x647   : > { %4416 = vmatpush.bf16.xpose.msra.mxu2 %v4374_v2  ;;  %6296 = vrcp.f32 %v10993_v17  ;;  %v1667_v2 = vmul.f32 %v6293_v48, %v10995_v52  ;;  %v4368_v48 = vsel %vm762_vm2, %v9009_v5, 0  ;;  %v11002_v5 = vld [vmem:[#allocation27_spill] sm:$0xff] }
 0x648   : > { %6298 = vrcp.f32 %v10998_v44  ;;  %v11003_v44 = vld [vmem:[#allocation69_spill] sm:$0xff] }
 0x649   : > { %5740 = vmatpush.xpose.msk.msra.mxu3 %vm762_vm2, %v1670_v7  ;;  %v9067_v51 = vpop.f32.mrf.mxu1  ;;  %v9081_v7 = vpop.permute.xlu0 %4306 }
 0x64b   : > { %3420 = vmax.xlane.f32.xlu0 %v3419_v18  ;;  %v10997_v18 = vld [vmem:[#allocation70_spill] sm:$0xff] }
 0x64c   : > { %v6295_v62 = vpop.eup %6294  ;;  %v1559_v35 = vadd.f32 %v10997_v18, %v10996_v33  ;;  %v3431_v18 = vmax.f32 %v8919_v36, %v8998_v12 }
 0x64d   : > { %5741 = vmatpush.xpose.msk.msra.mxu3 %vm762_vm2, %v1669_v8  ;;  %v3428_v8 = vmax.f32 %v8902_v3, %v8976_v37  ;;  %v6297_v46 = vpop.eup %6296  ;;  %v9105_v33 = vpop.f32.mrf.mxu0 }
 0x64e   : > { %v1666_v55 = vmul.f32 %v6295_v62, %v1559_v35 }
 0x64f   : > { %4417 = vmatpush.bf16.xpose.msra.mxu2 %v4371_v61  ;;  %v10999_v61 = vld [vmem:[#allocation140_spill] sm:$0xff] }
 0x650   : > { %6300 = vrcp.f32 %v10999_v61 }
 0x651   : > { %5742 = vmatpush.xpose.msk.msra.mxu3 %vm762_vm2, %v1668_v60  ;;  %v9088_v6 = vpop.f32.mrf.mxu1  ;;  %v3434_v60 = vmax.f32 %v8938_v10, %v9014_v28 }
 0x653   : > { %3429 = vmax.xlane.f32.xlu0 %v3428_v8  ;;  %v6299_v8 = vpop.eup %6298 }
 0x654   : > { %5797 = vmatmul.msk.bf16.gmra.mxu1 %vm762_vm2, %v8970_v59  ;;  %v11000_v59 = vld [vmem:[#allocation61_spill] sm:$0xff] }
 0x655   : > { %5743 = vmatpush.xpose.msk.msra.mxu3 %vm762_vm2, %v1667_v2  ;;  %v1665_v62 = vmul.f32 %v6297_v46, %v11000_v59  ;;  %v3437_v46 = vmax.f32 %v8963_v31, %v9030_v32 }
 0x656   : > { %v6301_v59 = vpop.eup %6300 }
 0x657   : > { %3435 = vmax.xlane.f32.xlu1 %v3434_v60  ;;  %v3406_v17 = vpop.xlane.xlu2 %3405  ;;  %4418 = vmatpush.bf16.xpose.msra.mxu2 %v4368_v48  ;;  %v11004_v60 = vld [vmem:[#allocation135_spill] sm:$0xff]  ;;  %v9114_v48 = vpop.permute.xlu0 %4304 }
 0x658   : > { %v3500_v52 = vsub.f32 %v8815_v53, %v3406_v17  ;;  %v3501_v2 = vsub.f32 %v8865_v63, %v3406_v17  ;;  %6302 = vrcp.f32 %v11004_v60  ;;  %v4285_v63 = vpop.permute.xlu1 %4284 }
 0x659   : > { %5744 = vmatpush.xpose.msk.msra.mxu3 %vm762_vm2, %v1666_v55  ;;  %v9109_v35 = vpop.f32.mrf.mxu1  ;;  %v1554_v55 = vadd.f32 %v11003_v44, %v11002_v5  ;;  %v11007_v5 = vld [vmem:[#allocation128_spill] sm:$0xff] }
 0x65a   : > { %11001 = vst [vmem:[#allocation144_spill] sm:$0xff] %v9109_v35  ;;  %v3564_v53 = vmul.f32 1.442695, %v3500_v52  ;;  %v3566_v61 = vmul.f32 1.442695, %v3501_v2  ;;  %v4365_v52 = vsel %vm762_vm2, %v4285_v63, 0 }
 0x65b   : > { %3432 = vmax.xlane.f32.xlu0 %v3431_v18  ;;  %v1664_v17 = vmul.f32 %v6299_v8, %v1554_v55  ;;  %v9125_v18 = vpop.f32.mrf.mxu0  ;;  %v11012_v63 = vld [vmem:[#allocation90_spill] sm:$0xff] }
 0x65c   : > { %6304 = vpow2.f32 %v3564_v53  ;;  %11009 = vst [vmem:[#allocation65_spill] sm:$0xff] %v9125_v18  ;;  %v3440_v53 = vmax.f32 %v8984_v26, %v9044_v42 }
 0x65d   : > { %5745 = vmatpush.xpose.msk.msra.mxu3 %vm762_vm2, %v1665_v62  ;;  %6306 = vpow2.f32 %v3566_v61  ;;  %3438 = vmax.xlane.f32.xlu2 %v3437_v46  ;;  %v11008_v62 = vld [vmem:[#allocation66_spill] sm:$0xff] }
 0x65e   : > { %6308 = vrcp.f32 %v11007_v5  ;;  %v6303_v2 = vpop.eup %6302  ;;  %v1663_v44 = vmul.f32 %v6301_v59, %v11008_v62  ;;  %v11016_v59 = vld [vmem:[#allocation131_spill] sm:$0xff]  ;;  %v9151_v62 = vld [vmem:[%s10505_s2] sm:$0xf] }
 0x65f   : > { %4419 = vmatpush.bf16.xpose.msra.mxu2 %v4365_v52  ;;  %v1694_v60 = vmul.f32 %v6303_v2, %v1629_v13  ;;  %6310 = vrcp.f32 %v11011_v54  ;;  %v9139_v13 = vpop.permute.xlu0 %4302  ;;  %v11017_v52 = vld [vmem:[#allocation133_spill] sm:$0xff]  ;;  %v11018_v54 = vld [vmem:[#allocation124_spill] sm:$0xff] }
 0x660   : > { %6312 = vrcp.f32 %v11012_v63  ;;  %11013 = vst [vmem:[#allocation8_spill] sm:$0xff] %v9139_v13 }
 0x661   : > { %5746 = vmatpush.xpose.msk.msra.mxu3 %vm762_vm2, %v1664_v17  ;;  %v9127_v8 = vpop.f32.mrf.mxu1  ;;  %v11015_v17 = vld [vmem:[#allocation130_spill] sm:$0xff]  ;;  %6314 = vrcp.f32 %v11018_v54  ;;  %v3446_v54 = vmax.f32 %v9034_v9, %v9088_v6 }
 0x662   : > { %11010 = vst [vmem:[#allocation137_spill] sm:$0xff] %v9127_v8  ;;  %v9129_v55 = vpop.eup %6304  ;;  %v1624_v5 = vadd.f32 %v11016_v59, %v11015_v17 }
 0x663   : > { %v9133_v27 = vpop.eup %6306 }
 0x664   : > { %v6309_v61 = vpop.eup %6308  ;;  %v9143_v46 = vadd.f32 %v9133_v27, %v9129_v55 }
 0x665   : > { %5747 = vmatpush.xpose.msk.msra.mxu3 %vm762_vm2, %v1663_v44  ;;  %v1693_v2 = vmul.f32 %v6309_v61, %v11017_v52  ;;  %3441 = vmax.xlane.f32.xlu2 %v3440_v53  ;;  %v11019_v53 = vld [vmem:[#allocation122_spill] sm:$0xff] }
 0x666   : > { %11014 = vst [vmem:[#allocation20_spill] sm:$0xff] %v9143_v46  ;;  %6316 = vrcp.f32 %v11019_v53  ;;  %v11025_v53 = vld [vmem:[#allocation28_spill] sm:$0xff] }
 0x667   : > { %v3412_v44 = vpop.xlane.xlu1 %3411 }
 0x668   : > { %5748 = vmatmul.msk.f32.vlgmr.msra.gmra.mxu3 %vm762_vm2, %v9151_v62  ;;  %v3504_v63 = vsub.f32 %v8839_v38, %v3412_v44  ;;  %v3505_v17 = vsub.f32 %v8882_v47, %v3412_v44  ;;  %v11021_v38 = vld [vmem:[#allocation127_spill] sm:$0xff]  ;;  %v9170_v44 = vpop.permute.xlu0 %4252 }
 0x669   : > { %5749 = vmatpush.xpose.msk.msrb.mxu3 %vm762_vm2, %v1694_v60  ;;  %v6311_v60 = vpop.eup %6310  ;;  %v9159_v59 = vpop.f32.mrf.mxu1  ;;  %11022 = vst [vmem:[#allocation30_spill] sm:$0xff] %v9170_v44  ;;  %v11033_v44 = vld [vmem:[#allocation143_spill] sm:$0xff] }
 0x66a   : > { %v1692_v61 = vmul.f32 %v6311_v60, %v1624_v5  ;;  %v6313_v52 = vpop.eup %6312  ;;  %v3572_v46 = vmul.f32 1.442695, %v3504_v63  ;;  %v3574_v37 = vmul.f32 1.442695, %v3505_v17  ;;  %v3455_v13 = vmax.f32 %v9105_v33, %v9159_v59  ;;  %v11023_v60 = vld [vmem:[#allocation91_spill] sm:$0xff]  ;;  %v11024_v63 = vld [vmem:[#allocation125_spill] sm:$0xff] }
 0x66b   : > { %v1691_v47 = vmul.f32 %v6313_v52, %v11021_v38  ;;  %v6315_v5 = vpop.eup %6314  ;;  %v1619_v17 = vadd.f32 %v11024_v63, %v11023_v60  ;;  %v11031_v63 = vld [vmem:[#allocation123_spill] sm:$0xff] }
 0x66c   : > { %6318 = vpow2.f32 %v3572_v46  ;;  %3456 = vmax.xlane.f32.xlu1 %v3455_v13  ;;  %v6317_v42 = vpop.eup %6316 }
 0x66d   : > { %5750 = vmatpush.xpose.msk.msrb.mxu3 %vm762_vm2, %v1693_v2  ;;  %v9164_v2 = vpop.f32.mrf.mxu0  ;;  %6320 = vpow2.f32 %v3574_v37  ;;  %3447 = vmax.xlane.f32.xlu2 %v3446_v54  ;;  %v1690_v26 = vmul.f32 %v6315_v5, %v1619_v17  ;;  %v11027_v37 = vld [vmem:[#allocation118_spill] sm:$0xff]  ;;  %v3449_v54 = vmax.f32 %v9052_v15, %v9109_v35  ;;  %v11030_v5 = vld [vmem:[#allocation121_spill] sm:$0xff]  ;;  %v1689_v17 = vmul.f32 %v6317_v42, %v11031_v63 }
 0x66e   : > { %11020 = vst [vmem:[#allocation138_spill] sm:$0xff] %v9164_v2  ;;  %6322 = vrcp.f32 %v11027_v37 }
 0x66f   : > { %4266 = vrot.lane.b32.xlu0 %v11025_v53, %s6787_s14  ;;  %v11032_v53 = vld [vmem:[#allocation132_spill] sm:$0xff] }
 0x670   : > { %6324 = vrcp.f32 %v11032_v53  ;;  %v9199_v35 = vpop.permute.xlu0 %4256  ;;  %v11039_v53 = vld [vmem:[#allocation117_spill] sm:$0xff] }
 0x671   : > { %5751 = vmatpush.xpose.msk.msrb.mxu3 %vm762_vm2, %v1692_v61  ;;  %v9177_v61 = vpop.f32.mrf.mxu1  ;;  %6326 = vrcp.f32 %v11033_v44  ;;  %11034 = vst [vmem:[#allocation82_spill] sm:$0xff] %v9199_v35  ;;  %v11040_v35 = vld [vmem:[#allocation146_spill] sm:$0xff] }
 0x672   : > { %11026 = vst [vmem:[#allocation49_spill] sm:$0xff] %v9177_v61  ;;  %v9179_v13 = vpop.eup %6318 }
 0x673   : > { %v9182_v46 = vpop.eup %6320 }
 0x674   : > { %v9191_v38 = vadd.f32 %v9182_v46, %v9179_v13  ;;  %v6323_v37 = vpop.eup %6322 }
 0x675   : > { %5752 = vmatpush.xpose.msk.msrb.mxu3 %vm762_vm2, %v1691_v47  ;;  %v9184_v52 = vpop.f32.mrf.mxu0  ;;  %v11029_v47 = vld [vmem:[#allocation120_spill] sm:$0xff]  ;;  %3450 = vmax.xlane.f32.xlu2 %v3449_v54  ;;  %v11036_v54 = vld [vmem:[#allocation145_spill] sm:$0xff] }
 0x676   : > { %11028 = vst [vmem:[#allocation98_spill] sm:$0xff] %v9191_v38  ;;  %v1614_v60 = vadd.f32 %v11030_v5, %v11029_v47  ;;  %v3452_v47 = vmax.f32 %v9077_v39, %v9127_v8  ;;  %v6325_v42 = vpop.eup %6324  ;;  %6328 = vrcp.f32 %v11036_v54  ;;  %v11037_v5 = vld [vmem:[#allocation119_spill] sm:$0xff] }
 0x677   : > { %v1687_v63 = vmul.f32 %v6325_v42, %v11037_v5  ;;  %6330 = vrcp.f32 %v11040_v35 }
 0x679   : > { %5753 = vmatpush.xpose.msk.msrb.mxu3 %vm762_vm2, %v1690_v26  ;;  %v1688_v26 = vmul.f32 %v6323_v37, %v1614_v60  ;;  %v9201_v15 = vpop.f32.mrf.mxu1  ;;  %v6327_v60 = vpop.eup %6326 }
 0x67a   : > { %11035 = vst [vmem:[#allocation9_spill] sm:$0xff] %v9201_v15  ;;  %v3461_v38 = vmax.f32 %v9164_v2, %v9201_v15 }
 0x67c   : > { %3462 = vmax.xlane.f32.xlu1 %v3461_v38  ;;  %v6329_v42 = vpop.eup %6328 }
 0x67d   : > { %5754 = vmatpush.xpose.msk.msrb.mxu3 %vm762_vm2, %v1689_v17  ;;  %v9210_v44 = vpop.f32.mrf.mxu0  ;;  %3453 = vmax.xlane.f32.xlu2 %v3452_v47  ;;  %v11038_v17 = vld [vmem:[#allocation114_spill] sm:$0xff]  ;;  %v3458_v47 = vmax.f32 %v9125_v18, %v9177_v61 }
 0x67e   : > { %v1609_v37 = vadd.f32 %v11039_v53, %v11038_v17  ;;  %v11041_v17 = vld [vmem:[#allocation56_spill] sm:$0xff] }
 0x67f   : > { %6332 = vrcp.f32 %v11041_v17 }
 0x680   : > { %v3409_v15 = vpop.xlane.xlu0 %3408  ;;  %v1686_v38 = vmul.f32 %v6327_v60, %v1609_v37  ;;  %v11044_v60 = vld [vmem:[#allocation112_spill] sm:$0xff]  ;;  %v11045_v37 = vld [vmem:[#allocation46_spill] sm:$0xff] }
 0x681   : > { %5755 = vmatpush.xpose.msk.msrb.mxu3 %vm762_vm2, %v1688_v26  ;;  %v3502_v26 = vsub.f32 %v8825_v24, %v3409_v15  ;;  %v3503_v2 = vsub.f32 %v8875_v56, %v3409_v15  ;;  %v9218_v54 = vpop.f32.mrf.mxu1  ;;  %v11042_v24 = vld [vmem:[#allocation113_spill] sm:$0xff]  ;;  %v6331_v56 = vpop.eup %6330  ;;  %v11043_v15 = vld [vmem:[#allocation111_spill] sm:$0xff] }
 0x682   : > { %v1685_v35 = vmul.f32 %v6329_v42, %v11042_v24  ;;  %v1604_v53 = vadd.f32 %v11044_v60, %v11043_v15  ;;  %v3464_v42 = vmax.f32 %v9184_v52, %v9218_v54 }
 0x683   : > { %v3568_v5 = vmul.f32 1.442695, %v3502_v26  ;;  %v3570_v8 = vmul.f32 1.442695, %v3503_v2  ;;  %v9231_v2 = vpop.xlane.xlu2 %3414 }
 0x685   : > { %5756 = vmatpush.xpose.msk.msrb.mxu3 %vm762_vm2, %v1687_v63  ;;  %v9224_v63 = vpop.f32.mrf.mxu0  ;;  %6334 = vpow2.f32 %v3568_v5  ;;  %3459 = vmax.xlane.f32.xlu2 %v3458_v47  ;;  %v6333_v17 = vpop.eup %6332 }
 0x686   : > { %6336 = vpow2.f32 %v3570_v8  ;;  %v3506_v8 = vsub.f32 %v8853_v41, %v9231_v2  ;;  %v11048_v41 = vld [vmem:[#allocation108_spill] sm:$0xff] }
 0x687   : > { %6338 = vrcp.f32 %v11045_v37  ;;  %v11049_v37 = vld [vmem:[#allocation109_spill] sm:$0xff] }
 0x688   : > { %6340 = vrcp.f32 %v8684_v0  ;;  %v1599_v61 = vadd.f32 %v11049_v37, %v11048_v41 }
 0x689   : > { %5757 = vmatpush.xpose.msk.msrb.mxu3 %vm762_vm2, %v1686_v38  ;;  %v9233_v26 = vpop.f32.mrf.mxu1  ;;  %v1684_v38 = vmul.f32 %v6331_v56, %v1604_v53  ;;  %v11046_v56 = vld [vmem:[#allocation110_spill] sm:$0xff]  ;;  %6342 = vrcp.f32 %v8773_v20 }
 0x68a   : > { %v3467_v47 = vmax.f32 %v9210_v44, %v9233_v26  ;;  %v1683_v15 = vmul.f32 %v6333_v17, %v11046_v56  ;;  %v11050_v17 = vld [vmem:[#allocation107_spill] sm:$0xff]  ;;  %v11052_v56 = vld [vmem:[#allocation106_spill] sm:$0xff] }
 0x68b   : > { %v6335_v5 = vpop.eup %6334 }
 0x68c   : > { %v9242_v24 = vpop.eup %6336  ;;  %3468 = vmax.xlane.f32.xlu1 %v3467_v47 }
 0x68d   : > { %5758 = vmatpush.xpose.msk.msrb.mxu3 %vm762_vm2, %v1685_v35  ;;  %v3788_v35 = vpack.c.bf16 %v6335_v5, %v9129_v55  ;;  %3465 = vmax.xlane.f32.xlu2 %v3464_v42  ;;  %v9248_v60 = vadd.f32 %v9242_v24, %v6335_v5  ;;  %v6339_v53 = vpop.eup %6338  ;;  %v9252_v18 = vpop.f32.mrf.mxu0 }
 0x68e   : > { %v1682_v55 = vmul.f32 %v6339_v53, %v1599_v61  ;;  %v6341_v47 = vpop.eup %6340 }
 0x68f   : > { %11047 = vst [vmem:[#allocation17_spill] sm:$0xff] %v9248_v60  ;;  %3876 = vmatmul.bf16.vlgmr.msrb.gmra.mxu2 %v3788_v35  ;;  %v1681_v5 = vmul.f32 %v6341_v47, %v11050_v17  ;;  %v6343_v42 = vpop.eup %6342  ;;  %v11051_v35 = vld [vmem:[#allocation104_spill] sm:$0xff]  ;;  %v11054_v17 = vld [vmem:[#allocation147_spill] sm:$0xff] }
 0x690   : > { %v1594_v41 = vadd.f32 %v11052_v56, %v11051_v35 }
 0x691   : > { %5759 = vmatpush.xpose.msk.msrb.mxu3 %vm762_vm2, %v1684_v38  ;;  %v3576_v38 = vmul.f32 1.442695, %v3506_v8  ;;  %v9256_v0 = vpop.f32.mrf.mxu1  ;;  %v3443_v8 = vmax.f32 %v9007_v1, %v9067_v51 }
 0x692   : > { %v1680_v53 = vmul.f32 %v6343_v42, %v1594_v41  ;;  %v11055_v41 = vld [vmem:[#allocation88_spill] sm:$0xff] }
 0x693   : > { %6344 = vpow2.f32 %v3576_v38 }
 0x694   : > { %6346 = vrcp.f32 %v8841_v30 }
 0x695   : > { %5760 = vmatpush.xpose.msk.msrb.mxu3 %vm762_vm2, %v1683_v15  ;;  %v9265_v15 = vpop.f32.mrf.mxu0 }
 0x699   : > { %5761 = vmatpush.xpose.msk.msrb.mxu3 %vm762_vm2, %v1682_v55  ;;  %v9268_v20 = vpop.eup %6344  ;;  %3444 = vmax.xlane.f32.xlu0 %v3443_v8  ;;  %v9270_v61 = vpop.f32.mrf.mxu1  ;;  %v11053_v55 = vld [vmem:[#allocation103_spill] sm:$0xff] }
 0x69a   : > { %v6347_v30 = vpop.eup %6346  ;;  %v3473_v37 = vmax.f32 %v9252_v18, %v9270_v61  ;;  %v3790_v38 = vpack.c.bf16 %v9268_v20, %v9179_v13  ;;  %v11056_v8 = vld [vmem:[#allocation31_spill] sm:$0xff] }
 0x69b   : > { %v1679_v47 = vmul.f32 %v6347_v30, %v11053_v55 }
 0x69c   : > { %3474 = vmax.xlane.f32.xlu2 %v3473_v37  ;;  %v9305_v37 = vpop.permute.xlu0 %4260 }
 0x69d   : > { %5762 = vmatpush.xpose.msk.msrb.mxu3 %vm762_vm2, %v1681_v5  ;;  %v9280_v5 = vpop.f32.mrf.mxu0  ;;  %11058 = vst [vmem:[#allocation15_spill] sm:$0xff] %v9305_v37 }
 0x69f   : > { %3881 = vmatmul.bf16.gmra.mxu2 %v3790_v38  ;;  %v3507_v38 = vsub.f32 %v8894_v22, %v9231_v2 }
 0x6a1   : > { %5763 = vmatpush.xpose.msk.msrb.mxu3 %vm762_vm2, %v1680_v53  ;;  %v9282_v42 = vpop.f32.mrf.mxu1  ;;  %v11057_v53 = vld [vmem:[#allocation52_spill] sm:$0xff] }
 0x6a2   : > { %v3476_v35 = vmax.f32 %v9265_v15, %v9282_v42 }
 0x6a4   : > { %3477 = vmax.xlane.f32.xlu1 %v3476_v35  ;;  %v3789_v35 = vpack.c.bf16 %v9242_v24, %v9133_v27  ;;  %v4407_v27 = vsel %vm762_vm2, %v9056_v43, 0 }
 0x6a5   : > { %5764 = vmatpush.xpose.msk.msrb.mxu3 %vm762_vm2, %v1679_v47  ;;  %v9292_v56 = vpop.f32.mrf.mxu0 }
 0x6a8   : > { %5765 = vmatmul.msk.f32.vlgmr.msrb.gmra.mxu3 %vm762_vm2, %v9151_v62 }
 0x6a9   : > { %3957 = vmatpush.bf16.msra.mxu3 %v11054_v17  ;;  %v9290_v13 = vpop.f32.mrf.mxu1  ;;  %v4410_v17 = vsel %vm762_vm2, %v8941_v25, 0 }
 0x6ad   : > { %3958 = vmatpush.bf16.msra.mxu3 %v8726_v57  ;;  %4268 = vrot.lane.b32.xlu0 %v11056_v8, %s6787_s14  ;;  %v9303_v57 = vpop.f32.mrf.mxu0 }
 0x6b1   : > { %3959 = vmatpush.bf16.msra.mxu3 %v8807_v19  ;;  %v9298_v62 = vpop.f32.mrf.mxu1  ;;  %v3418_v19 = vpop.xlane.xlu2 %3417 }
 0x6b2   : > { %v3482_v30 = vmax.f32 %v9292_v56, %v9298_v62  ;;  %v3508_v47 = vsub.f32 %v8859_v21, %v3418_v19 }
 0x6b4   : > { %3483 = vmax.xlane.f32.xlu2 %v3482_v30 }
 0x6b5   : > { %3960 = vmatpush.bf16.msra.mxu3 %v11055_v41  ;;  %v9318_v41 = vpop.xlane.xlu1 %3423  ;;  %v9322_v2 = vpop.f32.mrf.mxu0 }
 0x6b9   : > { %3961 = vmatpush.bf16.msra.mxu3 %v11057_v53  ;;  %v9310_v55 = vpop.f32.mrf.mxu1  ;;  %v9320_v8 = vpop.xlane.xlu2 %3426 }
 0x6bd   : > { %3962 = vmatpush.bf16.msra.mxu3 %v8880_v4  ;;  %v3578_v4 = vmul.f32 1.442695, %v3507_v38  ;;  %v9330_v24 = vpop.permute.xlu1 %4262 }
 0x6be   : > { %v3421_v22 = vpop.xlane.xlu0 %3420  ;;  %11059 = vst [vmem:[#allocation45_spill] sm:$0xff] %v9330_v24 }
 0x6bf   : > { %v3510_v21 = vsub.f32 %v8863_v58, %v3421_v22  ;;  %v3511_v53 = vsub.f32 %v8923_v50, %v3421_v22  ;;  %6348 = vpow2.f32 %v3578_v4  ;;  %v3514_v4 = vsub.f32 %v8886_v29, %v9320_v8 }
 0x6c0   : > { %v3512_v22 = vsub.f32 %v8877_v23, %v9318_v41 }
 0x6c1   : > { %3963 = vmatpush.bf16.msra.mxu3 %v8917_v45  ;;  %v3580_v45 = vmul.f32 1.442695, %v3508_v47  ;;  %v3586_v25 = vmul.f32 1.442695, %v3511_v53  ;;  %v9326_v30 = vpop.f32.mrf.mxu1  ;;  %v9338_v47 = vpop.permute.xlu2 %4264  ;;  %v3592_v29 = vmul.f32 1.442695, %v3514_v4 }
 0x6c2   : > { %11060 = vst [vmem:[#allocation86_spill] sm:$0xff] %v9338_v47  ;;  %v3509_v47 = vsub.f32 %v8906_v34, %v3418_v19  ;;  %v3588_v23 = vmul.f32 1.442695, %v3512_v22  ;;  %v4401_v34 = vsel %vm762_vm2, %v9084_v40, 0  ;;  %v3513_v40 = vsub.f32 %v8936_v49, %v9318_v41 }
 0x6c3   : > { %6350 = vpow2.f32 %v3580_v45  ;;  %v3515_v22 = vsub.f32 %v8956_v11, %v9320_v8  ;;  %v4398_v49 = vsel %vm762_vm2, %v9081_v7, 0  ;;  %v3479_v11 = vmax.f32 %v9280_v5, %v9290_v13 }
 0x6c4   : > { %v3590_v41 = vmul.f32 1.442695, %v3513_v40 }
 0x6c5   : > { %3964 = vmatpush.bf16.msra.mxu3 %v8932_v16  ;;  %v3584_v16 = vmul.f32 1.442695, %v3510_v21  ;;  %v9334_v58 = vpop.eup %6348 }
 0x6c6   : > { %v9332_v38 = vpop.xlane.xlu0 %3429 }
 0x6c7   : > { %6352 = vpow2.f32 %v3584_v16  ;;  %v4404_v16 = vsel %vm762_vm2, %v9012_v14, 0 }
 0x6c8   : > { %3965 = vmatmul.bf16.vlgmr.msra.gmra.mxu3 %v3789_v35  ;;  %6354 = vpow2.f32 %v3586_v25  ;;  %v9342_v35 = vpop.f32.mrf.mxu0 }
 0x6c9   : > { %4501 = vmatpush.bf16.xpose.msrb.mxu3 %v4410_v17  ;;  %v9336_v50 = vpop.eup %6350  ;;  %v9344_v45 = vpop.f32.mrf.mxu1  ;;  %6356 = vpow2.f32 %v3592_v29 }
 0x6ca   : > { %v3491_v21 = vmax.f32 %v9342_v35, %v9344_v45  ;;  %v3436_v24 = vpop.xlane.xlu1 %3435  ;;  %6358 = vpow2.f32 %v3588_v23 }
 0x6cb   : > { %v3520_v14 = vsub.f32 %v8938_v10, %v3436_v24 }
 0x6cc   : > { %3492 = vmax.xlane.f32.xlu2 %v3491_v21 }
 0x6cd   : > { %v6353_v17 = vpop.eup %6352 }
 0x6ce   : > { %v6355_v43 = vpop.eup %6354  ;;  %v3792_v53 = vpack.c.bf16 %v6353_v17, %v9336_v50  ;;  %v3433_v37 = vpop.xlane.xlu0 %3432 }
 0x6cf   : > { %v9353_v25 = vadd.f32 %v6355_v43, %v6353_v17  ;;  %v3518_v60 = vsub.f32 %v8919_v36, %v3433_v37  ;;  %v3519_v21 = vsub.f32 %v8998_v12, %v3433_v37  ;;  %v3470_v36 = vmax.f32 %v9224_v63, %v9256_v0  ;;  %v9368_v37 = vpop.eup %6356 }
 0x6d0   : > { %3886 = vmatmul.bf16.gmra.mxu2 %v3792_v53  ;;  %v9360_v53 = vpop.xlane.xlu2 %3438  ;;  %v3604_v12 = vmul.f32 1.442695, %v3520_v14  ;;  %v9370_v10 = vpop.eup %6358  ;;  %v3594_v14 = vmul.f32 1.442695, %v3515_v22 }
 0x6d1   : > { %4502 = vmatpush.bf16.xpose.msrb.mxu3 %v4407_v27  ;;  %v3791_v27 = vpack.c.bf16 %v9334_v58, %v9182_v46  ;;  %v3600_v17 = vmul.f32 1.442695, %v3518_v60  ;;  %v3602_v4 = vmul.f32 1.442695, %v3519_v21  ;;  %v3521_v46 = vsub.f32 %v9014_v28, %v3436_v24  ;;  %v2905_v60 = vpop.f32.mrf.mxu3 }
 0x6d2   : > { %v3794_v29 = vpack.c.bf16 %v9368_v37, %v9370_v10  ;;  %v3523_v40 = vsub.f32 %v9030_v32, %v9360_v53 }
 0x6d3   : > { %6360 = vpow2.f32 %v3600_v17  ;;  %v3606_v19 = vmul.f32 1.442695, %v3521_v46 }
 0x6d4   : > { %6362 = vpow2.f32 %v3602_v4  ;;  %v3610_v32 = vmul.f32 1.442695, %v3523_v40 }
 0x6d7   : > { %3471 = vmax.xlane.f32.xlu0 %v3470_v36 }
 0x6d8   : > { %3970 = vmatmul.bf16.gmra.mxu3 %v3791_v27  ;;  %v3516_v27 = vsub.f32 %v8902_v3, %v9332_v38 }
 0x6d9   : > { %4503 = vmatpush.bf16.xpose.msrb.mxu3 %v4404_v16  ;;  %v3582_v16 = vmul.f32 1.442695, %v3509_v47  ;;  %v9372_v47 = vpop.xlane.xlu2 %3441  ;;  %v9374_v28 = vpop.eup %6360 }
 0x6da   : > { %v9378_v24 = vpop.eup %6362  ;;  %v3596_v3 = vmul.f32 1.442695, %v3516_v27  ;;  %v9399_v46 = vpop.f32.mrf.mxu3 }
 0x6db   : > { %6364 = vpow2.f32 %v3582_v16  ;;  %v3719_v23 = vadd.f32 %v9378_v24, %v9374_v28  ;;  %11061 = vst [vmem:[#allocation5_spill] sm:$0xff] %v9399_v46 }
 0x6dc   : > { %6366 = vpow2.f32 %v3604_v12 }
 0x6dd   : > { %6368 = vpow2.f32 %v3606_v19  ;;  %3720 = vadd.xlane.f32.xlu1 %v3719_v23 }
 0x6de   : > { %6370 = vpow2.f32 %v3590_v41 }
 0x6df   : > { %3480 = vmax.xlane.f32.xlu0 %v3479_v11  ;;  %v3457_v4 = vpop.xlane.xlu1 %3456  ;;  %6372 = vpow2.f32 %v3594_v14 }
 0x6e0   : > { %3891 = vmatmul.bf16.gmra.mxu2 %v3794_v29  ;;  %v3534_v7 = vsub.f32 %v9105_v33, %v3457_v4  ;;  %6374 = vpow2.f32 %v3596_v3 }
 0x6e1   : > { %4504 = vmatpush.bf16.xpose.msrb.mxu3 %v4401_v34  ;;  %v9388_v21 = vpop.eup %6364  ;;  %v3535_v34 = vsub.f32 %v9159_v59, %v3457_v4  ;;  %v3448_v36 = vpop.xlane.xlu2 %3447 }
 0x6e2   : > { %v3793_v8 = vpack.c.bf16 %v6355_v43, %v9388_v21  ;;  %v9395_v17 = vpop.eup %6366  ;;  %v3522_v43 = vsub.f32 %v8963_v31, %v9360_v53  ;;  %v3528_v12 = vsub.f32 %v9034_v9, %v3448_v36  ;;  %v3529_v19 = vsub.f32 %v9088_v6, %v3448_v36 }
 0x6e3   : > { %v9397_v16 = vpop.eup %6368  ;;  %v3632_v22 = vmul.f32 1.442695, %v3534_v7  ;;  %v3634_v29 = vmul.f32 1.442695, %v3535_v34  ;;  %v4395_v31 = vsel %vm762_vm2, %v9114_v48, 0  ;;  %v3488_v9 = vmax.f32 %v9322_v2, %v9326_v30  ;;  %v9421_v48 = vpop.f32.mrf.mxu1  ;;  %v11064_v7 = vld [vmem:[#allocation11_spill] sm:$0xff] }
 0x6e4   : > { %v3620_v27 = vmul.f32 1.442695, %v3528_v12  ;;  %v3622_v33 = vmul.f32 1.442695, %v3529_v19  ;;  %v3722_v59 = vadd.f32 %v9397_v16, %v9395_v17  ;;  %v3608_v6 = vmul.f32 1.442695, %v3522_v43  ;;  %v9415_v53 = vpop.eup %6370  ;;  %v9436_v19 = vpop.f32.mrf.mxu0 }
 0x6e5   : > { %6376 = vpow2.f32 %v3632_v22  ;;  %v9417_v23 = vpop.eup %6372  ;;  %v3525_v34 = vsub.f32 %v11064_v7, %v9372_v47  ;;  %v3485_v12 = vmax.f32 %v9303_v57, %v9310_v55 }
 0x6e6   : > { %6378 = vpow2.f32 %v3634_v29  ;;  %3723 = vadd.xlane.f32.xlu1 %v3722_v59  ;;  %v6375_v11 = vpop.eup %6374  ;;  %v3795_v59 = vpack.c.bf16 %v9417_v23, %v9415_v53 }
 0x6e7   : > { %6380 = vpow2.f32 %v3620_v27  ;;  %3489 = vmax.xlane.f32.xlu0 %v3488_v9  ;;  %v3796_v36 = vpack.c.bf16 %v9374_v28, %v6375_v11  ;;  %v11066_v28 = vld [vmem:[#allocation58_spill] sm:$0xff] }
 0x6e8   : > { %3975 = vmatmul.bf16.gmra.mxu3 %v3793_v8  ;;  %6382 = vpow2.f32 %v3622_v33  ;;  %v11062_v8 = vld [vmem:[#allocation40_spill] sm:$0xff]  ;;  %v3517_v27 = vsub.f32 %v11066_v28, %v9332_v38 }
 0x6e9   : > { %4505 = vmatpush.bf16.xpose.msrb.mxu3 %v4398_v49  ;;  %v9419_v41 = vpop.xlane.xlu2 %3450  ;;  %6384 = vpow2.f32 %v3608_v6  ;;  %v3524_v14 = vsub.f32 %v11062_v8, %v9372_v47 }
 0x6ea   : > { %6386 = vpow2.f32 %v3610_v32  ;;  %v3598_v8 = vmul.f32 1.442695, %v3517_v27 }
 0x6eb   : > { %v3043_v49 = vpop.f32.mrf.mxu3  ;;  %v9427_v4 = vpop.eup %6376  ;;  %v3612_v33 = vmul.f32 1.442695, %v3524_v14  ;;  %v11067_v14 = vld [vmem:[#allocation137_spill] sm:$0xff] }
 0x6ec   : > { %v9425_v3 = vadd.f32 %v3043_v49, %v2905_v60  ;;  %v9432_v43 = vpop.eup %6378  ;;  %v11065_v60 = vld [vmem:[#allocation8_spill] sm:$0xff] }
 0x6ed   : > { %v9438_v40 = vpop.eup %6380  ;;  %v4392_v22 = vsel %vm762_vm2, %v11065_v60, 0  ;;  %v9444_v29 = vadd.f32 %v9432_v43, %v9427_v4  ;;  %6388 = vpow2.f32 %v3612_v33 }
 0x6ee   : > { %11063 = vst [vmem:[#allocation26_spill] sm:$0xff] %v9425_v3  ;;  %v9446_v47 = vpop.eup %6382  ;;  %3486 = vmax.xlane.f32.xlu1 %v3485_v12 }
 0x6ef   : > { %v3734_v9 = vadd.f32 %v9446_v47, %v9438_v40  ;;  %v6385_v6 = vpop.eup %6384  ;;  %v3463_v33 = vpop.xlane.xlu1 %3462 }
 0x6f0   : > { %3896 = vmatmul.bf16.gmra.mxu2 %v3796_v36  ;;  %v9454_v32 = vpop.eup %6386  ;;  %v9458_v36 = vpop.f32.mrf.mxu1 }
 0x6f1   : > { %4506 = vmatpush.bf16.xpose.msrb.mxu3 %v4395_v31  ;;  %v3614_v31 = vmul.f32 1.442695, %v3525_v34  ;;  %3735 = vadd.xlane.f32.xlu0 %v3734_v9  ;;  %v3454_v49 = vpop.xlane.xlu2 %3453  ;;  %v3725_v60 = vadd.f32 %v9454_v32, %v6385_v6 }
 0x6f2   : > { %v3532_v38 = vsub.f32 %v9077_v39, %v3454_v49  ;;  %v3533_v7 = vsub.f32 %v11067_v14, %v3454_v49  ;;  %v11069_v49 = vld [vmem:[#allocation138_spill] sm:$0xff] }
 0x6f3   : > { %6390 = vpow2.f32 %v3614_v31  ;;  %v9467_v27 = vpop.eup %6388 }
 0x6f4   : > { %v3628_v12 = vmul.f32 1.442695, %v3532_v38  ;;  %v3630_v34 = vmul.f32 1.442695, %v3533_v7  ;;  %6392 = vpow2.f32 %v3598_v8  ;;  %v3538_v38 = vsub.f32 %v11069_v49, %v3463_v33  ;;  %v11070_v7 = vld [vmem:[#allocation9_spill] sm:$0xff] }
 0x6f5   : > { %v3798_v8 = vpack.c.bf16 %v6385_v6, %v9395_v17 }
 0x6f6   : > { %3726 = vadd.xlane.f32.xlu1 %v3725_v60  ;;  %6394 = vpow2.f32 %v3628_v12  ;;  %v3539_v60 = vsub.f32 %v11070_v7, %v3463_v33 }
 0x6f7   : > { %6396 = vpow2.f32 %v3630_v34 }
 0x6f8   : > { %3980 = vmatmul.bf16.gmra.mxu3 %v3795_v59  ;;  %v9463_v59 = vpop.f32.mrf.mxu0  ;;  %v3642_v17 = vmul.f32 1.442695, %v3539_v60 }
 0x6f9   : > { %4507 = vmatpush.bf16.xpose.msrb.mxu3 %v4392_v22  ;;  %v11068_v22 = vld [vmem:[#allocation14_spill] sm:$0xff]  ;;  %v3497_v39 = vmax.f32 %v9463_v59, %v9458_v36  ;;  %v9469_v31 = vpop.eup %6390  ;;  %v9471_v9 = vpop.xlane.xlu2 %3459 }
 0x6fa   : > { %v4389_v28 = vsel %vm762_vm2, %v11068_v22, 0  ;;  %v6393_v14 = vpop.eup %6392  ;;  %v3728_v22 = vadd.f32 %v9469_v31, %v9467_v27 }
 0x6fb   : > { %3498 = vmax.xlane.f32.xlu0 %v3497_v39  ;;  %v3797_v34 = vpack.c.bf16 %v9378_v24, %v6393_v14  ;;  %v3640_v39 = vmul.f32 1.442695, %v3538_v38  ;;  %v3716_v3 = vadd.f32 %v6393_v14, %v6375_v11  ;;  %v3494_v38 = vmax.f32 %v9436_v19, %v9421_v48 }
 0x6fc   : > { %v9478_v12 = vpop.eup %6394 }
 0x6fd   : > { %6398 = vpow2.f32 %v3640_v39 }
 0x6fe   : > { %3729 = vadd.xlane.f32.xlu1 %v3728_v22  ;;  %6400 = vpow2.f32 %v3642_v17 }
 0x6ff   : > { %v3469_v6 = vpop.xlane.xlu1 %3468 }
 0x700   : > { %3901 = vmatmul.bf16.gmra.mxu2 %v3798_v8  ;;  %v3542_v33 = vsub.f32 %v9210_v44, %v3469_v6  ;;  %v3543_v7 = vsub.f32 %v9233_v26, %v3469_v6  ;;  %v11071_v44 = vld [vmem:[#allocation23_spill] sm:$0xff] }
 0x701   : > { %4508 = vmatpush.bf16.xpose.msrb.mxu3 %v4389_v28  ;;  %v9480_v28 = vpop.eup %6396  ;;  %v3466_v8 = vpop.xlane.xlu2 %3465 }
 0x702   : > { %v9485_v49 = vadd.f32 %v9480_v28, %v9478_v12  ;;  %v3540_v46 = vsub.f32 %v9184_v52, %v3466_v8  ;;  %v3541_v22 = vsub.f32 %v9218_v54, %v3466_v8  ;;  %v3648_v24 = vmul.f32 1.442695, %v3542_v33 }
 0x703   : > { %3717 = vadd.xlane.f32.xlu0 %v3716_v3  ;;  %v3650_v11 = vmul.f32 1.442695, %v3543_v7  ;;  %v3701_v52 = vadd.f32 %v9334_v58, %v9268_v20  ;;  %v3530_v54 = vsub.f32 %v11071_v44, %v9419_v41  ;;  %v9499_v26 = vpop.eup %6398  ;;  %v11072_v3 = vld [vmem:[#allocation144_spill] sm:$0xff]  ;;  %v3713_v20 = vadd.f32 %v9417_v23, %v9368_v37 }
 0x704   : > { %v3644_v14 = vmul.f32 1.442695, %v3540_v46  ;;  %v3646_v60 = vmul.f32 1.442695, %v3541_v22  ;;  %6402 = vpow2.f32 %v3648_v24  ;;  %v3531_v39 = vsub.f32 %v11072_v3, %v9419_v41  ;;  %v9503_v46 = vpop.eup %6400 }
 0x705   : > { %6404 = vpow2.f32 %v3650_v11  ;;  %v3624_v33 = vmul.f32 1.442695, %v3530_v54  ;;  %v3799_v11 = vpack.c.bf16 %v9454_v32, %v9397_v16  ;;  %v3749_v37 = vadd.f32 %v9503_v46, %v9499_v26 }
 0x706   : > { %3495 = vmax.xlane.f32.xlu1 %v3494_v38  ;;  %6406 = vpow2.f32 %v3644_v14  ;;  %v3626_v7 = vmul.f32 1.442695, %v3531_v39 }
 0x707   : > { %6408 = vpow2.f32 %v3646_v60 }
 0x708   : > { %3985 = vmatmul.bf16.gmra.mxu3 %v3797_v34  ;;  %v9493_v34 = vpop.permute.xlu0 %4266  ;;  %6410 = vpow2.f32 %v3624_v33 }
 0x709   : > { %6412 = vpow2.f32 %v3626_v7 }
 0x70a   : > { %v9505_v17 = vpop.eup %6402 }
 0x70b   : > { %3702 = vadd.xlane.f32.xlu0 %v3701_v52  ;;  %v9507_v6 = vpop.eup %6404 }
 0x70c   : > { %v9511_v58 = vpop.eup %6406 }
 0x70d   : > { %v9513_v22 = vpop.eup %6408  ;;  %v3808_v38 = vpack.c.bf16 %v9505_v17, %v9511_v58 }
 0x70e   : > { %3714 = vadd.xlane.f32.xlu1 %v3713_v20  ;;  %v3809_v23 = vpack.c.bf16 %v9507_v6, %v9513_v22  ;;  %v3752_v32 = vadd.f32 %v9513_v22, %v9511_v58 }
 0x710   : > { %v3445_v8 = vpop.xlane.xlu0 %3444 }
 0x711   : > { %v3526_v24 = vsub.f32 %v9007_v1, %v3445_v8  ;;  %v3527_v41 = vsub.f32 %v9067_v51, %v3445_v8  ;;  %v3710_v1 = vadd.f32 %v9415_v53, %v9370_v10  ;;  %v6411_v51 = vpop.eup %6410  ;;  %v3755_v10 = vadd.f32 %v9507_v6, %v9505_v17 }
 0x712   : > { %v6413_v16 = vpop.eup %6412  ;;  %v3802_v53 = vpack.c.bf16 %v6411_v51, %v9438_v40  ;;  %v3877_v20 = vpop.f32.mrf.mxu2 }
 0x713   : > { %v3616_v14 = vmul.f32 1.442695, %v3526_v24  ;;  %v3618_v60 = vmul.f32 1.442695, %v3527_v41  ;;  %3750 = vadd.xlane.f32.xlu0 %v3749_v37  ;;  %v3737_v39 = vadd.f32 %v6413_v16, %v6411_v51  ;;  %v3803_v7 = vpack.c.bf16 %v6413_v16, %v9446_v47  ;;  %v11074_v24 = vld [vmem:[#allocation60_spill] sm:$0xff]  ;;  %v9546_v41 = vpop.xlane.xlu2 %3474  ;;  %v11078_v37 = vld [vmem:[#allocation49_spill] sm:$0xff] }
 0x715   : > { %6414 = vpow2.f32 %v3616_v14  ;;  %v3537_v14 = vsub.f32 %v11078_v37, %v9471_v9 }
 0x716   : > { %6416 = vpow2.f32 %v3618_v60  ;;  %3711 = vadd.xlane.f32.xlu1 %v3710_v1  ;;  %v3805_v1 = vpack.c.bf16 %v9432_v43, %v9480_v28 }
 0x717   : > { %v3638_v16 = vmul.f32 1.442695, %v3537_v14 }
 0x718   : > { %3990 = vmatmul.bf16.gmra.mxu3 %v3799_v11  ;;  %v11077_v11 = vld [vmem:[#allocation29_spill] sm:$0xff] }
 0x71a   : > { %v9538_v8 = vpop.f32.mrf.mxu2 }
 0x71b   : > { %v6415_v52 = vpop.eup %6414  ;;  %3753 = vadd.xlane.f32.xlu0 %v3752_v32 }
 0x71c   : > { %v6417_v44 = vpop.eup %6416  ;;  %v3800_v54 = vpack.c.bf16 %v6415_v52, %v9467_v27  ;;  %v3704_v27 = vadd.f32 %v9388_v21, %v9336_v50  ;;  %v3804_v50 = vpack.c.bf16 %v9427_v4, %v9478_v12 }
 0x71d   : > { %v3731_v3 = vadd.f32 %v6417_v44, %v6415_v52  ;;  %v3801_v33 = vpack.c.bf16 %v6417_v44, %v9469_v31  ;;  %v11073_v31 = vld [vmem:[#allocation35_spill] sm:$0xff]  ;;  %v11079_v44 = vld [vmem:[#allocation38_spill] sm:$0xff] }
 0x71e   : > { %3906 = vmatmul.bf16.gmra.mxu2 %v3800_v54  ;;  %3738 = vadd.xlane.f32.xlu1 %v3737_v39 }
 0x71f   : > { %3732 = vadd.xlane.f32.xlu2 %v3731_v3  ;;  %v9560_v12 = vpop.permute.xlu0 %4268  ;;  %v9566_v3 = vpop.xlane.xlu1 %3477 }
 0x722   : > { %v3882_v60 = vpop.f32.mrf.mxu2 }
 0x723   : > { %3756 = vadd.xlane.f32.xlu0 %v3755_v10 }
 0x726   : > { %3708 = vadd.xlane.f32.xlu1 %v9353_v25  ;;  %v11075_v25 = vld [vmem:[#allocation65_spill] sm:$0xff] }
 0x727   : > { %v3536_v40 = vsub.f32 %v11075_v25, %v9471_v9  ;;  %v9558_v51 = vpop.xlane.xlu2 %3483 }
 0x728   : > { %3995 = vmatmul.bf16.gmra.mxu3 %v3801_v33  ;;  %v3552_v17 = vsub.f32 %v9292_v56, %v9558_v51  ;;  %v3549_v56 = vsub.f32 %v9282_v42, %v9566_v3 }
 0x729   : > { %v3636_v47 = vmul.f32 1.442695, %v3536_v40 }
 0x72a   : > { %v3884_v9 = vpop.f32.mrf.mxu2  ;;  %v3668_v6 = vmul.f32 1.442695, %v3552_v17 }
 0x72b   : > { %v9550_v21 = vpop.f32.mrf.mxu3  ;;  %6418 = vpow2.f32 %v3636_v47 }
 0x72c   : > { %11076 = vst [vmem:[#allocation85_spill] sm:$0xff] %v9550_v21  ;;  %6420 = vpow2.f32 %v3638_v16 }
 0x72e   : > { %3911 = vmatmul.bf16.gmra.mxu2 %v3802_v53  ;;  %3705 = vadd.xlane.f32.xlu1 %v3704_v27 }
 0x731   : > { %v6419_v52 = vpop.eup %6418 }
 0x732   : > { %v3806_v43 = vpack.c.bf16 %v9499_v26, %v6419_v52  ;;  %v6421_v28 = vpop.eup %6420 }
 0x733   : > { %v3746_v22 = vadd.f32 %v6421_v28, %v6419_v52 }
 0x737   : > { %4270 = vrot.lane.b32.xlu2 %v11073_v31, %s6787_s14  ;;  %5036 = vrot.lane.b32.xlu0 %v11074_v24, %s6787_s14 }
 0x738   : > { %4000 = vmatmul.bf16.gmra.mxu3 %v3803_v7 }
 0x73e   : > { %3916 = vmatmul.bf16.gmra.mxu2 %v3804_v50 }
 0x73f   : > { %5020 = vrot.lane.b32.xlu2 %v11077_v11, %s6787_s14  ;;  %v3493_v54 = vpop.xlane.xlu2 %3492 }
 0x740   : > { %v3558_v39 = vsub.f32 %v9342_v35, %v3493_v54  ;;  %v3559_v10 = vsub.f32 %v9344_v45, %v3493_v54 }
 0x742   : > { %v3680_v27 = vmul.f32 1.442695, %v3558_v39  ;;  %v3682_v7 = vmul.f32 1.442695, %v3559_v10 }
 0x744   : > { %6422 = vpow2.f32 %v3680_v27 }
 0x745   : > { %6424 = vpow2.f32 %v3682_v7 }
 0x747   : > { %4272 = vrot.lane.b32.xlu1 %v11079_v44, %s6787_s14  ;;  %v3547_v44 = vsub.f32 %v9270_v61, %v9546_v41 }
 0x748   : > { %4005 = vmatmul.bf16.gmra.mxu3 %v3805_v1 }
 0x74a   : > { %v3472_v53 = vpop.xlane.xlu0 %3471  ;;  %v9582_v11 = vpop.eup %6422 }
 0x74b   : > { %v3966_v4 = vpop.f32.mrf.mxu3  ;;  %v3544_v24 = vsub.f32 %v9224_v63, %v3472_v53  ;;  %v3545_v26 = vsub.f32 %v9256_v0, %v3472_v53  ;;  %v9587_v14 = vpop.eup %6424  ;;  %v3548_v53 = vsub.f32 %v9265_v15, %v9566_v3 }
 0x74c   : > { %v9562_v32 = vadd.f32 %v3966_v4, %v3877_v20  ;;  %v3807_v20 = vpack.c.bf16 %v9503_v46, %v6421_v28  ;;  %v3546_v46 = vsub.f32 %v9252_v18, %v9546_v41 }
 0x74d   : > { %v3652_v50 = vmul.f32 1.442695, %v3544_v24  ;;  %v3654_v45 = vmul.f32 1.442695, %v3545_v26  ;;  %v3662_v24 = vmul.f32 1.442695, %v3549_v56 }
 0x74e   : > { %3921 = vmatmul.bf16.gmra.mxu2 %v3806_v43  ;;  %v3656_v16 = vmul.f32 1.442695, %v3546_v46 }
 0x74f   : > { %6426 = vpow2.f32 %v3652_v50 }
 0x750   : > { %v9575_v25 = vpop.xlane.xlu1 %3720  ;;  %6428 = vpow2.f32 %v3654_v45 }
 0x751   : > { %6430 = vpow2.f32 %v3656_v16 }
 0x752   : > { %v3481_v47 = vpop.xlane.xlu0 %3480 }
 0x753   : > { %v9570_v33 = vpop.f32.mrf.mxu3  ;;  %v3887_v31 = vpop.f32.mrf.mxu2  ;;  %v3550_v63 = vsub.f32 %v9280_v5, %v3481_v47  ;;  %v3551_v0 = vsub.f32 %v9290_v13, %v3481_v47  ;;  %v3779_v5 = vadd.f32 %v9587_v14, %v9582_v11 }
 0x755   : > { %v3664_v4 = vmul.f32 1.442695, %v3550_v63  ;;  %v3666_v54 = vmul.f32 1.442695, %v3551_v0  ;;  %v6427_v43 = vpop.eup %6426 }
 0x756   : > { %v6429_v13 = vpop.eup %6428 }
 0x757   : > { %6432 = vpow2.f32 %v3664_v4  ;;  %v3758_v41 = vadd.f32 %v6429_v13, %v6427_v43 }
 0x758   : > { %4010 = vmatmul.bf16.gmra.mxu3 %v3807_v20  ;;  %6434 = vpow2.f32 %v3666_v54 }
 0x759   : > { %v9585_v37 = vpop.xlane.xlu1 %3723 }
 0x75a   : > { %v3490_v50 = vpop.xlane.xlu0 %3489 }
 0x75b   : > { %v3971_v35 = vpop.f32.mrf.mxu3 }
 0x75c   : > { %v9578_v40 = vadd.f32 %v3971_v35, %v3882_v60  ;;  %v3889_v60 = vpop.f32.mrf.mxu2 }
 0x75e   : > { %3926 = vmatmul.bf16.gmra.mxu2 %v3808_v38  ;;  %v3658_v38 = vmul.f32 1.442695, %v3547_v44 }
 0x760   : > { %6436 = vpow2.f32 %v3658_v38 }
 0x761   : > { %3780 = vadd.xlane.f32.xlu0 %v3779_v5  ;;  %v3487_v58 = vpop.xlane.xlu1 %3486  ;;  %6438 = vpow2.f32 %v3668_v6 }
 0x762   : > { %v3554_v7 = vsub.f32 %v9303_v57, %v3487_v58  ;;  %v3555_v52 = vsub.f32 %v9310_v55, %v3487_v58  ;;  %v3556_v55 = vsub.f32 %v9322_v2, %v3490_v50 }
 0x763   : > { %v3973_v1 = vpop.f32.mrf.mxu3 }
 0x764   : > { %v9593_v18 = vadd.f32 %v3973_v1, %v3884_v9  ;;  %v3553_v9 = vsub.f32 %v9298_v62, %v9558_v51  ;;  %v3892_v39 = vpop.f32.mrf.mxu2  ;;  %v3660_v51 = vmul.f32 1.442695, %v3548_v53  ;;  %v3672_v35 = vmul.f32 1.442695, %v3554_v7 }
 0x765   : > { %v3674_v57 = vmul.f32 1.442695, %v3555_v52 }
 0x766   : > { %v3670_v20 = vmul.f32 1.442695, %v3553_v9 }
 0x768   : > { %4015 = vmatmul.bf16.gmra.mxu3 %v3809_v23  ;;  %3759 = vadd.xlane.f32.xlu2 %v3758_v41  ;;  %v6431_v23 = vpop.eup %6430  ;;  %6440 = vpow2.f32 %v3670_v20 }
 0x769   : > { %v6433_v27 = vpop.eup %6432  ;;  %3747 = vadd.xlane.f32.xlu0 %v3746_v22  ;;  %v3810_v15 = vpack.c.bf16 %v6431_v23, %v6427_v43  ;;  %6442 = vpow2.f32 %v3660_v51  ;;  %v3676_v43 = vmul.f32 1.442695, %v3556_v55 }
 0x76a   : > { %v9612_v62 = vpop.eup %6434  ;;  %6444 = vpow2.f32 %v3662_v24 }
 0x76b   : > { %v3976_v61 = vpop.f32.mrf.mxu3  ;;  %v3767_v42 = vadd.f32 %v9612_v62, %v6433_v27  ;;  %v6437_v3 = vpop.eup %6436  ;;  %6446 = vpow2.f32 %v3672_v35 }
 0x76c   : > { %v9606_v10 = vadd.f32 %v3976_v61, %v3887_v31  ;;  %v9615_v31 = vpop.xlane.xlu1 %3726  ;;  %v3894_v45 = vpop.f32.mrf.mxu2  ;;  %v3811_v47 = vpack.c.bf16 %v6437_v3, %v6429_v13  ;;  %v3761_v63 = vadd.f32 %v6437_v3, %v6431_v23  ;;  %6448 = vpow2.f32 %v3674_v57 }
 0x76d   : > { %v6439_v46 = vpop.eup %6438  ;;  %6450 = vpow2.f32 %v3676_v43 }
 0x76e   : > { %3931 = vmatmul.bf16.gmra.mxu2 %v3810_v15  ;;  %v9621_v0 = vpop.eup %6440  ;;  %v11082_v15 = vld [vmem:[#allocation43_spill] sm:$0xff] }
 0x76f   : > { %v6443_v16 = vpop.eup %6442  ;;  %v3770_v5 = vadd.f32 %v9621_v0, %v6439_v46 }
 0x770   : > { %3768 = vadd.xlane.f32.xlu2 %v3767_v42  ;;  %v6445_v44 = vpop.eup %6444  ;;  %v3812_v61 = vpack.c.bf16 %v6433_v27, %v6443_v16 }
 0x771   : > { %3762 = vadd.xlane.f32.xlu1 %v3761_v63  ;;  %v6447_v17 = vpop.eup %6446  ;;  %v3764_v58 = vadd.f32 %v6445_v44, %v6443_v16  ;;  %v3813_v20 = vpack.c.bf16 %v9612_v62, %v6445_v44  ;;  %v3736_v63 = vpop.xlane.xlu0 %3735 }
 0x772   : > { %v6449_v2 = vpop.eup %6448  ;;  %v3814_v3 = vpack.c.bf16 %v6447_v17, %v6439_v46  ;;  %v11084_v46 = vld [vmem:[#allocation16_spill] sm:$0xff] }
 0x773   : > { %v3978_v28 = vpop.f32.mrf.mxu3  ;;  %v3773_v6 = vadd.f32 %v6449_v2, %v6447_v17  ;;  %v6451_v27 = vpop.eup %6450 }
 0x774   : > { %v9619_v26 = vadd.f32 %v3978_v28, %v3889_v60  ;;  %v9624_v1 = vpop.xlane.xlu1 %3729  ;;  %v3557_v60 = vsub.f32 %v9326_v30, %v3490_v50  ;;  %v3897_v38 = vpop.f32.mrf.mxu2  ;;  %v11083_v50 = vld [vmem:[#allocation48_spill] sm:$0xff] }
 0x776   : > { %v3678_v13 = vmul.f32 1.442695, %v3557_v60  ;;  %v3815_v60 = vpack.c.bf16 %v6449_v2, %v9621_v0  ;;  %v11086_v0 = vld [vmem:[#allocation25_spill] sm:$0xff] }
 0x778   : > { %4020 = vmatmul.bf16.gmra.mxu3 %v3811_v47  ;;  %3771 = vadd.xlane.f32.xlu2 %v3770_v5  ;;  %6452 = vpow2.f32 %v3678_v13  ;;  %v3816_v5 = vpack.c.bf16 %v9582_v11, %v6451_v27  ;;  %v11085_v13 = vld [vmem:[#allocation44_spill] sm:$0xff] }
 0x779   : > { %3765 = vadd.xlane.f32.xlu1 %v3764_v58 }
 0x77b   : > { %v3981_v4 = vpop.f32.mrf.mxu3 }
 0x77c   : > { %v9628_v54 = vadd.f32 %v3981_v4, %v3892_v39  ;;  %v3496_v9 = vpop.xlane.xlu1 %3495  ;;  %v11080_v39 = vld [vmem:[#allocation53_spill] sm:$0xff]  ;;  %v3499_v4 = vpop.xlane.xlu0 %3498 }
 0x77d   : > { %v3560_v30 = vsub.f32 %v9436_v19, %v3496_v9  ;;  %v3561_v41 = vsub.f32 %v9421_v48, %v3496_v9  ;;  %5032 = vrot.lane.b32.xlu0 %v11080_v39, %s6787_s14  ;;  %v11081_v19 = vld [vmem:[#allocation98_spill] sm:$0xff]  ;;  %v3899_v48 = vpop.f32.mrf.mxu2  ;;  %v3562_v44 = vsub.f32 %v9463_v59, %v3499_v4  ;;  %v3563_v2 = vsub.f32 %v9458_v36, %v3499_v4  ;;  %v11087_v9 = vld [vmem:[#allocation36_spill] sm:$0xff] }
 0x77e   : > { %3936 = vmatmul.bf16.gmra.mxu2 %v3812_v61  ;;  %v6453_v51 = vpop.eup %6452  ;;  %v11088_v61 = vld [vmem:[#allocation57_spill] sm:$0xff]  ;;  %v11089_v36 = vld [vmem:[#allocation22_spill] sm:$0xff] }
 0x77f   : > { %v3684_v22 = vmul.f32 1.442695, %v3560_v30  ;;  %v3686_v23 = vmul.f32 1.442695, %v3561_v41  ;;  %v3776_v24 = vadd.f32 %v6453_v51, %v6451_v27  ;;  %v3817_v58 = vpack.c.bf16 %v9587_v14, %v6453_v51 }
 0x780   : > { %3774 = vadd.xlane.f32.xlu2 %v3773_v6  ;;  %v3690_v11 = vmul.f32 1.442695, %v3563_v2  ;;  %v11090_v6 = vld [vmem:[#allocation32_spill] sm:$0xff] }
 0x781   : > { %6454 = vpow2.f32 %v3684_v22  ;;  %3699 = vadd.xlane.f32.xlu1 %v11081_v19 }
 0x782   : > { %6456 = vpow2.f32 %v3686_v23 }
 0x783   : > { %v3983_v53 = vpop.f32.mrf.mxu3  ;;  %6458 = vrcp.f32 %v9575_v25 }
 0x784   : > { %v9634_v56 = vadd.f32 %v3983_v53, %v3894_v45 }
 0x785   : > { %4274 = vrot.lane.b32.xlu0 %v11082_v15, %s6787_s14  ;;  %v9645_v57 = vpop.f32.mrf.mxu2 }
 0x787   : > { %v6455_v52 = vpop.eup %6454 }
 0x788   : > { %4025 = vmatmul.bf16.gmra.mxu3 %v3813_v20  ;;  %v6457_v42 = vpop.eup %6456  ;;  %3777 = vadd.xlane.f32.xlu2 %v3776_v24 }
 0x789   : > { %v3782_v62 = vadd.f32 %v6457_v42, %v6455_v52  ;;  %v6459_v47 = vpop.eup %6458 }
 0x78b   : > { %v3986_v7 = vpop.f32.mrf.mxu3  ;;  %3783 = vadd.xlane.f32.xlu1 %v3782_v62  ;;  %v3718_v62 = vpop.xlane.xlu0 %3717 }
 0x78c   : > { %v9640_v28 = vadd.f32 %v3986_v7, %v3897_v38  ;;  %v9665_v38 = vpop.xlane.xlu1 %3714  ;;  %v11091_v7 = vld [vmem:[#allocation30_spill] sm:$0xff] }
 0x78d   : > { %5030 = vrot.lane.b32.xlu0 %v11083_v50, %s6787_s14  ;;  %v9655_v16 = vpop.f32.mrf.mxu2 }
 0x78e   : > { %3941 = vmatmul.bf16.gmra.mxu2 %v3814_v3 }
 0x792   : > { %v3733_v15 = vpop.xlane.xlu2 %3732 }
 0x793   : > { %v3988_v35 = vpop.f32.mrf.mxu3  ;;  %3744 = vadd.xlane.f32.xlu1 %v9444_v29  ;;  %v3688_v29 = vmul.f32 1.442695, %v3562_v44 }
 0x794   : > { %v3989_v45 = vadd.f32 %v3988_v35, %v3899_v48  ;;  %v9671_v39 = vpop.xlane.xlu1 %3711 }
 0x795   : > { %5012 = vrot.lane.b32.xlu0 %v11084_v46, %s6787_s14  ;;  %6460 = vpow2.f32 %v3688_v29 }
 0x796   : > { %v9647_v55 = vmul.f32 %v6459_v47, %v3989_v45  ;;  %6462 = vpow2.f32 %v3690_v11  ;;  %v11092_v11 = vld [vmem:[#allocation139_spill] sm:$0xff] }
 0x798   : > { %4030 = vmatmul.bf16.gmra.mxu3 %v3815_v60 }
 0x79b   : > { %v9651_v25 = vpop.f32.mrf.mxu3  ;;  %v6461_v41 = vpop.eup %6460 }
 0x79c   : > { %v3818_v53 = vpack.c.bf16 %v6461_v41, %v6455_v52  ;;  %v6463_v22 = vpop.eup %6462  ;;  %v3739_v51 = vpop.xlane.xlu1 %3738 }
 0x79d   : > { %5028 = vrot.lane.b32.xlu0 %v11085_v13, %s6787_s14  ;;  %v3819_v20 = vpack.c.bf16 %v6463_v22, %v6457_v42  ;;  %6464 = vrcp.f32 %v3739_v51  ;;  %v3703_v13 = vpop.xlane.xlu0 %3702  ;;  %v11095_v51 = vld [vmem:[#allocation82_spill] sm:$0xff] }
 0x79e   : > { %3946 = vmatmul.bf16.gmra.mxu2 %v3816_v5  ;;  %6466 = vrcp.f32 %v3736_v63 }
 0x79f   : > { %6468 = vrcp.f32 %v3733_v15 }
 0x7a0   : > { %5018 = vrot.lane.b32.xlu2 %v11086_v0, %s6787_s14  ;;  %6470 = vrcp.f32 %v9624_v1 }
 0x7a1   : > { %v3907_v17 = vpop.f32.mrf.mxu2  ;;  %6472 = vrcp.f32 %v9615_v31 }
 0x7a2   : > { %6474 = vrcp.f32 %v9585_v37 }
 0x7a3   : > { %v3993_v43 = vpop.f32.mrf.mxu3  ;;  %v6465_v52 = vpop.eup %6464  ;;  %6476 = vrcp.f32 %v3718_v62 }
 0x7a4   : > { %v6467_v42 = vpop.eup %6466  ;;  %v3709_v29 = vpop.xlane.xlu1 %3708  ;;  %6478 = vrcp.f32 %v9665_v38 }
 0x7a5   : > { %5024 = vrot.lane.b32.xlu0 %v11087_v9, %s6787_s14  ;;  %v6469_v46 = vpop.eup %6468 }
 0x7a6   : > { %v6471_v0 = vpop.eup %6470 }
 0x7a7   : > { %v6473_v31 = vpop.eup %6472 }
 0x7a8   : > { %4035 = vmatmul.bf16.gmra.mxu3 %v3817_v58  ;;  %5034 = vrot.lane.b32.xlu2 %v11088_v61, %s6787_s14  ;;  %v3994_v58 = vadd.f32 %v3993_v43, %v9655_v16  ;;  %v6475_v37 = vpop.eup %6474  ;;  %v3751_v16 = vpop.xlane.xlu0 %3750 }
 0x7a9   : > { %v3909_v30 = vpop.f32.mrf.mxu2  ;;  %6480 = vrcp.f32 %v3751_v16 }
 0x7aa   : > { %v4089_v61 = vmul.f32 %v6473_v31, %v3994_v58  ;;  %6482 = vrcp.f32 %v9671_v39  ;;  %v11099_v31 = vld [vmem:[#allocation19_spill] sm:$0xff] }
 0x7ab   : > { %v3996_v59 = vpop.f32.mrf.mxu3  ;;  %6484 = vrcp.f32 %v3709_v29 }
 0x7ac   : > { %5016 = vrot.lane.b32.xlu1 %v11089_v36, %s6787_s14  ;;  %v3997_v4 = vadd.f32 %v3996_v59, %v3907_v17  ;;  %v3785_v17 = vadd.f32 %v6463_v22, %v6461_v41  ;;  %v3992_v59 = vadd.f32 %v9651_v25, %v9645_v57  ;;  %v3706_v36 = vpop.xlane.xlu1 %3705  ;;  %v11093_v41 = vld [vmem:[#allocation20_spill] sm:$0xff]  ;;  %v11094_v57 = vld [vmem:[#allocation17_spill] sm:$0xff] }
 0x7ad   : > { %5022 = vrot.lane.b32.xlu0 %v11090_v6, %s6787_s14  ;;  %v6477_v6 = vpop.eup %6476 }
 0x7ae   : > { %3951 = vmatmul.bf16.gmra.mxu2 %v3818_v53  ;;  %v4090_v2 = vmul.f32 %v6471_v0, %v3997_v4  ;;  %v4088_v43 = vmul.f32 %v6475_v37, %v3992_v59  ;;  %v4086_v22 = vmul.f32 %v6477_v6, %v9640_v28  ;;  %v11096_v4 = vld [vmem:[#allocation141_spill] sm:$0xff] }
 0x7af   : > { %v11097_v0 = vld [vmem:[#allocation13_spill] sm:$0xff] }
 0x7b0   : > { %v3754_v38 = vpop.xlane.xlu0 %3753 }
 0x7b1   : > { %v3912_v23 = vpop.f32.mrf.mxu2  ;;  %6486 = vrcp.f32 %v3754_v38  ;;  %v11103_v38 = vld [vmem:[#allocation45_spill] sm:$0xff] }
 0x7b2   : > { %6488 = vrcp.f32 %v3706_v36 }
 0x7b3   : > { %v3998_v14 = vpop.f32.mrf.mxu3  ;;  %6490 = vrcp.f32 %v3703_v13 }
 0x7b4   : > { %v3999_v45 = vadd.f32 %v3998_v14, %v3909_v30 }
 0x7b6   : > { %v4091_v5 = vmul.f32 %v6469_v46, %v3999_v45 }
 0x7b8   : > { %4040 = vmatmul.bf16.gmra.mxu3 %v3819_v20  ;;  %v6479_v20 = vpop.eup %6478 }
 0x7b9   : > { %v3914_v19 = vpop.f32.mrf.mxu2  ;;  %v4085_v39 = vmul.f32 %v6479_v20, %v9634_v56  ;;  %v11102_v20 = vld [vmem:[#allocation47_spill] sm:$0xff] }
 0x7bb   : > { %v4001_v27 = vpop.f32.mrf.mxu3 }
 0x7bc   : > { %v4002_v3 = vadd.f32 %v4001_v27, %v3912_v23  ;;  %v9710_v23 = vpop.permute.xlu2 %4270 }
 0x7be   : > { %5832 = vmatmul.msk.bf16.vlgmr.msra.gmra.mxu2 %vm762_vm2, %v11091_v7  ;;  %v4092_v47 = vmul.f32 %v6467_v42, %v4002_v3 }
 0x7c1   : > { %v3917_v50 = vpop.f32.mrf.mxu2 }
 0x7c3   : > { %v4003_v48 = vpop.f32.mrf.mxu3 }
 0x7c4   : > { %v4004_v24 = vadd.f32 %v4003_v48, %v3914_v19  ;;  %v9714_v19 = vpop.permute.xlu1 %4272  ;;  %v9725_v3 = vpop.permute.xlu2 %5020 }
 0x7c6   : > { %v4093_v35 = vmul.f32 %v6465_v52, %v4004_v24 }
 0x7c8   : > { %5798 = vmatpush.xpose.msk.msra.mxu0 %vm762_vm2, %v4093_v35  ;;  %5848 = vmatmul.msk.bf16.vlgmr.msrb.gmra.mxu3 %vm762_vm2, %v11091_v7  ;;  %v6481_v7 = vpop.eup %6480 }
 0x7c9   : > { %v3919_v44 = vpop.f32.mrf.mxu2  ;;  %v6483_v15 = vpop.eup %6482 }
 0x7ca   : > { %v4084_v24 = vmul.f32 %v6483_v15, %v9628_v54  ;;  %v6485_v52 = vpop.eup %6484 }
 0x7cb   : > { %v4006_v63 = vpop.f32.mrf.mxu3  ;;  %v4083_v45 = vmul.f32 %v6485_v52, %v9619_v26 }
 0x7cc   : > { %v9683_v60 = vadd.f32 %v4006_v63, %v3917_v50  ;;  %5799 = vmatpush.xpose.msk.msra.mxu0 %vm762_vm2, %v4092_v47  ;;  %v6487_v50 = vpop.eup %6486 }
 0x7cd   : > { %v6489_v47 = vpop.eup %6488 }
 0x7ce   : > { %5833 = vmatmul.msk.bf16.gmra.mxu2 %vm762_vm2, %v11092_v11  ;;  %v4082_v54 = vmul.f32 %v6489_v47, %v9606_v10  ;;  %v6491_v63 = vpop.eup %6490 }
 0x7cf   : > { %v4081_v29 = vmul.f32 %v6491_v63, %v9593_v18  ;;  %v9784_v63 = vpop.xlane.xlu0 %3756 }
 0x7d0   : > { %5800 = vmatpush.xpose.msk.msra.mxu0 %vm762_vm2, %v4091_v5 }
 0x7d1   : > { %3786 = vadd.xlane.f32.xlu2 %v3785_v17  ;;  %v3922_v30 = vpop.f32.mrf.mxu2 }
 0x7d3   : > { %v4008_v1 = vpop.f32.mrf.mxu3 }
 0x7d4   : > { %v9692_v9 = vadd.f32 %v4008_v1, %v3919_v44  ;;  %5801 = vmatpush.xpose.msk.msra.mxu0 %vm762_vm2, %v4090_v2 }
 0x7d6   : > { %3693 = vadd.xlane.f32.xlu1 %v11093_v41 }
 0x7d8   : > { %5802 = vmatpush.xpose.msk.msra.mxu0 %vm762_vm2, %v4089_v61  ;;  %5849 = vmatmul.msk.bf16.gmra.mxu3 %vm762_vm2, %v11092_v11  ;;  %v11098_v11 = vld [vmem:[#allocation41_spill] sm:$0xff] }
 0x7d9   : > { %3696 = vadd.xlane.f32.xlu2 %v11094_v57  ;;  %v3924_v25 = vpop.f32.mrf.mxu2 }
 0x7db   : > { %v4011_v53 = vpop.f32.mrf.mxu3  ;;  %v3760_v5 = vpop.xlane.xlu2 %3759 }
 0x7dc   : > { %v9700_v14 = vadd.f32 %v4011_v53, %v3922_v30  ;;  %5803 = vmatpush.xpose.msk.msra.mxu0 %vm762_vm2, %v4088_v43  ;;  %6492 = vrcp.f32 %v3760_v5  ;;  %v11100_v30 = vld [vmem:[#allocation15_spill] sm:$0xff]  ;;  %v11101_v53 = vld [vmem:[#allocation10_spill] sm:$0xff]  ;;  %v9788_v5 = vpop.permute.xlu0 %5036 }
 0x7de   : > { %5834 = vmatmul.msk.bf16.gmra.mxu2 %vm762_vm2, %v11095_v51 }
 0x7e0   : > { %5804 = vmatpush.xpose.msk.msra.mxu0 %vm762_vm2, %v9647_v55 }
 0x7e1   : > { %3741 = vadd.xlane.f32.xlu2 %v9485_v49  ;;  %v3927_v28 = vpop.f32.mrf.mxu2 }
 0x7e2   : > { %v6493_v1 = vpop.eup %6492 }
 0x7e3   : > { %v4013_v27 = vpop.f32.mrf.mxu3 }
 0x7e4   : > { %v4014_v48 = vadd.f32 %v4013_v27, %v3924_v25  ;;  %5805 = vmatpush.xpose.msk.msra.mxu0 %vm762_vm2, %v4086_v22  ;;  %v3763_v49 = vpop.xlane.xlu1 %3762  ;;  %v3769_v25 = vpop.xlane.xlu2 %3768 }
 0x7e6   : > { %v9717_v55 = vmul.f32 %v6481_v7, %v4014_v48 }
 0x7e8   : > { %5806 = vmatpush.xpose.msk.msra.mxu0 %vm762_vm2, %v4085_v39  ;;  %5850 = vmatmul.msk.bf16.gmra.mxu3 %vm762_vm2, %v11095_v51 }
 0x7e9   : > { %v3929_v42 = vpop.f32.mrf.mxu2 }
 0x7eb   : > { %v4016_v62 = vpop.f32.mrf.mxu3 }
 0x7ec   : > { %v4017_v35 = vadd.f32 %v4016_v62, %v3927_v28  ;;  %5807 = vmatpush.xpose.msk.msra.mxu0 %vm762_vm2, %v4084_v24  ;;  %v3766_v13 = vpop.xlane.xlu1 %3765  ;;  %v11104_v28 = vld [vmem:[#allocation7_spill] sm:$0xff]  ;;  %v9772_v24 = vpop.xlane.xlu2 %3771 }
 0x7ee   : > { %v9728_v56 = vmul.f32 %v6487_v50, %v4017_v35  ;;  %5835 = vmatmul.msk.bf16.gmra.mxu2 %vm762_vm2, %v11096_v4 }
 0x7ef   : > { %5010 = vrot.lane.b32.xlu1 %v11097_v0, %s6787_s14 }
 0x7f0   : > { %5808 = vmatpush.xpose.msk.msra.mxu0 %vm762_vm2, %v4083_v45 }
 0x7f1   : > { %v3932_v26 = vpop.f32.mrf.mxu2 }
 0x7f3   : > { %v4018_v46 = vpop.f32.mrf.mxu3 }
 0x7f4   : > { %v9735_v44 = vadd.f32 %v4018_v46, %v3929_v42  ;;  %5809 = vmatpush.xpose.msk.msra.mxu0 %vm762_vm2, %v4082_v54  ;;  %v3700_v2 = vpop.xlane.xlu1 %3699  ;;  %v11105_v42 = vld [vmem:[#allocation86_spill] sm:$0xff] }
 0x7f5   : > { %6494 = vrcp.f32 %v3700_v2 }
 0x7f6   : > { %6496 = vrcp.f32 %v3763_v49  ;;  %v3775_v49 = vpop.xlane.xlu2 %3774 }
 0x7f7   : > { %5026 = vrot.lane.b32.xlu1 %v11098_v11, %s6787_s14  ;;  %6498 = vrcp.f32 %v3766_v13 }
 0x7f8   : > { %5810 = vmatpush.xpose.msk.msra.mxu0 %vm762_vm2, %v4081_v29  ;;  %5851 = vmatmul.msk.bf16.gmra.mxu3 %vm762_vm2, %v11096_v4  ;;  %6500 = vrcp.f32 %v3769_v25 }
 0x7f9   : > { %5014 = vrot.lane.b32.xlu2 %v11099_v31, %s6787_s14  ;;  %v3934_v18 = vpop.f32.mrf.mxu2 }
 0x7fb   : > { %v4021_v10 = vpop.f32.mrf.mxu3  ;;  %v6495_v59 = vpop.eup %6494 }
 0x7fc   : > { %v4022_v58 = vadd.f32 %v4021_v10, %v3932_v26  ;;  %v4080_v16 = vmul.f32 %v6495_v59, %v9578_v40  ;;  %v6497_v43 = vpop.eup %6496  ;;  %v3781_v10 = vpop.xlane.xlu0 %3780 }
 0x7fd   : > { %v6499_v22 = vpop.eup %6498 }
 0x7fe   : > { %v9746_v17 = vmul.f32 %v6493_v1, %v4022_v58  ;;  %5836 = vmatmul.msk.bf16.gmra.mxu2 %vm762_vm2, %v11100_v30  ;;  %5811 = vmatpush.xpose.msk.msra.mxu0 %vm762_vm2, %v4080_v16  ;;  %v6501_v7 = vpop.eup %6500  ;;  %v3778_v54 = vpop.xlane.xlu2 %3777 }
 0x7ff   : > { %5008 = vrot.lane.b32.xlu1 %v11101_v53, %s6787_s14  ;;  %v3784_v0 = vpop.xlane.xlu1 %3783 }
 0x801   : > { %v3937_v41 = vpop.f32.mrf.mxu2 }
 0x803   : > { %v4023_v61 = vpop.f32.mrf.mxu3 }
 0x804   : > { %v4024_v37 = vadd.f32 %v4023_v61, %v3934_v18  ;;  %v9802_v18 = vpop.xlane.xlu0 %3747 }
 0x806   : > { %v9755_v36 = vmul.f32 %v6497_v43, %v4024_v37  ;;  %v9790_v26 = vpop.permute.xlu2 %5018 }
 0x807   : > { %4276 = vrot.lane.b32.xlu1 %v11102_v20, %s6787_s14  ;;  %v9794_v2 = vpop.xlane.xlu1 %3744 }
 0x808   : > { %5852 = vmatmul.msk.bf16.gmra.mxu3 %vm762_vm2, %v11100_v30 }
 0x809   : > { %v3939_v27 = vpop.f32.mrf.mxu2 }
 0x80b   : > { %v4026_v57 = vpop.f32.mrf.mxu3 }
 0x80c   : > { %v4027_v6 = vadd.f32 %v4026_v57, %v3937_v41  ;;  %v9814_v53 = vpop.permute.xlu0 %5032 }
 0x80e   : > { %v9762_v40 = vmul.f32 %v6499_v22, %v4027_v6  ;;  %5837 = vmatmul.msk.bf16.gmra.mxu2 %vm762_vm2, %v11103_v38  ;;  %v9796_v1 = vpop.permute.xlu2 %5034 }
 0x80f   : > { %5006 = vrot.lane.b32.xlu1 %v11104_v28, %s6787_s14 }
 0x811   : > { %v3942_v15 = vpop.f32.mrf.mxu2 }
 0x813   : > { %v4028_v51 = vpop.f32.mrf.mxu3 }
 0x814   : > { %v4029_v48 = vadd.f32 %v4028_v51, %v3939_v27 }
 0x816   : > { %v9768_v39 = vmul.f32 %v6501_v7, %v4029_v48  ;;  %v3969_v7 = vadd.f32 %v9570_v33, %v9538_v8 }
 0x818   : > { %5853 = vmatmul.msk.bf16.gmra.mxu3 %vm762_vm2, %v11103_v38 }
 0x819   : > { %v9776_v35 = vpop.f32.mrf.mxu2 }
 0x81b   : > { %v4031_v52 = vpop.f32.mrf.mxu3 }
 0x81c   : > { %v9774_v62 = vadd.f32 %v4031_v52, %v3942_v15 }
 0x81e   : > { %5838 = vmatmul.msk.bf16.gmra.mxu2 %vm762_vm2, %v11105_v42  ;;  %v9806_v59 = vpop.permute.xlu1 %5016 }
 0x821   : > { %v3947_v45 = vpop.f32.mrf.mxu2 }
 0x823   : > { %v9778_v50 = vpop.f32.mrf.mxu3 }
 0x824   : > { %v4034_v8 = vadd.f32 %v9778_v50, %v9776_v35 }
 0x828   : > { %5854 = vmatmul.msk.bf16.gmra.mxu3 %vm762_vm2, %v11105_v42 }
 0x829   : > { %v3949_v46 = vpop.f32.mrf.mxu2 }
 0x82b   : > { %v4036_v47 = vpop.f32.mrf.mxu3 }
 0x82c   : > { %v4037_v15 = vadd.f32 %v4036_v47, %v3947_v45 }
 0x82e   : > { %5839 = vmatmul.msk.bf16.gmra.mxu2 %vm762_vm2, %v9493_v34 }
 0x831   : > { %v3952_v13 = vpop.f32.mrf.mxu2 }
 0x833   : > { %v4038_v4 = vpop.f32.mrf.mxu3 }
 0x834   : > { %v4039_v27 = vadd.f32 %v4038_v4, %v3949_v46  ;;  %v4275_v46 = vpop.permute.xlu0 %4274 }
 0x838   : > { %5855 = vmatmul.msk.bf16.gmra.mxu3 %vm762_vm2, %v9493_v34 }
 0x839   : > { %v3954_v58 = vpop.f32.mrf.mxu2 }
 0x83b   : > { %v4041_v29 = vpop.f32.mrf.mxu3 }
 0x83c   : > { %v4042_v41 = vadd.f32 %v4041_v29, %v3952_v13  ;;  %v9851_v35 = vpop.permute.xlu0 %5030 }
 0x83e   : > { %5840 = vmatmul.msk.bf16.gmra.mxu2 %vm762_vm2, %v9560_v12 }
 0x841   : > { %v9800_v31 = vpop.f32.mrf.mxu2 }
 0x843   : > { %v4043_v11 = vpop.f32.mrf.mxu3 }
 0x844   : > { %v3787_v34 = vpop.xlane.xlu2 %3786  ;;  %v4044_v16 = vadd.f32 %v4043_v11, %v3954_v58 }
 0x845   : > { %6502 = vrcp.f32 %v3787_v34 }
 0x846   : > { %6504 = vrcp.f32 %v3784_v0 }
 0x847   : > { %6506 = vrcp.f32 %v3781_v10 }
 0x848   : > { %5856 = vmatmul.msk.bf16.gmra.mxu3 %vm762_vm2, %v9560_v12 }
 0x849   : > { %v9812_v37 = vpop.f32.mrf.mxu2  ;;  %v3694_v57 = vpop.xlane.xlu1 %3693 }
 0x84b   : > { %v9808_v61 = vpop.f32.mrf.mxu3  ;;  %v6503_v43 = vpop.eup %6502 }
 0x84c   : > { %v4590_v30 = vmax.f32 %v9800_v31, %v9808_v61  ;;  %v4109_v12 = vmul.f32 %v6503_v43, %v4044_v16  ;;  %v3697_v25 = vpop.xlane.xlu2 %3696  ;;  %v6505_v22 = vpop.eup %6504 }
 0x84d   : > { %6508 = vrcp.f32 %v3697_v25  ;;  %v4108_v51 = vmul.f32 %v6505_v22, %v4042_v41  ;;  %v6507_v48 = vpop.eup %6506  ;;  %v11107_v41 = vld [vmem:[#allocation55_spill] sm:$0xff] }
 0x84e   : > { %4591 = vmax.xlane.f32.xlu2 %v4590_v30  ;;  %5815 = vmatpush.xpose.msk.msra.mxu1 %vm762_vm2, %v4109_v12  ;;  %6510 = vrcp.f32 %v3694_v57  ;;  %v4107_v52 = vmul.f32 %v6507_v48, %v4039_v27  ;;  %v5013_v30 = vpop.permute.xlu0 %5012 }
 0x84f   : > { %5841 = vmatmul.msk.bf16.gmra.mxu2 %vm762_vm2, %v9710_v23  ;;  %6512 = vrcp.f32 %v3778_v54 }
 0x850   : > { %6514 = vrcp.f32 %v3775_v49 }
 0x851   : > { %v9823_v38 = vpop.f32.mrf.mxu2  ;;  %6516 = vrcp.f32 %v9772_v24 }
 0x852   : > { %5816 = vmatpush.xpose.msk.msra.mxu1 %vm762_vm2, %v4108_v51  ;;  %6518 = vrcp.f32 %v9784_v63 }
 0x853   : > { %v9817_v6 = vpop.f32.mrf.mxu3  ;;  %v6509_v28 = vpop.eup %6508  ;;  %6520 = vrcp.f32 %v9802_v18 }
 0x854   : > { %v4593_v20 = vmax.f32 %v9812_v37, %v9817_v6  ;;  %v4079_v42 = vmul.f32 %v6509_v28, %v3969_v7  ;;  %v6511_v13 = vpop.eup %6510  ;;  %v3742_v47 = vpop.xlane.xlu2 %3741  ;;  %6522 = vrcp.f32 %v9794_v2 }
 0x855   : > { %v6513_v4 = vpop.eup %6512  ;;  %v4078_v0 = vmul.f32 %v6511_v13, %v9562_v32  ;;  %6524 = vrcp.f32 %v3742_v47 }
 0x856   : > { %4594 = vmax.xlane.f32.xlu0 %v4593_v20  ;;  %5812 = vmatpush.xpose.msk.msra.mxu0 %vm762_vm2, %v4079_v42  ;;  %v4106_v33 = vmul.f32 %v6513_v4, %v4037_v15  ;;  %v6515_v49 = vpop.eup %6514 }
 0x857   : > { %5817 = vmatpush.xpose.msk.msra.mxu1 %vm762_vm2, %v4107_v52  ;;  %v4105_v45 = vmul.f32 %v6515_v49, %v4034_v8  ;;  %v6517_v32 = vpop.eup %6516 }
 0x858   : > { %5857 = vmatmul.msk.bf16.gmra.mxu3 %vm762_vm2, %v9710_v23  ;;  %v4104_v50 = vmul.f32 %v6517_v32, %v9774_v62  ;;  %v6519_v43 = vpop.eup %6518 }
 0x859   : > { %v9838_v23 = vpop.f32.mrf.mxu2  ;;  %v6521_v12 = vpop.eup %6520 }
 0x85a   : > { %5813 = vmatpush.xpose.msk.msra.mxu0 %vm762_vm2, %v4078_v0  ;;  %v4096_v18 = vmul.f32 %v6521_v12, %v9700_v14  ;;  %v6523_v57 = vpop.eup %6522 }
 0x85b   : > { %v9832_v54 = vpop.f32.mrf.mxu3  ;;  %5818 = vmatpush.xpose.msk.msra.mxu1 %vm762_vm2, %v4106_v33  ;;  %v4095_v2 = vmul.f32 %v6523_v57, %v9692_v9  ;;  %v6525_v22 = vpop.eup %6524 }
 0x85c   : > { %v5015_v62 = vpop.permute.xlu2 %5014  ;;  %v4596_v20 = vmax.f32 %v9823_v38, %v9832_v54  ;;  %v4094_v14 = vmul.f32 %v6525_v22, %v9683_v60  ;;  %v5029_v60 = vpop.permute.xlu0 %5028 }
 0x85e   : > { %5054 = vmatpush.bf16.msrb.mxu0 %v9725_v3  ;;  %v6719_v3 = vld [vmem:[%s10505_s2] sm:$0xf] }
 0x85f   : > { %5819 = vmatpush.xpose.msk.msra.mxu1 %vm762_vm2, %v4105_v45  ;;  %5842 = vmatmul.msk.bf16.gmra.mxu2 %vm762_vm2, %v9714_v19 }
 0x861   : > { %v9858_v10 = vpop.f32.mrf.mxu2  ;;  %v5011_v58 = vpop.permute.xlu1 %5010 }
 0x862   : > { %5055 = vmatpush.bf16.msrb.mxu0 %v9790_v26  ;;  %v11106_v26 = vld [vmem:[#allocation51_spill] sm:$0xff] }
 0x863   : > { %v9844_v29 = vpop.f32.mrf.mxu3  ;;  %5820 = vmatpush.xpose.msk.msra.mxu1 %vm762_vm2, %v4104_v50 }
 0x864   : > { %v4599_v24 = vmax.f32 %v9838_v23, %v9844_v29 }
 0x866   : > { %4110 = vrot.lane.b32.xlu2 %v6719_v3, %s6785_s10  ;;  %4600 = vmax.xlane.f32.xlu1 %v4599_v24 }
 0x867   : > { %5056 = vmatpush.bf16.msrb.mxu0 %v9806_v59  ;;  %5821 = vmatpush.xpose.msk.msra.mxu1 %vm762_vm2, %v9768_v39 }
 0x868   : > { %5858 = vmatmul.msk.bf16.gmra.mxu3 %vm762_vm2, %v9714_v19 }
 0x869   : > { %v9870_v34 = vpop.f32.mrf.mxu2  ;;  %v5027_v16 = vpop.permute.xlu1 %5026 }
 0x86a   : > { %4278 = vrot.lane.b32.xlu0 %v11106_v26, %s6787_s14 }
 0x86b   : > { %v9868_v11 = vpop.f32.mrf.mxu3  ;;  %5057 = vmatpush.bf16.msrb.mxu0 %v5015_v62  ;;  %5822 = vmatpush.xpose.msk.msra.mxu1 %vm762_vm2, %v9762_v40  ;;  %v4099_v40 = vmul.f32 %v6519_v43, %v9735_v44 }
 0x86c   : > { %v4602_v9 = vmax.f32 %v9858_v10, %v9868_v11 }
 0x86f   : > { %5058 = vmatpush.bf16.msrb.mxu0 %v5013_v30  ;;  %5823 = vmatpush.xpose.msk.msra.mxu1 %vm762_vm2, %v9755_v36 }
 0x870   : > { %5843 = vmatmul.msk.bf16.gmra.mxu2 %vm762_vm2, %v4275_v46 }
 0x871   : > { %v9880_v39 = vpop.f32.mrf.mxu2  ;;  %v5009_v59 = vpop.permute.xlu1 %5008 }
 0x873   : > { %v9877_v19 = vpop.f32.mrf.mxu3  ;;  %5059 = vmatpush.bf16.msrb.mxu0 %v5011_v58  ;;  %5824 = vmatpush.xpose.msk.msra.mxu1 %vm762_vm2, %v9746_v17 }
 0x874   : > { %v4605_v48 = vmax.f32 %v9870_v34, %v9877_v19 }
 0x877   : > { %5060 = vmatpush.bf16.msrb.mxu0 %v5009_v59  ;;  %5825 = vmatpush.xpose.msk.msra.mxu1 %vm762_vm2, %v4099_v40 }
 0x878   : > { %5859 = vmatmul.msk.bf16.gmra.mxu3 %vm762_vm2, %v4275_v46  ;;  %v11108_v46 = vld [vmem:[#allocation59_spill] sm:$0xff] }
 0x879   : > { %v9890_v63 = vpop.f32.mrf.mxu2  ;;  %v4277_v17 = vpop.permute.xlu1 %4276 }
 0x87b   : > { %v9887_v36 = vpop.f32.mrf.mxu3  ;;  %5826 = vmatpush.xpose.msk.msra.mxu1 %vm762_vm2, %v9728_v56 }
 0x87f   : > { %4280 = vrot.lane.b32.xlu1 %v11107_v41, %s6787_s14  ;;  %5827 = vmatpush.xpose.msk.msra.mxu1 %vm762_vm2, %v9717_v55 }
 0x880   : > { %5844 = vmatmul.msk.bf16.gmra.mxu2 %vm762_vm2, %v4277_v17 }
 0x881   : > { %v9903_v25 = vpop.f32.mrf.mxu2  ;;  %v5007_v56 = vpop.permute.xlu1 %5006 }
 0x882   : > { %5061 = vmatpush.bf16.msrb.mxu0 %v5007_v56 }
 0x883   : > { %v9899_v44 = vpop.f32.mrf.mxu3  ;;  %5828 = vmatpush.xpose.msk.msra.mxu1 %vm762_vm2, %v4096_v18 }
 0x884   : > { %v4611_v42 = vmax.f32 %v9890_v63, %v9899_v44 }
 0x887   : > { %5829 = vmatpush.xpose.msk.msra.mxu1 %vm762_vm2, %v4095_v2 }
 0x888   : > { %5860 = vmatmul.msk.bf16.gmra.mxu3 %vm762_vm2, %v4277_v17 }
 0x889   : > { %v9914_v27 = vpop.f32.mrf.mxu2 }
 0x88b   : > { %v9909_v55 = vpop.f32.mrf.mxu3  ;;  %5830 = vmatpush.xpose.msk.msra.mxu1 %vm762_vm2, %v4094_v14 }
 0x88c   : > { %v4614_v33 = vmax.f32 %v9903_v25, %v9909_v55 }
 0x88f   : > { %4597 = vmax.xlane.f32.xlu2 %v4596_v20  ;;  %5143 = vmatpush.bf16.msrb.mxu1 %v9788_v5  ;;  %v4608_v5 = vmax.f32 %v9880_v39, %v9887_v36 }
 0x891   : > { %v9925_v7 = vpop.f32.mrf.mxu2 }
 0x893   : > { %v9920_v51 = vpop.f32.mrf.mxu3  ;;  %5144 = vmatpush.bf16.msrb.mxu1 %v9796_v1  ;;  %v5025_v1 = vpop.permute.xlu0 %5024 }
 0x894   : > { %4603 = vmax.xlane.f32.xlu0 %v4602_v9 }
 0x897   : > { %4606 = vmax.xlane.f32.xlu2 %v4605_v48  ;;  %5145 = vmatpush.bf16.msrb.mxu1 %v9814_v53  ;;  %v4617_v53 = vmax.f32 %v9914_v27, %v9920_v51 }
 0x899   : > { %v9933_v15 = vpop.f32.mrf.mxu2 }
 0x89b   : > { %v9928_v28 = vpop.f32.mrf.mxu3  ;;  %5146 = vmatpush.bf16.msrb.mxu1 %v9851_v35  ;;  %v5023_v4 = vpop.permute.xlu0 %5022 }
 0x89c   : > { %v4620_v45 = vmax.f32 %v9925_v7, %v9928_v28 }
 0x89f   : > { %4609 = vmax.xlane.f32.xlu2 %v4608_v5  ;;  %5147 = vmatpush.bf16.msrb.mxu1 %v5029_v60 }
 0x8a1   : > { %v9939_v13 = vpop.f32.mrf.mxu2 }
 0x8a3   : > { %v9935_v52 = vpop.f32.mrf.mxu3  ;;  %5148 = vmatpush.bf16.msrb.mxu1 %v5027_v16 }
 0x8a4   : > { %v4623_v22 = vmax.f32 %v9933_v15, %v9935_v52 }
 0x8a7   : > { %4612 = vmax.xlane.f32.xlu2 %v4611_v42  ;;  %5149 = vmatpush.bf16.msrb.mxu1 %v5025_v1 }
 0x8a8   : > { %4282 = vrot.lane.b32.xlu0 %v11108_v46, %s6787_s14 }
 0x8a9   : > { %4618 = vmax.xlane.f32.xlu1 %v4617_v53  ;;  %v9949_v0 = vpop.f32.mrf.mxu2 }
 0x8ab   : > { %v9945_v8 = vpop.f32.mrf.mxu3  ;;  %5150 = vmatpush.bf16.msrb.mxu1 %v5023_v4 }
 0x8ac   : > { %v4626_v24 = vmax.f32 %v9939_v13, %v9945_v8 }
 0x8af   : > { %4615 = vmax.xlane.f32.xlu2 %v4614_v33 }
 0x8b1   : > { %v9955_v47 = vpop.f32.mrf.mxu2 }
 0x8b3   : > { %v9951_v49 = vpop.f32.mrf.mxu3 }
 0x8b4   : > { %v4629_v16 = vmax.f32 %v9949_v0, %v9951_v49 }
 0x8b7   : > { %4621 = vmax.xlane.f32.xlu2 %v4620_v45 }
 0x8b9   : > { %v9961_v35 = vpop.f32.mrf.mxu2 }
 0x8bb   : > { %v9957_v32 = vpop.f32.mrf.mxu3 }
 0x8bc   : > { %v4632_v2 = vmax.f32 %v9955_v47, %v9957_v32 }
 0x8bf   : > { %4627 = vmax.xlane.f32.xlu2 %v4626_v24 }
 0x8c1   : > { %v4592_v50 = vpop.xlane.xlu2 %4591  ;;  %v9969_v59 = vpop.f32.mrf.mxu2 }
 0x8c2   : > { %v4686_v3 = vsub.f32 %v9800_v31, %v4592_v50  ;;  %v4687_v58 = vsub.f32 %v9808_v61, %v4592_v50 }
 0x8c3   : > { %v9965_v26 = vpop.f32.mrf.mxu3 }
 0x8c4   : > { %v4750_v62 = vmul.f32 1.442695, %v4686_v3  ;;  %v4752_v30 = vmul.f32 1.442695, %v4687_v58  ;;  %v4635_v48 = vmax.f32 %v9961_v35, %v9965_v26 }
 0x8c6   : > { %6526 = vpow2.f32 %v4750_v62 }
 0x8c7   : > { %6528 = vpow2.f32 %v4752_v30  ;;  %4630 = vmax.xlane.f32.xlu2 %v4629_v16 }
 0x8c9   : > { %v4111_v43 = vpop.permute.xlu2 %4110  ;;  %v4595_v40 = vpop.xlane.xlu0 %4594 }
 0x8ca   : > { %v4688_v41 = vsub.f32 %v9812_v37, %v4595_v40  ;;  %v4689_v31 = vsub.f32 %v9817_v6, %v4595_v40  ;;  %5814 = vmatmul.msk.f32.vlgmr.msra.gmra.mxu0 %vm762_vm2, %v4111_v43  ;;  %5831 = vmatmul.msk.f32.vlgmr.msra.gmra.mxu1 %vm762_vm2, %v4111_v43  ;;  %v9981_v37 = vpop.f32.mrf.mxu2 }
 0x8cb   : > { %v9975_v61 = vpop.f32.mrf.mxu3 }
 0x8cc   : > { %v6527_v17 = vpop.eup %6526  ;;  %v4754_v12 = vmul.f32 1.442695, %v4688_v41  ;;  %v4756_v18 = vmul.f32 1.442695, %v4689_v31  ;;  %v4638_v57 = vmax.f32 %v9969_v59, %v9975_v61 }
 0x8cd   : > { %v6529_v56 = vpop.eup %6528 }
 0x8ce   : > { %6530 = vpow2.f32 %v4754_v12  ;;  %4639 = vmax.xlane.f32.xlu1 %v4638_v57  ;;  %v9983_v6 = vadd.f32 %v6529_v56, %v6527_v17 }
 0x8cf   : > { %6532 = vpow2.f32 %v4756_v18  ;;  %4633 = vmax.xlane.f32.xlu2 %v4632_v2 }
 0x8d2   : > { %4624 = vmax.xlane.f32.xlu0 %v4623_v22  ;;  %v9991_v1 = vpop.f32.mrf.mxu2 }
 0x8d3   : > { %v9987_v20 = vpop.f32.mrf.mxu3 }
 0x8d4   : > { %v6531_v14 = vpop.eup %6530  ;;  %v4641_v58 = vmax.f32 %v9981_v37, %v9987_v20 }
 0x8d5   : > { %v6533_v9 = vpop.eup %6532  ;;  %v4974_v60 = vpack.c.bf16 %v6531_v14, %v6527_v17 }
 0x8d6   : > { %v4975_v5 = vpack.c.bf16 %v6533_v9, %v6529_v56  ;;  %v9993_v42 = vadd.f32 %v6533_v9, %v6531_v14 }
 0x8d7   : > { %4636 = vmax.xlane.f32.xlu2 %v4635_v48  ;;  %5062 = vmatmul.bf16.vlgmr.msrb.gmra.mxu0 %v4974_v60 }
 0x8d8   : > { %5151 = vmatmul.bf16.vlgmr.msrb.gmra.mxu1 %v4975_v5 }
 0x8d9   : > { %v4601_v53 = vpop.xlane.xlu1 %4600 }
 0x8da   : > { %v4692_v46 = vsub.f32 %v9838_v23, %v4601_v53  ;;  %v4693_v4 = vsub.f32 %v9844_v29, %v4601_v53  ;;  %v10005_v23 = vpop.f32.mrf.mxu2 }
 0x8db   : > { %v9997_v33 = vpop.f32.mrf.mxu3 }
 0x8dc   : > { %v4762_v45 = vmul.f32 1.442695, %v4692_v46  ;;  %v4764_v24 = vmul.f32 1.442695, %v4693_v4  ;;  %v4644_v50 = vmax.f32 %v9991_v1, %v9997_v33  ;;  %v4279_v3 = vpop.permute.xlu0 %4278 }
 0x8dd   : > { %5845 = vmatmul.msk.bf16.gmra.mxu2 %vm762_vm2, %v4279_v3  ;;  %5861 = vmatmul.msk.bf16.gmra.mxu3 %vm762_vm2, %v4279_v3 }
 0x8de   : > { %6534 = vpow2.f32 %v4762_v45  ;;  %4645 = vmax.xlane.f32.xlu1 %v4644_v50 }
 0x8df   : > { %6536 = vpow2.f32 %v4764_v24  ;;  %4642 = vmax.xlane.f32.xlu2 %v4641_v58 }
 0x8e2   : > { %v10011_v43 = vpop.f32.mrf.mxu2 }
 0x8e3   : > { %v10007_v29 = vpop.f32.mrf.mxu3 }
 0x8e4   : > { %v6535_v62 = vpop.eup %6534  ;;  %v4647_v30 = vmax.f32 %v10005_v23, %v10007_v29 }
 0x8e5   : > { %v6537_v16 = vpop.eup %6536 }
 0x8e6   : > { %4648 = vmax.xlane.f32.xlu0 %v4647_v30  ;;  %v10013_v40 = vadd.f32 %v6537_v16, %v6535_v62 }
 0x8ea   : > { %v10019_v17 = vpop.f32.mrf.mxu2 }
 0x8eb   : > { %v10015_v41 = vpop.f32.mrf.mxu3 }
 0x8ec   : > { %v4650_v31 = vmax.f32 %v10011_v43, %v10015_v41 }
 0x8ee   : > { %4651 = vmax.xlane.f32.xlu2 %v4650_v31 }
 0x8f1   : > { %v4281_v12 = vpop.permute.xlu1 %4280 }
 0x8f2   : > { %5846 = vmatmul.msk.bf16.gmra.mxu2 %vm762_vm2, %v4281_v12  ;;  %5862 = vmatmul.msk.bf16.gmra.mxu3 %vm762_vm2, %v4281_v12 }
 0x8f3   : > { %v10023_v18 = vpop.f32.mrf.mxu3  ;;  %v10027_v56 = vpop.f32.mrf.mxu2 }
 0x8f4   : > { %v4653_v57 = vmax.f32 %v10019_v17, %v10023_v18 }
 0x8f6   : > { %4654 = vmax.xlane.f32.xlu1 %v4653_v57 }
 0x8fb   : > { %v10029_v2 = vpop.f32.mrf.mxu3  ;;  %v10033_v14 = vpop.f32.mrf.mxu2 }
 0x8fc   : > { %v4656_v22 = vmax.f32 %v10027_v56, %v10029_v2 }
 0x8fe   : > { %4657 = vmax.xlane.f32.xlu0 %v4656_v22 }
 0x902   : > { %v4598_v9 = vpop.xlane.xlu2 %4597 }
 0x903   : > { %v4690_v48 = vsub.f32 %v9823_v38, %v4598_v9  ;;  %v4691_v60 = vsub.f32 %v9832_v54, %v4598_v9  ;;  %v10037_v5 = vpop.f32.mrf.mxu3  ;;  %v10043_v3 = vpop.f32.mrf.mxu2 }
 0x904   : > { %v4659_v53 = vmax.f32 %v10033_v14, %v10037_v5 }
 0x905   : > { %v4758_v46 = vmul.f32 1.442695, %v4690_v48  ;;  %v4760_v4 = vmul.f32 1.442695, %v4691_v60 }
 0x906   : > { %4660 = vmax.xlane.f32.xlu2 %v4659_v53 }
 0x907   : > { %6538 = vpow2.f32 %v4758_v46  ;;  %v4604_v45 = vpop.xlane.xlu0 %4603 }
 0x908   : > { %6540 = vpow2.f32 %v4760_v4  ;;  %v4694_v24 = vsub.f32 %v9858_v10, %v4604_v45  ;;  %v4695_v50 = vsub.f32 %v9868_v11, %v4604_v45 }
 0x90a   : > { %v4766_v38 = vmul.f32 1.442695, %v4694_v24  ;;  %v4768_v58 = vmul.f32 1.442695, %v4695_v50  ;;  %v4607_v54 = vpop.xlane.xlu2 %4606 }
 0x90b   : > { %v4696_v30 = vsub.f32 %v9870_v34, %v4607_v54  ;;  %v4697_v31 = vsub.f32 %v9877_v19, %v4607_v54  ;;  %v10047_v12 = vpop.f32.mrf.mxu3  ;;  %v10053_v4 = vpop.f32.mrf.mxu2 }
 0x90c   : > { %6542 = vpow2.f32 %v4766_v38  ;;  %v4662_v57 = vmax.f32 %v10043_v3, %v10047_v12 }
 0x90d   : > { %v6539_v22 = vpop.eup %6538  ;;  %6544 = vpow2.f32 %v4768_v58  ;;  %v4770_v10 = vmul.f32 1.442695, %v4696_v30  ;;  %v4772_v9 = vmul.f32 1.442695, %v4697_v31 }
 0x90e   : > { %v6541_v11 = vpop.eup %6540  ;;  %4663 = vmax.xlane.f32.xlu1 %v4662_v57  ;;  %v4976_v48 = vpack.c.bf16 %v6535_v62, %v6539_v22 }
 0x90f   : > { %6546 = vpow2.f32 %v4770_v10  ;;  %v4977_v60 = vpack.c.bf16 %v6537_v16, %v6541_v11  ;;  %v10051_v53 = vadd.f32 %v6541_v11, %v6539_v22 }
 0x910   : > { %6548 = vpow2.f32 %v4772_v9  ;;  %5067 = vmatmul.bf16.gmra.mxu0 %v4976_v48 }
 0x911   : > { %5156 = vmatmul.bf16.gmra.mxu1 %v4977_v60 }
 0x912   : > { %v6543_v34 = vpop.eup %6542  ;;  %v4610_v19 = vpop.xlane.xlu2 %4609 }
 0x913   : > { %v6545_v46 = vpop.eup %6544  ;;  %v4698_v45 = vsub.f32 %v9880_v39, %v4610_v19  ;;  %v4699_v24 = vsub.f32 %v9887_v36, %v4610_v19  ;;  %v10057_v50 = vpop.f32.mrf.mxu3 }
 0x914   : > { %v4665_v62 = vmax.f32 %v10053_v4, %v10057_v50  ;;  %v10061_v16 = vadd.f32 %v6545_v46, %v6543_v34 }
 0x915   : > { %v6547_v38 = vpop.eup %6546  ;;  %v4774_v58 = vmul.f32 1.442695, %v4698_v45  ;;  %v4776_v54 = vmul.f32 1.442695, %v4699_v24 }
 0x916   : > { %v6549_v30 = vpop.eup %6548  ;;  %4666 = vmax.xlane.f32.xlu0 %v4665_v62  ;;  %v4978_v24 = vpack.c.bf16 %v6547_v38, %v6543_v34 }
 0x917   : > { %6550 = vpow2.f32 %v4774_v58  ;;  %v10063_v31 = vadd.f32 %v6549_v30, %v6547_v38  ;;  %v4979_v62 = vpack.c.bf16 %v6549_v30, %v6545_v46 }
 0x918   : > { %6552 = vpow2.f32 %v4776_v54 }
 0x91a   : > { %v4283_v57 = vpop.permute.xlu0 %4282  ;;  %v4613_v39 = vpop.xlane.xlu2 %4612 }
 0x91b   : > { %v4700_v36 = vsub.f32 %v9890_v63, %v4613_v39  ;;  %v4701_v22 = vsub.f32 %v9899_v44, %v4613_v39  ;;  %5847 = vmatmul.msk.bf16.gmra.mxu2 %vm762_vm2, %v4283_v57  ;;  %5863 = vmatmul.msk.bf16.gmra.mxu3 %vm762_vm2, %v4283_v57 }
 0x91c   : > { %v4619_v10 = vpop.xlane.xlu1 %4618 }
 0x91d   : > { %v6551_v9 = vpop.eup %6550  ;;  %v4778_v11 = vmul.f32 1.442695, %v4700_v36  ;;  %v4780_v48 = vmul.f32 1.442695, %v4701_v22  ;;  %v4704_v60 = vsub.f32 %v9914_v27, %v4619_v10  ;;  %v4705_v19 = vsub.f32 %v9920_v51, %v4619_v10 }
 0x91e   : > { %v6553_v45 = vpop.eup %6552 }
 0x91f   : > { %6554 = vpow2.f32 %v4778_v11  ;;  %v4786_v58 = vmul.f32 1.442695, %v4704_v60  ;;  %v4788_v63 = vmul.f32 1.442695, %v4705_v19  ;;  %v10071_v54 = vadd.f32 %v6553_v45, %v6551_v9 }
 0x920   : > { %6556 = vpow2.f32 %v4780_v48  ;;  %5072 = vmatmul.bf16.gmra.mxu0 %v4978_v24 }
 0x921   : > { %6558 = vpow2.f32 %v4786_v58  ;;  %5161 = vmatmul.bf16.gmra.mxu1 %v4979_v62 }
 0x922   : > { %6560 = vpow2.f32 %v4788_v63  ;;  %v4616_v44 = vpop.xlane.xlu2 %4615 }
 0x923   : > { %v4702_v57 = vsub.f32 %v9903_v25, %v4616_v44  ;;  %v4703_v27 = vsub.f32 %v9909_v55, %v4616_v44 }
 0x925   : > { %v6555_v39 = vpop.eup %6554  ;;  %v4782_v51 = vmul.f32 1.442695, %v4702_v57  ;;  %v4784_v36 = vmul.f32 1.442695, %v4703_v27 }
 0x926   : > { %v6557_v34 = vpop.eup %6556  ;;  %v4980_v24 = vpack.c.bf16 %v6555_v39, %v6551_v9 }
 0x927   : > { %v6559_v46 = vpop.eup %6558  ;;  %6562 = vpow2.f32 %v4782_v51  ;;  %v10075_v38 = vadd.f32 %v6557_v34, %v6555_v39  ;;  %v4981_v62 = vpack.c.bf16 %v6557_v34, %v6553_v45 }
 0x928   : > { %v6561_v30 = vpop.eup %6560  ;;  %6564 = vpow2.f32 %v4784_v36 }
 0x929   : > { %v10077_v22 = vadd.f32 %v6561_v30, %v6559_v46 }
 0x92a   : > { %v4622_v10 = vpop.xlane.xlu2 %4621 }
 0x92b   : > { %v4706_v11 = vsub.f32 %v9925_v7, %v4622_v10  ;;  %v4707_v48 = vsub.f32 %v9928_v28, %v4622_v10 }
 0x92d   : > { %v6563_v25 = vpop.eup %6562  ;;  %v4790_v60 = vmul.f32 1.442695, %v4706_v11  ;;  %v4792_v55 = vmul.f32 1.442695, %v4707_v48 }
 0x92e   : > { %v6565_v19 = vpop.eup %6564 }
 0x92f   : > { %6566 = vpow2.f32 %v4790_v60  ;;  %v10081_v58 = vadd.f32 %v6565_v19, %v6563_v25  ;;  %v4983_v48 = vpack.c.bf16 %v6561_v30, %v6565_v19 }
 0x930   : > { %6568 = vpow2.f32 %v4792_v55  ;;  %5077 = vmatmul.bf16.gmra.mxu0 %v4980_v24 }
 0x931   : > { %5166 = vmatmul.bf16.gmra.mxu1 %v4981_v62 }
 0x932   : > { %v4628_v63 = vpop.xlane.xlu2 %4627 }
 0x933   : > { %v4710_v44 = vsub.f32 %v9939_v13, %v4628_v63  ;;  %v4711_v57 = vsub.f32 %v9945_v8, %v4628_v63  ;;  %v4982_v8 = vpack.c.bf16 %v6559_v46, %v6563_v25 }
 0x935   : > { %v6567_v7 = vpop.eup %6566  ;;  %v4798_v27 = vmul.f32 1.442695, %v4710_v44  ;;  %v4800_v28 = vmul.f32 1.442695, %v4711_v57 }
 0x936   : > { %v6569_v51 = vpop.eup %6568 }
 0x937   : > { %6570 = vpow2.f32 %v4798_v27  ;;  %v10085_v36 = vadd.f32 %v6569_v51, %v6567_v7 }
 0x938   : > { %6572 = vpow2.f32 %v4800_v28 }
 0x93a   : > { %v4631_v9 = vpop.xlane.xlu2 %4630 }
 0x93b   : > { %v4712_v45 = vsub.f32 %v9949_v0, %v4631_v9  ;;  %v4713_v39 = vsub.f32 %v9951_v49, %v4631_v9 }
 0x93d   : > { %v10089_v34 = vpop.eup %6570  ;;  %v4802_v10 = vmul.f32 1.442695, %v4712_v45  ;;  %v4804_v11 = vmul.f32 1.442695, %v4713_v39 }
 0x93e   : > { %v10091_v13 = vpop.eup %6572 }
 0x93f   : > { %6574 = vpow2.f32 %v4802_v10  ;;  %v10095_v60 = vadd.f32 %v10091_v13, %v10089_v34 }
 0x940   : > { %6576 = vpow2.f32 %v4804_v11  ;;  %5082 = vmatmul.bf16.gmra.mxu0 %v4982_v8 }
 0x941   : > { %5171 = vmatmul.bf16.gmra.mxu1 %v4983_v48  ;;  %v4640_v55 = vpop.xlane.xlu1 %4639 }
 0x942   : > { %v4718_v0 = vsub.f32 %v9969_v59, %v4640_v55  ;;  %v4719_v49 = vsub.f32 %v9975_v61, %v4640_v55  ;;  %v10099_v24 = vpop.xlane.xlu2 %4633 }
 0x944   : > { %v4814_v62 = vmul.f32 1.442695, %v4718_v0  ;;  %v4816_v63 = vmul.f32 1.442695, %v4719_v49 }
 0x945   : > { %v10101_v44 = vpop.eup %6574  ;;  %v4625_v46 = vpop.xlane.xlu0 %4624 }
 0x946   : > { %v10103_v30 = vpop.eup %6576  ;;  %6578 = vpow2.f32 %v4814_v62  ;;  %v4708_v25 = vsub.f32 %v9933_v15, %v4625_v46  ;;  %v4709_v19 = vsub.f32 %v9935_v52, %v4625_v46 }
 0x947   : > { %6580 = vpow2.f32 %v4816_v63  ;;  %v10109_v59 = vadd.f32 %v10103_v30, %v10101_v44  ;;  %v10115_v39 = vpop.f32.mrf.mxu0  ;;  %v10119_v52 = vpop.f32.mrf.mxu1 }
 0x948   : > { %v4794_v61 = vmul.f32 1.442695, %v4708_v25  ;;  %v4796_v57 = vmul.f32 1.442695, %v4709_v19  ;;  %11109 = vst [vmem:[#allocation54_spill] sm:$0xff] %v10115_v39 }
 0x949   : > { %11110 = vst [vmem:[#allocation42_spill] sm:$0xff] %v10119_v52 }
 0x94a   : > { %6582 = vpow2.f32 %v4794_v61  ;;  %v4637_v27 = vpop.xlane.xlu2 %4636 }
 0x94b   : > { %6584 = vpow2.f32 %v4796_v57  ;;  %v4716_v28 = vsub.f32 %v9961_v35, %v4637_v27  ;;  %v4717_v9 = vsub.f32 %v9965_v26, %v4637_v27 }
 0x94c   : > { %v10113_v45 = vpop.eup %6578 }
 0x94d   : > { %v10117_v15 = vpop.eup %6580  ;;  %v4810_v10 = vmul.f32 1.442695, %v4716_v28  ;;  %v4812_v11 = vmul.f32 1.442695, %v4717_v9 }
 0x94e   : > { %v10123_v8 = vadd.f32 %v10117_v15, %v10113_v45 }
 0x94f   : > { %6586 = vpow2.f32 %v4810_v10 }
 0x950   : > { %v6583_v48 = vpop.eup %6582  ;;  %6588 = vpow2.f32 %v4812_v11 }
 0x951   : > { %v6585_v35 = vpop.eup %6584  ;;  %v4646_v55 = vpop.xlane.xlu1 %4645  ;;  %v4984_v26 = vpack.c.bf16 %v6583_v48, %v6567_v7 }
 0x952   : > { %v4722_v0 = vsub.f32 %v9991_v1, %v4646_v55  ;;  %v4723_v49 = vsub.f32 %v9997_v33, %v4646_v55  ;;  %v4643_v62 = vpop.xlane.xlu2 %4642  ;;  %v4985_v63 = vpack.c.bf16 %v6585_v35, %v6569_v51  ;;  %v10127_v46 = vadd.f32 %v6585_v35, %v6583_v48 }
 0x953   : > { %v4720_v25 = vsub.f32 %v9981_v37, %v4643_v62  ;;  %v4721_v19 = vsub.f32 %v9987_v20, %v4643_v62  ;;  %5087 = vmatmul.bf16.gmra.mxu0 %v4984_v26 }
 0x954   : > { %v4822_v61 = vmul.f32 1.442695, %v4722_v0  ;;  %v4824_v57 = vmul.f32 1.442695, %v4723_v49  ;;  %5176 = vmatmul.bf16.gmra.mxu1 %v4985_v63  ;;  %v5063_v27 = vpop.f32.mrf.mxu0 }
 0x955   : > { %v10131_v28 = vpop.eup %6586  ;;  %v4818_v7 = vmul.f32 1.442695, %v4720_v25  ;;  %v4820_v9 = vmul.f32 1.442695, %v4721_v19  ;;  %v5152_v1 = vpop.f32.mrf.mxu1 }
 0x956   : > { %v10133_v10 = vpop.eup %6588  ;;  %6590 = vpow2.f32 %v4822_v61  ;;  %v10135_v33 = vadd.f32 %v5152_v1, %v5063_v27  ;;  %v4986_v61 = vpack.c.bf16 %v10101_v44, %v10089_v34  ;;  %v4715_v1 = vsub.f32 %v9957_v32, %v10099_v24 }
 0x957   : > { %6592 = vpow2.f32 %v4824_v57  ;;  %v10139_v37 = vadd.f32 %v10133_v10, %v10131_v28  ;;  %v4714_v57 = vsub.f32 %v9955_v47, %v10099_v24 }
 0x958   : > { %11111 = vst [vmem:[#allocation95_spill] sm:$0xff] %v10135_v33  ;;  %6594 = vpow2.f32 %v4818_v7 }
 0x959   : > { %6596 = vpow2.f32 %v4820_v9  ;;  %v4649_v20 = vpop.xlane.xlu0 %4648  ;;  %v4987_v9 = vpack.c.bf16 %v10103_v30, %v10091_v13  ;;  %v4806_v47 = vmul.f32 1.442695, %v4714_v57 }
 0x95a   : > { %v4724_v51 = vsub.f32 %v10005_v23, %v4649_v20  ;;  %v4725_v11 = vsub.f32 %v10007_v29, %v4649_v20 }
 0x95c   : > { %v10143_v48 = vpop.eup %6590  ;;  %v4826_v35 = vmul.f32 1.442695, %v4724_v51  ;;  %v4828_v55 = vmul.f32 1.442695, %v4725_v11  ;;  %v10239_v39 = vpop.f32.mrf.mxu0 }
 0x95d   : > { %v10145_v26 = vpop.eup %6592  ;;  %11112 = vst [vmem:[#allocation37_spill] sm:$0xff] %v10239_v39 }
 0x95e   : > { %v10147_v0 = vpop.eup %6594  ;;  %6598 = vpow2.f32 %v4826_v35  ;;  %v10151_v49 = vadd.f32 %v10145_v26, %v10143_v48 }
 0x95f   : > { %v10153_v62 = vpop.eup %6596  ;;  %6600 = vpow2.f32 %v4828_v55 }
 0x960   : > { %v10155_v63 = vpop.f32.mrf.mxu2  ;;  %v10157_v23 = vpop.f32.mrf.mxu3  ;;  %v10161_v29 = vadd.f32 %v10153_v62, %v10147_v0 }
 0x961   : > { %v4668_v25 = vmax.f32 %v10155_v63, %v10157_v23  ;;  %v4652_v19 = vpop.xlane.xlu2 %4651 }
 0x962   : > { %v4726_v27 = vsub.f32 %v10011_v43, %v4652_v19  ;;  %v4727_v7 = vsub.f32 %v10015_v41, %v4652_v19  ;;  %v4808_v41 = vmul.f32 1.442695, %v4715_v1 }
 0x963   : > { %4669 = vmax.xlane.f32.xlu2 %v4668_v25  ;;  %5092 = vmatmul.bf16.gmra.mxu0 %v4986_v61 }
 0x964   : > { %v10175_v20 = vpop.eup %6598  ;;  %v4830_v51 = vmul.f32 1.442695, %v4726_v27  ;;  %v4832_v11 = vmul.f32 1.442695, %v4727_v7  ;;  %5181 = vmatmul.bf16.gmra.mxu1 %v4987_v9 }
 0x965   : > { %v10177_v34 = vpop.eup %6600 }
 0x966   : > { %6602 = vpow2.f32 %v4830_v51  ;;  %v10181_v43 = vadd.f32 %v10177_v34, %v10175_v20 }
 0x967   : > { %6604 = vpow2.f32 %v4832_v11 }
 0x968   : > { %v10183_v13 = vpop.f32.mrf.mxu2  ;;  %v10185_v32 = vpop.f32.mrf.mxu3  ;;  %6606 = vpow2.f32 %v4806_v47 }
 0x969   : > { %v4671_v24 = vmax.f32 %v10183_v13, %v10185_v32  ;;  %v4655_v44 = vpop.xlane.xlu1 %4654  ;;  %6608 = vpow2.f32 %v4808_v41 }
 0x96a   : > { %v4728_v30 = vsub.f32 %v10019_v17, %v4655_v44  ;;  %v4729_v35 = vsub.f32 %v10023_v18, %v4655_v44 }
 0x96b   : > { %4672 = vmax.xlane.f32.xlu1 %v4671_v24 }
 0x96c   : > { %v10191_v55 = vpop.eup %6602  ;;  %v4834_v25 = vmul.f32 1.442695, %v4728_v30  ;;  %v4836_v19 = vmul.f32 1.442695, %v4729_v35 }
 0x96d   : > { %v10193_v61 = vpop.eup %6604 }
 0x96e   : > { %6610 = vpow2.f32 %v4834_v25  ;;  %v10197_v57 = vadd.f32 %v10193_v61, %v10191_v55  ;;  %v6607_v27 = vpop.eup %6606 }
 0x96f   : > { %6612 = vpow2.f32 %v4836_v19  ;;  %v6609_v7 = vpop.eup %6608  ;;  %v4988_v17 = vpack.c.bf16 %v10131_v28, %v6607_v27 }
 0x970   : > { %v4989_v51 = vpack.c.bf16 %v10133_v10, %v6609_v7 }
 0x971   : > { %v4658_v9 = vpop.xlane.xlu0 %4657 }
 0x972   : > { %v4730_v18 = vsub.f32 %v10027_v56, %v4658_v9  ;;  %v4731_v1 = vsub.f32 %v10029_v2, %v4658_v9 }
 0x973   : > { %5097 = vmatmul.bf16.gmra.mxu0 %v4988_v17 }
 0x974   : > { %v10203_v11 = vpop.eup %6610  ;;  %v4838_v47 = vmul.f32 1.442695, %v4730_v18  ;;  %v4840_v41 = vmul.f32 1.442695, %v4731_v1  ;;  %5186 = vmatmul.bf16.gmra.mxu1 %v4989_v51 }
 0x975   : > { %v10205_v24 = vpop.eup %6612  ;;  %v10207_v44 = vpop.f32.mrf.mxu2 }
 0x976   : > { %v10209_v30 = vpop.f32.mrf.mxu3  ;;  %6614 = vpow2.f32 %v4838_v47  ;;  %v10215_v2 = vadd.f32 %v10205_v24, %v10203_v11 }
 0x977   : > { %v4674_v56 = vmax.f32 %v10207_v44, %v10209_v30  ;;  %6616 = vpow2.f32 %v4840_v41 }
 0x979   : > { %4675 = vmax.xlane.f32.xlu0 %v4674_v56  ;;  %v4661_v28 = vpop.xlane.xlu2 %4660 }
 0x97a   : > { %v4732_v10 = vsub.f32 %v10033_v14, %v4661_v28  ;;  %v4733_v35 = vsub.f32 %v10037_v5, %v4661_v28  ;;  %v4990_v5 = vpack.c.bf16 %v10147_v0, %v10113_v45  ;;  %v4991_v28 = vpack.c.bf16 %v10153_v62, %v10117_v15 }
 0x97c   : > { %v10219_v25 = vpop.eup %6614  ;;  %v4842_v19 = vmul.f32 1.442695, %v4732_v10  ;;  %v4844_v9 = vmul.f32 1.442695, %v4733_v35 }
 0x97d   : > { %v10221_v17 = vpop.eup %6616  ;;  %v10223_v18 = vpop.f32.mrf.mxu2 }
 0x97e   : > { %v10225_v1 = vpop.f32.mrf.mxu3  ;;  %6618 = vpow2.f32 %v4842_v19  ;;  %v10231_v47 = vadd.f32 %v10221_v17, %v10219_v25 }
 0x97f   : > { %v4677_v51 = vmax.f32 %v10223_v18, %v10225_v1  ;;  %6620 = vpow2.f32 %v4844_v9  ;;  %v10241_v9 = vpop.f32.mrf.mxu1 }
 0x980   : > { %11113 = vst [vmem:[#allocation33_spill] sm:$0xff] %v10241_v9 }
 0x981   : > { %4678 = vmax.xlane.f32.xlu2 %v4677_v51  ;;  %v4664_v14 = vpop.xlane.xlu1 %4663  ;;  %v4920_v51 = vadd.f32 %v6609_v7, %v6607_v27  ;;  %v4992_v7 = vpack.c.bf16 %v10175_v20, %v10143_v48  ;;  %v4994_v20 = vpack.c.bf16 %v10203_v11, %v10191_v55 }
 0x982   : > { %v4734_v41 = vsub.f32 %v10043_v3, %v4664_v14  ;;  %v4735_v56 = vsub.f32 %v10047_v12, %v4664_v14 }
 0x983   : > { %5102 = vmatmul.bf16.gmra.mxu0 %v4990_v5 }
 0x984   : > { %v6619_v10 = vpop.eup %6618  ;;  %v4846_v35 = vmul.f32 1.442695, %v4734_v41  ;;  %v4848_v19 = vmul.f32 1.442695, %v4735_v56  ;;  %5191 = vmatmul.bf16.gmra.mxu1 %v4991_v28 }
 0x985   : > { %v6621_v52 = vpop.eup %6620 }
 0x986   : > { %6622 = vpow2.f32 %v4846_v35  ;;  %v10243_v45 = vadd.f32 %v6621_v52, %v6619_v10 }
 0x987   : > { %6624 = vpow2.f32 %v4848_v19 }
 0x989   : > { %4921 = vadd.xlane.f32.xlu2 %v4920_v51  ;;  %v4667_v3 = vpop.xlane.xlu0 %4666 }
 0x98a   : > { %v4736_v12 = vsub.f32 %v10053_v4, %v4667_v3  ;;  %v4737_v15 = vsub.f32 %v10057_v50, %v4667_v3  ;;  %v4993_v4 = vpack.c.bf16 %v10177_v34, %v10145_v26  ;;  %v4995_v34 = vpack.c.bf16 %v10205_v24, %v10193_v61 }
 0x98b   : > { %v4996_v61 = vpack.c.bf16 %v6619_v10, %v10219_v25  ;;  %v4997_v24 = vpack.c.bf16 %v6621_v52, %v10221_v17 }
 0x98c   : > { %v6623_v0 = vpop.eup %6622  ;;  %v4850_v62 = vmul.f32 1.442695, %v4736_v12  ;;  %v4852_v14 = vmul.f32 1.442695, %v4737_v15 }
 0x98d   : > { %v6625_v5 = vpop.eup %6624  ;;  %v5068_v41 = vpop.f32.mrf.mxu0 }
 0x98e   : > { %6626 = vpow2.f32 %v4850_v62  ;;  %v5157_v56 = vpop.f32.mrf.mxu1  ;;  %v10247_v28 = vadd.f32 %v6625_v5, %v6623_v0 }
 0x98f   : > { %6628 = vpow2.f32 %v4852_v14  ;;  %v10249_v27 = vadd.f32 %v5157_v56, %v5068_v41 }
 0x991   : > { %11114 = vst [vmem:[#allocation94_spill] sm:$0xff] %v10249_v27 }
 0x993   : > { %5107 = vmatmul.bf16.gmra.mxu0 %v4992_v7 }
 0x994   : > { %v6627_v50 = vpop.eup %6626  ;;  %5196 = vmatmul.bf16.gmra.mxu1 %v4993_v4 }
 0x995   : > { %v6629_v35 = vpop.eup %6628  ;;  %v10255_v19 = vpop.f32.mrf.mxu0 }
 0x996   : > { %v10257_v51 = vpop.f32.mrf.mxu1  ;;  %v10259_v3 = vadd.f32 %v6629_v35, %v6627_v50 }
 0x997   : > { %11115 = vst [vmem:[#allocation6_spill] sm:$0xff] %v10257_v51 }
 0x99d   : > { %v5073_v12 = vpop.f32.mrf.mxu0 }
 0x99e   : > { %v5162_v15 = vpop.f32.mrf.mxu1  ;;  %v10261_v62 = vpop.f32.mrf.mxu2 }
 0x99f   : > { %v10263_v14 = vadd.f32 %v5162_v15, %v5073_v12  ;;  %v10265_v48 = vpop.f32.mrf.mxu3 }
 0x9a0   : > { %v4680_v26 = vmax.f32 %v10261_v62, %v10265_v48 }
 0x9a2   : > { %4681 = vmax.xlane.f32.xlu1 %v4680_v26 }
 0x9a3   : > { %5112 = vmatmul.bf16.gmra.mxu0 %v4994_v20 }
 0x9a4   : > { %5201 = vmatmul.bf16.gmra.mxu1 %v4995_v34 }
 0x9a5   : > { %v10273_v41 = vpop.f32.mrf.mxu0 }
 0x9a6   : > { %v10275_v56 = vpop.f32.mrf.mxu1  ;;  %v10277_v7 = vpop.f32.mrf.mxu2 }
 0x9a7   : > { %v10279_v4 = vpop.f32.mrf.mxu3 }
 0x9a8   : > { %v4683_v12 = vmax.f32 %v10277_v7, %v10279_v4 }
 0x9aa   : > { %4915 = vadd.xlane.f32.xlu1 %v10095_v60  ;;  %4684 = vmax.xlane.f32.xlu0 %v4683_v12 }
 0x9ad   : > { %v5078_v55 = vpop.f32.mrf.mxu0 }
 0x9ae   : > { %v5167_v11 = vpop.f32.mrf.mxu1 }
 0x9af   : > { %v10284_v15 = vadd.f32 %v5167_v11, %v5078_v55  ;;  %v4998_v55 = vpack.c.bf16 %v6627_v50, %v6623_v0  ;;  %v4999_v11 = vpack.c.bf16 %v6629_v35, %v6625_v5 }
 0x9b2   : > { %4924 = vadd.xlane.f32.xlu1 %v10139_v37  ;;  %4918 = vadd.xlane.f32.xlu0 %v10109_v59 }
 0x9b3   : > { %5117 = vmatmul.bf16.gmra.mxu0 %v4996_v61 }
 0x9b4   : > { %5206 = vmatmul.bf16.gmra.mxu1 %v4997_v24 }
 0x9b5   : > { %v10290_v26 = vpop.f32.mrf.mxu0 }
 0x9b6   : > { %v10292_v20 = vpop.f32.mrf.mxu1 }
 0x9bd   : > { %v5083_v60 = vpop.f32.mrf.mxu0 }
 0x9be   : > { %v5172_v34 = vpop.f32.mrf.mxu1 }
 0x9bf   : > { %v10294_v12 = vadd.f32 %v5172_v34, %v5083_v60 }
 0x9c3   : > { %5122 = vmatmul.bf16.gmra.mxu0 %v4998_v55 }
 0x9c4   : > { %5211 = vmatmul.bf16.gmra.mxu1 %v4999_v11 }
 0x9c5   : > { %v5085_v25 = vpop.f32.mrf.mxu0 }
 0x9c6   : > { %v5174_v37 = vpop.f32.mrf.mxu1 }
 0x9c7   : > { %v10296_v10 = vadd.f32 %v5174_v37, %v5085_v25 }
 0x9d0   : > { %v5088_v59 = vpop.f32.mrf.mxu0 }
 0x9d1   : > { %v5177_v52 = vpop.f32.mrf.mxu1 }
 0x9d2   : > { %v10298_v17 = vadd.f32 %v5177_v52, %v5088_v59 }
 0x9d6   : > { %v4670_v61 = vpop.xlane.xlu2 %4669 }
 0x9d7   : > { %v4738_v21 = vsub.f32 %v10155_v63, %v4670_v61  ;;  %v4739_v60 = vsub.f32 %v10157_v23, %v4670_v61 }
 0x9d8   : > { %v5090_v24 = vpop.f32.mrf.mxu0 }
 0x9d9   : > { %v5179_v33 = vpop.f32.mrf.mxu1  ;;  %v4854_v0 = vmul.f32 1.442695, %v4738_v21  ;;  %v4856_v5 = vmul.f32 1.442695, %v4739_v60 }
 0x9da   : > { %v10302_v34 = vadd.f32 %v5179_v33, %v5090_v24 }
 0x9db   : > { %6630 = vpow2.f32 %v4854_v0 }
 0x9dc   : > { %6632 = vpow2.f32 %v4856_v5 }
 0x9de   : > { %v4673_v50 = vpop.xlane.xlu1 %4672 }
 0x9df   : > { %v4740_v35 = vsub.f32 %v10183_v13, %v4673_v50  ;;  %v4741_v55 = vsub.f32 %v10185_v32, %v4673_v50 }
 0x9e0   : > { %v10306_v11 = vpop.f32.mrf.mxu0 }
 0x9e1   : > { %v4858_v25 = vmul.f32 1.442695, %v4740_v35  ;;  %v4860_v37 = vmul.f32 1.442695, %v4741_v55  ;;  %v10308_v59 = vpop.f32.mrf.mxu1  ;;  %v6631_v63 = vpop.eup %6630 }
 0x9e2   : > { %v6633_v33 = vpop.eup %6632 }
 0x9e3   : > { %6634 = vpow2.f32 %v4858_v25 }
 0x9e4   : > { %6636 = vpow2.f32 %v4860_v37 }
 0x9e8   : > { %v10310_v23 = vpop.f32.mrf.mxu0 }
 0x9e9   : > { %v6635_v21 = vpop.eup %6634  ;;  %v10312_v52 = vpop.f32.mrf.mxu1 }
 0x9ea   : > { %v6637_v13 = vpop.eup %6636  ;;  %v5000_v61 = vpack.c.bf16 %v6635_v21, %v6631_v63 }
 0x9eb   : > { %v5001_v24 = vpack.c.bf16 %v6637_v13, %v6633_v33  ;;  %v4959_v60 = vadd.f32 %v6637_v13, %v6635_v21 }
 0x9ec   : > { %v4676_v32 = vpop.xlane.xlu0 %4675  ;;  %5127 = vmatmul.bf16.gmra.mxu0 %v5000_v61 }
 0x9ed   : > { %v4742_v0 = vsub.f32 %v10207_v44, %v4676_v32  ;;  %v4743_v50 = vsub.f32 %v10209_v30, %v4676_v32  ;;  %5216 = vmatmul.bf16.gmra.mxu1 %v5001_v24  ;;  %4960 = vadd.xlane.f32.xlu0 %v4959_v60 }
 0x9ef   : > { %v4862_v5 = vmul.f32 1.442695, %v4742_v0  ;;  %v4864_v35 = vmul.f32 1.442695, %v4743_v50 }
 0x9f0   : > { %v10316_v55 = vpop.f32.mrf.mxu0 }
 0x9f1   : > { %6638 = vpow2.f32 %v4862_v5  ;;  %v10318_v25 = vpop.f32.mrf.mxu1 }
 0x9f2   : > { %6640 = vpow2.f32 %v4864_v35 }
 0x9f4   : > { %v4679_v37 = vpop.xlane.xlu2 %4678 }
 0x9f5   : > { %v4744_v9 = vsub.f32 %v10223_v18, %v4679_v37  ;;  %v4745_v21 = vsub.f32 %v10225_v1, %v4679_v37  ;;  %v4956_v37 = vadd.f32 %v6633_v33, %v6631_v63 }
 0x9f7   : > { %v6639_v13 = vpop.eup %6638  ;;  %v4866_v44 = vmul.f32 1.442695, %v4744_v9  ;;  %v4868_v39 = vmul.f32 1.442695, %v4745_v21 }
 0x9f8   : > { %v6641_v30 = vpop.eup %6640  ;;  %v10322_v61 = vpop.f32.mrf.mxu0 }
 0x9f9   : > { %6642 = vpow2.f32 %v4866_v44  ;;  %v4962_v32 = vadd.f32 %v6641_v30, %v6639_v13  ;;  %v10324_v24 = vpop.f32.mrf.mxu1 }
 0x9fa   : > { %6644 = vpow2.f32 %v4868_v39 }
 0x9fb   : > { %4963 = vadd.xlane.f32.xlu2 %v4962_v32 }
 0x9ff   : > { %v6643_v60 = vpop.eup %6642 }
 0xa00   : > { %v6645_v0 = vpop.eup %6644  ;;  %v5002_v50 = vpack.c.bf16 %v6643_v60, %v6639_v13  ;;  %v5103_v5 = vpop.f32.mrf.mxu0 }
 0xa01   : > { %v4965_v35 = vadd.f32 %v6645_v0, %v6643_v60  ;;  %v5003_v18 = vpack.c.bf16 %v6645_v0, %v6641_v30  ;;  %v5192_v27 = vpop.f32.mrf.mxu1 }
 0xa02   : > { %5132 = vmatmul.bf16.gmra.mxu0 %v5002_v50  ;;  %v10326_v1 = vadd.f32 %v5192_v27, %v5103_v5 }
 0xa03   : > { %4966 = vadd.xlane.f32.xlu1 %v4965_v35  ;;  %5221 = vmatmul.bf16.gmra.mxu1 %v5003_v18 }
 0xa08   : > { %v5105_v9 = vpop.f32.mrf.mxu0 }
 0xa09   : > { %v5194_v21 = vpop.f32.mrf.mxu1 }
 0xa0a   : > { %v10328_v44 = vadd.f32 %v5194_v21, %v5105_v9 }
 0xa0b   : > { %4957 = vadd.xlane.f32.xlu1 %v4956_v37 }
 0xa10   : > { %v5108_v39 = vpop.f32.mrf.mxu0 }
 0xa11   : > { %v5197_v32 = vpop.f32.mrf.mxu1 }
 0xa12   : > { %v10330_v51 = vadd.f32 %v5197_v32, %v5108_v39 }
 0xa13   : > { %4906 = vadd.xlane.f32.xlu1 %v10077_v22 }
 0xa15   : > { %v4682_v13 = vpop.xlane.xlu1 %4681 }
 0xa16   : > { %v4746_v30 = vsub.f32 %v10261_v62, %v4682_v13  ;;  %v4747_v27 = vsub.f32 %v10265_v48, %v4682_v13 }
 0xa18   : > { %v4870_v60 = vmul.f32 1.442695, %v4746_v30  ;;  %v4872_v0 = vmul.f32 1.442695, %v4747_v27  ;;  %v5110_v50 = vpop.f32.mrf.mxu0  ;;  %v4922_v30 = vpop.xlane.xlu2 %4921 }
 0xa19   : > { %v5199_v5 = vpop.f32.mrf.mxu1 }
 0xa1a   : > { %6646 = vpow2.f32 %v4870_v60  ;;  %v10335_v63 = vadd.f32 %v5199_v5, %v5110_v50 }
 0xa1b   : > { %4948 = vadd.xlane.f32.xlu1 %v10243_v45  ;;  %6648 = vpow2.f32 %v4872_v0 }
 0xa1d   : > { %v4685_v33 = vpop.xlane.xlu0 %4684  ;;  %v4916_v35 = vpop.xlane.xlu1 %4915 }
 0xa1e   : > { %v4748_v18 = vsub.f32 %v10277_v7, %v4685_v33  ;;  %v4749_v22 = vsub.f32 %v10279_v4, %v4685_v33 }
 0xa20   : > { %v6647_v9 = vpop.eup %6646  ;;  %v4874_v62 = vmul.f32 1.442695, %v4748_v18  ;;  %v4876_v37 = vmul.f32 1.442695, %v4749_v22  ;;  %v5113_v48 = vpop.f32.mrf.mxu0 }
 0xa21   : > { %v6649_v21 = vpop.eup %6648  ;;  %v5202_v39 = vpop.f32.mrf.mxu1 }
 0xa22   : > { %6650 = vpow2.f32 %v4874_v62  ;;  %v10340_v32 = vadd.f32 %v5202_v39, %v5113_v48  ;;  %v4968_v13 = vadd.f32 %v6649_v21, %v6647_v9  ;;  %v5185_v39 = vadd.f32 %v10312_v52, %v10310_v23 }
 0xa23   : > { %4897 = vadd.xlane.f32.xlu1 %v10071_v54  ;;  %6652 = vpow2.f32 %v4876_v37  ;;  %v5190_v54 = vadd.f32 %v10324_v24, %v10322_v61 }
 0xa24   : > { %4969 = vadd.xlane.f32.xlu0 %v4968_v13 }
 0xa25   : > { %v4925_v45 = vpop.xlane.xlu1 %4924  ;;  %v4919_v50 = vpop.xlane.xlu0 %4918 }
 0xa26   : > { %6654 = vrcp.f32 %v4925_v45 }
 0xa27   : > { %6656 = vrcp.f32 %v4922_v30 }
 0xa28   : > { %v6651_v7 = vpop.eup %6650  ;;  %v5115_v27 = vpop.f32.mrf.mxu0  ;;  %6658 = vrcp.f32 %v4919_v50 }
 0xa29   : > { %v6653_v4 = vpop.eup %6652  ;;  %v5204_v60 = vpop.f32.mrf.mxu1  ;;  %v5004_v0 = vpack.c.bf16 %v6651_v7, %v6647_v9  ;;  %v5188_v9 = vadd.f32 %v10318_v25, %v10316_v55  ;;  %6660 = vrcp.f32 %v4916_v35  ;;  %v5183_v25 = vadd.f32 %v10308_v59, %v10306_v11 }
 0xa2a   : > { %v10343_v5 = vadd.f32 %v5204_v60, %v5115_v27  ;;  %v4971_v33 = vadd.f32 %v6653_v4, %v6651_v7  ;;  %v5005_v18 = vpack.c.bf16 %v6653_v4, %v6649_v21 }
 0xa2b   : > { %4939 = vadd.xlane.f32.xlu1 %v10197_v57  ;;  %5137 = vmatmul.bf16.gmra.mxu0 %v5004_v0 }
 0xa2c   : > { %4972 = vadd.xlane.f32.xlu2 %v4971_v33  ;;  %5226 = vmatmul.bf16.gmra.mxu1 %v5005_v18  ;;  %v6655_v22 = vpop.eup %6654 }
 0xa2d   : > { %4909 = vadd.xlane.f32.xlu0 %v10085_v36  ;;  %v5279_v62 = vmul.f32 %v6655_v22, %v5190_v54  ;;  %v6657_v37 = vpop.eup %6656 }
 0xa2e   : > { %v5278_v61 = vmul.f32 %v6657_v37, %v5188_v9  ;;  %v6659_v24 = vpop.eup %6658 }
 0xa2f   : > { %5864 = vmatpush.xpose.msk.msrb.mxu2 %vm762_vm2, %v5279_v62  ;;  %v5277_v36 = vmul.f32 %v6659_v24, %v5185_v39  ;;  %v6661_v55 = vpop.eup %6660 }
 0xa30   : > { %v5118_v57 = vpop.f32.mrf.mxu0  ;;  %v5276_v23 = vmul.f32 %v6661_v55, %v5183_v25 }
 0xa31   : > { %v5207_v48 = vpop.f32.mrf.mxu1 }
 0xa32   : > { %v10352_v21 = vadd.f32 %v5207_v48, %v5118_v57 }
 0xa33   : > { %4888 = vadd.xlane.f32.xlu1 %v10013_v40  ;;  %5865 = vmatpush.xpose.msk.msrb.mxu2 %vm762_vm2, %v5278_v61 }
 0xa34   : > { %4912 = vadd.xlane.f32.xlu2 %v10127_v46 }
 0xa35   : > { %4951 = vadd.xlane.f32.xlu0 %v10247_v28 }
 0xa37   : > { %5866 = vmatpush.xpose.msk.msrb.mxu2 %vm762_vm2, %v5277_v36 }
 0xa38   : > { %v5120_v35 = vpop.f32.mrf.mxu0 }
 0xa39   : > { %v5209_v40 = vpop.f32.mrf.mxu1 }
 0xa3a   : > { %v10363_v13 = vadd.f32 %v5209_v40, %v5120_v35 }
 0xa3b   : > { %4930 = vadd.xlane.f32.xlu1 %v10161_v29  ;;  %5867 = vmatpush.xpose.msk.msrb.mxu2 %vm762_vm2, %v5276_v23 }
 0xa3c   : > { %4954 = vadd.xlane.f32.xlu2 %v10259_v3 }
 0xa3d   : > { %4900 = vadd.xlane.f32.xlu0 %v10075_v38 }
 0xa40   : > { %v5123_v46 = vpop.f32.mrf.mxu0 }
 0xa41   : > { %v5212_v28 = vpop.f32.mrf.mxu1 }
 0xa42   : > { %v10369_v52 = vadd.f32 %v5212_v28, %v5123_v46 }
 0xa43   : > { %4879 = vadd.xlane.f32.xlu1 %v9983_v6  ;;  %v6720_v6 = vld [vmem:[%s10505_s2] sm:$0xf] }
 0xa44   : > { %4903 = vadd.xlane.f32.xlu2 %v10081_v58 }
 0xa45   : > { %4942 = vadd.xlane.f32.xlu0 %v10215_v2 }
 0xa48   : > { %v5125_v11 = vpop.f32.mrf.mxu0 }
 0xa49   : > { %v5214_v59 = vpop.f32.mrf.mxu1 }
 0xa4a   : > { %v10374_v29 = vadd.f32 %v5214_v59, %v5125_v11 }
 0xa4c   : > { %4945 = vadd.xlane.f32.xlu2 %v10231_v47 }
 0xa4d   : > { %4891 = vadd.xlane.f32.xlu0 %v10061_v16 }
 0xa54   : > { %4894 = vadd.xlane.f32.xlu2 %v10063_v31 }
 0xa55   : > { %4933 = vadd.xlane.f32.xlu0 %v10151_v49 }
 0xa5c   : > { %4936 = vadd.xlane.f32.xlu2 %v10181_v43 }
 0xa5d   : > { %4882 = vadd.xlane.f32.xlu0 %v9993_v42 }
 0xa60   : > { %v4961_v49 = vpop.xlane.xlu0 %4960 }
 0xa64   : > { %4885 = vadd.xlane.f32.xlu2 %v10051_v53 }
 0xa69   : > { %v10388_v38 = vpop.f32.mrf.mxu0 }
 0xa6a   : > { %v10390_v16 = vpop.f32.mrf.mxu1 }
 0xa6c   : > { %4927 = vadd.xlane.f32.xlu2 %v10123_v8 }
 0xa6e   : > { %v4964_v53 = vpop.xlane.xlu2 %4963 }
 0xa71   : > { %5296 = vrot.lane.b32.xlu0 %v6720_v6, %s6787_s14  ;;  %v10392_v58 = vpop.f32.mrf.mxu0  ;;  %s5468_s14 = sshll.u32 %s5464_s11, 4  ;;  %s5469_s14 = int_to_ptr.hbm [resolvable:$true] %s5468_s14 }
 0xa72   : > { %v10394_v43 = vpop.f32.mrf.mxu1  ;;  %s6735_s20 = sshra.s32 %s5469_s14, 4  ;;  %s6736_s20 = int_to_ptr.hbm [resolvable:$true] %s6735_s20 }
 0xa73   : > { %s6737_s22 = scalar_lea.hbm %s6736_s20, 8  ;;  %p6742_p0 = scmp.lt.s32.totalorder %s6736_s20, %s10507_s4 }
 0xa74   : > { %p6738_p11 = scmp.ne.s32.totalorder %s6736_s20, %s6737_s22  ;;  %p6743_p1 = scmp.lt.s32.totalorder %s6741_s28, %s6737_s22 }
 0xa76   : > { %v4967_v31 = vpop.xlane.xlu1 %4966  ;;  %p6739_p12 = pnand %p6738_p11, %p6852_p5  ;;  %p6744_p2 = por %p6743_p1, %p6742_p0 }
 0xa78   : > { %p6740_p13 = pneg %p6739_p12 }
 0xa7a   : > { %p6745_p3 = pnand %p6744_p2, %p6740_p13 }
 0xa7e   : > { %v4958_v42 = vpop.xlane.xlu1 %4957 }
 0xa7f   : > { %v5133_v2 = vpop.f32.mrf.mxu0 }
 0xa80   : > { %v5222_v8 = vpop.f32.mrf.mxu1 }
 0xa81   : > { %v5223_v11 = vadd.f32 %v5222_v8, %v5133_v2  ;;  %v5170_v2 = vadd.f32 %v10292_v20, %v10290_v26 }
 0xa86   : > { %v4907_v3 = vpop.xlane.xlu1 %4906 }
 0xa87   : > { %v5135_v30 = vpop.f32.mrf.mxu0 }
 0xa88   : > { %v5224_v27 = vpop.f32.mrf.mxu1 }
 0xa89   : > { %v5225_v23 = vadd.f32 %v5224_v27, %v5135_v30 }
 0xa8e   : > { %v10398_v50 = vpop.xlane.xlu1 %4948 }
 0xa96   : > { %v4898_v24 = vpop.xlane.xlu1 %4897 }
 0xa97   : > { %v4970_v47 = vpop.xlane.xlu0 %4969 }
 0xa9e   : > { %v4940_v6 = vpop.xlane.xlu1 %4939 }
 0xa9f   : > { %v4973_v45 = vpop.xlane.xlu2 %4972 }
 0xaa0   : > { %v4910_v7 = vpop.xlane.xlu0 %4909 }
 0xaa7   : > { %v4913_v4 = vpop.xlane.xlu2 %4912 }
 0xaa8   : > { %6662 = vrcp.f32 %v4913_v4  ;;  %v10396_v60 = vpop.xlane.xlu0 %4951  ;;  %v5138_v0 = vpop.f32.mrf.mxu0 }
 0xaa9   : > { %v5227_v33 = vpop.f32.mrf.mxu1  ;;  %6664 = vrcp.f32 %v4910_v7 }
 0xaaa   : > { %6666 = vrcp.f32 %v4973_v45  ;;  %v5228_v55 = vadd.f32 %v5227_v33, %v5138_v0  ;;  %v5220_v45 = vadd.f32 %v10394_v43, %v10392_v58  ;;  %v4889_v58 = vpop.xlane.xlu1 %4888  ;;  %v5165_v33 = vadd.f32 %v10275_v56, %v10273_v41 }
 0xaab   : > { %6668 = vrcp.f32 %v4907_v3 }
 0xaac   : > { %6670 = vrcp.f32 %v4970_v47 }
 0xaad   : > { %6672 = vrcp.f32 %v4967_v31 }
 0xaae   : > { %v6663_v18 = vpop.eup %6662 }
 0xaaf   : > { %v4955_v54 = vpop.xlane.xlu2 %4954  ;;  %v5275_v22 = vmul.f32 %v6663_v18, %v10302_v34  ;;  %v6665_v62 = vpop.eup %6664 }
 0xab0   : > { %v4901_v37 = vpop.xlane.xlu0 %4900  ;;  %v5140_v9 = vpop.f32.mrf.mxu0  ;;  %v5274_v39 = vmul.f32 %v6665_v62, %v10298_v17 }
 0xab1   : > { %v5229_v57 = vpop.f32.mrf.mxu1  ;;  %5868 = vmatpush.xpose.msk.msrb.mxu2 %vm762_vm2, %v5275_v22  ;;  %v6667_v61 = vpop.eup %6666 }
 0xab2   : > { %v5230_v48 = vadd.f32 %v5229_v57, %v5140_v9  ;;  %v6669_v36 = vpop.eup %6668  ;;  %v4931_v9 = vpop.xlane.xlu1 %4930  ;;  %v11116_v57 = vld [vmem:[#allocation6_spill] sm:$0xff] }
 0xab3   : > { %v6671_v34 = vpop.eup %6670  ;;  %v5273_v40 = vmul.f32 %v6669_v36, %v10296_v10 }
 0xab4   : > { %v5295_v25 = vmul.f32 %v6667_v61, %v5230_v48  ;;  %v5294_v46 = vmul.f32 %v6671_v34, %v5228_v55  ;;  %v6673_v17 = vpop.eup %6672  ;;  %v5160_v48 = vadd.f32 %v11116_v57, %v10255_v19  ;;  %v6788_v61 = vmov 0  }
 0xab5   : > { %5869 = vmatpush.xpose.msk.msrb.mxu2 %vm762_vm2, %v5274_v39  ;;  %v5293_v59 = vmul.f32 %v6673_v17, %v5225_v23  ;;  %5948 = vset.pattern.permute.xlu2 %v6788_v61  ;;  %v11119_v17 = vld [vmem:[#allocation33_spill] sm:$0xff] }
 0xab6   : > { %5881 = vmatpush.xpose.msk.msra.mxu3 %vm762_vm2, %v5295_v25  ;;  %5949 = vset.pattern.permute.xlu0 %v6788_v61 }
 0xab7   : > { %v4904_v35 = vpop.xlane.xlu2 %4903 }
 0xab8   : > { %6674 = vrcp.f32 %v4904_v35  ;;  %v4943_v28 = vpop.xlane.xlu0 %4942  ;;  %v11117_v35 = vld [vmem:[#allocation94_spill] sm:$0xff] }
 0xab9   : > { %6676 = vrcp.f32 %v4964_v53  ;;  %5870 = vmatpush.xpose.msk.msrb.mxu2 %vm762_vm2, %v5273_v40 }
 0xaba   : > { %6678 = vrcp.f32 %v4901_v37  ;;  %5882 = vmatpush.xpose.msk.msra.mxu3 %vm762_vm2, %v5294_v46  ;;  %v4880_v36 = vpop.xlane.xlu1 %4879 }
 0xabb   : > { %6680 = vrcp.f32 %v4961_v49 }
 0xabc   : > { %6682 = vrcp.f32 %v4898_v24 }
 0xabd   : > { %6684 = vrcp.f32 %v4958_v42 }
 0xabe   : > { %v6675_v31 = vpop.eup %6674  ;;  %5883 = vmatpush.xpose.msk.msra.mxu3 %vm762_vm2, %v5293_v59  ;;  %6686 = vrcp.f32 %v4955_v54 }
 0xabf   : > { %v6677_v10 = vpop.eup %6676  ;;  %v4946_v47 = vpop.xlane.xlu2 %4945  ;;  %v5272_v53 = vmul.f32 %v6675_v31, %v10294_v12  ;;  %v5218_v12 = vadd.f32 %v10390_v16, %v10388_v38  ;;  %6688 = vrcp.f32 %v10396_v60 }
 0xac0   : > { %v6679_v3 = vpop.eup %6678  ;;  %v5292_v30 = vmul.f32 %v6677_v10, %v5223_v11  ;;  %v4892_v8 = vpop.xlane.xlu0 %4891 }
 0xac1   : > { %5871 = vmatpush.xpose.msk.msrb.mxu2 %vm762_vm2, %v5272_v53  ;;  %v6681_v49 = vpop.eup %6680  ;;  %v5271_v7 = vmul.f32 %v6679_v3, %v5170_v2 }
 0xac2   : > { %5884 = vmatpush.xpose.msk.msra.mxu3 %vm762_vm2, %v5292_v30  ;;  %v6683_v42 = vpop.eup %6682  ;;  %v5291_v27 = vmul.f32 %v6681_v49, %v5220_v45  ;;  %v11122_v49 = vld [vmem:[#allocation85_spill] sm:$0xff] }
 0xac3   : > { %v6685_v4 = vpop.eup %6684  ;;  %v5270_v20 = vmul.f32 %v6683_v42, %v10284_v15  ;;  %v11123_v42 = vld [vmem:[#allocation26_spill] sm:$0xff] }
 0xac4   : > { %v5290_v43 = vmul.f32 %v6685_v4, %v5218_v12  ;;  %v6687_v0 = vpop.eup %6686 }
 0xac5   : > { %5872 = vmatpush.xpose.msk.msrb.mxu2 %vm762_vm2, %v5271_v7  ;;  %v5289_v38 = vmul.f32 %v6687_v0, %v10374_v29  ;;  %v6689_v16 = vpop.eup %6688 }
 0xac6   : > { %5885 = vmatpush.xpose.msk.msra.mxu3 %vm762_vm2, %v5291_v27  ;;  %v5288_v62 = vmul.f32 %v6689_v16, %v10369_v52  ;;  %v5438_v52 = vld [vmem:[%s10506_s3] sm:$0xf] }
 0xac7   : > { %v4895_v26 = vpop.xlane.xlu2 %4894  ;;  %5441 = vperm.xlu2 %5948, %v5438_v52   ;;  %v11124_v27 = vld [vmem:[#allocation54_spill] sm:$0xff] }
 0xac8   : > { %6690 = vrcp.f32 %v4895_v26  ;;  %v4934_v60 = vpop.xlane.xlu0 %4933  ;;  %v4250_v4 = vadd.f32 %v11124_v27, %v11123_v42 }
 0xac9   : > { %5873 = vmatpush.xpose.msk.msrb.mxu2 %vm762_vm2, %v5270_v20  ;;  %6692 = vrcp.f32 %v4892_v8 }
 0xaca   : > { %5886 = vmatpush.xpose.msk.msra.mxu3 %vm762_vm2, %v5290_v43  ;;  %6694 = vrcp.f32 %v10398_v50 }
 0xacb   : > { %6696 = vrcp.f32 %v4889_v58 }
 0xacc   : > { %6698 = vrcp.f32 %v4946_v47 }
 0xacd   : > { %6700 = vrcp.f32 %v4943_v28  ;;  %v11118_v28 = vld [vmem:[#allocation37_spill] sm:$0xff] }
 0xace   : > { %v6691_v18 = vpop.eup %6690  ;;  %5887 = vmatpush.xpose.msk.msra.mxu3 %vm762_vm2, %v5289_v38  ;;  %6702 = vrcp.f32 %v4940_v6  ;;  %v5155_v11 = vadd.f32 %v11119_v17, %v11118_v28 }
 0xacf   : > { %v4937_v15 = vpop.xlane.xlu2 %4936  ;;  %v5269_v54 = vmul.f32 %v6691_v18, %v5165_v33  ;;  %v6693_v22 = vpop.eup %6692 }
 0xad0   : > { %v6695_v37 = vpop.eup %6694  ;;  %v5268_v41 = vmul.f32 %v6693_v22, %v10263_v14  ;;  %v4883_v24 = vpop.xlane.xlu0 %4882 }
 0xad1   : > { %5874 = vmatpush.xpose.msk.msrb.mxu2 %vm762_vm2, %v5269_v54  ;;  %v6697_v56 = vpop.eup %6696  ;;  %v5287_v29 = vmul.f32 %v6695_v37, %v10363_v13 }
 0xad2   : > { %5888 = vmatpush.xpose.msk.msra.mxu3 %vm762_vm2, %v5288_v62  ;;  %v6699_v50 = vpop.eup %6698  ;;  %v5267_v39 = vmul.f32 %v6697_v56, %v5160_v48 }
 0xad3   : > { %v5286_v13 = vmul.f32 %v6699_v50, %v10352_v21  ;;  %v6701_v19 = vpop.eup %6700 }
 0xad4   : > { %v5285_v55 = vmul.f32 %v6701_v19, %v10343_v5  ;;  %v6703_v25 = vpop.eup %6702 }
 0xad5   : > { %5875 = vmatpush.xpose.msk.msrb.mxu2 %vm762_vm2, %v5268_v41  ;;  %v5284_v21 = vmul.f32 %v6703_v25, %v10340_v32  ;;  %v11120_v32 = vld [vmem:[#allocation95_spill] sm:$0xff] }
 0xad6   : > { %5889 = vmatpush.xpose.msk.msra.mxu3 %vm762_vm2, %v5287_v29 }
 0xad7   : > { %v4886_v14 = vpop.xlane.xlu2 %4885 }
 0xad8   : > { %6704 = vrcp.f32 %v4886_v14 }
 0xad9   : > { %5876 = vmatpush.xpose.msk.msrb.mxu2 %vm762_vm2, %v5267_v39  ;;  %6706 = vrcp.f32 %v4883_v24 }
 0xada   : > { %5890 = vmatpush.xpose.msk.msra.mxu3 %vm762_vm2, %v5286_v13  ;;  %6708 = vrcp.f32 %v4937_v15 }
 0xadb   : > { %6710 = vrcp.f32 %v4880_v36 }
 0xadc   : > { %6712 = vrcp.f32 %v4934_v60 }
 0xadd   : > { %6714 = vrcp.f32 %v4931_v9 }
 0xade   : > { %v6705_v34 = vpop.eup %6704  ;;  %5891 = vmatpush.xpose.msk.msra.mxu3 %vm762_vm2, %v5285_v55 }
 0xadf   : > { %v5266_v40 = vmul.f32 %v6705_v34, %v11117_v35  ;;  %v6707_v23 = vpop.eup %6706  ;;  %v4928_v6 = vpop.xlane.xlu2 %4927 }
 0xae0   : > { %v6709_v46 = vpop.eup %6708  ;;  %v5265_v5 = vmul.f32 %v6707_v23, %v5155_v11  ;;  %6716 = vrcp.f32 %v4928_v6 }
 0xae1   : > { %5877 = vmatpush.xpose.msk.msrb.mxu2 %vm762_vm2, %v5266_v40  ;;  %v6711_v59 = vpop.eup %6710  ;;  %v5283_v31 = vmul.f32 %v6709_v46, %v10335_v63 }
 0xae2   : > { %5892 = vmatpush.xpose.msk.msra.mxu3 %vm762_vm2, %v5284_v21  ;;  %v6713_v10 = vpop.eup %6712  ;;  %v5264_v47 = vmul.f32 %v6711_v59, %v11120_v32 }
 0xae3   : > { %v5282_v53 = vmul.f32 %v6713_v10, %v10330_v51  ;;  %v6715_v3 = vpop.eup %6714  ;;  %v5297_v45 = vpop.permute.xlu0 %5296  ;;  %v11121_v51 = vld [vmem:[#allocation5_spill] sm:$0xff] }
 0xae4   : > { %v5281_v63 = vmul.f32 %v6715_v3, %v10328_v44  ;;  %v3064_v8 = vadd.f32 %v11122_v49, %v11121_v51  ;;  %v11125_v44 = vld [vmem:[#allocation42_spill] sm:$0xff] }
 0xae5   : > { %5878 = vmatpush.xpose.msk.msrb.mxu2 %vm762_vm2, %v5265_v5 }
 0xae6   : > { %5893 = vmatpush.xpose.msk.msra.mxu3 %vm762_vm2, %v5283_v31  ;;  %v6717_v30 = vpop.eup %6716  ;;  %v4251_v12 = vadd.f32 %v11125_v44, %v3064_v8 }
 0xae7   : > { %v5280_v2 = vmul.f32 %v6717_v30, %v10326_v1 }
 0xae9   : > { %5879 = vmatpush.xpose.msk.msrb.mxu2 %vm762_vm2, %v5264_v47 }
 0xaea   : > { %5894 = vmatpush.xpose.msk.msra.mxu3 %vm762_vm2, %v5282_v53 }
 0xaec   : > { %5880 = vmatmul.msk.f32.vlgmr.msrb.gmra.mxu2 %vm762_vm2, %v5297_v45 }
 0xaee   : > { %5895 = vmatpush.xpose.msk.msra.mxu3 %vm762_vm2, %v5281_v63 }
 0xaf2   : > { %5896 = vmatpush.xpose.msk.msra.mxu3 %vm762_vm2, %v5280_v2 }
 0xaf5   : > { %5897 = vmatmul.msk.f32.vlgmr.msra.gmra.mxu3 %vm762_vm2, %v5297_v45 }
 0xb21   : > { %v5442_v20 = vpop.permute.xlu2 %5441 }
 0xb6f   : > { %v5413_v7 = vpop.f32.mrf.mxu2 }
 0xb70   : > { %v5436_v1 = vadd.f32 %v5413_v7, %v4250_v4 }
 0xb72   : > { %v5444_v0 = vadd.f32 %v5442_v20, %v5436_v1 }
 0xb78   : > { %v5433_v58 = vpop.f32.mrf.mxu3 }
 0xb79   : > { %v5437_v26 = vadd.f32 %v5433_v58, %v4251_v12 }
 0xb7b   : > { %v5445_v43 = vadd.f32 %v5442_v20, %v5437_v26 }
 0xb7d   : > { %v5448_v38 = vrot.slane %v5445_v43, 4 }
 0xb7f   : > { %v5449_v16 = vsel %vm336_vm0, %v5444_v0, %v5448_v38 }
 0xb80   : > { %5451 = vst [vmem:[%s190_s12] sm:$0xff] %v5449_v16 }
 0xb81   : > { %6748 = shalt.err (!%p6745_p3)
}
 0xb82   : > { %5905 = dma.vmem_to_hbm [thread:$0]  (%p6852_p5), %s5467_s13, 128, %s5469_s14, %s5453_s19  }
 0xb83 PF: > { %p5911_p4 = scmp.ge.s32.totalorder %s6783_s18, 2  ;;  %s5480_s5 = sand.u32 1, %s6771_s15  }
 0xb84   : > { %s5481_s6 = scalar_lea.sflag [#allocation3], %s5480_s5 }
 0xb85   : > { %p5908_p7 = pnand %p5911_p4, %p6856_p6 }
 0xb87   : > { %p5909_p8 = pneg %p5908_p7 }
 0xb89   : > { %6766 = dma.done.wait (%p5909_p8), %s5481_s6, 128  }
 0xb8a   : > { %6768 = vsyncadd (%p5909_p8), %s5481_s6, 4294967168  ;;  %p14_p9 = scmp.ge.s32.totalorder %s6839_s21, 4   ;;  %s11126_s15 = smov %s6775_s16 }
 0xb8b   : > { %s11127_s16 = smov %s6779_s17  ;;  %s11128_s17 = smov %s6850_s24 }
 0xb8c   : > { %s11129_s18 = smov %s6839_s21  ;;  %16 = sbr.rel (!%p14_p9) target bundleno = 3 (0x3), region = 72 }
 0xb91   :  { %5487 = vsyncpa [#allocation3], 1 }
 0xb92   :  { %5489 = vsyncpa [#allocation3 + $0x1], 1 }

</bundles_post_ra>
